<compile_context>
chip_gen: v6e
topology: v6e:2x2x1
jax: 0.10.0
libtpu: 0.0.40
codegen_flags: <defaults>
</compile_context>

<pallas_src>
import jax
import jax.numpy as jnp
from jax.experimental import pallas as pl
from jax.experimental.pallas import tpu as pltpu


def _round_up(n, m):
    return ((n + m - 1) // m) * m


def _vmem_capacity_bytes():
    try:
        return int(pltpu.get_tpu_info().vmem_capacity_bytes)
    except Exception:
        return 64 << 20  # conservative default (v7x per-TensorCore VMEM)


# ----------------------------------------------------------------------------
# Kernel
# ----------------------------------------------------------------------------
def _mlp_kernel(x_ref, w1_ref, b1_ref, w2_ref, b2_ref, w3_ref, b3_ref,
                o_ref, acc_ref):
    k = pl.program_id(1)

    @pl.when(k == 0)
    def _():
        acc_ref[...] = jnp.zeros_like(acc_ref)

    # layer 1 partial product: (tile_b, tile_k) @ (tile_k, 1024) -> fp32 acc
    acc_ref[...] += jnp.dot(x_ref[...], w1_ref[...],
                            preferred_element_type=jnp.float32)

    @pl.when(k == pl.num_programs(1) - 1)
    def _():
        cd = w2_ref.dtype
        # layer-1 epilogue: bias + sigmoid in the compute dtype (bf16 on v6e/v7x)
        h1 = jax.nn.sigmoid(acc_ref[...].astype(cd) + b1_ref[...])
        # drop1: identity (eval mode)

        # layer 2: (tile_b, 1024) @ (1024, 256) -> fp32 acc
        h2 = jnp.dot(h1, w2_ref[...], preferred_element_type=jnp.float32)
        h2 = jax.nn.sigmoid(h2.astype(cd) + b2_ref[...])
        # drop2: identity (eval mode)

        # layer 3: (tile_b, 256) @ (256, E_p) -> fp32; final sigmoid in fp32
        h3 = jnp.dot(h2, w3_ref[...], preferred_element_type=jnp.float32)
        o_ref[...] = jax.nn.sigmoid(h3 + b3_ref[...]).astype(o_ref.dtype)


# ----------------------------------------------------------------------------
# One-time parameter preparation (hoisted out of the per-call forward path)
# ----------------------------------------------------------------------------
def prepare_params(params, *, compute_dtype=jnp.bfloat16, tile_k=None):
    """Pad + cast weights once; reuse the result across forward calls.

    params: (in,out) weights, (1,out) biases.  Returns (prepared, meta).
    """
    cd = jnp.dtype(compute_dtype)
    w1, b1, w2, b2, w3, b3 = (params[k] for k in ("w1", "b1", "w2", "b2", "w3", "b3"))
    U, H1 = w1.shape
    H2 = w2.shape[1]
    E = w3.shape[1]

    U_128 = _round_up(U, 128)
    if tile_k is None:
        tile_k = min(2048, U_128)          # K chunk streamed through VMEM
    tile_k = _round_up(min(tile_k, U_128), 128)
    U_p = _round_up(U, tile_k)             # lane/tile-dense padded user_num
    E_p = _round_up(E, 128)                # lane-dense padded exp_num

    prepared = {
        "w1": jnp.zeros((U_p, H1), cd).at[:U, :].set(w1.astype(cd)),
        "b1": b1.astype(cd).reshape(1, H1),
        "w2": w2.astype(cd),
        "b2": b2.astype(cd).reshape(1, H2),
        "w3": jnp.zeros((H2, E_p), cd).at[:, :E].set(w3.astype(cd)),
        "b3": jnp.zeros((1, E_p), jnp.float32).at[:, :E].set(
            b3.astype(jnp.float32).reshape(1, E)),
    }
    meta = dict(U=U, E=E, U_p=U_p, E_p=E_p, H1=H1, H2=H2,
                tile_k=tile_k, compute_dtype=cd)
    return prepared, meta


# ----------------------------------------------------------------------------
# Forward wrapper
# ----------------------------------------------------------------------------
def _pallas_forward(x_p, prepared, *, tile_b, tile_k, U_p, E_p, H1, H2,
                    out_dtype, vmem_limit, cost, single_buffer_weights):
    B_p = x_p.shape[0]
    num_b = B_p // tile_b
    num_k = U_p // tile_k

    wt_kwargs = {"pipeline_mode": pl.Buffered(1)} if single_buffer_weights else {}
    invariant = lambda shape: pl.BlockSpec(shape, lambda i, k: (0, 0), **wt_kwargs)

    return pl.pallas_call(
        _mlp_kernel,
        out_shape=jax.ShapeDtypeStruct((B_p, E_p), out_dtype),
        grid_spec=pltpu.PrefetchScalarGridSpec(
            num_scalar_prefetch=0,
            grid=(num_b, num_k),
            in_specs=[
                pl.BlockSpec((tile_b, tile_k), lambda i, k: (i, k)),  # x, streamed over K
                pl.BlockSpec((tile_k, H1), lambda i, k: (k, 0)),      # w1, streamed over K
                invariant((1, H1)),                                   # b1
                invariant((H1, H2)), invariant((1, H2)),              # layer 2 params
                invariant((H2, E_p)), invariant((1, E_p)),            # layer 3 params
            ],
            out_specs=pl.BlockSpec((tile_b, E_p), lambda i, k: (i, 0)),
            scratch_shapes=[pltpu.VMEM((tile_b, H1), jnp.float32)],   # layer-1 acc
        ),
        compiler_params=pltpu.CompilerParams(
            dimension_semantics=("parallel", "arbitrary"),
            vmem_limit_bytes=vmem_limit,
        ),
        cost_estimate=cost,
    )(x_p, prepared["w1"], prepared["b1"], prepared["w2"], prepared["b2"],
      prepared["w3"], prepared["b3"])


def exer_user_gnn_forward(x, prepared, meta, *, tile_b=None):
    """x: (B, user_num) float32.  prepared/meta: from prepare_params()."""
    cd = meta["compute_dtype"]
    U, E, U_p, E_p = meta["U"], meta["E"], meta["U_p"], meta["E_p"]
    H1, H2, tile_k = meta["H1"], meta["H2"], meta["tile_k"]
    B = x.shape[0]
    out_dtype = x.dtype

    # ---- batch tiling: multiples of 128; >=2 batch tiles when B allows so
    #      both v7x TensorCores get work via the "parallel" axis ----
    if tile_b is None:
        tile_b = min(512, _round_up(B, 128))
        while tile_b > 128 and _round_up(B, tile_b) // tile_b < 2:
            tile_b //= 2
    tile_b = max(16, _round_up(tile_b, 16))
    B_p = _round_up(B, tile_b)

    # ---- pad input (zero K columns contribute nothing; padded rows sliced) ----
    x_p = jnp.zeros((B_p, U_p), cd).at[:B, :U].set(x.astype(cd))

    # ---- explicit VMEM budget, clamped to the device's real capacity ----
    it = cd.itemsize
    oit = jnp.dtype(out_dtype).itemsize
    need = (
        2 * tile_b * tile_k * it            # x stream (double-buffered)
        + 2 * tile_k * H1 * it              # w1 stream (double-buffered)
        + 2 * (H1 * H2 + H2 * E_p) * it     # w2/w3 (worst case: double-buffered)
        + 2 * (H1 + H2 + E_p) * 4           # biases (overestimate as fp32)
        + 2 * tile_b * E_p * oit            # output tile (double-buffered)
        + tile_b * H1 * 4                   # fp32 accumulator scratch
        + tile_b * (H1 + H2 + E_p) * 4      # epilogue fp32 activations (upper bound)
        + tile_b * (H1 + H2) * it           # compute-dtype copies of h1/h2
    )
    vmem_cap = _vmem_capacity_bytes()
    vmem_limit = min(int(1.4 * need) + (8 << 20), int(0.85 * vmem_cap))
    vmem_limit = max(vmem_limit, 16 << 20)

    # ---- cost estimate for XLA scheduling around the custom call ----
    cost = pl.CostEstimate(
        flops=2 * B_p * (U_p * H1 + H1 * H2 + H2 * E_p),
        transcendentals=B_p * (H1 + H2 + E_p),
        bytes_accessed=(B_p * U_p + U_p * H1 + H1 * H2 + H2 * E_p) * it
        + (H1 + H2) * it + E_p * 4 + B_p * E_p * oit,
    )

    common = dict(tile_b=tile_b, tile_k=tile_k, U_p=U_p, E_p=E_p, H1=H1, H2=H2,
                  out_dtype=out_dtype, vmem_limit=vmem_limit, cost=cost)
    try:
        out_p = _pallas_forward(x_p, prepared, single_buffer_weights=True, **common)
    except Exception:
        # Fallback if this JAX build rejects Buffered(1) on grid-invariant specs.
        out_p = _pallas_forward(x_p, prepared, single_buffer_weights=False, **common)

    return out_p[:B, :E]


# ----------------------------------------------------------------------------
# Synthetic params + pure-JAX reference
# ----------------------------------------------------------------------------
def init_params(key, user_num, exp_num):
    """Deterministic synthetic parameters matching nn.Linear shapes.

    PyTorch: linear1 = Linear(user_num, 1024), linear2 = Linear(1024, 256),
             linear3 = Linear(256, exp_num).  Stored transposed as (in, out);
    biases as (1, out) for 2D VMEM tiles.
    """
    k1, k2, k3, k4, k5, k6 = jax.random.split(key, 6)
    s1 = 1.0 / jnp.sqrt(user_num)
    s2 = 1.0 / jnp.sqrt(1024.0)
    s3 = 1.0 / jnp.sqrt(256.0)
    return {
        "w1": jax.random.uniform(k1, (user_num, 1024), jnp.float32, -s1, s1),
        "b1": jax.random.uniform(k2, (1, 1024), jnp.float32, -s1, s1),
        "w2": jax.random.uniform(k3, (1024, 256), jnp.float32, -s2, s2),
        "b2": jax.random.uniform(k4, (1, 256), jnp.float32, -s2, s2),
        "w3": jax.random.uniform(k5, (256, exp_num), jnp.float32, -s3, s3),
        "b3": jax.random.uniform(k6, (1, exp_num), jnp.float32, -s3, s3),
    }


def reference_forward(x, params):
    """Pure-JAX fp32 reference (eval-mode dropout) for correctness checking."""
    h = jax.nn.sigmoid(x @ params["w1"] + params["b1"])
    h = jax.nn.sigmoid(h @ params["w2"] + params["b2"])
    return jax.nn.sigmoid(h @ params["w3"] + params["b3"])


if __name__ == "__main__":
    key = jax.random.PRNGKey(0)

    # ---- config 1: tiny shapes, single K tile / single batch tile ----
    user_num, exp_num, batch = 64, 32, 8
    pkey, xkey, key = jax.random.split(key, 3)
    params = init_params(pkey, user_num, exp_num)
    x = jax.random.normal(xkey, (batch, user_num), dtype=jnp.float32)
    ref = reference_forward(x, params)

    # Exact-mode check (fp32 on the MXU) -- tight tolerance vs fp32 reference.
    prep32, meta32 = prepare_params(params, compute_dtype=jnp.float32)
    out32 = jax.block_until_ready(exer_user_gnn_forward(x, prep32, meta32))
    assert out32.shape == (batch, exp_num)
    assert jnp.allclose(out32, ref, atol=1e-5, rtol=1e-5), "fp32 mismatch vs reference"

    # Performance-mode check (bf16 MXU inputs, fp32 accumulation).
    prep16, meta16 = prepare_params(params, compute_dtype=jnp.bfloat16)
    out16 = jax.block_until_ready(exer_user_gnn_forward(x, prep16, meta16))
    assert out16.shape == (batch, exp_num)
    assert float(jnp.max(jnp.abs(out16 - ref))) < 2e-2, "bf16 mismatch vs reference"

    # ---- config 2: exercises the K-reduction axis (3 K tiles) and 2 batch tiles ----
    user_num2, exp_num2, batch2 = 384, 40, 200
    pkey2, xkey2, key = jax.random.split(key, 3)
    params2 = init_params(pkey2, user_num2, exp_num2)
    x2 = jax.random.normal(xkey2, (batch2, user_num2), dtype=jnp.float32)
    ref2 = reference_forward(x2, params2)

    prep2_32, meta2_32 = prepare_params(params2, compute_dtype=jnp.float32, tile_k=128)
    out2_32 = jax.block_until_ready(exer_user_gnn_forward(x2, prep2_32, meta2_32))
    assert out2_32.shape == (batch2, exp_num2)
    assert jnp.allclose(out2_32, ref2, atol=1e-4, rtol=1e-4), "fp32 K-tiled mismatch"

    prep2_16, meta2_16 = prepare_params(params2, compute_dtype=jnp.bfloat16, tile_k=128)
    out2_16 = jax.block_until_ready(exer_user_gnn_forward(x2, prep2_16, meta2_16))
    assert out2_16.shape == (batch2, exp_num2)
    assert float(jnp.max(jnp.abs(out2_16 - ref2))) < 2e-2, "bf16 K-tiled mismatch"

    print("KERNEL_OK")
</pallas_src>

<mosaic_0001>
module attributes {stable_mosaic.version = 11 : i64} {
  func.func @_mlp_kernel(%arg0: i32, %arg1: i32, %arg2: memref<128x128xf32, #tpu.memory_space<vmem>>, %arg3: memref<128x1024xf32, #tpu.memory_space<vmem>>, %arg4: memref<1x1024xf32, #tpu.memory_space<vmem>>, %arg5: memref<1024x256xf32, #tpu.memory_space<vmem>>, %arg6: memref<1x256xf32, #tpu.memory_space<vmem>>, %arg7: memref<256x128xf32, #tpu.memory_space<vmem>>, %arg8: memref<1x128xf32, #tpu.memory_space<vmem>>, %arg9: memref<128x128xf32, #tpu.memory_space<vmem>>, %arg10: memref<128x1024xf32, #tpu.memory_space<vmem>>) attributes {dimension_semantics = [#tpu.dimension_semantics<parallel>, #tpu.dimension_semantics<arbitrary>], iteration_bounds = array<i64: 1, 1>, scalar_prefetch = 0 : i64, scratch_operands = 1 : i64, tpu.core_type = #tpu.core_type<tc>, window_params = [{transform_indices = @transform_0, window_bounds = array<i64: 128, 128>}, {transform_indices = @transform_1, window_bounds = array<i64: 128, 1024>}, {pipeline_mode = #tpu.pipeline_mode<synchronous>, transform_indices = @transform_2, window_bounds = array<i64: 1, 1024>}, {pipeline_mode = #tpu.pipeline_mode<synchronous>, transform_indices = @transform_3, window_bounds = array<i64: 1024, 256>}, {pipeline_mode = #tpu.pipeline_mode<synchronous>, transform_indices = @transform_4, window_bounds = array<i64: 1, 256>}, {pipeline_mode = #tpu.pipeline_mode<synchronous>, transform_indices = @transform_5, window_bounds = array<i64: 256, 128>}, {pipeline_mode = #tpu.pipeline_mode<synchronous>, transform_indices = @transform_6, window_bounds = array<i64: 1, 128>}, {transform_indices = @transform_7, window_bounds = array<i64: 128, 128>}]} {
    %c0_i32 = arith.constant 0 : i32
    %0 = arith.cmpi eq, %arg1, %c0_i32 : i32
    %1 = arith.extui %0 : i1 to i32
    %c0_i32_0 = arith.constant 0 : i32
    %2 = arith.cmpi ne, %1, %c0_i32_0 : i32
    scf.if %2 {
      %cst_10 = arith.constant 0.000000e+00 : f32
      %12 = vector.broadcast %cst_10 : f32 to vector<128x1024xf32>
      %c0_11 = arith.constant 0 : index
      %c0_12 = arith.constant 0 : index
      %13 = vector.load %arg10[%c0_11, %c0_12] : memref<128x1024xf32, #tpu.memory_space<vmem>>, vector<128x1024xf32>
      tpu.vector_store %arg10[%c0_11, %c0_12], %12 {strides = array<i32>} : memref<128x1024xf32, #tpu.memory_space<vmem>>, vector<128x1024xf32>,
    } else {
    }
    %c0 = arith.constant 0 : index
    %c0_1 = arith.constant 0 : index
    %3 = vector.load %arg10[%c0, %c0_1] : memref<128x1024xf32, #tpu.memory_space<vmem>>, vector<128x1024xf32>
    %c0_2 = arith.constant 0 : index
    %c0_3 = arith.constant 0 : index
    %4 = vector.load %arg2[%c0_2, %c0_3] : memref<128x128xf32, #tpu.memory_space<vmem>>, vector<128x128xf32>
    %c0_4 = arith.constant 0 : index
    %c0_5 = arith.constant 0 : index
    %5 = vector.load %arg3[%c0_4, %c0_5] : memref<128x1024xf32, #tpu.memory_space<vmem>>, vector<128x1024xf32>
    %cst = arith.constant dense<0.000000e+00> : vector<128x1024xf32>
    %6 = tpu.matmul %4, %5, %cst {dimension_numbers = #tpu.dot_dimension_numbers<[1], [0], [0], [1], [0, 0, 1, 1], [], []>} : vector<128x128xf32>, vector<128x1024xf32>, vector<128x1024xf32> -> vector<128x1024xf32>
    %7 = arith.addf %3, %6 : vector<128x1024xf32>
    %c0_6 = arith.constant 0 : index
    %c0_7 = arith.constant 0 : index
    %8 = vector.load %arg10[%c0_6, %c0_7] : memref<128x1024xf32, #tpu.memory_space<vmem>>, vector<128x1024xf32>
    tpu.vector_store %arg10[%c0_6, %c0_7], %7 {strides = array<i32>} : memref<128x1024xf32, #tpu.memory_space<vmem>>, vector<128x1024xf32>,
    %c0_i32_8 = arith.constant 0 : i32
    %9 = arith.cmpi eq, %arg1, %c0_i32_8 : i32
    %10 = arith.extui %9 : i1 to i32
    %c0_i32_9 = arith.constant 0 : i32
    %11 = arith.cmpi ne, %10, %c0_i32_9 : i32
    scf.if %11 {
      %c0_10 = arith.constant 0 : index
      %c0_11 = arith.constant 0 : index
      %12 = vector.load %arg10[%c0_10, %c0_11] : memref<128x1024xf32, #tpu.memory_space<vmem>>, vector<128x1024xf32>
      %c0_12 = arith.constant 0 : index
      %c0_13 = arith.constant 0 : index
      %13 = vector.load %arg4[%c0_12, %c0_13] : memref<1x1024xf32, #tpu.memory_space<vmem>>, vector<1x1024xf32>
      %14 = vector.broadcast %13 : vector<1x1024xf32> to vector<128x1024xf32>
      %15 = arith.addf %12, %14 : vector<128x1024xf32>
      %16 = arith.negf %15 : vector<128x1024xf32>
      %17 = math.exp %16 : vector<128x1024xf32>
      %cst_14 = arith.constant 1.000000e+00 : f32
      %18 = vector.broadcast %cst_14 : f32 to vector<128x1024xf32>
      %19 = arith.addf %18, %17 : vector<128x1024xf32>
      %20 = arith.divf %18, %19 : vector<128x1024xf32>
      %c0_15 = arith.constant 0 : index
      %c0_16 = arith.constant 0 : index
      %21 = vector.load %arg5[%c0_15, %c0_16] : memref<1024x256xf32, #tpu.memory_space<vmem>>, vector<1024x256xf32>
      %cst_17 = arith.constant dense<0.000000e+00> : vector<128x256xf32>
      %22 = tpu.matmul %20, %21, %cst_17 {dimension_numbers = #tpu.dot_dimension_numbers<[1], [0], [0], [1], [0, 0, 1, 1], [], []>} : vector<128x1024xf32>, vector<1024x256xf32>, vector<128x256xf32> -> vector<128x256xf32>
      %c0_18 = arith.constant 0 : index
      %c0_19 = arith.constant 0 : index
      %23 = vector.load %arg6[%c0_18, %c0_19] : memref<1x256xf32, #tpu.memory_space<vmem>>, vector<1x256xf32>
      %24 = vector.broadcast %23 : vector<1x256xf32> to vector<128x256xf32>
      %25 = arith.addf %22, %24 : vector<128x256xf32>
      %26 = arith.negf %25 : vector<128x256xf32>
      %27 = math.exp %26 : vector<128x256xf32>
      %cst_20 = arith.constant 1.000000e+00 : f32
      %28 = vector.broadcast %cst_20 : f32 to vector<128x256xf32>
      %29 = arith.addf %28, %27 : vector<128x256xf32>
      %30 = arith.divf %28, %29 : vector<128x256xf32>
      %c0_21 = arith.constant 0 : index
      %c0_22 = arith.constant 0 : index
      %31 = vector.load %arg7[%c0_21, %c0_22] : memref<256x128xf32, #tpu.memory_space<vmem>>, vector<256x128xf32>
      %cst_23 = arith.constant dense<0.000000e+00> : vector<128x128xf32>
      %32 = tpu.matmul %30, %31, %cst_23 {dimension_numbers = #tpu.dot_dimension_numbers<[1], [0], [0], [1], [0, 0, 1, 1], [], []>} : vector<128x256xf32>, vector<256x128xf32>, vector<128x128xf32> -> vector<128x128xf32>
      %c0_24 = arith.constant 0 : index
      %c0_25 = arith.constant 0 : index
      %33 = vector.load %arg8[%c0_24, %c0_25] : memref<1x128xf32, #tpu.memory_space<vmem>>, vector<1x128xf32>
      %34 = vector.broadcast %33 : vector<1x128xf32> to vector<128x128xf32>
      %35 = arith.addf %32, %34 : vector<128x128xf32>
      %36 = arith.negf %35 : vector<128x128xf32>
      %37 = math.exp %36 : vector<128x128xf32>
      %cst_26 = arith.constant 1.000000e+00 : f32
      %38 = vector.broadcast %cst_26 : f32 to vector<128x128xf32>
      %39 = arith.addf %38, %37 : vector<128x128xf32>
      %40 = arith.divf %38, %39 : vector<128x128xf32>
      %c0_27 = arith.constant 0 : index
      %c0_28 = arith.constant 0 : index
      %41 = vector.load %arg9[%c0_27, %c0_28] : memref<128x128xf32, #tpu.memory_space<vmem>>, vector<128x128xf32>
      tpu.vector_store %arg9[%c0_27, %c0_28], %40 {strides = array<i32>} : memref<128x128xf32, #tpu.memory_space<vmem>>, vector<128x128xf32>,
    } else {
    }
    return
  }
  func.func @transform_0(%arg0: i32, %arg1: i32) -> (i32, i32) {
    %c0_i32 = arith.constant 0 : i32
    return %arg0, %arg1 : i32, i32
  }
  func.func @transform_1(%arg0: i32, %arg1: i32) -> (i32, i32) {
    %c0_i32 = arith.constant 0 : i32
    %c0_i32_0 = arith.constant 0 : i32
    return %arg1, %c0_i32 : i32, i32
  }
  func.func @transform_2(%arg0: i32, %arg1: i32) -> (i32, i32) {
    %c0_i32 = arith.constant 0 : i32
    %c0_i32_0 = arith.constant 0 : i32
    %c0_i32_1 = arith.constant 0 : i32
    return %c0_i32, %c0_i32_0 : i32, i32
  }
  func.func @transform_3(%arg0: i32, %arg1: i32) -> (i32, i32) {
    %c0_i32 = arith.constant 0 : i32
    %c0_i32_0 = arith.constant 0 : i32
    %c0_i32_1 = arith.constant 0 : i32
    return %c0_i32, %c0_i32_0 : i32, i32
  }
  func.func @transform_4(%arg0: i32, %arg1: i32) -> (i32, i32) {
    %c0_i32 = arith.constant 0 : i32
    %c0_i32_0 = arith.constant 0 : i32
    %c0_i32_1 = arith.constant 0 : i32
    return %c0_i32, %c0_i32_0 : i32, i32
  }
  func.func @transform_5(%arg0: i32, %arg1: i32) -> (i32, i32) {
    %c0_i32 = arith.constant 0 : i32
    %c0_i32_0 = arith.constant 0 : i32
    %c0_i32_1 = arith.constant 0 : i32
    return %c0_i32, %c0_i32_0 : i32, i32
  }
  func.func @transform_6(%arg0: i32, %arg1: i32) -> (i32, i32) {
    %c0_i32 = arith.constant 0 : i32
    %c0_i32_0 = arith.constant 0 : i32
    %c0_i32_1 = arith.constant 0 : i32
    return %c0_i32, %c0_i32_0 : i32, i32
  }
  func.func @transform_7(%arg0: i32, %arg1: i32) -> (i32, i32) {
    %c0_i32 = arith.constant 0 : i32
    %c0_i32_0 = arith.constant 0 : i32
    return %arg0, %c0_i32 : i32, i32
  }
}

module attributes {stable_mosaic.version = 11 : i64} {
  func.func @_mlp_kernel(%arg0: i32, %arg1: i32, %arg2: memref<128x128xf32, #tpu.memory_space<vmem>>, %arg3: memref<128x1024xf32, #tpu.memory_space<vmem>>, %arg4: memref<1x1024xf32, #tpu.memory_space<vmem>>, %arg5: memref<1024x256xf32, #tpu.memory_space<vmem>>, %arg6: memref<1x256xf32, #tpu.memory_space<vmem>>, %arg7: memref<256x128xf32, #tpu.memory_space<vmem>>, %arg8: memref<1x128xf32, #tpu.memory_space<vmem>>, %arg9: memref<128x128xf32, #tpu.memory_space<vmem>>, %arg10: memref<128x1024xf32, #tpu.memory_space<vmem>>) attributes {dimension_semantics = [#tpu.dimension_semantics<parallel>, #tpu.dimension_semantics<arbitrary>], iteration_bounds = array<i64: 1, 1>, scalar_prefetch = 0 : i64, scratch_operands = 1 : i64, tpu.core_type = #tpu.core_type<tc>, window_params = [{transform_indices = @transform_0, window_bounds = array<i64: 128, 128>}, {transform_indices = @transform_1, window_bounds = array<i64: 128, 1024>}, {pipeline_mode = #tpu.pipeline_mode<synchronous>, transform_indices = @transform_2, window_bounds = array<i64: 1, 1024>}, {pipeline_mode = #tpu.pipeline_mode<synchronous>, transform_indices = @transform_3, window_bounds = array<i64: 1024, 256>}, {pipeline_mode = #tpu.pipeline_mode<synchronous>, transform_indices = @transform_4, window_bounds = array<i64: 1, 256>}, {pipeline_mode = #tpu.pipeline_mode<synchronous>, transform_indices = @transform_5, window_bounds = array<i64: 256, 128>}, {pipeline_mode = #tpu.pipeline_mode<synchronous>, transform_indices = @transform_6, window_bounds = array<i64: 1, 128>}, {transform_indices = @transform_7, window_bounds = array<i64: 128, 128>}]} {
    %c0_i32 = arith.constant 0 : i32
    %0 = arith.cmpi eq, %arg1, %c0_i32 : i32
    %1 = arith.extui %0 : i1 to i32
    %c0_i32_0 = arith.constant 0 : i32
    %2 = arith.cmpi ne, %1, %c0_i32_0 : i32
    scf.if %2 {
      %cst_10 = arith.constant 0.000000e+00 : f32
      %12 = vector.broadcast %cst_10 : f32 to vector<128x1024xf32>
      %c0_11 = arith.constant 0 : index
      %c0_12 = arith.constant 0 : index
      %13 = vector.load %arg10[%c0_11, %c0_12] : memref<128x1024xf32, #tpu.memory_space<vmem>>, vector<128x1024xf32>
      tpu.vector_store %arg10[%c0_11, %c0_12], %12 {strides = array<i32>} : memref<128x1024xf32, #tpu.memory_space<vmem>>, vector<128x1024xf32>,
    } else {
    }
    %c0 = arith.constant 0 : index
    %c0_1 = arith.constant 0 : index
    %3 = vector.load %arg10[%c0, %c0_1] : memref<128x1024xf32, #tpu.memory_space<vmem>>, vector<128x1024xf32>
    %c0_2 = arith.constant 0 : index
    %c0_3 = arith.constant 0 : index
    %4 = vector.load %arg2[%c0_2, %c0_3] : memref<128x128xf32, #tpu.memory_space<vmem>>, vector<128x128xf32>
    %c0_4 = arith.constant 0 : index
    %c0_5 = arith.constant 0 : index
    %5 = vector.load %arg3[%c0_4, %c0_5] : memref<128x1024xf32, #tpu.memory_space<vmem>>, vector<128x1024xf32>
    %cst = arith.constant dense<0.000000e+00> : vector<128x1024xf32>
    %6 = tpu.matmul %4, %5, %cst {dimension_numbers = #tpu.dot_dimension_numbers<[1], [0], [0], [1], [0, 0, 1, 1], [], []>} : vector<128x128xf32>, vector<128x1024xf32>, vector<128x1024xf32> -> vector<128x1024xf32>
    %7 = arith.addf %3, %6 : vector<128x1024xf32>
    %c0_6 = arith.constant 0 : index
    %c0_7 = arith.constant 0 : index
    %8 = vector.load %arg10[%c0_6, %c0_7] : memref<128x1024xf32, #tpu.memory_space<vmem>>, vector<128x1024xf32>
    tpu.vector_store %arg10[%c0_6, %c0_7], %7 {strides = array<i32>} : memref<128x1024xf32, #tpu.memory_space<vmem>>, vector<128x1024xf32>,
    %c0_i32_8 = arith.constant 0 : i32
    %9 = arith.cmpi eq, %arg1, %c0_i32_8 : i32
    %10 = arith.extui %9 : i1 to i32
    %c0_i32_9 = arith.constant 0 : i32
    %11 = arith.cmpi ne, %10, %c0_i32_9 : i32
    scf.if %11 {
      %c0_10 = arith.constant 0 : index
      %c0_11 = arith.constant 0 : index
      %12 = vector.load %arg10[%c0_10, %c0_11] : memref<128x1024xf32, #tpu.memory_space<vmem>>, vector<128x1024xf32>
      %c0_12 = arith.constant 0 : index
      %c0_13 = arith.constant 0 : index
      %13 = vector.load %arg4[%c0_12, %c0_13] : memref<1x1024xf32, #tpu.memory_space<vmem>>, vector<1x1024xf32>
      %14 = vector.broadcast %13 : vector<1x1024xf32> to vector<128x1024xf32>
      %15 = arith.addf %12, %14 : vector<128x1024xf32>
      %16 = arith.negf %15 : vector<128x1024xf32>
      %17 = math.exp %16 : vector<128x1024xf32>
      %cst_14 = arith.constant 1.000000e+00 : f32
      %18 = vector.broadcast %cst_14 : f32 to vector<128x1024xf32>
      %19 = arith.addf %18, %17 : vector<128x1024xf32>
      %20 = arith.divf %18, %19 : vector<128x1024xf32>
      %c0_15 = arith.constant 0 : index
      %c0_16 = arith.constant 0 : index
      %21 = vector.load %arg5[%c0_15, %c0_16] : memref<1024x256xf32, #tpu.memory_space<vmem>>, vector<1024x256xf32>
      %cst_17 = arith.constant dense<0.000000e+00> : vector<128x256xf32>
      %22 = tpu.matmul %20, %21, %cst_17 {dimension_numbers = #tpu.dot_dimension_numbers<[1], [0], [0], [1], [0, 0, 1, 1], [], []>} : vector<128x1024xf32>, vector<1024x256xf32>, vector<128x256xf32> -> vector<128x256xf32>
      %c0_18 = arith.constant 0 : index
      %c0_19 = arith.constant 0 : index
      %23 = vector.load %arg6[%c0_18, %c0_19] : memref<1x256xf32, #tpu.memory_space<vmem>>, vector<1x256xf32>
      %24 = vector.broadcast %23 : vector<1x256xf32> to vector<128x256xf32>
      %25 = arith.addf %22, %24 : vector<128x256xf32>
      %26 = arith.negf %25 : vector<128x256xf32>
      %27 = math.exp %26 : vector<128x256xf32>
      %cst_20 = arith.constant 1.000000e+00 : f32
      %28 = vector.broadcast %cst_20 : f32 to vector<128x256xf32>
      %29 = arith.addf %28, %27 : vector<128x256xf32>
      %30 = arith.divf %28, %29 : vector<128x256xf32>
      %c0_21 = arith.constant 0 : index
      %c0_22 = arith.constant 0 : index
      %31 = vector.load %arg7[%c0_21, %c0_22] : memref<256x128xf32, #tpu.memory_space<vmem>>, vector<256x128xf32>
      %cst_23 = arith.constant dense<0.000000e+00> : vector<128x128xf32>
      %32 = tpu.matmul %30, %31, %cst_23 {dimension_numbers = #tpu.dot_dimension_numbers<[1], [0], [0], [1], [0, 0, 1, 1], [], []>} : vector<128x256xf32>, vector<256x128xf32>, vector<128x128xf32> -> vector<128x128xf32>
      %c0_24 = arith.constant 0 : index
      %c0_25 = arith.constant 0 : index
      %33 = vector.load %arg8[%c0_24, %c0_25] : memref<1x128xf32, #tpu.memory_space<vmem>>, vector<1x128xf32>
      %34 = vector.broadcast %33 : vector<1x128xf32> to vector<128x128xf32>
      %35 = arith.addf %32, %34 : vector<128x128xf32>
      %36 = arith.negf %35 : vector<128x128xf32>
      %37 = math.exp %36 : vector<128x128xf32>
      %cst_26 = arith.constant 1.000000e+00 : f32
      %38 = vector.broadcast %cst_26 : f32 to vector<128x128xf32>
      %39 = arith.addf %38, %37 : vector<128x128xf32>
      %40 = arith.divf %38, %39 : vector<128x128xf32>
      %c0_27 = arith.constant 0 : index
      %c0_28 = arith.constant 0 : index
      %41 = vector.load %arg9[%c0_27, %c0_28] : memref<128x128xf32, #tpu.memory_space<vmem>>, vector<128x128xf32>
      tpu.vector_store %arg9[%c0_27, %c0_28], %40 {strides = array<i32>} : memref<128x128xf32, #tpu.memory_space<vmem>>, vector<128x128xf32>,
    } else {
    }
    return
  }
  func.func @transform_0(%arg0: i32, %arg1: i32) -> (i32, i32) {
    %c0_i32 = arith.constant 0 : i32
    return %arg0, %arg1 : i32, i32
  }
  func.func @transform_1(%arg0: i32, %arg1: i32) -> (i32, i32) {
    %c0_i32 = arith.constant 0 : i32
    %c0_i32_0 = arith.constant 0 : i32
    return %arg1, %c0_i32 : i32, i32
  }
  func.func @transform_2(%arg0: i32, %arg1: i32) -> (i32, i32) {
    %c0_i32 = arith.constant 0 : i32
    %c0_i32_0 = arith.constant 0 : i32
    %c0_i32_1 = arith.constant 0 : i32
    return %c0_i32, %c0_i32_0 : i32, i32
  }
  func.func @transform_3(%arg0: i32, %arg1: i32) -> (i32, i32) {
    %c0_i32 = arith.constant 0 : i32
    %c0_i32_0 = arith.constant 0 : i32
    %c0_i32_1 = arith.constant 0 : i32
    return %c0_i32, %c0_i32_0 : i32, i32
  }
  func.func @transform_4(%arg0: i32, %arg1: i32) -> (i32, i32) {
    %c0_i32 = arith.constant 0 : i32
    %c0_i32_0 = arith.constant 0 : i32
    %c0_i32_1 = arith.constant 0 : i32
    return %c0_i32, %c0_i32_0 : i32, i32
  }
  func.func @transform_5(%arg0: i32, %arg1: i32) -> (i32, i32) {
    %c0_i32 = arith.constant 0 : i32
    %c0_i32_0 = arith.constant 0 : i32
    %c0_i32_1 = arith.constant 0 : i32
    return %c0_i32, %c0_i32_0 : i32, i32
  }
  func.func @transform_6(%arg0: i32, %arg1: i32) -> (i32, i32) {
    %c0_i32 = arith.constant 0 : i32
    %c0_i32_0 = arith.constant 0 : i32
    %c0_i32_1 = arith.constant 0 : i32
    return %c0_i32, %c0_i32_0 : i32, i32
  }
  func.func @transform_7(%arg0: i32, %arg1: i32) -> (i32, i32) {
    %c0_i32 = arith.constant 0 : i32
    %c0_i32_0 = arith.constant 0 : i32
    return %arg0, %c0_i32 : i32, i32
  }
}

</mosaic_0001>

<bundles_post_ra>
// kernel: tpu_custom_call.1
= control target key start
LH: loop header
LB: loop body
LE: loop exit
PB: predicated region body
PF: predicated region fallthrough
CT: control target
= control target key end

     0   :  { %12 = vsyncpa [#allocation4], 0  ;;  %s5986_s0 = inlined_call_operand.hbm [shape: f32[128,128], index: 0, kind: input, shape index: {}]   ;;  %s5987_s1 = inlined_call_operand.hbm [shape: f32[128,1024], index: 1, kind: input, shape index: {}]   ;;  %s5988_s2 = inlined_call_operand.hbm [shape: f32[1,1024], index: 2, kind: input, shape index: {}]   ;;  %s5989_s3 = inlined_call_operand.hbm [shape: f32[1024,256], index: 3, kind: input, shape index: {}]   ;;  %s5990_s4 = inlined_call_operand.vmem [shape: f32[1,256], index: 4, kind: input, shape index: {}]   ;;  %s5991_s5 = inlined_call_operand.hbm [shape: f32[256,128], index: 5, kind: input, shape index: {}]   ;;  %s5992_s6 = inlined_call_operand.vmem [shape: f32[1,128], index: 6, kind: input, shape index: {}]   ;;  %s5993_s7 = inlined_call_operand.hbm [shape: f32[128,128], index: 7, kind: output, shape index: {}]  }
   0x1   :  { %13 = vsyncpa [#allocation7], 0 }
   0x2   :  { %14 = vsyncpa [#allocation10], 0 }
   0x3   :  { %15 = vsyncpa [#allocation5], 0  ;;  %s5020_s24 = smov [#allocation6]  }
   0x4   :  { %s33_s25 = sshll.u32 %s5020_s24, 4  ;;  %s34_s25 = int_to_ptr.vmem [resolvable:$true] %s33_s25 }
   0x5   :  { %s4900_s26 = scalar_lea.vmem %s34_s25, 16384  ;;  %p4905_p1 = scmp.lt.s32.totalorder %s34_s25, %s34_s25 }
   0x6   :  { %p4901_p0 = scmp.ne.s32.totalorder %s34_s25, %s4900_s26  ;;  %p4906_p2 = scmp.lt.s32.totalorder %s4900_s26, %s4900_s26 }
   0x8   :  { %p4907_p3 = por %p4906_p2, %p4905_p1 }
   0xa   :  { %p4908_p4 = pnand %p4907_p3, %p4901_p0 }
   0xc   :  { %4911 = shalt.err (!%p4908_p4)
}
   0xd   :  { %s5021_s27 = smov 1024   ;;  %s5022_s28 = smov 64  }
   0xe   :  { %39 = dma.hbm_to_vmem [thread:$0]  %s5987_s1, 16384, %s34_s25, [#allocation7], %s5021_s27, %s5021_s27, %s5022_s28  }
   0xf   :  { %s5023_s8 = smov [#allocation9]  }
  0x10   :  { %s55_s9 = sshll.u32 %s5023_s8, 4  ;;  %s56_s9 = int_to_ptr.vmem [resolvable:$true] %s55_s9 }
  0x11   :  { %s4920_s10 = scalar_lea.vmem %s56_s9, 32768  ;;  %p4925_p6 = scmp.lt.s32.totalorder %s56_s9, %s56_s9 }
  0x12   :  { %p4921_p5 = scmp.ne.s32.totalorder %s56_s9, %s4920_s10  ;;  %p4926_p7 = scmp.lt.s32.totalorder %s4920_s10, %s4920_s10 }
  0x14   :  { %p4927_p8 = por %p4926_p7, %p4925_p6 }
  0x16   :  { %p4928_p9 = pnand %p4927_p8, %p4921_p5 }
  0x18   :  { %4931 = shalt.err (!%p4928_p9)
}
  0x19   :  { %s5024_s11 = smov 256   ;;  %s5025_s12 = smov 16  }
  0x1a   :  { %61 = dma.hbm_to_vmem [thread:$0]  %s5989_s3, 32768, %s56_s9, [#allocation10], %s5024_s11, %s5024_s11, %s5025_s12  }
  0x1b   :  { %s5026_s15 = smov [#allocation3]  }
  0x1c   :  { %s21_s16 = sshll.u32 %s5026_s15, 4  ;;  %s22_s16 = int_to_ptr.vmem [resolvable:$true] %s21_s16 }
  0x1d   :  { %s4940_s1 = scalar_lea.vmem %s22_s16, 2048  ;;  %p4945_p11 = scmp.lt.s32.totalorder %s22_s16, %s22_s16 }
  0x1e   :  { %p4941_p10 = scmp.ne.s32.totalorder %s22_s16, %s4940_s1  ;;  %p4946_p12 = scmp.lt.s32.totalorder %s4940_s1, %s4940_s1 }
  0x20   :  { %p4947_p13 = por %p4946_p12, %p4945_p11 }
  0x22   :  { %p4948_p0 = pnand %p4947_p13, %p4941_p10 }
  0x24   :  { %4951 = shalt.err (!%p4948_p0)
}
  0x25   :  { %s5027_s17 = smov 128   ;;  %s5028_s18 = smov 8  }
  0x26   :  { %27 = dma.hbm_to_vmem [thread:$0]  %s5986_s0, 2048, %s22_s16, [#allocation4], %s5027_s17, %s5027_s17, %s5028_s18  }
  0x27   :  { %s5029_s3 = smov [#allocation8]   ;;  %s5030_s22 = smov [#allocation11]  }
  0x28   :  { %s46_s21 = sshll.u32 %s5029_s3, 4  ;;  %s69_s23 = sshll.u32 %s5030_s22, 4  ;;  %s47_s21 = int_to_ptr.vmem [resolvable:$true] %s46_s21  ;;  %s70_s23 = int_to_ptr.vmem [resolvable:$true] %s69_s23 }
  0x29   :  { %s4960_s24 = scalar_lea.vmem %s47_s21, 128  ;;  %p4965_p2 = scmp.lt.s32.totalorder %s47_s21, %s47_s21 }
  0x2a   :  { %p4961_p1 = scmp.ne.s32.totalorder %s47_s21, %s4960_s24  ;;  %p4966_p3 = scmp.lt.s32.totalorder %s4960_s24, %s4960_s24 }
  0x2c   :  { %p4967_p4 = por %p4966_p3, %p4965_p2 }
  0x2e   :  { %p4968_p5 = pnand %p4967_p4, %p4961_p1 }
  0x30   :  { %4971 = shalt.err (!%p4968_p5)
}
  0x31   :  { %49 = dma.hbm_to_vmem [thread:$0]  %s5988_s2, 128, %s47_s21, [#allocation7]  }
  0x32   :  { %s4980_s27 = scalar_lea.vmem %s70_s23, 4096  ;;  %p4985_p7 = scmp.lt.s32.totalorder %s70_s23, %s70_s23 }
  0x33   :  { %p4981_p6 = scmp.ne.s32.totalorder %s70_s23, %s4980_s27  ;;  %p4986_p8 = scmp.lt.s32.totalorder %s4980_s27, %s4980_s27 }
  0x35   :  { %p4987_p9 = por %p4986_p8, %p4985_p7 }
  0x37   :  { %p4988_p10 = pnand %p4987_p9, %p4981_p6 }
  0x39   :  { %4991 = shalt.err (!%p4988_p10)
}
  0x3a   :  { %75 = dma.hbm_to_vmem [thread:$0]  %s5991_s5, 4096, %s70_s23, [#allocation10], %s5027_s17, %s5027_s17, %s5028_s18  }
  0x3b   :  { %5012 = dma.done.wait [#allocation4], 2048  }
  0x3c   :  { %5013 = vsyncadd [#allocation4], 4294965248 }
  0x3d   :  { %5014 = dma.done.wait [#allocation7], 16512  }
  0x3e   :  { %5015 = vsyncadd [#allocation7], 4294950784 }
  0x3f   :  { %5016 = dma.done.wait [#allocation10], 36864  }
  0x40   :  { %5017 = vsyncadd [#allocation10], 4294930432  ;;  %v5031_v0 = vmov 0.0   ;;  %v490_v1 = vld [vmem:[#allocation6 + $0x3c8] sm:$0xff]  ;;  %v489_v2 = vld [vmem:[#allocation6 + $0x3c0] sm:$0xff] }
  0x41   :  { %561 = vmatprep.mubr.f32.mxu0 %v5031_v0  ;;  %609 = vmatprep.mubr.f32.mxu1 %v5031_v0  ;;  %v482_v3 = vld [vmem:[#allocation6 + $0x388] sm:$0xff]  ;;  %v481_v4 = vld [vmem:[#allocation6 + $0x380] sm:$0xff]  ;;  %v492_v35 = vld [vmem:[#allocation6 + $0x3d8] sm:$0xff] }
  0x42   :  { %497 = vmatprep.subr.mxu0 %v490_v1  ;;  %4142 = vmatprep.subr.mxu1 %v490_v1  ;;  %v474_v5 = vld [vmem:[#allocation6 + $0x348] sm:$0xff]  ;;  %v473_v6 = vld [vmem:[#allocation6 + $0x340] sm:$0xff]  ;;  %v491_v36 = vld [vmem:[#allocation6 + $0x3d0] sm:$0xff] }
  0x43   :  { %498 = vmatpush1.msra.mxu0 %v489_v2  ;;  %4158 = vmatpush1.msra.mxu1 %v489_v2  ;;  %v466_v7 = vld [vmem:[#allocation6 + $0x308] sm:$0xff]  ;;  %v465_v8 = vld [vmem:[#allocation6 + $0x300] sm:$0xff]  ;;  %v484_v37 = vld [vmem:[#allocation6 + $0x398] sm:$0xff] }
  0x44   :  { %499 = vmatprep.subr.mxu0 %v482_v3  ;;  %4143 = vmatprep.subr.mxu1 %v482_v3  ;;  %v458_v9 = vld [vmem:[#allocation6 + $0x2c8] sm:$0xff]  ;;  %v457_v10 = vld [vmem:[#allocation6 + $0x2c0] sm:$0xff]  ;;  %v483_v39 = vld [vmem:[#allocation6 + $0x390] sm:$0xff] }
  0x45   :  { %500 = vmatpush1.msra.mxu0 %v481_v4  ;;  %4159 = vmatpush1.msra.mxu1 %v481_v4  ;;  %v450_v11 = vld [vmem:[#allocation6 + $0x288] sm:$0xff]  ;;  %v449_v12 = vld [vmem:[#allocation6 + $0x280] sm:$0xff]  ;;  %v476_v42 = vld [vmem:[#allocation6 + $0x358] sm:$0xff] }
  0x46   :  { %501 = vmatprep.subr.mxu0 %v474_v5  ;;  %4144 = vmatprep.subr.mxu1 %v474_v5  ;;  %v442_v13 = vld [vmem:[#allocation6 + $0x248] sm:$0xff]  ;;  %v441_v14 = vld [vmem:[#allocation6 + $0x240] sm:$0xff]  ;;  %v475_v43 = vld [vmem:[#allocation6 + $0x350] sm:$0xff] }
  0x47   :  { %502 = vmatpush1.msra.mxu0 %v473_v6  ;;  %4160 = vmatpush1.msra.mxu1 %v473_v6  ;;  %v434_v15 = vld [vmem:[#allocation6 + $0x208] sm:$0xff]  ;;  %v433_v16 = vld [vmem:[#allocation6 + $0x200] sm:$0xff]  ;;  %v468_v44 = vld [vmem:[#allocation6 + $0x318] sm:$0xff] }
  0x48   :  { %503 = vmatprep.subr.mxu0 %v466_v7  ;;  %4145 = vmatprep.subr.mxu1 %v466_v7  ;;  %v426_v17 = vld [vmem:[#allocation6 + $0x1c8] sm:$0xff]  ;;  %v425_v18 = vld [vmem:[#allocation6 + $0x1c0] sm:$0xff]  ;;  %v467_v45 = vld [vmem:[#allocation6 + $0x310] sm:$0xff] }
  0x49   :  { %504 = vmatpush1.msra.mxu0 %v465_v8  ;;  %4161 = vmatpush1.msra.mxu1 %v465_v8  ;;  %v418_v19 = vld [vmem:[#allocation6 + $0x188] sm:$0xff]  ;;  %v417_v20 = vld [vmem:[#allocation6 + $0x180] sm:$0xff]  ;;  %v5110_v46 = vld [vmem:[#allocation3 + $0x10] sm:$0xff] }
  0x4a   :  { %505 = vmatprep.subr.mxu0 %v458_v9  ;;  %4146 = vmatprep.subr.mxu1 %v458_v9  ;;  %v410_v21 = vld [vmem:[#allocation6 + $0x148] sm:$0xff]  ;;  %v409_v22 = vld [vmem:[#allocation6 + $0x140] sm:$0xff]  ;;  %v5113_v47 = vld [vmem:[#allocation3 + $0x50] sm:$0xff] }
  0x4b   :  { %506 = vmatpush1.msra.mxu0 %v457_v10  ;;  %4162 = vmatpush1.msra.mxu1 %v457_v10  ;;  %v402_v23 = vld [vmem:[#allocation6 + $0x108] sm:$0xff]  ;;  %v401_v24 = vld [vmem:[#allocation6 + $0x100] sm:$0xff]  ;;  %v460_v48 = vld [vmem:[#allocation6 + $0x2d8] sm:$0xff] }
  0x4c   :  { %507 = vmatprep.subr.mxu0 %v450_v11  ;;  %4147 = vmatprep.subr.mxu1 %v450_v11  ;;  %v394_v25 = vld [vmem:[#allocation6 + $0xc8] sm:$0xff]  ;;  %v393_v26 = vld [vmem:[#allocation6 + $0xc0] sm:$0xff]  ;;  %v459_v49 = vld [vmem:[#allocation6 + $0x2d0] sm:$0xff] }
  0x4d   :  { %508 = vmatpush1.msra.mxu0 %v449_v12  ;;  %4163 = vmatpush1.msra.mxu1 %v449_v12  ;;  %v386_v27 = vld [vmem:[#allocation6 + $0x88] sm:$0xff]  ;;  %v385_v28 = vld [vmem:[#allocation6 + $0x80] sm:$0xff]  ;;  %v452_v50 = vld [vmem:[#allocation6 + $0x298] sm:$0xff] }
  0x4e   :  { %509 = vmatprep.subr.mxu0 %v442_v13  ;;  %4148 = vmatprep.subr.mxu1 %v442_v13  ;;  %v378_v29 = vld [vmem:[#allocation6 + $0x48] sm:$0xff]  ;;  %v377_v30 = vld [vmem:[#allocation6 + $0x40] sm:$0xff]  ;;  %v451_v51 = vld [vmem:[#allocation6 + $0x290] sm:$0xff] }
  0x4f   :  { %510 = vmatpush1.msra.mxu0 %v441_v14  ;;  %4164 = vmatpush1.msra.mxu1 %v441_v14  ;;  %v370_v31 = vld [vmem:[#allocation6 + $0x8] sm:$0xff]  ;;  %v369_v32 = vld [vmem:[#allocation6] sm:$0xff]  ;;  %v5118_v52 = vld [vmem:[#allocation3 + $0x18] sm:$0xff] }
  0x50   :  { %511 = vmatprep.subr.mxu0 %v434_v15  ;;  %4149 = vmatprep.subr.mxu1 %v434_v15  ;;  %v5096_v33 = vld [vmem:[#allocation3] sm:$0xff]  ;;  %v494_v38 = vld [vmem:[#allocation6 + $0x3e8] sm:$0xff]  ;;  %v5121_v53 = vld [vmem:[#allocation3 + $0x58] sm:$0xff] }
  0x51   :  { %512 = vmatpush1.msra.mxu0 %v433_v16  ;;  %4165 = vmatpush1.msra.mxu1 %v433_v16  ;;  %v5098_v34 = vld [vmem:[#allocation3 + $0x40] sm:$0xff]  ;;  %v5103_v40 = vld [vmem:[#allocation3 + $0x8] sm:$0xff]  ;;  %v444_v54 = vld [vmem:[#allocation6 + $0x258] sm:$0xff] }
  0x52   :  { %513 = vmatprep.subr.mxu0 %v426_v17  ;;  %4150 = vmatprep.subr.mxu1 %v426_v17  ;;  %v5106_v41 = vld [vmem:[#allocation3 + $0x48] sm:$0xff]  ;;  %v443_v55 = vld [vmem:[#allocation6 + $0x250] sm:$0xff]  ;;  %v436_v56 = vld [vmem:[#allocation6 + $0x218] sm:$0xff] }
  0x53   :  { %514 = vmatpush1.msra.mxu0 %v425_v18  ;;  %4166 = vmatpush1.msra.mxu1 %v425_v18  ;;  %v435_v57 = vld [vmem:[#allocation6 + $0x210] sm:$0xff]  ;;  %v5126_v58 = vld [vmem:[#allocation3 + $0x20] sm:$0xff]  ;;  %v428_v60 = vld [vmem:[#allocation6 + $0x1d8] sm:$0xff] }
  0x54   :  { %515 = vmatprep.subr.mxu0 %v418_v19  ;;  %4151 = vmatprep.subr.mxu1 %v418_v19  ;;  %v5129_v59 = vld [vmem:[#allocation3 + $0x60] sm:$0xff]  ;;  %v427_v61 = vld [vmem:[#allocation6 + $0x1d0] sm:$0xff]  ;;  %v420_v62 = vld [vmem:[#allocation6 + $0x198] sm:$0xff] }
  0x55   :  { %516 = vmatpush1.msra.mxu0 %v417_v20  ;;  %4167 = vmatpush1.msra.mxu1 %v417_v20  ;;  %v419_v63 = vld [vmem:[#allocation6 + $0x190] sm:$0xff]  ;;  %v5134_v1 = vld [vmem:[#allocation3 + $0x28] sm:$0xff]  ;;  %v412_v3 = vld [vmem:[#allocation6 + $0x158] sm:$0xff] }
  0x56   :  { %517 = vmatprep.subr.mxu0 %v410_v21  ;;  %4152 = vmatprep.subr.mxu1 %v410_v21  ;;  %v5137_v2 = vld [vmem:[#allocation3 + $0x68] sm:$0xff]  ;;  %v411_v4 = vld [vmem:[#allocation6 + $0x150] sm:$0xff]  ;;  %v404_v5 = vld [vmem:[#allocation6 + $0x118] sm:$0xff] }
  0x57   :  { %518 = vmatpush1.msra.mxu0 %v409_v22  ;;  %4168 = vmatpush1.msra.mxu1 %v409_v22  ;;  %v403_v6 = vld [vmem:[#allocation6 + $0x110] sm:$0xff]  ;;  %v396_v9 = vld [vmem:[#allocation6 + $0xd8] sm:$0xff]  ;;  %v493_v18 = vld [vmem:[#allocation6 + $0x3e0] sm:$0xff] }
  0x58   :  { %519 = vmatprep.subr.mxu0 %v402_v23  ;;  %4153 = vmatprep.subr.mxu1 %v402_v23  ;;  %v5142_v7 = vld [vmem:[#allocation3 + $0x30] sm:$0xff]  ;;  %v388_v11 = vld [vmem:[#allocation6 + $0x98] sm:$0xff]  ;;  %v486_v20 = vld [vmem:[#allocation6 + $0x3a8] sm:$0xff] }
  0x59   :  { %520 = vmatpush1.msra.mxu0 %v401_v24  ;;  %4169 = vmatpush1.msra.mxu1 %v401_v24  ;;  %v5145_v8 = vld [vmem:[#allocation3 + $0x70] sm:$0xff]  ;;  %v5150_v13 = vld [vmem:[#allocation3 + $0x38] sm:$0xff]  ;;  %v485_v23 = vld [vmem:[#allocation6 + $0x3a0] sm:$0xff] }
  0x5a   :  { %521 = vmatprep.subr.mxu0 %v394_v25  ;;  %4154 = vmatprep.subr.mxu1 %v394_v25  ;;  %v395_v10 = vld [vmem:[#allocation6 + $0xd0] sm:$0xff]  ;;  %v5153_v14 = vld [vmem:[#allocation3 + $0x78] sm:$0xff]  ;;  %v478_v25 = vld [vmem:[#allocation6 + $0x368] sm:$0xff] }
  0x5b   :  { %522 = vmatpush1.msra.mxu0 %v393_v26  ;;  %4170 = vmatpush1.msra.mxu1 %v393_v26  ;;  %v387_v12 = vld [vmem:[#allocation6 + $0x90] sm:$0xff]  ;;  %v380_v15 = vld [vmem:[#allocation6 + $0x58] sm:$0xff] }
  0x5c   :  { %523 = vmatprep.subr.mxu0 %v386_v27  ;;  %4155 = vmatprep.subr.mxu1 %v386_v27  ;;  %v379_v16 = vld [vmem:[#allocation6 + $0x50] sm:$0xff]  ;;  %v372_v17 = vld [vmem:[#allocation6 + $0x18] sm:$0xff]  ;;  %v477_v27 = vld [vmem:[#allocation6 + $0x360] sm:$0xff] }
  0x5d   :  { %524 = vmatpush1.msra.mxu0 %v385_v28  ;;  %4171 = vmatpush1.msra.mxu1 %v385_v28  ;;  %v371_v19 = vld [vmem:[#allocation6 + $0x10] sm:$0xff]  ;;  %v496_v21 = vld [vmem:[#allocation6 + $0x3f8] sm:$0xff]  ;;  %v470_v28 = vld [vmem:[#allocation6 + $0x328] sm:$0xff] }
  0x5e   :  { %525 = vmatprep.subr.mxu0 %v378_v29  ;;  %4156 = vmatprep.subr.mxu1 %v378_v29  ;;  %v495_v22 = vld [vmem:[#allocation6 + $0x3f0] sm:$0xff]  ;;  %v488_v24 = vld [vmem:[#allocation6 + $0x3b8] sm:$0xff]  ;;  %v469_v29 = vld [vmem:[#allocation6 + $0x320] sm:$0xff] }
  0x5f   :  { %526 = vmatpush1.msra.mxu0 %v377_v30  ;;  %4172 = vmatpush1.msra.mxu1 %v377_v30  ;;  %v487_v26 = vld [vmem:[#allocation6 + $0x3b0] sm:$0xff]  ;;  %v480_v30 = vld [vmem:[#allocation6 + $0x378] sm:$0xff] }
  0x60   :  { %527 = vmatprep.subr.mxu0 %v370_v31  ;;  %4157 = vmatprep.subr.mxu1 %v370_v31  ;;  %v462_v31 = vld [vmem:[#allocation6 + $0x2e8] sm:$0xff] }
  0x61   :  { %528 = vmatpush1.msra.mxu0 %v369_v32  ;;  %4173 = vmatpush1.msra.mxu1 %v369_v32  ;;  %v479_v32 = vld [vmem:[#allocation6 + $0x370] sm:$0xff] }
  0x62   :  { %562 = vmatmul.mubr.f32.vlgmr.msra.gmra.mxu0 %v5096_v33  ;;  %610 = vmatmul.mubr.f32.vlgmr.msra.gmra.mxu1 %v5098_v34 }
  0x63   :  { %658 = vmatprep.subr.mxu1 %v492_v35  ;;  %567 = vmatprep.mubr.f32.mxu0 %v5031_v0  ;;  %v461_v35 = vld [vmem:[#allocation6 + $0x2e0] sm:$0xff] }
  0x64   :  { %659 = vmatpush1.msra.mxu1 %v491_v36  ;;  %615 = vmatprep.mubr.f32.mxu1 %v5031_v0  ;;  %v454_v36 = vld [vmem:[#allocation6 + $0x2a8] sm:$0xff] }
  0x65   :  { %660 = vmatprep.subr.mxu1 %v484_v37  ;;  %819 = vmatprep.subr.mxu0 %v494_v38  ;;  %v453_v37 = vld [vmem:[#allocation6 + $0x2a0] sm:$0xff]  ;;  %v472_v38 = vld [vmem:[#allocation6 + $0x338] sm:$0xff] }
  0x66   :  { %661 = vmatpush1.msra.mxu1 %v483_v39  ;;  %568 = vmatmul.mubr.f32.gmra.mxu0 %v5103_v40  ;;  %v446_v39 = vld [vmem:[#allocation6 + $0x268] sm:$0xff] }
  0x67   :  { %616 = vmatmul.mubr.f32.gmra.mxu1 %v5106_v41  ;;  %662 = vmatprep.subr.mxu1 %v476_v42  ;;  %v471_v42 = vld [vmem:[#allocation6 + $0x330] sm:$0xff] }
  0x68   :  { %663 = vmatpush1.msra.mxu1 %v475_v43  ;;  %573 = vmatprep.mubr.f32.mxu0 %v5031_v0  ;;  %v445_v43 = vld [vmem:[#allocation6 + $0x260] sm:$0xff] }
  0x69   :  { %664 = vmatprep.subr.mxu1 %v468_v44  ;;  %621 = vmatprep.mubr.f32.mxu1 %v5031_v0  ;;  %v438_v44 = vld [vmem:[#allocation6 + $0x228] sm:$0xff] }
  0x6a   :  { %665 = vmatpush1.msra.mxu1 %v467_v45  ;;  %574 = vmatmul.mubr.f32.gmra.mxu0 %v5110_v46  ;;  %v437_v45 = vld [vmem:[#allocation6 + $0x220] sm:$0xff] }
  0x6b   :  { %622 = vmatmul.mubr.f32.gmra.mxu1 %v5113_v47  ;;  %666 = vmatprep.subr.mxu1 %v460_v48  ;;  %v464_v48 = vld [vmem:[#allocation6 + $0x2f8] sm:$0xff] }
  0x6c   :  { %667 = vmatpush1.msra.mxu1 %v459_v49  ;;  %579 = vmatprep.mubr.f32.mxu0 %v5031_v0  ;;  %v430_v49 = vld [vmem:[#allocation6 + $0x1e8] sm:$0xff] }
  0x6d   :  { %668 = vmatprep.subr.mxu1 %v452_v50  ;;  %627 = vmatprep.mubr.f32.mxu1 %v5031_v0  ;;  %v463_v50 = vld [vmem:[#allocation6 + $0x2f0] sm:$0xff] }
  0x6e   :  { %669 = vmatpush1.msra.mxu1 %v451_v51  ;;  %580 = vmatmul.mubr.f32.gmra.mxu0 %v5118_v52  ;;  %v429_v51 = vld [vmem:[#allocation6 + $0x1e0] sm:$0xff] }
  0x6f   :  { %628 = vmatmul.mubr.f32.gmra.mxu1 %v5121_v53  ;;  %670 = vmatprep.subr.mxu1 %v444_v54  ;;  %v422_v54 = vld [vmem:[#allocation6 + $0x1a8] sm:$0xff] }
  0x70   :  { %671 = vmatpush1.msra.mxu1 %v443_v55  ;;  %585 = vmatprep.mubr.f32.mxu0 %v5031_v0  ;;  %v421_v55 = vld [vmem:[#allocation6 + $0x1a0] sm:$0xff] }
  0x71   :  { %672 = vmatprep.subr.mxu1 %v436_v56  ;;  %633 = vmatprep.mubr.f32.mxu1 %v5031_v0  ;;  %v456_v56 = vld [vmem:[#allocation6 + $0x2b8] sm:$0xff] }
  0x72   :  { %673 = vmatpush1.msra.mxu1 %v435_v57  ;;  %586 = vmatmul.mubr.f32.gmra.mxu0 %v5126_v58  ;;  %v414_v57 = vld [vmem:[#allocation6 + $0x168] sm:$0xff] }
  0x73   :  { %634 = vmatmul.mubr.f32.gmra.mxu1 %v5129_v59  ;;  %674 = vmatprep.subr.mxu1 %v428_v60  ;;  %v455_v60 = vld [vmem:[#allocation6 + $0x2b0] sm:$0xff] }
  0x74   :  { %675 = vmatpush1.msra.mxu1 %v427_v61  ;;  %591 = vmatprep.mubr.f32.mxu0 %v5031_v0  ;;  %v413_v61 = vld [vmem:[#allocation6 + $0x160] sm:$0xff] }
  0x75   :  { %676 = vmatprep.subr.mxu1 %v420_v62  ;;  %639 = vmatprep.mubr.f32.mxu1 %v5031_v0  ;;  %v406_v62 = vld [vmem:[#allocation6 + $0x128] sm:$0xff] }
  0x76   :  { %677 = vmatpush1.msra.mxu1 %v419_v63  ;;  %592 = vmatmul.mubr.f32.gmra.mxu0 %v5134_v1  ;;  %v405_v63 = vld [vmem:[#allocation6 + $0x120] sm:$0xff] }
  0x77   :  { %640 = vmatmul.mubr.f32.gmra.mxu1 %v5137_v2  ;;  %678 = vmatprep.subr.mxu1 %v412_v3  ;;  %v448_v3 = vld [vmem:[#allocation6 + $0x278] sm:$0xff] }
  0x78   :  { %679 = vmatpush1.msra.mxu1 %v411_v4  ;;  %597 = vmatprep.mubr.f32.mxu0 %v5031_v0  ;;  %v398_v4 = vld [vmem:[#allocation6 + $0xe8] sm:$0xff] }
  0x79   :  { %680 = vmatprep.subr.mxu1 %v404_v5  ;;  %645 = vmatprep.mubr.f32.mxu1 %v5031_v0  ;;  %v447_v5 = vld [vmem:[#allocation6 + $0x270] sm:$0xff] }
  0x7a   :  { %681 = vmatpush1.msra.mxu1 %v403_v6  ;;  %598 = vmatmul.mubr.f32.gmra.mxu0 %v5142_v7  ;;  %v397_v6 = vld [vmem:[#allocation6 + $0xe0] sm:$0xff] }
  0x7b   :  { %646 = vmatmul.mubr.f32.gmra.mxu1 %v5145_v8  ;;  %682 = vmatprep.subr.mxu1 %v396_v9  ;;  %v390_v9 = vld [vmem:[#allocation6 + $0xa8] sm:$0xff] }
  0x7c   :  { %683 = vmatpush1.msra.mxu1 %v395_v10  ;;  %603 = vmatprep.mubr.f32.mxu0 %v5031_v0  ;;  %v389_v10 = vld [vmem:[#allocation6 + $0xa0] sm:$0xff] }
  0x7d   :  { %684 = vmatprep.subr.mxu1 %v388_v11  ;;  %651 = vmatprep.mubr.f32.mxu1 %v5031_v0  ;;  %v440_v11 = vld [vmem:[#allocation6 + $0x238] sm:$0xff] }
  0x7e   :  { %685 = vmatpush1.msra.mxu1 %v387_v12  ;;  %604 = vmatmul.mubr.f32.gmra.mxu0 %v5150_v13  ;;  %v382_v12 = vld [vmem:[#allocation6 + $0x68] sm:$0xff] }
  0x7f   :  { %652 = vmatmul.mubr.f32.gmra.mxu1 %v5153_v14  ;;  %686 = vmatprep.subr.mxu1 %v380_v15  ;;  %v439_v15 = vld [vmem:[#allocation6 + $0x230] sm:$0xff] }
  0x80   :  { %687 = vmatpush1.msra.mxu1 %v379_v16  ;;  %722 = vmatprep.mubr.f32.mxu1 %v5031_v0  ;;  %v381_v16 = vld [vmem:[#allocation6 + $0x60] sm:$0xff] }
  0x81   :  { %688 = vmatprep.subr.mxu1 %v372_v17  ;;  %820 = vmatpush1.msra.mxu0 %v493_v18  ;;  %v374_v17 = vld [vmem:[#allocation6 + $0x28] sm:$0xff]  ;;  %v373_v18 = vld [vmem:[#allocation6 + $0x20] sm:$0xff] }
  0x82   :  { %689 = vmatpush1.msra.mxu1 %v371_v19  ;;  %821 = vmatprep.subr.mxu0 %v486_v20  ;;  %v432_v19 = vld [vmem:[#allocation6 + $0x1f8] sm:$0xff]  ;;  %v431_v20 = vld [vmem:[#allocation6 + $0x1f0] sm:$0xff] }
  0x83   :  { %723 = vmatmul.mubr.f32.vlgmr.msra.gmra.mxu1 %v5096_v33  ;;  %980 = vmatprep.subr.mxu1 %v496_v21  ;;  %v424_v21 = vld [vmem:[#allocation6 + $0x1b8] sm:$0xff] }
  0x84   :  { %981 = vmatpush1.msra.mxu1 %v495_v22  ;;  %728 = vmatprep.mubr.f32.mxu1 %v5031_v0  ;;  %v2497_v22 = vld [vmem:[#allocation9 + $0xf8] sm:$0xff] }
  0x85   :  { %822 = vmatpush1.msra.mxu0 %v485_v23  ;;  %982 = vmatprep.subr.mxu1 %v488_v24  ;;  %v423_v23 = vld [vmem:[#allocation6 + $0x1b0] sm:$0xff]  ;;  %v416_v24 = vld [vmem:[#allocation6 + $0x178] sm:$0xff] }
  0x86   :  { %823 = vmatprep.subr.mxu0 %v478_v25  ;;  %983 = vmatpush1.msra.mxu1 %v487_v26  ;;  %v415_v25 = vld [vmem:[#allocation6 + $0x170] sm:$0xff]  ;;  %v2496_v26 = vld [vmem:[#allocation9 + $0xf0] sm:$0xff] }
  0x87   :  { %729 = vmatmul.mubr.f32.gmra.mxu1 %v5103_v40  ;;  %824 = vmatpush1.msra.mxu0 %v477_v27  ;;  %v408_v27 = vld [vmem:[#allocation6 + $0x138] sm:$0xff] }
  0x88   :  { %825 = vmatprep.subr.mxu0 %v470_v28  ;;  %734 = vmatprep.mubr.f32.mxu1 %v5031_v0  ;;  %v407_v28 = vld [vmem:[#allocation6 + $0x130] sm:$0xff] }
  0x89   :  { %826 = vmatpush1.msra.mxu0 %v469_v29  ;;  %984 = vmatprep.subr.mxu1 %v480_v30  ;;  %v400_v29 = vld [vmem:[#allocation6 + $0xf8] sm:$0xff]  ;;  %v2495_v30 = vld [vmem:[#allocation9 + $0xe8] sm:$0xff] }
  0x8a   :  { %827 = vmatprep.subr.mxu0 %v462_v31  ;;  %985 = vmatpush1.msra.mxu1 %v479_v32  ;;  %v399_v31 = vld [vmem:[#allocation6 + $0xf0] sm:$0xff]  ;;  %v392_v32 = vld [vmem:[#allocation6 + $0xb8] sm:$0xff] }
  0x8b   :  { %735 = vmatmul.mubr.f32.gmra.mxu1 %v5110_v46  ;;  %828 = vmatpush1.msra.mxu0 %v461_v35  ;;  %v391_v35 = vld [vmem:[#allocation6 + $0xb0] sm:$0xff] }
  0x8c   :  { %829 = vmatprep.subr.mxu0 %v454_v36  ;;  %740 = vmatprep.mubr.f32.mxu1 %v5031_v0  ;;  %v2494_v36 = vld [vmem:[#allocation9 + $0xe0] sm:$0xff] }
  0x8d   :  { %830 = vmatpush1.msra.mxu0 %v453_v37  ;;  %986 = vmatprep.subr.mxu1 %v472_v38  ;;  %v384_v37 = vld [vmem:[#allocation6 + $0x78] sm:$0xff]  ;;  %v383_v38 = vld [vmem:[#allocation6 + $0x70] sm:$0xff] }
  0x8e   :  { %831 = vmatprep.subr.mxu0 %v446_v39  ;;  %987 = vmatpush1.msra.mxu1 %v471_v42  ;;  %v376_v39 = vld [vmem:[#allocation6 + $0x38] sm:$0xff]  ;;  %v2493_v42 = vld [vmem:[#allocation9 + $0xd8] sm:$0xff] }
  0x8f   :  { %741 = vmatmul.mubr.f32.gmra.mxu1 %v5118_v52  ;;  %832 = vmatpush1.msra.mxu0 %v445_v43  ;;  %v375_v43 = vld [vmem:[#allocation6 + $0x30] sm:$0xff] }
  0x90   :  { %833 = vmatprep.subr.mxu0 %v438_v44  ;;  %746 = vmatprep.mubr.f32.mxu1 %v5031_v0  ;;  %v2492_v44 = vld [vmem:[#allocation9 + $0xd0] sm:$0xff] }
  0x91   :  { %834 = vmatpush1.msra.mxu0 %v437_v45  ;;  %988 = vmatprep.subr.mxu1 %v464_v48  ;;  %v2491_v45 = vld [vmem:[#allocation9 + $0xc8] sm:$0xff]  ;;  %v2561_v48 = vld [vmem:[#allocation9 + $0x2f8] sm:$0xff] }
  0x92   :  { %835 = vmatprep.subr.mxu0 %v430_v49  ;;  %989 = vmatpush1.msra.mxu1 %v463_v50  ;;  %v2490_v49 = vld [vmem:[#allocation9 + $0xc0] sm:$0xff]  ;;  %v2489_v50 = vld [vmem:[#allocation9 + $0xb8] sm:$0xff] }
  0x93   :  { %747 = vmatmul.mubr.f32.gmra.mxu1 %v5126_v58  ;;  %836 = vmatpush1.msra.mxu0 %v429_v51  ;;  %v2488_v51 = vld [vmem:[#allocation9 + $0xb0] sm:$0xff] }
  0x94   :  { %837 = vmatprep.subr.mxu0 %v422_v54  ;;  %752 = vmatprep.mubr.f32.mxu1 %v5031_v0  ;;  %v2487_v54 = vld [vmem:[#allocation9 + $0xa8] sm:$0xff] }
  0x95   :  { %838 = vmatpush1.msra.mxu0 %v421_v55  ;;  %990 = vmatprep.subr.mxu1 %v456_v56  ;;  %v2486_v55 = vld [vmem:[#allocation9 + $0xa0] sm:$0xff]  ;;  %v2485_v56 = vld [vmem:[#allocation9 + $0x98] sm:$0xff] }
  0x96   :  { %839 = vmatprep.subr.mxu0 %v414_v57  ;;  %991 = vmatpush1.msra.mxu1 %v455_v60  ;;  %v2560_v57 = vld [vmem:[#allocation9 + $0x2f0] sm:$0xff]  ;;  %v2559_v60 = vld [vmem:[#allocation9 + $0x2e8] sm:$0xff] }
  0x97   :  { %753 = vmatmul.mubr.f32.gmra.mxu1 %v5134_v1  ;;  %840 = vmatpush1.msra.mxu0 %v413_v61  ;;  %v2484_v61 = vld [vmem:[#allocation9 + $0x90] sm:$0xff] }
  0x98   :  { %841 = vmatprep.subr.mxu0 %v406_v62  ;;  %758 = vmatprep.mubr.f32.mxu1 %v5031_v0  ;;  %v2483_v62 = vld [vmem:[#allocation9 + $0x88] sm:$0xff] }
  0x99   :  { %842 = vmatpush1.msra.mxu0 %v405_v63  ;;  %992 = vmatprep.subr.mxu1 %v448_v3  ;;  %v2558_v63 = vld [vmem:[#allocation9 + $0x2e0] sm:$0xff]  ;;  %v2557_v3 = vld [vmem:[#allocation9 + $0x2d8] sm:$0xff] }
  0x9a   :  { %843 = vmatprep.subr.mxu0 %v398_v4  ;;  %993 = vmatpush1.msra.mxu1 %v447_v5  ;;  %v2481_v4 = vld [vmem:[#allocation9 + $0x78] sm:$0xff]  ;;  %v2556_v5 = vld [vmem:[#allocation9 + $0x2d0] sm:$0xff] }
  0x9b   :  { %759 = vmatmul.mubr.f32.gmra.mxu1 %v5142_v7  ;;  %844 = vmatpush1.msra.mxu0 %v397_v6  ;;  %v2555_v6 = vld [vmem:[#allocation9 + $0x2c8] sm:$0xff] }
  0x9c   :  { %845 = vmatprep.subr.mxu0 %v390_v9  ;;  %764 = vmatprep.mubr.f32.mxu1 %v5031_v0  ;;  %v2479_v9 = vld [vmem:[#allocation9 + $0x68] sm:$0xff] }
  0x9d   :  { %846 = vmatpush1.msra.mxu0 %v389_v10  ;;  %994 = vmatprep.subr.mxu1 %v440_v11  ;;  %v2554_v10 = vld [vmem:[#allocation9 + $0x2c0] sm:$0xff]  ;;  %v2553_v11 = vld [vmem:[#allocation9 + $0x2b8] sm:$0xff] }
  0x9e   :  { %847 = vmatprep.subr.mxu0 %v382_v12  ;;  %995 = vmatpush1.msra.mxu1 %v439_v15  ;;  %v2477_v12 = vld [vmem:[#allocation9 + $0x58] sm:$0xff]  ;;  %v2552_v15 = vld [vmem:[#allocation9 + $0x2b0] sm:$0xff] }
  0x9f   :  { %765 = vmatmul.mubr.f32.gmra.mxu1 %v5150_v13  ;;  %848 = vmatpush1.msra.mxu0 %v381_v16  ;;  %v2551_v16 = vld [vmem:[#allocation9 + $0x2a8] sm:$0xff] }
  0xa0   :  { %849 = vmatprep.subr.mxu0 %v374_v17  ;;  %770 = vmatprep.mubr.f32.mxu1 %v5031_v0  ;;  %v2475_v17 = vld [vmem:[#allocation9 + $0x48] sm:$0xff] }
  0xa1   :  { %850 = vmatpush1.msra.mxu0 %v373_v18  ;;  %883 = vmatprep.mubr.f32.mxu0 %v5031_v0  ;;  %v2550_v18 = vld [vmem:[#allocation9 + $0x2a0] sm:$0xff] }
  0xa2   :  { %884 = vmatmul.mubr.f32.vlgmr.msra.gmra.mxu0 %v5096_v33  ;;  %996 = vmatprep.subr.mxu1 %v432_v19  ;;  %v2549_v19 = vld [vmem:[#allocation9 + $0x298] sm:$0xff] }
  0xa3   :  { %771 = vmatmul.mubr.f32.gmra.mxu1 %v5098_v34  ;;  %889 = vmatprep.mubr.f32.mxu0 %v5031_v0 }
  0xa4   :  { %997 = vmatpush1.msra.mxu1 %v431_v20  ;;  %776 = vmatprep.mubr.f32.mxu1 %v5031_v0  ;;  %v2473_v20 = vld [vmem:[#allocation9 + $0x38] sm:$0xff] }
  0xa5   :  { %998 = vmatprep.subr.mxu1 %v424_v21  ;;  %2734 = vmatprep.subr.mxu0 %v2497_v22  ;;  %v2548_v21 = vld [vmem:[#allocation9 + $0x290] sm:$0xff]  ;;  %v2547_v22 = vld [vmem:[#allocation9 + $0x288] sm:$0xff] }
  0xa6   :  { %890 = vmatmul.mubr.f32.gmra.mxu0 %v5103_v40  ;;  %999 = vmatpush1.msra.mxu1 %v423_v23  ;;  %v2471_v23 = vld [vmem:[#allocation9 + $0x28] sm:$0xff] }
  0xa7   :  { %777 = vmatmul.mubr.f32.gmra.mxu1 %v5106_v41  ;;  %895 = vmatprep.mubr.f32.mxu0 %v5031_v0 }
  0xa8   :  { %782 = vmatprep.mubr.f32.mxu1 %v5031_v0  ;;  %1000 = vmatprep.subr.mxu1 %v416_v24  ;;  %v2470_v24 = vld [vmem:[#allocation9 + $0x20] sm:$0xff] }
  0xa9   :  { %1001 = vmatpush1.msra.mxu1 %v415_v25  ;;  %2735 = vmatpush1.msra.mxu0 %v2496_v26  ;;  %v2546_v25 = vld [vmem:[#allocation9 + $0x280] sm:$0xff]  ;;  %v2469_v26 = vld [vmem:[#allocation9 + $0x18] sm:$0xff] }
  0xaa   :  { %896 = vmatmul.mubr.f32.gmra.mxu0 %v5110_v46  ;;  %1002 = vmatprep.subr.mxu1 %v408_v27  ;;  %v2468_v27 = vld [vmem:[#allocation9 + $0x10] sm:$0xff] }
  0xab   :  { %783 = vmatmul.mubr.f32.gmra.mxu1 %v5113_v47  ;;  %901 = vmatprep.mubr.f32.mxu0 %v5031_v0 }
  0xac   :  { %788 = vmatprep.mubr.f32.mxu1 %v5031_v0  ;;  %1003 = vmatpush1.msra.mxu1 %v407_v28  ;;  %v2467_v28 = vld [vmem:[#allocation9 + $0x8] sm:$0xff] }
  0xad   :  { %1004 = vmatprep.subr.mxu1 %v400_v29  ;;  %2736 = vmatprep.subr.mxu0 %v2495_v30  ;;  %v2466_v29 = vld [vmem:[#allocation9] sm:$0xff]  ;;  %v2544_v30 = vld [vmem:[#allocation9 + $0x270] sm:$0xff] }
  0xae   :  { %902 = vmatmul.mubr.f32.gmra.mxu0 %v5118_v52  ;;  %1005 = vmatpush1.msra.mxu1 %v399_v31  ;;  %v2529_v31 = vld [vmem:[#allocation9 + $0x1f8] sm:$0xff] }
  0xaf   :  { %789 = vmatmul.mubr.f32.gmra.mxu1 %v5121_v53  ;;  %907 = vmatprep.mubr.f32.mxu0 %v5031_v0 }
  0xb0   :  { %794 = vmatprep.mubr.f32.mxu1 %v5031_v0  ;;  %1006 = vmatprep.subr.mxu1 %v392_v32  ;;  %v2543_v32 = vld [vmem:[#allocation9 + $0x268] sm:$0xff] }
  0xb1   :  { %1007 = vmatpush1.msra.mxu1 %v391_v35  ;;  %2737 = vmatpush1.msra.mxu0 %v2494_v36  ;;  %v2527_v35 = vld [vmem:[#allocation9 + $0x1e8] sm:$0xff]  ;;  %v2526_v36 = vld [vmem:[#allocation9 + $0x1e0] sm:$0xff] }
  0xb2   :  { %908 = vmatmul.mubr.f32.gmra.mxu0 %v5126_v58  ;;  %1008 = vmatprep.subr.mxu1 %v384_v37  ;;  %v2542_v37 = vld [vmem:[#allocation9 + $0x260] sm:$0xff] }
  0xb3   :  { %795 = vmatmul.mubr.f32.gmra.mxu1 %v5129_v59  ;;  %913 = vmatprep.mubr.f32.mxu0 %v5031_v0 }
  0xb4   :  { %800 = vmatprep.mubr.f32.mxu1 %v5031_v0  ;;  %1009 = vmatpush1.msra.mxu1 %v383_v38  ;;  %v2525_v38 = vld [vmem:[#allocation9 + $0x1d8] sm:$0xff] }
  0xb5   :  { %1010 = vmatprep.subr.mxu1 %v376_v39  ;;  %2738 = vmatprep.subr.mxu0 %v2493_v42  ;;  %v2541_v39 = vld [vmem:[#allocation9 + $0x258] sm:$0xff]  ;;  %v2523_v42 = vld [vmem:[#allocation9 + $0x1c8] sm:$0xff] }
  0xb6   :  { %914 = vmatmul.mubr.f32.gmra.mxu0 %v5134_v1  ;;  %1011 = vmatpush1.msra.mxu1 %v375_v43  ;;  %v2522_v43 = vld [vmem:[#allocation9 + $0x1c0] sm:$0xff] }
  0xb7   :  { %801 = vmatmul.mubr.f32.gmra.mxu1 %v5137_v2  ;;  %919 = vmatprep.mubr.f32.mxu0 %v5031_v0 }
  0xb8   :  { %806 = vmatprep.mubr.f32.mxu1 %v5031_v0  ;;  %2739 = vmatpush1.msra.mxu0 %v2492_v44  ;;  %v2540_v44 = vld [vmem:[#allocation9 + $0x250] sm:$0xff] }
  0xb9   :  { %2740 = vmatprep.subr.mxu0 %v2491_v45  ;;  %2895 = vmatprep.subr.mxu1 %v2561_v48  ;;  %v2521_v45 = vld [vmem:[#allocation9 + $0x1b8] sm:$0xff]  ;;  %v2539_v48 = vld [vmem:[#allocation9 + $0x248] sm:$0xff] }
  0xba   :  { %920 = vmatmul.mubr.f32.gmra.mxu0 %v5142_v7 }
  0xbb   :  { %807 = vmatmul.mubr.f32.gmra.mxu1 %v5145_v8  ;;  %925 = vmatprep.mubr.f32.mxu0 %v5031_v0 }
  0xbc   :  { %812 = vmatprep.mubr.f32.mxu1 %v5031_v0  ;;  %2741 = vmatpush1.msra.mxu0 %v2490_v49  ;;  %v2519_v49 = vld [vmem:[#allocation9 + $0x1a8] sm:$0xff] }
  0xbd   :  { %2742 = vmatprep.subr.mxu0 %v2489_v50  ;;  %v2518_v50 = vld [vmem:[#allocation9 + $0x1a0] sm:$0xff] }
  0xbe   :  { %926 = vmatmul.mubr.f32.gmra.mxu0 %v5150_v13 }
  0xbf   :  { %813 = vmatmul.mubr.f32.gmra.mxu1 %v5153_v14  ;;  %931 = vmatprep.mubr.f32.mxu0 %v5031_v0 }
  0xc0   :  { %1044 = vmatprep.mubr.f32.mxu1 %v5031_v0  ;;  %2743 = vmatpush1.msra.mxu0 %v2488_v51  ;;  %v2538_v51 = vld [vmem:[#allocation9 + $0x240] sm:$0xff] }
  0xc1   :  { %2744 = vmatprep.subr.mxu0 %v2487_v54  ;;  %v2517_v54 = vld [vmem:[#allocation9 + $0x198] sm:$0xff] }
  0xc2   :  { %932 = vmatmul.mubr.f32.gmra.mxu0 %v5098_v34 }
  0xc3   :  { %1045 = vmatmul.mubr.f32.vlgmr.msra.gmra.mxu1 %v5096_v33  ;;  %937 = vmatprep.mubr.f32.mxu0 %v5031_v0  ;;  %v2482_v33 = vld [vmem:[#allocation9 + $0x80] sm:$0xff] }
  0xc4   :  { %1050 = vmatprep.mubr.f32.mxu1 %v5031_v0  ;;  %2745 = vmatpush1.msra.mxu0 %v2486_v55  ;;  %v2537_v55 = vld [vmem:[#allocation9 + $0x238] sm:$0xff] }
  0xc5   :  { %2746 = vmatprep.subr.mxu0 %v2485_v56  ;;  %2896 = vmatpush1.msra.mxu1 %v2560_v57  ;;  %v2515_v56 = vld [vmem:[#allocation9 + $0x188] sm:$0xff]  ;;  %v2514_v57 = vld [vmem:[#allocation9 + $0x180] sm:$0xff] }
  0xc6   :  { %938 = vmatmul.mubr.f32.gmra.mxu0 %v5106_v41  ;;  %2897 = vmatprep.subr.mxu1 %v2559_v60  ;;  %v2536_v60 = vld [vmem:[#allocation9 + $0x230] sm:$0xff] }
  0xc7   :  { %1051 = vmatmul.mubr.f32.gmra.mxu1 %v5103_v40  ;;  %943 = vmatprep.mubr.f32.mxu0 %v5031_v0  ;;  %v2480_v40 = vld [vmem:[#allocation9 + $0x70] sm:$0xff] }
  0xc8   :  { %1056 = vmatprep.mubr.f32.mxu1 %v5031_v0  ;;  %2747 = vmatpush1.msra.mxu0 %v2484_v61  ;;  %v2513_v61 = vld [vmem:[#allocation9 + $0x178] sm:$0xff] }
  0xc9   :  { %2748 = vmatprep.subr.mxu0 %v2483_v62  ;;  %2898 = vmatpush1.msra.mxu1 %v2558_v63  ;;  %v2535_v62 = vld [vmem:[#allocation9 + $0x228] sm:$0xff] }
  0xca   :  { %944 = vmatmul.mubr.f32.gmra.mxu0 %v5113_v47  ;;  %2899 = vmatprep.subr.mxu1 %v2557_v3  ;;  %v2511_v63 = vld [vmem:[#allocation9 + $0x168] sm:$0xff]  ;;  %v2510_v3 = vld [vmem:[#allocation9 + $0x160] sm:$0xff] }
  0xcb   :  { %1057 = vmatmul.mubr.f32.gmra.mxu1 %v5110_v46  ;;  %949 = vmatprep.mubr.f32.mxu0 %v5031_v0  ;;  %v2478_v46 = vld [vmem:[#allocation9 + $0x60] sm:$0xff] }
  0xcc   :  { %1062 = vmatprep.mubr.f32.mxu1 %v5031_v0  ;;  %2749 = vmatpush1.msra.mxu0 %v2482_v33  ;;  %v2534_v33 = vld [vmem:[#allocation9 + $0x220] sm:$0xff] }
  0xcd   :  { %2750 = vmatprep.subr.mxu0 %v2481_v4  ;;  %2900 = vmatpush1.msra.mxu1 %v2556_v5  ;;  %v2509_v4 = vld [vmem:[#allocation9 + $0x158] sm:$0xff] }
  0xce   :  { %950 = vmatmul.mubr.f32.gmra.mxu0 %v5121_v53  ;;  %2901 = vmatprep.subr.mxu1 %v2555_v6  ;;  %v2533_v5 = vld [vmem:[#allocation9 + $0x218] sm:$0xff]  ;;  %v2507_v6 = vld [vmem:[#allocation9 + $0x148] sm:$0xff] }
  0xcf   :  { %1063 = vmatmul.mubr.f32.gmra.mxu1 %v5118_v52  ;;  %955 = vmatprep.mubr.f32.mxu0 %v5031_v0  ;;  %v2476_v52 = vld [vmem:[#allocation9 + $0x50] sm:$0xff] }
  0xd0   :  { %1068 = vmatprep.mubr.f32.mxu1 %v5031_v0  ;;  %2751 = vmatpush1.msra.mxu0 %v2480_v40  ;;  %v2506_v40 = vld [vmem:[#allocation9 + $0x140] sm:$0xff] }
  0xd1   :  { %2752 = vmatprep.subr.mxu0 %v2479_v9  ;;  %2902 = vmatpush1.msra.mxu1 %v2554_v10  ;;  %v2532_v9 = vld [vmem:[#allocation9 + $0x210] sm:$0xff]  ;;  %v2505_v10 = vld [vmem:[#allocation9 + $0x138] sm:$0xff] }
  0xd2   :  { %956 = vmatmul.mubr.f32.gmra.mxu0 %v5129_v59  ;;  %2903 = vmatprep.subr.mxu1 %v2553_v11  ;;  %v2531_v11 = vld [vmem:[#allocation9 + $0x208] sm:$0xff] }
  0xd3   :  { %1069 = vmatmul.mubr.f32.gmra.mxu1 %v5126_v58  ;;  %961 = vmatprep.mubr.f32.mxu0 %v5031_v0  ;;  %v2474_v58 = vld [vmem:[#allocation9 + $0x40] sm:$0xff] }
  0xd4   :  { %1074 = vmatprep.mubr.f32.mxu1 %v5031_v0  ;;  %2753 = vmatpush1.msra.mxu0 %v2478_v46  ;;  %v2503_v46 = vld [vmem:[#allocation9 + $0x128] sm:$0xff] }
  0xd5   :  { %2754 = vmatprep.subr.mxu0 %v2477_v12  ;;  %2904 = vmatpush1.msra.mxu1 %v2552_v15  ;;  %v2530_v12 = vld [vmem:[#allocation9 + $0x200] sm:$0xff] }
  0xd6   :  { %962 = vmatmul.mubr.f32.gmra.mxu0 %v5137_v2  ;;  %2905 = vmatprep.subr.mxu1 %v2551_v16  ;;  %v2502_v15 = vld [vmem:[#allocation9 + $0x120] sm:$0xff]  ;;  %v2593_v16 = vld [vmem:[#allocation9 + $0x3f8] sm:$0xff] }
  0xd7   :  { %1075 = vmatmul.mubr.f32.gmra.mxu1 %v5134_v1  ;;  %967 = vmatprep.mubr.f32.mxu0 %v5031_v0  ;;  %v2472_v1 = vld [vmem:[#allocation9 + $0x30] sm:$0xff] }
  0xd8   :  { %1080 = vmatprep.mubr.f32.mxu1 %v5031_v0  ;;  %2755 = vmatpush1.msra.mxu0 %v2476_v52  ;;  %v2501_v52 = vld [vmem:[#allocation9 + $0x118] sm:$0xff] }
  0xd9   :  { %2756 = vmatprep.subr.mxu0 %v2475_v17  ;;  %2906 = vmatpush1.msra.mxu1 %v2550_v18  ;;  %v2500_v17 = vld [vmem:[#allocation9 + $0x110] sm:$0xff]  ;;  %v2591_v18 = vld [vmem:[#allocation9 + $0x3e8] sm:$0xff] }
  0xda   :  { %968 = vmatmul.mubr.f32.gmra.mxu0 %v5145_v8  ;;  %2907 = vmatprep.subr.mxu1 %v2549_v19  ;;  %v2590_v19 = vld [vmem:[#allocation9 + $0x3e0] sm:$0xff] }
  0xdb   :  { %1081 = vmatmul.mubr.f32.gmra.mxu1 %v5142_v7  ;;  %973 = vmatprep.mubr.f32.mxu0 %v5031_v0  ;;  %v2545_v7 = vld [vmem:[#allocation9 + $0x278] sm:$0xff] }
  0xdc   :  { %1086 = vmatprep.mubr.f32.mxu1 %v5031_v0  ;;  %2757 = vmatpush1.msra.mxu0 %v2474_v58  ;;  %v2498_v58 = vld [vmem:[#allocation9 + $0x100] sm:$0xff] }
  0xdd   :  { %2758 = vmatprep.subr.mxu0 %v2473_v20  ;;  %2908 = vmatpush1.msra.mxu1 %v2548_v21  ;;  %v2589_v20 = vld [vmem:[#allocation9 + $0x3d8] sm:$0xff] }
  0xde   :  { %974 = vmatmul.mubr.f32.gmra.mxu0 %v5153_v14  ;;  %2909 = vmatprep.subr.mxu1 %v2547_v22  ;;  %v2625_v21 = vld [vmem:[#allocation9 + $0x4f8] sm:$0xff]  ;;  %v2588_v22 = vld [vmem:[#allocation9 + $0x3d0] sm:$0xff] }
  0xdf   :  { %1087 = vmatmul.mubr.f32.gmra.mxu1 %v5150_v13  ;;  %2759 = vmatpush1.msra.mxu0 %v2472_v1  ;;  %v2528_v13 = vld [vmem:[#allocation9 + $0x1f0] sm:$0xff]  ;;  %v2586_v1 = vld [vmem:[#allocation9 + $0x3c0] sm:$0xff] }
  0xe0   :  { %1092 = vmatprep.mubr.f32.mxu1 %v5031_v0  ;;  %2760 = vmatprep.subr.mxu0 %v2471_v23  ;;  %v2585_v23 = vld [vmem:[#allocation9 + $0x3b8] sm:$0xff] }
  0xe1   :  { %2761 = vmatpush1.msra.mxu0 %v2470_v24  ;;  %2910 = vmatpush1.msra.mxu1 %v2546_v25  ;;  %v2584_v24 = vld [vmem:[#allocation9 + $0x3b0] sm:$0xff]  ;;  %v2583_v25 = vld [vmem:[#allocation9 + $0x3a8] sm:$0xff] }
  0xe2   :  { %2762 = vmatprep.subr.mxu0 %v2469_v26  ;;  %2911 = vmatprep.subr.mxu1 %v2545_v7  ;;  %v2582_v26 = vld [vmem:[#allocation9 + $0x3a0] sm:$0xff]  ;;  %v2581_v7 = vld [vmem:[#allocation9 + $0x398] sm:$0xff] }
  0xe3   :  { %1093 = vmatmul.mubr.f32.gmra.mxu1 %v5098_v34  ;;  %2763 = vmatpush1.msra.mxu0 %v2468_v27  ;;  %v2524_v34 = vld [vmem:[#allocation9 + $0x1d0] sm:$0xff] }
  0xe4   :  { %1098 = vmatprep.mubr.f32.mxu1 %v5031_v0  ;;  %2764 = vmatprep.subr.mxu0 %v2467_v28  ;;  %v2580_v27 = vld [vmem:[#allocation9 + $0x390] sm:$0xff]  ;;  %v2579_v28 = vld [vmem:[#allocation9 + $0x388] sm:$0xff] }
  0xe5   :  { %2765 = vmatpush1.msra.mxu0 %v2466_v29  ;;  %2912 = vmatpush1.msra.mxu1 %v2544_v30  ;;  %v2578_v29 = vld [vmem:[#allocation9 + $0x380] sm:$0xff]  ;;  %v2577_v30 = vld [vmem:[#allocation9 + $0x378] sm:$0xff] }
  0xe6   :  { %2766 = vmatprep.subr.mxu0 %v2529_v31  ;;  %2913 = vmatprep.subr.mxu1 %v2543_v32  ;;  %v2576_v31 = vld [vmem:[#allocation9 + $0x370] sm:$0xff]  ;;  %v2575_v32 = vld [vmem:[#allocation9 + $0x368] sm:$0xff] }
  0xe7   :  { %1099 = vmatmul.mubr.f32.gmra.mxu1 %v5106_v41  ;;  %2767 = vmatpush2.msra.mxu0 %v2528_v13  ;;  %v2520_v41 = vld [vmem:[#allocation9 + $0x1b0] sm:$0xff]  ;;  %v2574_v13 = vld [vmem:[#allocation9 + $0x360] sm:$0xff] }
  0xe8   :  { %1104 = vmatprep.mubr.f32.mxu1 %v5031_v0  ;;  %2768 = vmatprep.subr.mxu0 %v2527_v35  ;;  %v2573_v35 = vld [vmem:[#allocation9 + $0x358] sm:$0xff] }
  0xe9   :  { %2769 = vmatpush2.msra.mxu0 %v2526_v36  ;;  %2914 = vmatpush1.msra.mxu1 %v2542_v37  ;;  %v1530_v36 = vlaneseq  ;;  %v2572_v37 = vld [vmem:[#allocation9 + $0x350] sm:$0xff] }
  0xea   :  { %2770 = vmatprep.subr.mxu0 %v2525_v38  ;;  %2915 = vmatprep.subr.mxu1 %v2541_v39  ;;  %v2571_v38 = vld [vmem:[#allocation9 + $0x348] sm:$0xff]  ;;  %v2570_v39 = vld [vmem:[#allocation9 + $0x340] sm:$0xff] }
  0xeb   :  { %1105 = vmatmul.mubr.f32.gmra.mxu1 %v5113_v47  ;;  %2771 = vmatpush2.msra.mxu0 %v2524_v34  ;;  %v2516_v47 = vld [vmem:[#allocation9 + $0x190] sm:$0xff]  ;;  %v2569_v34 = vld [vmem:[#allocation9 + $0x338] sm:$0xff] }
  0xec   :  { %1110 = vmatprep.mubr.f32.mxu1 %v5031_v0  ;;  %2772 = vmatprep.subr.mxu0 %v2523_v42  ;;  %v5254_v42 = vshrl.u32 %v1530_v36, 7 }
  0xed   :  { %2773 = vmatpush2.msra.mxu0 %v2522_v43  ;;  %2916 = vmatpush1.msra.mxu1 %v2540_v44  ;;  %v2568_v43 = vld [vmem:[#allocation9 + $0x330] sm:$0xff]  ;;  %v2567_v44 = vld [vmem:[#allocation9 + $0x328] sm:$0xff] }
  0xee   :  { %2774 = vmatprep.subr.mxu0 %v2521_v45  ;;  %2917 = vmatprep.subr.mxu1 %v2539_v48  ;;  %v2566_v45 = vld [vmem:[#allocation9 + $0x320] sm:$0xff]  ;;  %v2565_v48 = vld [vmem:[#allocation9 + $0x318] sm:$0xff] }
  0xef   :  { %1111 = vmatmul.mubr.f32.gmra.mxu1 %v5121_v53  ;;  %2775 = vmatpush2.msra.mxu0 %v2520_v41  ;;  %v2512_v53 = vld [vmem:[#allocation9 + $0x170] sm:$0xff]  ;;  %v1532_v41 = vsub.s32 0, %v5254_v42 }
  0xf0   :  { %1116 = vmatprep.mubr.f32.mxu1 %v5031_v0  ;;  %2776 = vmatprep.subr.mxu0 %v2519_v49  ;;  %v2564_v49 = vld [vmem:[#allocation9 + $0x310] sm:$0xff] }
  0xf1   :  { %2777 = vmatpush2.msra.mxu0 %v2518_v50  ;;  %2918 = vmatpush1.msra.mxu1 %v2538_v51  ;;  %v5257_v50 = vld [vmem:[#allocation8] sm:$0xff]  ;;  %v2563_v51 = vld [vmem:[#allocation9 + $0x308] sm:$0xff] }
  0xf2   :  { %2778 = vmatprep.subr.mxu0 %v2517_v54  ;;  %2919 = vmatprep.subr.mxu1 %v2537_v55  ;;  %v1536_v54 = vsub.s32 1, %v5254_v42  ;;  %v2562_v55 = vld [vmem:[#allocation9 + $0x300] sm:$0xff] }
  0xf3   :  { %1117 = vmatmul.mubr.f32.gmra.mxu1 %v5129_v59  ;;  %2779 = vmatpush2.msra.mxu0 %v2516_v47  ;;  %v2508_v59 = vld [vmem:[#allocation9 + $0x150] sm:$0xff]  ;;  %v2689_v47 = vld [vmem:[#allocation9 + $0x6f8] sm:$0xff] }
  0xf4   :  { %1122 = vmatprep.mubr.f32.mxu1 %v5031_v0  ;;  %2780 = vmatprep.subr.mxu0 %v2515_v56  ;;  %v5263_v56 = vrot.slane %v5257_v50, %v1532_v41 }
  0xf5   :  { %2781 = vmatpush2.msra.mxu0 %v2514_v57  ;;  %2920 = vmatpush1.msra.mxu1 %v2536_v60  ;;  %v5268_v57 = vrot.slane %v5257_v50, %v1536_v54 }
  0xf6   :  { %2782 = vmatprep.subr.mxu0 %v2513_v61  ;;  %2921 = vmatprep.subr.mxu1 %v2535_v62 }
  0xf7   :  { %1123 = vmatmul.mubr.f32.gmra.mxu1 %v5137_v2  ;;  %2783 = vmatpush2.msra.mxu0 %v2512_v53  ;;  %v2504_v2 = vld [vmem:[#allocation9 + $0x130] sm:$0xff] }
  0xf8   :  { %1128 = vmatprep.mubr.f32.mxu1 %v5031_v0  ;;  %2784 = vmatprep.subr.mxu0 %v2511_v63 }
  0xf9   :  { %2785 = vmatpush2.msra.mxu0 %v2510_v3  ;;  %2922 = vmatpush1.msra.mxu1 %v2534_v33 }
  0xfa   :  { %2786 = vmatprep.subr.mxu0 %v2509_v4  ;;  %2923 = vmatprep.subr.mxu1 %v2533_v5 }
  0xfb   :  { %1129 = vmatmul.mubr.f32.gmra.mxu1 %v5145_v8  ;;  %2787 = vmatpush2.msra.mxu0 %v2508_v59  ;;  %v2592_v8 = vld [vmem:[#allocation9 + $0x3f0] sm:$0xff] }
  0xfc   :  { %1134 = vmatprep.mubr.f32.mxu1 %v5031_v0  ;;  %2788 = vmatprep.subr.mxu0 %v2507_v6  ;;  %v2499_v0 = vld [vmem:[#allocation9 + $0x108] sm:$0xff] }
  0xfd   :  { %2789 = vmatpush2.msra.mxu0 %v2506_v40  ;;  %2924 = vmatpush1.msra.mxu1 %v2532_v9 }
  0xfe   :  { %2790 = vmatprep.subr.mxu0 %v2505_v10  ;;  %2925 = vmatprep.subr.mxu1 %v2531_v11 }
  0xff   :  { %1135 = vmatmul.mubr.f32.gmra.mxu1 %v5153_v14  ;;  %2791 = vmatpush2.msra.mxu0 %v2504_v2  ;;  %v2587_v14 = vld [vmem:[#allocation9 + $0x3c8] sm:$0xff] }
 0x100   :  { %2792 = vmatprep.subr.mxu0 %v2503_v46  ;;  %2926 = vmatpush1.msra.mxu1 %v2530_v12 }
 0x101   :  { %2793 = vmatpush2.msra.mxu0 %v2502_v15  ;;  %2927 = vmatprep.subr.mxu1 %v2593_v16 }
 0x102   :  { %2794 = vmatprep.subr.mxu0 %v2501_v52  ;;  %2928 = vmatpush2.msra.mxu1 %v2592_v8 }
 0x103   :  { %2795 = vmatpush2.msra.mxu0 %v2500_v17  ;;  %2929 = vmatprep.subr.mxu1 %v2591_v18 }
 0x104   :  { %2796 = vmatprep.subr.mxu0 %v2499_v0  ;;  %2930 = vmatpush2.msra.mxu1 %v2590_v19 }
 0x105   :  { %2797 = vmatpush2.msra.mxu0 %v2498_v58  ;;  %2931 = vmatprep.subr.mxu1 %v2589_v20 }
 0x106   :  { %3056 = vmatprep.subr.mxu0 %v2625_v21  ;;  %2932 = vmatpush2.msra.mxu1 %v2588_v22 }
 0x107   :  { %2933 = vmatprep.subr.mxu1 %v2587_v14 }
 0x108   :  { %2934 = vmatpush2.msra.mxu1 %v2586_v1 }
 0x109   :  { %2935 = vmatprep.subr.mxu1 %v2585_v23 }
 0x10a   :  { %2936 = vmatpush2.msra.mxu1 %v2584_v24 }
 0x10b   :  { %2937 = vmatprep.subr.mxu1 %v2583_v25 }
 0x10c   :  { %2938 = vmatpush2.msra.mxu1 %v2582_v26 }
 0x10d   :  { %2939 = vmatprep.subr.mxu1 %v2581_v7 }
 0x10e   :  { %2940 = vmatpush2.msra.mxu1 %v2580_v27 }
 0x10f   :  { %2941 = vmatprep.subr.mxu1 %v2579_v28 }
 0x110   :  { %2942 = vmatpush2.msra.mxu1 %v2578_v29 }
 0x111   :  { %2943 = vmatprep.subr.mxu1 %v2577_v30 }
 0x112   :  { %2944 = vmatpush2.msra.mxu1 %v2576_v31 }
 0x113   :  { %2945 = vmatprep.subr.mxu1 %v2575_v32 }
 0x114   :  { %2946 = vmatpush2.msra.mxu1 %v2574_v13 }
 0x115   :  { %2947 = vmatprep.subr.mxu1 %v2573_v35 }
 0x116   :  { %2948 = vmatpush2.msra.mxu1 %v2572_v37 }
 0x117   :  { %2949 = vmatprep.subr.mxu1 %v2571_v38 }
 0x118   :  { %2950 = vmatpush2.msra.mxu1 %v2570_v39 }
 0x119   :  { %2951 = vmatprep.subr.mxu1 %v2569_v34 }
 0x11a   :  { %2952 = vmatpush2.msra.mxu1 %v2568_v43 }
 0x11b   :  { %2953 = vmatprep.subr.mxu1 %v2567_v44 }
 0x11c   :  { %2954 = vmatpush2.msra.mxu1 %v2566_v45 }
 0x11d   :  { %2955 = vmatprep.subr.mxu1 %v2565_v48 }
 0x11e   :  { %2956 = vmatpush2.msra.mxu1 %v2564_v49 }
 0x11f   :  { %2957 = vmatprep.subr.mxu1 %v2563_v51 }
 0x120   :  { %2958 = vmatpush2.msra.mxu1 %v2562_v55 }
 0x121   :  { %3217 = vmatprep.subr.mxu1 %v2689_v47 }
 0x122   :  { %v563_v60 = vpop.f32.mrf.mxu0  ;;  %v611_v61 = vpop.f32.mrf.mxu1 }
 0x123   :  { %v1570_v62 = vadd.f32 %v5263_v56, %v563_v60  ;;  %v1634_v53 = vadd.f32 %v5263_v56, %v611_v61 }
 0x124   :  { %v565_v63 = vpop.f32.mrf.mxu0  ;;  %v613_v3 = vpop.f32.mrf.mxu1 }
 0x125   :  { %v3885_v33 = vmul.f32 -1.442695, %v1570_v62  ;;  %v3949_v4 = vmul.f32 -1.442695, %v1634_v53  ;;  %v1571_v5 = vadd.f32 %v5268_v57, %v565_v63  ;;  %v1635_v59 = vadd.f32 %v5268_v57, %v613_v3 }
 0x126   :  { %v569_v6 = vpop.f32.mrf.mxu0 }
 0x127   :  { %4187 = vpow2.f32 %v3885_v33  ;;  %v3886_v40 = vmul.f32 -1.442695, %v1571_v5  ;;  %v3950_v9 = vmul.f32 -1.442695, %v1635_v59  ;;  %v1578_v10 = vadd.f32 %v5263_v56, %v569_v6  ;;  %v617_v11 = vpop.f32.mrf.mxu1 }
 0x128   :  { %4189 = vpow2.f32 %v3949_v4  ;;  %v1642_v2 = vadd.f32 %v5263_v56, %v617_v11  ;;  %v571_v46 = vpop.f32.mrf.mxu0 }
 0x129   :  { %4191 = vpow2.f32 %v3886_v40  ;;  %v3893_v12 = vmul.f32 -1.442695, %v1578_v10  ;;  %v1579_v15 = vadd.f32 %v5268_v57, %v571_v46  ;;  %v619_v16 = vpop.f32.mrf.mxu1 }
 0x12a   :  { %4193 = vpow2.f32 %v3950_v9  ;;  %v3957_v52 = vmul.f32 -1.442695, %v1642_v2  ;;  %v1643_v8 = vadd.f32 %v5268_v57, %v619_v16  ;;  %v575_v17 = vpop.f32.mrf.mxu0 }
 0x12b   :  { %4195 = vpow2.f32 %v3893_v12  ;;  %v3894_v18 = vmul.f32 -1.442695, %v1579_v15  ;;  %v1586_v0 = vadd.f32 %v5263_v56, %v575_v17  ;;  %v623_v19 = vpop.f32.mrf.mxu1 }
 0x12c   :  { %4197 = vpow2.f32 %v3957_v52  ;;  %v3958_v58 = vmul.f32 -1.442695, %v1643_v8  ;;  %v1650_v20 = vadd.f32 %v5263_v56, %v623_v19  ;;  %v577_v21 = vpop.f32.mrf.mxu0 }
 0x12d   :  { %4199 = vpow2.f32 %v3894_v18  ;;  %v3901_v22 = vmul.f32 -1.442695, %v1586_v0  ;;  %v1587_v14 = vadd.f32 %v5268_v57, %v577_v21  ;;  %v625_v1 = vpop.f32.mrf.mxu1 }
 0x12e   :  { %4201 = vpow2.f32 %v3958_v58  ;;  %v3965_v23 = vmul.f32 -1.442695, %v1650_v20  ;;  %v1651_v24 = vadd.f32 %v5268_v57, %v625_v1  ;;  %v581_v25 = vpop.f32.mrf.mxu0 }
 0x12f   :  { %4203 = vpow2.f32 %v3901_v22  ;;  %v3902_v26 = vmul.f32 -1.442695, %v1587_v14  ;;  %v1594_v7 = vadd.f32 %v5263_v56, %v581_v25  ;;  %v629_v27 = vpop.f32.mrf.mxu1 }
 0x130   :  { %4205 = vpow2.f32 %v3965_v23  ;;  %v3966_v28 = vmul.f32 -1.442695, %v1651_v24  ;;  %v1658_v29 = vadd.f32 %v5263_v56, %v629_v27  ;;  %v583_v30 = vpop.f32.mrf.mxu0 }
 0x131   :  { %4207 = vpow2.f32 %v3902_v26  ;;  %v3909_v31 = vmul.f32 -1.442695, %v1594_v7  ;;  %v1595_v32 = vadd.f32 %v5268_v57, %v583_v30  ;;  %v631_v13 = vpop.f32.mrf.mxu1 }
 0x132   :  { %4209 = vpow2.f32 %v3966_v28  ;;  %v3973_v35 = vmul.f32 -1.442695, %v1658_v29  ;;  %v1659_v36 = vadd.f32 %v5268_v57, %v631_v13  ;;  %v587_v37 = vpop.f32.mrf.mxu0 }
 0x133   :  { %4211 = vpow2.f32 %v3909_v31  ;;  %v3910_v38 = vmul.f32 -1.442695, %v1595_v32  ;;  %v635_v39 = vpop.f32.mrf.mxu1  ;;  %v1602_v0 = vadd.f32 %v5263_v56, %v587_v37 }
 0x134   :  { %v4188_v34 = vpop.eup %4187  ;;  %4213 = vpow2.f32 %v3973_v35  ;;  %v3974_v43 = vmul.f32 -1.442695, %v1659_v36  ;;  %v589_v44 = vpop.f32.mrf.mxu0  ;;  %v1666_v21 = vadd.f32 %v5263_v56, %v635_v39 }
 0x135   :  { %v4190_v45 = vpop.eup %4189  ;;  %v2082_v48 = vadd.f32 1.0, %v4188_v34  ;;  %4215 = vpow2.f32 %v3910_v38  ;;  %v637_v49 = vpop.f32.mrf.mxu1  ;;  %v1603_v1 = vadd.f32 %v5268_v57, %v589_v44  ;;  %v3917_v29 = vmul.f32 -1.442695, %v1602_v0  ;;  %v2618_v0 = vld [vmem:[#allocation9 + $0x4c0] sm:$0xff] }
 0x136   :  { %v4192_v51 = vpop.eup %4191  ;;  %v2146_v55 = vadd.f32 1.0, %v4190_v45  ;;  %4217 = vpow2.f32 %v3974_v43  ;;  %v593_v47 = vpop.f32.mrf.mxu0  ;;  %v1667_v26 = vadd.f32 %v5268_v57, %v637_v49  ;;  %v3981_v35 = vmul.f32 -1.442695, %v1666_v21  ;;  %v2624_v49 = vld [vmem:[#allocation9 + $0x4f0] sm:$0xff] }
 0x137   :  { %v4194_v60 = vpop.eup %4193  ;;  %4219 = vrcp.f32 %v2082_v48  ;;  %v2083_v61 = vadd.f32 1.0, %v4192_v51  ;;  %v641_v62 = vpop.f32.mrf.mxu1  ;;  %v1610_v30 = vadd.f32 %v5263_v56, %v593_v47  ;;  %v3918_v38 = vmul.f32 -1.442695, %v1603_v1 }
 0x138   :  { %v4196_v53 = vpop.eup %4195  ;;  %4221 = vrcp.f32 %v2146_v55  ;;  %v2147_v63 = vadd.f32 1.0, %v4194_v60  ;;  %v595_v6 = vpop.f32.mrf.mxu0  ;;  %v1674_v36 = vadd.f32 %v5263_v56, %v641_v62  ;;  %v3982_v44 = vmul.f32 -1.442695, %v1667_v26 }
 0x139   :  { %v4198_v3 = vpop.eup %4197  ;;  %4223 = vrcp.f32 %v2083_v61  ;;  %v2090_v33 = vadd.f32 1.0, %v4196_v53  ;;  %v643_v4 = vpop.f32.mrf.mxu1  ;;  %v1611_v39 = vadd.f32 %v5268_v57, %v595_v6  ;;  %v3925_v55 = vmul.f32 -1.442695, %v1610_v30  ;;  %v2623_v61 = vld [vmem:[#allocation9 + $0x4e8] sm:$0xff]  ;;  %v2621_v6 = vld [vmem:[#allocation9 + $0x4d8] sm:$0xff]  ;;  %v2614_v30 = vld [vmem:[#allocation9 + $0x4a0] sm:$0xff] }
 0x13a   :  { %v4200_v5 = vpop.eup %4199  ;;  %4225 = vrcp.f32 %v2147_v63  ;;  %v2154_v59 = vadd.f32 1.0, %v4198_v3  ;;  %v599_v8 = vpop.f32.mrf.mxu0  ;;  %v1675_v45 = vadd.f32 %v5268_v57, %v643_v4  ;;  %v3989_v53 = vmul.f32 -1.442695, %v1674_v36  ;;  %v2622_v3 = vld [vmem:[#allocation9 + $0x4e0] sm:$0xff] }
 0x13b   :  { %v4202_v40 = vpop.eup %4201  ;;  %4227 = vrcp.f32 %v2090_v33  ;;  %v2091_v9 = vadd.f32 1.0, %v4200_v5  ;;  %v5286_v10 = vpop.f32.mrf.mxu1  ;;  %v1618_v47 = vadd.f32 %v5263_v56, %v599_v8  ;;  %v3926_v4 = vmul.f32 -1.442695, %v1611_v39  ;;  %v2619_v8 = vld [vmem:[#allocation9 + $0x4c8] sm:$0xff] }
 0x13c   :  { %v4204_v11 = vpop.eup %4203  ;;  %4229 = vrcp.f32 %v2154_v59  ;;  %v2155_v2 = vadd.f32 1.0, %v4202_v40  ;;  %v601_v7 = vpop.f32.mrf.mxu0  ;;  %v1682_v63 = vadd.f32 %v5263_v56, %v5286_v10  ;;  %v2620_v10 = vld [vmem:[#allocation9 + $0x4d0] sm:$0xff] }
 0x13d   :  { %v4206_v46 = vpop.eup %4205  ;;  %4231 = vrcp.f32 %v2091_v9  ;;  %v2098_v12 = vadd.f32 1.0, %v4204_v11  ;;  %v5288_v15 = vpop.f32.mrf.mxu1  ;;  %v1619_v5 = vadd.f32 %v5268_v57, %v601_v7  ;;  %v3990_v9 = vmul.f32 -1.442695, %v1675_v45 }
 0x13e   :  { %v4208_v16 = vpop.eup %4207  ;;  %4233 = vrcp.f32 %v2155_v2  ;;  %v2162_v52 = vadd.f32 1.0, %v4206_v46  ;;  %v605_v48 = vpop.f32.mrf.mxu0  ;;  %v1683_v11 = vadd.f32 %v5268_v57, %v5288_v15 }
 0x13f   :  { %v4210_v17 = vpop.eup %4209  ;;  %4235 = vrcp.f32 %v2098_v12  ;;  %v2099_v18 = vadd.f32 1.0, %v4208_v16  ;;  %v5291_v19 = vpop.f32.mrf.mxu1  ;;  %v3933_v12 = vmul.f32 -1.442695, %v1618_v47  ;;  %v1626_v16 = vadd.f32 %v5263_v56, %v605_v48  ;;  %v2610_v48 = vld [vmem:[#allocation9 + $0x480] sm:$0xff] }
 0x140   :  { %v4212_v58 = vpop.eup %4211  ;;  %4237 = vrcp.f32 %v2162_v52  ;;  %v2163_v20 = vadd.f32 1.0, %v4210_v17  ;;  %v607_v2 = vpop.f32.mrf.mxu0  ;;  %v1690_v15 = vadd.f32 %v5263_v56, %v5291_v19  ;;  %v2616_v56 = vld [vmem:[#allocation9 + $0x4b0] sm:$0xff] }
 0x141   :  { %v4214_v22 = vpop.eup %4213  ;;  %4239 = vrcp.f32 %v2099_v18  ;;  %v2106_v14 = vadd.f32 1.0, %v4212_v58  ;;  %v5295_v23 = vpop.f32.mrf.mxu1  ;;  %v3997_v18 = vmul.f32 -1.442695, %v1682_v63  ;;  %v1627_v21 = vadd.f32 %v5268_v57, %v607_v2  ;;  %v2608_v63 = vld [vmem:[#allocation9 + $0x470] sm:$0xff] }
 0x142   :  { %v4216_v24 = vpop.eup %4215  ;;  %4241 = vrcp.f32 %v2163_v20  ;;  %v2170_v25 = vadd.f32 1.0, %v4214_v22  ;;  %v3934_v20 = vmul.f32 -1.442695, %v1619_v5  ;;  %v3941_v26 = vmul.f32 -1.442695, %v1626_v16 }
 0x143   :  { %v4218_v27 = vpop.eup %4217  ;;  %4243 = vrcp.f32 %v2106_v14  ;;  %v2107_v28 = vadd.f32 1.0, %v4216_v24  ;;  %v5299_v31 = vpop.f32.mrf.mxu1  ;;  %v2617_v14 = vld [vmem:[#allocation9 + $0x4b8] sm:$0xff]  ;;  %v3998_v24 = vmul.f32 -1.442695, %v1683_v11  ;;  %v1540_v5 = vsub.s32 2, %v5254_v42 }
 0x144   :  { %v4220_v32 = vpop.eup %4219  ;;  %4245 = vrcp.f32 %v2170_v25  ;;  %v2171_v13 = vadd.f32 1.0, %v4218_v27  ;;  %v1691_v25 = vadd.f32 %v5268_v57, %v5295_v23  ;;  %v2615_v27 = vld [vmem:[#allocation9 + $0x4a8] sm:$0xff]  ;;  %v3942_v57 = vmul.f32 -1.442695, %v1627_v21 }
 0x145   :  { %v5302_v37 = vpop.eup %4221  ;;  %4247 = vrcp.f32 %v2107_v28  ;;  %v5305_v34 = vpop.f32.mrf.mxu1  ;;  %v1544_v2 = vsub.s32 3, %v5254_v42 }
 0x146   :  { %v4224_v43 = vpop.eup %4223  ;;  %4249 = vrcp.f32 %v2171_v13  ;;  %v2613_v13 = vld [vmem:[#allocation9 + $0x498] sm:$0xff]  ;;  %v4006_v36 = vmul.f32 -1.442695, %v1691_v25 }
 0x147   :  { %v5308_v51 = vpop.eup %4225  ;;  %4251 = vpow2.f32 %v3917_v29  ;;  %v5311_v60 = vpop.f32.mrf.mxu1  ;;  %2798 = vmatprep.mubr.f32.mxu0 %v4224_v43  ;;  %v4005_v29 = vmul.f32 -1.442695, %v1690_v15 }
 0x148   :  { %v4228_v62 = vpop.eup %4227  ;;  %4253 = vpow2.f32 %v3981_v35  ;;  %2799 = vmatmul.mubr.f32.vlgmr.msra.gmra.mxu0 %v4220_v32 }
 0x149   :  { %v5315_v33 = vpop.eup %4229  ;;  %4255 = vpow2.f32 %v3918_v38  ;;  %v5318_v59 = vpop.f32.mrf.mxu1  ;;  %3057 = vmatpush1.msra.mxu0 %v2624_v49  ;;  %v2612_v38 = vld [vmem:[#allocation9 + $0x490] sm:$0xff] }
 0x14a   :  { %v4232_v40 = vpop.eup %4231  ;;  %4257 = vpow2.f32 %v3982_v44  ;;  %3058 = vmatprep.subr.mxu0 %v2623_v61  ;;  %v2611_v44 = vld [vmem:[#allocation9 + $0x488] sm:$0xff]  ;;  %v2609_v61 = vld [vmem:[#allocation9 + $0x478] sm:$0xff] }
 0x14b   :  { %v5322_v46 = vpop.eup %4233  ;;  %4259 = vpow2.f32 %v3925_v55  ;;  %v5325_v52 = vpop.f32.mrf.mxu1  ;;  %2804 = vmatprep.mubr.f32.mxu0 %v4232_v40  ;;  %3059 = vmatpush1.msra.mxu0 %v2622_v3  ;;  %v2607_v40 = vld [vmem:[#allocation9 + $0x468] sm:$0xff] }
 0x14c   :  { %v4236_v17 = vpop.eup %4235  ;;  %4261 = vpow2.f32 %v3989_v53  ;;  %2805 = vmatmul.mubr.f32.gmra.mxu0 %v4228_v62  ;;  %3060 = vmatprep.subr.mxu0 %v2621_v6 }
 0x14d   :  { %v5329_v58 = vpop.eup %4237  ;;  %4263 = vpow2.f32 %v3926_v4  ;;  %v5332_v22 = vpop.f32.mrf.mxu1  ;;  %3061 = vmatpush1.msra.mxu0 %v2620_v10  ;;  %v2606_v10 = vld [vmem:[#allocation9 + $0x460] sm:$0xff] }
 0x14e   :  { %v4240_v1 = vpop.eup %4239  ;;  %4265 = vpow2.f32 %v3990_v9  ;;  %3062 = vmatprep.subr.mxu0 %v2619_v8 }
 0x14f   :  { %v5336_v19 = vpop.eup %4241  ;;  %4267 = vpow2.f32 %v3933_v12  ;;  %v5338_v7 = vpop.f32.mrf.mxu1  ;;  %2810 = vmatprep.mubr.f32.mxu0 %v4240_v1  ;;  %3063 = vmatpush1.msra.mxu0 %v2618_v0  ;;  %v2604_v0 = vld [vmem:[#allocation9 + $0x450] sm:$0xff] }
 0x150   :  { %v4244_v28 = vpop.eup %4243  ;;  %4269 = vpow2.f32 %v3997_v18  ;;  %2811 = vmatmul.mubr.f32.gmra.mxu0 %v4236_v17  ;;  %3064 = vmatprep.subr.mxu0 %v2617_v14  ;;  %v2605_v17 = vld [vmem:[#allocation9 + $0x458] sm:$0xff]  ;;  %v5357_v14 = vrot.slane %v5257_v50, %v1540_v5 }
 0x151   :  { %v5340_v32 = vpop.eup %4245  ;;  %4271 = vpow2.f32 %v3934_v20  ;;  %v5342_v23 = vpop.f32.mrf.mxu1  ;;  %3065 = vmatpush1.msra.mxu0 %v2616_v56 }
 0x152   :  { %v4248_v35 = vpop.eup %4247  ;;  %4273 = vpow2.f32 %v3998_v24  ;;  %3066 = vmatprep.subr.mxu0 %v2615_v27  ;;  %v2603_v24 = vld [vmem:[#allocation9 + $0x448] sm:$0xff]  ;;  %v2602_v27 = vld [vmem:[#allocation9 + $0x440] sm:$0xff] }
 0x153   :  { %v5344_v39 = vpop.eup %4249  ;;  %4275 = vpow2.f32 %v3941_v26  ;;  %v5346_v43 = vpop.f32.mrf.mxu1  ;;  %2816 = vmatprep.mubr.f32.mxu0 %v4248_v35  ;;  %3067 = vmatpush1.msra.mxu0 %v2614_v30  ;;  %v5362_v26 = vrot.slane %v5257_v50, %v1544_v2 }
 0x154   :  { %v4252_v45 = vpop.eup %4251  ;;  %4277 = vpow2.f32 %v4005_v29  ;;  %2817 = vmatmul.mubr.f32.gmra.mxu0 %v4244_v28  ;;  %3068 = vmatprep.subr.mxu0 %v2613_v13 }
 0x155   :  { %v4254_v49 = vpop.eup %4253  ;;  %v2114_v55 = vadd.f32 1.0, %v4252_v45  ;;  %4279 = vpow2.f32 %v3942_v57  ;;  %v5348_v47 = vpop.f32.mrf.mxu1  ;;  %3069 = vmatpush1.msra.mxu0 %v2612_v38  ;;  %v2601_v57 = vld [vmem:[#allocation9 + $0x438] sm:$0xff]  ;;  %v1572_v45 = vadd.f32 %v5357_v14, %v5299_v31 }
 0x156   :  { %v4256_v62 = vpop.eup %4255  ;;  %v2178_v53 = vadd.f32 1.0, %v4254_v49  ;;  %4281 = vpow2.f32 %v4006_v36  ;;  %3070 = vmatprep.subr.mxu0 %v2611_v44  ;;  %v2600_v36 = vld [vmem:[#allocation9 + $0x430] sm:$0xff]  ;;  %v2599_v49 = vld [vmem:[#allocation9 + $0x428] sm:$0xff]  ;;  %v2597_v31 = vld [vmem:[#allocation9 + $0x418] sm:$0xff] }
 0x157   :  { %v4258_v3 = vpop.eup %4257  ;;  %4283 = vrcp.f32 %v2114_v55  ;;  %v2115_v4 = vadd.f32 1.0, %v4256_v62  ;;  %v5351_v6 = vpop.f32.mrf.mxu1  ;;  %3071 = vmatpush1.msra.mxu0 %v2610_v48  ;;  %v1573_v62 = vadd.f32 %v5362_v26, %v5305_v34  ;;  %v2596_v34 = vld [vmem:[#allocation9 + $0x410] sm:$0xff] }
 0x158   :  { %v4260_v9 = vpop.eup %4259  ;;  %4285 = vrcp.f32 %v2178_v53  ;;  %v2179_v11 = vadd.f32 1.0, %v4258_v3  ;;  %3072 = vmatprep.subr.mxu0 %v2609_v61  ;;  %v2598_v53 = vld [vmem:[#allocation9 + $0x420] sm:$0xff] }
 0x159   :  { %v4262_v12 = vpop.eup %4261  ;;  %4287 = vrcp.f32 %v2115_v4  ;;  %v2122_v16 = vadd.f32 1.0, %v4260_v9  ;;  %v5354_v8 = vpop.f32.mrf.mxu1  ;;  %3073 = vmatpush1.msra.mxu0 %v2608_v63  ;;  %v1580_v4 = vadd.f32 %v5357_v14, %v5311_v60 }
 0x15a   :  { %v4264_v18 = vpop.eup %4263  ;;  %4289 = vrcp.f32 %v2179_v11  ;;  %v2186_v15 = vadd.f32 1.0, %v4262_v12  ;;  %3074 = vmatprep.subr.mxu0 %v2607_v40  ;;  %v1581_v11 = vadd.f32 %v5362_v26, %v5318_v59  ;;  %v3887_v12 = vmul.f32 -1.442695, %v1572_v45  ;;  %v2654_v45 = vld [vmem:[#allocation9 + $0x5e0] sm:$0xff] }
 0x15b   :  { %v4266_v20 = vpop.eup %4265  ;;  %4291 = vrcp.f32 %v2122_v16  ;;  %v2123_v21 = vadd.f32 1.0, %v4264_v18  ;;  %v5359_v1 = vpop.f32.mrf.mxu1  ;;  %3075 = vmatpush1.msra.mxu0 %v2606_v10  ;;  %v1588_v16 = vadd.f32 %v5357_v14, %v5325_v52  ;;  %v1589_v59 = vadd.f32 %v5362_v26, %v5332_v22  ;;  %v2656_v22 = vld [vmem:[#allocation9 + $0x5f0] sm:$0xff] }
 0x15c   :  { %v4268_v25 = vpop.eup %4267  ;;  %4293 = vrcp.f32 %v2186_v15  ;;  %v2187_v56 = vadd.f32 1.0, %v4266_v20  ;;  %3076 = vmatprep.subr.mxu0 %v2605_v17  ;;  %v2595_v17 = vld [vmem:[#allocation9 + $0x408] sm:$0xff]  ;;  %v2594_v20 = vld [vmem:[#allocation9 + $0x400] sm:$0xff]  ;;  %v1596_v52 = vadd.f32 %v5357_v14, %v5338_v7 }
 0x15d   :  { %v4270_v28 = vpop.eup %4269  ;;  %4295 = vrcp.f32 %v2123_v21  ;;  %v2130_v29 = vadd.f32 1.0, %v4268_v25  ;;  %v5364_v30 = vpop.f32.mrf.mxu1  ;;  %3077 = vmatpush1.msra.mxu0 %v2604_v0  ;;  %v3888_v0 = vmul.f32 -1.442695, %v1573_v62  ;;  %v2653_v62 = vld [vmem:[#allocation9 + $0x5d8] sm:$0xff] }
 0x15e   :  { %v4272_v13 = vpop.eup %4271  ;;  %4297 = vrcp.f32 %v2187_v56  ;;  %v2194_v35 = vadd.f32 1.0, %v4270_v28  ;;  %3078 = vmatprep.subr.mxu0 %v2603_v24  ;;  %v3895_v24 = vmul.f32 -1.442695, %v1580_v4  ;;  %v2657_v56 = vld [vmem:[#allocation9 + $0x5f8] sm:$0xff]  ;;  %v3896_v28 = vmul.f32 -1.442695, %v1581_v11 }
 0x15f   :  { %v4274_v38 = vpop.eup %4273  ;;  %4299 = vrcp.f32 %v2130_v29  ;;  %v2131_v44 = vadd.f32 1.0, %v4272_v13  ;;  %v5368_v48 = vpop.f32.mrf.mxu1  ;;  %3079 = vmatpush1.msra.mxu0 %v2602_v27  ;;  %v1597_v29 = vadd.f32 %v5362_v26, %v5342_v23  ;;  %v3903_v13 = vmul.f32 -1.442695, %v1588_v16 }
 0x160   :  { %v4276_v55 = vpop.eup %4275  ;;  %4301 = vrcp.f32 %v2194_v35  ;;  %v2195_v61 = vadd.f32 1.0, %v4274_v38  ;;  %3080 = vmatprep.subr.mxu0 %v2601_v57  ;;  %v1604_v35 = vadd.f32 %v5357_v14, %v5346_v43  ;;  %v1605_v23 = vadd.f32 %v5362_v26, %v5348_v47 }
 0x161   :  { %v4278_v63 = vpop.eup %4277  ;;  %4303 = vrcp.f32 %v2131_v44  ;;  %v2138_v3 = vadd.f32 1.0, %v4276_v55  ;;  %v5374_v5 = vpop.f32.mrf.mxu1  ;;  %3081 = vmatpush1.msra.mxu0 %v2600_v36  ;;  %v2655_v36 = vld [vmem:[#allocation9 + $0x5e8] sm:$0xff]  ;;  %v3904_v44 = vmul.f32 -1.442695, %v1589_v59  ;;  %v3911_v55 = vmul.f32 -1.442695, %v1596_v52 }
 0x162   :  { %v4280_v40 = vpop.eup %4279  ;;  %4305 = vrcp.f32 %v2195_v61  ;;  %v2202_v9 = vadd.f32 1.0, %v4278_v63  ;;  %3082 = vmatprep.subr.mxu0 %v2599_v49  ;;  %v1612_v43 = vadd.f32 %v5357_v14, %v5351_v6  ;;  %v3912_v63 = vmul.f32 -1.442695, %v1597_v29  ;;  %v2648_v59 = vld [vmem:[#allocation9 + $0x5b0] sm:$0xff]  ;;  %v2647_v52 = vld [vmem:[#allocation9 + $0x5a8] sm:$0xff] }
 0x163   :  { %v4282_v2 = vpop.eup %4281  ;;  %4307 = vrcp.f32 %v2138_v3  ;;  %v2139_v10 = vadd.f32 1.0, %v4280_v40  ;;  %v5380_v60 = vpop.f32.mrf.mxu1  ;;  %3083 = vmatpush1.msra.mxu0 %v2598_v53  ;;  %v1613_v47 = vadd.f32 %v5362_v26, %v5354_v8  ;;  %v2652_v3 = vld [vmem:[#allocation9 + $0x5d0] sm:$0xff]  ;;  %v1620_v40 = vadd.f32 %v5357_v14, %v5359_v1 }
 0x164   :  { %v4284_v18 = vpop.eup %4283  ;;  %4309 = vrcp.f32 %v2202_v9  ;;  %v2203_v15 = vadd.f32 1.0, %v4282_v2  ;;  %3084 = vmatprep.subr.mxu0 %v2597_v31  ;;  %v3919_v31 = vmul.f32 -1.442695, %v1604_v35  ;;  %v2651_v9 = vld [vmem:[#allocation9 + $0x5c8] sm:$0xff]  ;;  %v1621_v8 = vadd.f32 %v5362_v26, %v5364_v30  ;;  %v2650_v2 = vld [vmem:[#allocation9 + $0x5c0] sm:$0xff] }
 0x165   :  { %v5384_v21 = vpop.eup %4285  ;;  %4311 = vrcp.f32 %v2139_v10  ;;  %v5388_v25 = vpop.f32.mrf.mxu1  ;;  %3085 = vmatpush1.msra.mxu0 %v2596_v34  ;;  %v3920_v34 = vmul.f32 -1.442695, %v1605_v23  ;;  %v1628_v1 = vadd.f32 %v5357_v14, %v5368_v48  ;;  %v1629_v30 = vadd.f32 %v5362_v26, %v5374_v5 }
 0x166   :  { %v4288_v27 = vpop.eup %4287  ;;  %4313 = vrcp.f32 %v2203_v15  ;;  %3086 = vmatprep.subr.mxu0 %v2595_v17  ;;  %v2649_v17 = vld [vmem:[#allocation9 + $0x5b8] sm:$0xff]  ;;  %v3928_v15 = vmul.f32 -1.442695, %v1613_v47 }
 0x167   :  { %v5392_v57 = vpop.eup %4289  ;;  %4315 = vpow2.f32 %v3887_v12  ;;  %2822 = vmatprep.mubr.f32.mxu0 %v4288_v27  ;;  %v5396_v7 = vpop.f32.mrf.mxu1  ;;  %3087 = vmatpush1.msra.mxu0 %v2594_v20  ;;  %v3927_v12 = vmul.f32 -1.442695, %v1612_v43  ;;  %v3936_v27 = vmul.f32 -1.442695, %v1621_v8  ;;  %v3943_v29 = vmul.f32 -1.442695, %v1628_v1 }
 0x168   :  { %v4292_v38 = vpop.eup %4291  ;;  %4317 = vpow2.f32 %v3888_v0  ;;  %2823 = vmatmul.mubr.f32.gmra.mxu0 %v4284_v18  ;;  %3088 = vmatprep.subr.mxu0 %v2657_v56  ;;  %v5424_v0 = vpop.f32.mrf.mxu0  ;;  %v2641_v47 = vld [vmem:[#allocation9 + $0x578] sm:$0xff]  ;;  %v2639_v8 = vld [vmem:[#allocation9 + $0x568] sm:$0xff]  ;;  %v1548_v1 = vsub.s32 4, %v5254_v42 }
 0x169   :  { %v5400_v49 = vpop.eup %4293  ;;  %4319 = vpow2.f32 %v3895_v24  ;;  %v5404_v61 = vpop.f32.mrf.mxu1  ;;  %3089 = vmatpush2.msra.mxu0 %v2656_v22  ;;  %v3935_v24 = vmul.f32 -1.442695, %v1620_v40 }
 0x16a   :  { %v4296_v53 = vpop.eup %4295  ;;  %4321 = vpow2.f32 %v3896_v28  ;;  %3090 = vmatprep.subr.mxu0 %v2655_v36  ;;  %v2646_v28 = vld [vmem:[#allocation9 + $0x5a0] sm:$0xff]  ;;  %v3944_v36 = vmul.f32 -1.442695, %v1629_v30  ;;  %v2637_v30 = vld [vmem:[#allocation9 + $0x558] sm:$0xff] }
 0x16b   :  { %v5408_v4 = vpop.eup %4297  ;;  %4323 = vpow2.f32 %v3903_v13  ;;  %2828 = vmatprep.mubr.f32.mxu0 %v4296_v53  ;;  %v5412_v6 = vpop.f32.mrf.mxu1  ;;  %3091 = vmatpush2.msra.mxu0 %v2654_v45  ;;  %v2645_v13 = vld [vmem:[#allocation9 + $0x598] sm:$0xff]  ;;  %v2643_v45 = vld [vmem:[#allocation9 + $0x588] sm:$0xff] }
 0x16c   :  { %v4300_v11 = vpop.eup %4299  ;;  %4325 = vpow2.f32 %v3904_v44  ;;  %2829 = vmatmul.mubr.f32.gmra.mxu0 %v4292_v38  ;;  %3092 = vmatprep.subr.mxu0 %v2653_v62  ;;  %v5434_v38 = vpop.f32.mrf.mxu0  ;;  %v2644_v44 = vld [vmem:[#allocation9 + $0x590] sm:$0xff]  ;;  %v2642_v62 = vld [vmem:[#allocation9 + $0x580] sm:$0xff] }
 0x16d   :  { %v5416_v10 = vpop.eup %4301  ;;  %4327 = vpow2.f32 %v3911_v55  ;;  %v5420_v16 = vpop.f32.mrf.mxu1  ;;  %3093 = vmatpush2.msra.mxu0 %v2652_v3 }
 0x16e   :  { %v4304_v18 = vpop.eup %4303  ;;  %4329 = vpow2.f32 %v3912_v63  ;;  %3094 = vmatprep.subr.mxu0 %v2651_v9  ;;  %v5441_v40 = vpop.f32.mrf.mxu0  ;;  %v2640_v9 = vld [vmem:[#allocation9 + $0x570] sm:$0xff] }
 0x16f   :  { %v5426_v20 = vpop.eup %4305  ;;  %4331 = vpow2.f32 %v3919_v31  ;;  %2834 = vmatprep.mubr.f32.mxu0 %v4304_v18  ;;  %v5428_v48 = vpop.f32.mrf.mxu1  ;;  %3095 = vmatpush2.msra.mxu0 %v2650_v2 }
 0x170   :  { %v4308_v56 = vpop.eup %4307  ;;  %4333 = vpow2.f32 %v3920_v34  ;;  %2835 = vmatmul.mubr.f32.gmra.mxu0 %v4300_v11  ;;  %3096 = vmatprep.subr.mxu0 %v2649_v17  ;;  %v2638_v17 = vld [vmem:[#allocation9 + $0x560] sm:$0xff] }
 0x171   :  { %v5430_v5 = vpop.eup %4309  ;;  %4335 = vpow2.f32 %v3927_v12  ;;  %v5432_v22 = vpop.f32.mrf.mxu1  ;;  %3097 = vmatpush2.msra.mxu0 %v2648_v59 }
 0x172   :  { %v4312_v35 = vpop.eup %4311  ;;  %4337 = vpow2.f32 %v3928_v15  ;;  %3098 = vmatprep.subr.mxu0 %v2647_v52  ;;  %v1552_v52 = vsub.s32 5, %v5254_v42 }
 0x173   :  { %v5436_v23 = vpop.eup %4313  ;;  %4339 = vpow2.f32 %v3935_v24  ;;  %2840 = vmatprep.mubr.f32.mxu0 %v4312_v35  ;;  %3099 = vmatpush2.msra.mxu0 %v2646_v28  ;;  %v5438_v43 = vpop.f32.mrf.mxu1 }
 0x174   :  { %v4316_v55 = vpop.eup %4315  ;;  %4341 = vpow2.f32 %v3936_v27  ;;  %2841 = vmatmul.mubr.f32.gmra.mxu0 %v4308_v56  ;;  %3100 = vmatprep.subr.mxu0 %v2645_v13  ;;  %v5449_v56 = vpop.f32.mrf.mxu0 }
 0x175   :  { %v4318_v53 = vpop.eup %4317  ;;  %v2084_v63 = vadd.f32 1.0, %v4316_v55  ;;  %4343 = vpow2.f32 %v3943_v29  ;;  %2846 = vmatprep.mubr.f32.mxu0 %v5308_v51  ;;  %3101 = vmatpush2.msra.mxu0 %v2644_v44  ;;  %v5445_v51 = vpop.f32.mrf.mxu1  ;;  %v2635_v29 = vld [vmem:[#allocation9 + $0x548] sm:$0xff]  ;;  %v2634_v44 = vld [vmem:[#allocation9 + $0x540] sm:$0xff] }
 0x176   :  { %v4320_v3 = vpop.eup %4319  ;;  %v2085_v31 = vadd.f32 1.0, %v4318_v53  ;;  %4345 = vpow2.f32 %v3944_v36  ;;  %3102 = vmatprep.subr.mxu0 %v2643_v45 }
 0x177   :  { %v4322_v11 = vpop.eup %4321  ;;  %4347 = vrcp.f32 %v2084_v63  ;;  %v2092_v34 = vadd.f32 1.0, %v4320_v3  ;;  %3103 = vmatpush2.msra.mxu0 %v2642_v62  ;;  %v5455_v36 = vpop.f32.mrf.mxu1  ;;  %v2633_v62 = vld [vmem:[#allocation9 + $0x538] sm:$0xff]  ;;  %v2632_v3 = vld [vmem:[#allocation9 + $0x530] sm:$0xff] }
 0x178   :  { %v4324_v2 = vpop.eup %4323  ;;  %4349 = vrcp.f32 %v2085_v31  ;;  %v2093_v12 = vadd.f32 1.0, %v4322_v11  ;;  %2847 = vmatmul.mubr.f32.gmra.mxu0 %v5302_v37  ;;  %3104 = vmatprep.subr.mxu0 %v2641_v47  ;;  %v2636_v37 = vld [vmem:[#allocation9 + $0x550] sm:$0xff]  ;;  %v5458_v47 = vld [vmem:[#allocation8] sm:$0xff]  ;;  %v2631_v11 = vld [vmem:[#allocation9 + $0x528] sm:$0xff] }
 0x179   :  { %v4326_v18 = vpop.eup %4325  ;;  %4351 = vrcp.f32 %v2092_v34  ;;  %v2100_v15 = vadd.f32 1.0, %v4324_v2  ;;  %2852 = vmatprep.mubr.f32.mxu0 %v5322_v46  ;;  %3105 = vmatpush2.msra.mxu0 %v2640_v9  ;;  %v5452_v46 = vrot.slane %v5257_v50, %v1548_v1  ;;  %v5461_v50 = vrot.slane %v5458_v47, %v1552_v52  ;;  %v2630_v1 = vld [vmem:[#allocation9 + $0x520] sm:$0xff] }
 0x17a   :  { %v4328_v59 = vpop.eup %4327  ;;  %4353 = vrcp.f32 %v2093_v12  ;;  %v2101_v24 = vadd.f32 1.0, %v4326_v18  ;;  %3106 = vmatprep.subr.mxu0 %v2639_v8  ;;  %v5470_v12 = vpop.f32.mrf.mxu1 }
 0x17b   :  { %v4330_v27 = vpop.eup %4329  ;;  %4355 = vrcp.f32 %v2100_v15  ;;  %v2108_v28 = vadd.f32 1.0, %v4328_v59  ;;  %3107 = vmatpush2.msra.mxu0 %v2638_v17  ;;  %v1574_v2 = vadd.f32 %v5452_v46, %v5424_v0  ;;  %v2629_v15 = vld [vmem:[#allocation9 + $0x518] sm:$0xff] }
 0x17c   :  { %v4332_v13 = vpop.eup %4331  ;;  %4357 = vrcp.f32 %v2101_v24  ;;  %v2109_v35 = vadd.f32 1.0, %v4330_v27  ;;  %2853 = vmatmul.mubr.f32.gmra.mxu0 %v5315_v33  ;;  %3108 = vmatprep.subr.mxu0 %v2637_v30  ;;  %v5463_v33 = vpop.f32.mrf.mxu0  ;;  %v2628_v24 = vld [vmem:[#allocation9 + $0x510] sm:$0xff] }
 0x17d   :  { %v4334_v45 = vpop.eup %4333  ;;  %4359 = vrcp.f32 %v2108_v28  ;;  %v2116_v55 = vadd.f32 1.0, %v4332_v13  ;;  %2858 = vmatprep.mubr.f32.mxu0 %v5336_v19  ;;  %3109 = vmatpush2.msra.mxu0 %v2636_v37  ;;  %v1636_v19 = vadd.f32 %v5357_v14, %v5380_v60  ;;  %v1637_v60 = vadd.f32 %v5362_v26, %v5388_v25 }
 0x17e   :  { %v4336_v53 = vpop.eup %4335  ;;  %4361 = vrcp.f32 %v2109_v35  ;;  %v2117_v63 = vadd.f32 1.0, %v4334_v45  ;;  %3110 = vmatprep.subr.mxu0 %v2635_v29  ;;  %v899_v0 = vpop.f32.mrf.mxu0  ;;  %v1644_v25 = vadd.f32 %v5357_v14, %v5396_v7  ;;  %v3889_v13 = vmul.f32 -1.442695, %v1574_v2 }
 0x17f   :  { %v4338_v31 = vpop.eup %4337  ;;  %4363 = vrcp.f32 %v2116_v55  ;;  %v2124_v9 = vadd.f32 1.0, %v4336_v53  ;;  %3111 = vmatpush2.msra.mxu0 %v2634_v44  ;;  %v3951_v27 = vmul.f32 -1.442695, %v1636_v19  ;;  %v1582_v35 = vadd.f32 %v5452_v46, %v5441_v40  ;;  %v2626_v44 = vld [vmem:[#allocation9 + $0x500] sm:$0xff]  ;;  %v2687_v40 = vld [vmem:[#allocation9 + $0x6e8] sm:$0xff] }
 0x180   :  { %v4340_v34 = vpop.eup %4339  ;;  %4365 = vrcp.f32 %v2117_v63  ;;  %v2125_v8 = vadd.f32 1.0, %v4338_v31  ;;  %2859 = vmatmul.mubr.f32.gmra.mxu0 %v5329_v58  ;;  %3112 = vmatprep.subr.mxu0 %v2633_v62  ;;  %v1575_v58 = vadd.f32 %v5461_v50, %v5434_v38  ;;  %v5482_v38 = vpop.f32.mrf.mxu1  ;;  %v3952_v55 = vmul.f32 -1.442695, %v1637_v60  ;;  %v2688_v62 = vld [vmem:[#allocation9 + $0x6f0] sm:$0xff]  ;;  %v2686_v19 = vld [vmem:[#allocation9 + $0x6e0] sm:$0xff] }
 0x181   :  { %v4342_v17 = vpop.eup %4341  ;;  %4367 = vrcp.f32 %v2124_v9  ;;  %v2132_v18 = vadd.f32 1.0, %v4340_v34  ;;  %2864 = vmatprep.mubr.f32.mxu0 %v5344_v39  ;;  %3113 = vmatpush2.msra.mxu0 %v2632_v3  ;;  %v2627_v39 = vld [vmem:[#allocation9 + $0x508] sm:$0xff]  ;;  %v1645_v7 = vadd.f32 %v5362_v26, %v5404_v61  ;;  %v903_v3 = vpop.f32.mrf.mxu0  ;;  %v3959_v9 = vmul.f32 -1.442695, %v1644_v25 }
 0x182   :  { %v4344_v30 = vpop.eup %4343  ;;  %4369 = vrcp.f32 %v2125_v8  ;;  %v2133_v59 = vadd.f32 1.0, %v4342_v17  ;;  %3114 = vmatprep.subr.mxu0 %v2631_v11  ;;  %v3890_v63 = vmul.f32 -1.442695, %v1575_v58  ;;  %v1652_v61 = vadd.f32 %v5357_v14, %v5412_v6  ;;  %v5493_v8 = vpop.f32.mrf.mxu1  ;;  %v2684_v17 = vld [vmem:[#allocation9 + $0x6d0] sm:$0xff] }
 0x183   :  { %v4346_v52 = vpop.eup %4345  ;;  %4371 = vrcp.f32 %v2132_v18  ;;  %v2140_v37 = vadd.f32 1.0, %v4344_v30  ;;  %3115 = vmatpush2.msra.mxu0 %v2630_v1  ;;  %v3897_v11 = vmul.f32 -1.442695, %v1582_v35  ;;  %v1590_v34 = vadd.f32 %v5452_v46, %v5463_v33  ;;  %v905_v30 = vpop.f32.mrf.mxu0 }
 0x184   :  { %v4348_v28 = vpop.eup %4347  ;;  %4373 = vrcp.f32 %v2133_v59  ;;  %v2141_v29 = vadd.f32 1.0, %v4346_v52  ;;  %2865 = vmatmul.mubr.f32.gmra.mxu0 %v5340_v32  ;;  %3116 = vmatprep.subr.mxu0 %v2629_v15  ;;  %v1583_v32 = vadd.f32 %v5461_v50, %v5449_v56  ;;  %v2685_v56 = vld [vmem:[#allocation9 + $0x6d8] sm:$0xff]  ;;  %v3960_v1 = vmul.f32 -1.442695, %v1645_v7  ;;  %v2683_v15 = vld [vmem:[#allocation9 + $0x6c8] sm:$0xff] }
 0x185   :  { %v4350_v45 = vpop.eup %4349  ;;  %4375 = vrcp.f32 %v2140_v37  ;;  %2870 = vmatprep.mubr.f32.mxu0 %v5392_v57  ;;  %3117 = vmatpush2.msra.mxu0 %v2628_v24  ;;  %v1653_v6 = vadd.f32 %v5362_v26, %v5420_v16  ;;  %v1591_v33 = vadd.f32 %v5461_v50, %v899_v0  ;;  %v3967_v58 = vmul.f32 -1.442695, %v1652_v61  ;;  %v2681_v37 = vld [vmem:[#allocation9 + $0x6b8] sm:$0xff]  ;;  %v5515_v35 = vpop.f32.mrf.mxu0 }
 0x186   :  { %v4352_v53 = vpop.eup %4351  ;;  %4377 = vrcp.f32 %v2141_v29  ;;  %2959 = vmatprep.mubr.f32.mxu1 %v4350_v45  ;;  %3118 = vmatprep.subr.mxu0 %v2627_v39  ;;  %v3898_v60 = vmul.f32 -1.442695, %v1583_v32  ;;  %v1660_v16 = vadd.f32 %v5357_v14, %v5428_v48  ;;  %v3905_v52 = vmul.f32 -1.442695, %v1590_v34  ;;  %v2680_v48 = vld [vmem:[#allocation9 + $0x6b0] sm:$0xff] }
 0x187   :  { %v4354_v31 = vpop.eup %4353  ;;  %4379 = vpow2.f32 %v3951_v27  ;;  %2960 = vmatmul.mubr.f32.vlgmr.msra.gmra.mxu1 %v4348_v28  ;;  %3119 = vmatpush2.msra.mxu0 %v2626_v44  ;;  %v1598_v0 = vadd.f32 %v5452_v46, %v903_v3  ;;  %v5507_v27 = vpop.f32.mrf.mxu1  ;;  %v3968_v25 = vmul.f32 -1.442695, %v1653_v6  ;;  %v1661_v39 = vadd.f32 %v5362_v26, %v5432_v22  ;;  %v2679_v44 = vld [vmem:[#allocation9 + $0x6a8] sm:$0xff]  ;;  %v2678_v22 = vld [vmem:[#allocation9 + $0x6a0] sm:$0xff] }
 0x188   :  { %v4356_v57 = vpop.eup %4355  ;;  %4381 = vpow2.f32 %v3889_v13  ;;  %3218 = vmatpush1.msra.mxu1 %v2688_v62  ;;  %2965 = vmatprep.mubr.f32.mxu1 %v4354_v31  ;;  %v3906_v29 = vmul.f32 -1.442695, %v1591_v33  ;;  %v1599_v13 = vadd.f32 %v5461_v50, %v905_v30  ;;  %v2677_v62 = vld [vmem:[#allocation9 + $0x698] sm:$0xff]  ;;  %v5527_v31 = vpop.f32.mrf.mxu0  ;;  %v2670_v33 = vld [vmem:[#allocation9 + $0x660] sm:$0xff] }
 0x189   :  { %v4358_v2 = vpop.eup %4357  ;;  %4383 = vpow2.f32 %v3952_v55  ;;  %3219 = vmatprep.subr.mxu1 %v2687_v40  ;;  %2871 = vmatmul.mubr.f32.gmra.mxu0 %v5384_v21  ;;  %v2682_v21 = vld [vmem:[#allocation9 + $0x6c0] sm:$0xff]  ;;  %v3975_v55 = vmul.f32 -1.442695, %v1660_v16  ;;  %v3976_v32 = vmul.f32 -1.442695, %v1661_v39 }
 0x18a   :  { %v5498_v18 = vpop.eup %4359  ;;  %4385 = vpow2.f32 %v3890_v63  ;;  %3220 = vmatpush1.msra.mxu1 %v2686_v19  ;;  %2876 = vmatprep.mubr.f32.mxu0 %v5408_v4  ;;  %v3914_v3 = vmul.f32 -1.442695, %v1599_v13  ;;  %v2674_v19 = vld [vmem:[#allocation9 + $0x680] sm:$0xff]  ;;  %v5536_v6 = vpop.f32.mrf.mxu0  ;;  %v2665_v13 = vld [vmem:[#allocation9 + $0x638] sm:$0xff] }
 0x18b   :  { %v4362_v59 = vpop.eup %4361  ;;  %4387 = vpow2.f32 %v3959_v9  ;;  %2966 = vmatmul.mubr.f32.gmra.mxu1 %v4352_v53  ;;  %3221 = vmatprep.subr.mxu1 %v2685_v56  ;;  %v5520_v53 = vpop.f32.mrf.mxu1  ;;  %v2675_v9 = vld [vmem:[#allocation9 + $0x688] sm:$0xff]  ;;  %v2666_v39 = vld [vmem:[#allocation9 + $0x640] sm:$0xff] }
 0x18c   :  { %v5504_v24 = vpop.eup %4363  ;;  %4389 = vpow2.f32 %v3897_v11  ;;  %3222 = vmatpush1.msra.mxu1 %v2684_v17  ;;  %2971 = vmatprep.mubr.f32.mxu1 %v4358_v2  ;;  %v2672_v2 = vld [vmem:[#allocation9 + $0x670] sm:$0xff]  ;;  %v2671_v17 = vld [vmem:[#allocation9 + $0x668] sm:$0xff] }
 0x18d   :  { %v4366_v4 = vpop.eup %4365  ;;  %4391 = vpow2.f32 %v3960_v1  ;;  %3223 = vmatprep.subr.mxu1 %v2683_v15  ;;  %2877 = vmatmul.mubr.f32.gmra.mxu0 %v5400_v49  ;;  %v3913_v49 = vmul.f32 -1.442695, %v1598_v0  ;;  %v5533_v11 = vpop.f32.mrf.mxu1 }
 0x18e   :  { %v5512_v28 = vpop.eup %4367  ;;  %4393 = vpow2.f32 %v3898_v60  ;;  %3224 = vmatpush1.msra.mxu1 %v2682_v21  ;;  %2882 = vmatprep.mubr.f32.mxu0 %v5426_v20  ;;  %v2676_v20 = vld [vmem:[#allocation9 + $0x690] sm:$0xff] }
 0x18f   :  { %v4370_v45 = vpop.eup %4369  ;;  %4395 = vpow2.f32 %v3967_v58  ;;  %2972 = vmatmul.mubr.f32.gmra.mxu1 %v4356_v57  ;;  %3225 = vmatprep.subr.mxu1 %v2681_v37  ;;  %v2668_v21 = vld [vmem:[#allocation9 + $0x650] sm:$0xff]  ;;  %v5541_v37 = vpop.f32.mrf.mxu0 }
 0x190   :  { %v5518_v7 = vpop.eup %4371  ;;  %4397 = vpow2.f32 %v3905_v52  ;;  %3226 = vmatpush1.msra.mxu1 %v2680_v48  ;;  %2977 = vmatprep.mubr.f32.mxu1 %v4362_v59  ;;  %v5539_v59 = vpop.f32.mrf.mxu1 }
 0x191   :  { %v5522_v63 = vpop.eup %4373  ;;  %4399 = vpow2.f32 %v3968_v25  ;;  %3227 = vmatprep.subr.mxu1 %v2679_v44  ;;  %2883 = vmatmul.mubr.f32.gmra.mxu0 %v5416_v10  ;;  %v2673_v10 = vld [vmem:[#allocation9 + $0x678] sm:$0xff] }
 0x192   :  { %v5525_v40 = vpop.eup %4375  ;;  %4401 = vpow2.f32 %v3906_v29  ;;  %3228 = vmatpush1.msra.mxu1 %v2678_v22  ;;  %2888 = vmatprep.mubr.f32.mxu0 %v5436_v23  ;;  %v5545_v44 = vpop.f32.mrf.mxu1  ;;  %v2664_v22 = vld [vmem:[#allocation9 + $0x630] sm:$0xff] }
 0x193   :  { %v5530_v61 = vpop.eup %4377  ;;  %4403 = vpow2.f32 %v3975_v55  ;;  %2978 = vmatmul.mubr.f32.gmra.mxu1 %v5498_v18  ;;  %3229 = vmatprep.subr.mxu1 %v2677_v62 }
 0x194   :  { %v4380_v57 = vpop.eup %4379  ;;  %4405 = vpow2.f32 %v3913_v49  ;;  %3230 = vmatpush1.msra.mxu1 %v2676_v20  ;;  %2983 = vmatprep.mubr.f32.mxu1 %v4366_v4 }
 0x195   :  { %v4382_v34 = vpop.eup %4381  ;;  %v2148_v56 = vadd.f32 1.0, %v4380_v57  ;;  %4407 = vpow2.f32 %v3976_v32  ;;  %3231 = vmatprep.subr.mxu1 %v2675_v9  ;;  %2889 = vmatmul.mubr.f32.gmra.mxu0 %v5430_v5  ;;  %v2669_v5 = vld [vmem:[#allocation9 + $0x658] sm:$0xff]  ;;  %v2663_v32 = vld [vmem:[#allocation9 + $0x628] sm:$0xff]  ;;  %v2662_v9 = vld [vmem:[#allocation9 + $0x620] sm:$0xff] }
 0x196   :  { %v4384_v23 = vpop.eup %4383  ;;  %v2086_v1 = vadd.f32 1.0, %v4382_v34  ;;  %4409 = vpow2.f32 %v3914_v3  ;;  %3232 = vmatpush1.msra.mxu1 %v2674_v19  ;;  %v2661_v34 = vld [vmem:[#allocation9 + $0x618] sm:$0xff] }
 0x197   :  { %v4386_v18 = vpop.eup %4385  ;;  %4411 = vrcp.f32 %v2148_v56  ;;  %v2149_v60 = vadd.f32 1.0, %v4384_v23  ;;  %2984 = vmatmul.mubr.f32.gmra.mxu1 %v5504_v24  ;;  %3233 = vmatprep.subr.mxu1 %v2673_v10  ;;  %v2667_v24 = vld [vmem:[#allocation9 + $0x648] sm:$0xff]  ;;  %v1606_v10 = vadd.f32 %v5452_v46, %v5515_v35  ;;  %v5555_v56 = vpop.f32.mrf.mxu1  ;;  %v1607_v35 = vadd.f32 %v5461_v50, %v5527_v31 }
 0x198   :  { %v4388_v15 = vpop.eup %4387  ;;  %4413 = vrcp.f32 %v2086_v1  ;;  %v2087_v30 = vadd.f32 1.0, %v4386_v18  ;;  %3234 = vmatpush1.msra.mxu1 %v2672_v2  ;;  %2989 = vmatprep.mubr.f32.mxu1 %v4370_v45  ;;  %v1614_v31 = vadd.f32 %v5452_v46, %v5536_v6  ;;  %v2720_v6 = vld [vmem:[#allocation9 + $0x7f0] sm:$0xff] }
 0x199   :  { %v4390_v58 = vpop.eup %4389  ;;  %4415 = vrcp.f32 %v2149_v60  ;;  %v2156_v16 = vadd.f32 1.0, %v4388_v15  ;;  %3235 = vmatprep.subr.mxu1 %v2671_v17 }
 0x19a   :  { %v4392_v52 = vpop.eup %4391  ;;  %4417 = vrcp.f32 %v2087_v30  ;;  %v2094_v0 = vadd.f32 1.0, %v4390_v58  ;;  %3236 = vmatpush1.msra.mxu1 %v2670_v33  ;;  %v1676_v30 = vadd.f32 %v5357_v14, %v5455_v36  ;;  %v1677_v36 = vadd.f32 %v5362_v26, %v5470_v12 }
 0x19b   :  { %v4394_v4 = vpop.eup %4393  ;;  %4419 = vrcp.f32 %v2156_v16  ;;  %v2157_v25 = vadd.f32 1.0, %v4392_v52  ;;  %2990 = vmatmul.mubr.f32.gmra.mxu1 %v5512_v28  ;;  %3237 = vmatprep.subr.mxu1 %v2669_v5  ;;  %v5547_v28 = vpop.f32.mrf.mxu0  ;;  %v3921_v16 = vmul.f32 -1.442695, %v1606_v10  ;;  %v1692_v10 = vadd.f32 %v5357_v14, %v5507_v27 }
 0x19c   :  { %v4396_v48 = vpop.eup %4395  ;;  %4421 = vrcp.f32 %v2094_v0  ;;  %v2095_v29 = vadd.f32 1.0, %v4394_v4  ;;  %3238 = vmatpush1.msra.mxu1 %v2668_v21  ;;  %2995 = vmatprep.mubr.f32.mxu1 %v5522_v63  ;;  %v1668_v63 = vadd.f32 %v5357_v14, %v5438_v43  ;;  %v1669_v43 = vadd.f32 %v5362_v26, %v5445_v51  ;;  %v2658_v51 = vld [vmem:[#allocation9 + $0x600] sm:$0xff]  ;;  %v2721_v21 = vld [vmem:[#allocation9 + $0x7f8] sm:$0xff]  ;;  %v5566_v52 = vpop.f32.mrf.mxu1 }
 0x19d   :  { %v4398_v45 = vpop.eup %4397  ;;  %4423 = vrcp.f32 %v2157_v25  ;;  %v2164_v55 = vadd.f32 1.0, %v4396_v48  ;;  %3239 = vmatprep.subr.mxu1 %v2667_v24  ;;  %v923_v18 = vpop.f32.mrf.mxu0  ;;  %v3922_v4 = vmul.f32 -1.442695, %v1607_v35  ;;  %v1615_v25 = vadd.f32 %v5461_v50, %v5541_v37  ;;  %v2718_v37 = vld [vmem:[#allocation9 + $0x7e0] sm:$0xff] }
 0x19e   :  { %v4400_v49 = vpop.eup %4399  ;;  %4425 = vrcp.f32 %v2095_v29  ;;  %v2102_v62 = vadd.f32 1.0, %v4398_v45  ;;  %3240 = vmatpush1.msra.mxu1 %v2666_v39  ;;  %v3983_v15 = vmul.f32 -1.442695, %v1668_v63  ;;  %v3984_v24 = vmul.f32 -1.442695, %v1669_v43  ;;  %v2719_v45 = vld [vmem:[#allocation9 + $0x7e8] sm:$0xff] }
 0x19f   :  { %v4402_v20 = vpop.eup %4401  ;;  %4427 = vrcp.f32 %v2164_v55  ;;  %v2165_v3 = vadd.f32 1.0, %v4400_v49  ;;  %2996 = vmatmul.mubr.f32.gmra.mxu1 %v5518_v7  ;;  %3241 = vmatprep.subr.mxu1 %v2665_v13  ;;  %v2660_v7 = vld [vmem:[#allocation9 + $0x610] sm:$0xff]  ;;  %v927_v39 = vpop.f32.mrf.mxu0  ;;  %v3991_v29 = vmul.f32 -1.442695, %v1676_v30  ;;  %v1684_v13 = vadd.f32 %v5357_v14, %v5482_v38  ;;  %v2714_v14 = vld [vmem:[#allocation9 + $0x7c0] sm:$0xff]  ;;  %v2713_v30 = vld [vmem:[#allocation9 + $0x7b8] sm:$0xff] }
 0x1a0   :  { %v4404_v19 = vpop.eup %4403  ;;  %4429 = vrcp.f32 %v2102_v62  ;;  %v2103_v57 = vadd.f32 1.0, %v4402_v20  ;;  %3242 = vmatpush1.msra.mxu1 %v2664_v22  ;;  %3001 = vmatprep.mubr.f32.mxu1 %v5530_v61  ;;  %v2659_v61 = vld [vmem:[#allocation9 + $0x608] sm:$0xff]  ;;  %v3929_v55 = vmul.f32 -1.442695, %v1614_v31  ;;  %v1622_v22 = vadd.f32 %v5452_v46, %v5547_v28  ;;  %v5576_v49 = vpop.f32.mrf.mxu1  ;;  %v2717_v28 = vld [vmem:[#allocation9 + $0x7d8] sm:$0xff] }
 0x1a1   :  { %v4406_v2 = vpop.eup %4405  ;;  %4431 = vrcp.f32 %v2165_v3  ;;  %v2172_v23 = vadd.f32 1.0, %v4404_v19  ;;  %3243 = vmatprep.subr.mxu1 %v2663_v32  ;;  %v3992_v32 = vmul.f32 -1.442695, %v1677_v36  ;;  %v1685_v38 = vadd.f32 %v5362_v26, %v5493_v8  ;;  %v2711_v31 = vld [vmem:[#allocation9 + $0x7a8] sm:$0xff]  ;;  %v2710_v36 = vld [vmem:[#allocation9 + $0x7a0] sm:$0xff] }
 0x1a2   :  { %v4408_v1 = vpop.eup %4407  ;;  %4433 = vrcp.f32 %v2103_v57  ;;  %v2110_v17 = vadd.f32 1.0, %v4406_v2  ;;  %3244 = vmatpush1.msra.mxu1 %v2662_v9  ;;  %v3930_v3 = vmul.f32 -1.442695, %v1615_v25  ;;  %v1623_v63 = vadd.f32 %v5461_v50, %v923_v18  ;;  %v929_v9 = vpop.f32.mrf.mxu0 }
 0x1a3   :  { %v4410_v60 = vpop.eup %4409  ;;  %4435 = vrcp.f32 %v2172_v23  ;;  %v2173_v33 = vadd.f32 1.0, %v4408_v1  ;;  %3002 = vmatmul.mubr.f32.gmra.mxu1 %v5525_v40  ;;  %3245 = vmatprep.subr.mxu1 %v2661_v34  ;;  %v3999_v57 = vmul.f32 -1.442695, %v1684_v13  ;;  %v2716_v34 = vld [vmem:[#allocation9 + $0x7d0] sm:$0xff]  ;;  %v3937_v2 = vmul.f32 -1.442695, %v1622_v22  ;;  %v5584_v43 = vpop.f32.mrf.mxu1 }
 0x1a4   :  { %v4412_v5 = vpop.eup %4411  ;;  %4437 = vrcp.f32 %v2110_v17  ;;  %v2111_v58 = vadd.f32 1.0, %v4410_v60  ;;  %3246 = vmatpush1.msra.mxu1 %v2660_v7  ;;  %v1630_v23 = vadd.f32 %v5452_v46, %v927_v39  ;;  %v2715_v7 = vld [vmem:[#allocation9 + $0x7c8] sm:$0xff]  ;;  %v4000_v17 = vmul.f32 -1.442695, %v1685_v38  ;;  %v5589_v60 = vpop.f32.mrf.mxu0  ;;  %v2706_v22 = vld [vmem:[#allocation9 + $0x780] sm:$0xff] }
 0x1a5   :  { %v4414_v0 = vpop.eup %4413  ;;  %4439 = vrcp.f32 %v2173_v33  ;;  %3247 = vmatprep.subr.mxu1 %v2659_v61  ;;  %v1693_v35 = vadd.f32 %v5362_v26, %v5520_v53  ;;  %v3938_v18 = vmul.f32 -1.442695, %v1623_v63  ;;  %v1631_v61 = vadd.f32 %v5461_v50, %v929_v9  ;;  %v5591_v53 = vpop.f32.mrf.mxu1  ;;  %v2707_v13 = vld [vmem:[#allocation9 + $0x788] sm:$0xff]  ;;  %v2704_v9 = vld [vmem:[#allocation9 + $0x770] sm:$0xff] }
 0x1a6   :  { %v4416_v40 = vpop.eup %4415  ;;  %4441 = vrcp.f32 %v2111_v58  ;;  %3248 = vmatpush1.msra.mxu1 %v2658_v51  ;;  %v3945_v26 = vmul.f32 -1.442695, %v1630_v23  ;;  %v2702_v23 = vld [vmem:[#allocation9 + $0x760] sm:$0xff] }
 0x1a7   :  { %v4418_v48 = vpop.eup %4417  ;;  %4443 = vpow2.f32 %v3983_v15  ;;  %3007 = vmatprep.mubr.f32.mxu1 %v4416_v40  ;;  %3249 = vmatprep.subr.mxu1 %v2721_v21  ;;  %v4007_v15 = vmul.f32 -1.442695, %v1692_v10  ;;  %v5595_v39 = vpop.f32.mrf.mxu1 }
 0x1a8   :  { %v4420_v12 = vpop.eup %4419  ;;  %4445 = vpow2.f32 %v3921_v16  ;;  %3120 = vmatprep.mubr.f32.mxu0 %v4418_v48  ;;  %3008 = vmatmul.mubr.f32.gmra.mxu1 %v4412_v5  ;;  %v2712_v5 = vld [vmem:[#allocation9 + $0x7b0] sm:$0xff]  ;;  %v4008_v16 = vmul.f32 -1.442695, %v1693_v35 }
 0x1a9   :  { %v4422_v62 = vpop.eup %4421  ;;  %4447 = vpow2.f32 %v3984_v24  ;;  %3121 = vmatmul.mubr.f32.vlgmr.msra.gmra.mxu0 %v4414_v0  ;;  %3250 = vmatpush2.msra.mxu1 %v2720_v6  ;;  %v3946_v0 = vmul.f32 -1.442695, %v1631_v61  ;;  %v5593_v24 = vpop.f32.mrf.mxu0  ;;  %v2708_v6 = vld [vmem:[#allocation9 + $0x790] sm:$0xff] }
 0x1aa   :  { %v4424_v20 = vpop.eup %4423  ;;  %4449 = vpow2.f32 %v3922_v4  ;;  %3251 = vmatprep.subr.mxu1 %v2719_v45  ;;  %v2709_v4 = vld [vmem:[#allocation9 + $0x798] sm:$0xff]  ;;  %v5600_v63 = vpop.f32.mrf.mxu1  ;;  %v2700_v61 = vld [vmem:[#allocation9 + $0x750] sm:$0xff] }
 0x1ab   :  { %v4426_v19 = vpop.eup %4425  ;;  %4451 = vpow2.f32 %v3991_v29  ;;  %3013 = vmatprep.mubr.f32.mxu1 %v4424_v20  ;;  %3252 = vmatpush2.msra.mxu1 %v2718_v37 }
 0x1ac   :  { %v4428_v8 = vpop.eup %4427  ;;  %4453 = vpow2.f32 %v3929_v55  ;;  %3126 = vmatprep.mubr.f32.mxu0 %v4426_v19  ;;  %3014 = vmatmul.mubr.f32.gmra.mxu1 %v4420_v12  ;;  %v5597_v55 = vpop.f32.mrf.mxu0 }
 0x1ad   :  { %v4430_v1 = vpop.eup %4429  ;;  %4455 = vpow2.f32 %v3992_v32  ;;  %3127 = vmatmul.mubr.f32.gmra.mxu0 %v4422_v62  ;;  %3253 = vmatprep.subr.mxu1 %v2717_v28  ;;  %v2705_v32 = vld [vmem:[#allocation9 + $0x778] sm:$0xff] }
 0x1ae   :  { %v4432_v27 = vpop.eup %4431  ;;  %4457 = vpow2.f32 %v3930_v3  ;;  %3254 = vmatpush2.msra.mxu1 %v2716_v34  ;;  %v1556_v3 = vsub.s32 6, %v5254_v42 }
 0x1af   :  { %v4434_v33 = vpop.eup %4433  ;;  %4459 = vpow2.f32 %v3999_v57  ;;  %3255 = vmatprep.subr.mxu1 %v2715_v7  ;;  %3019 = vmatprep.mubr.f32.mxu1 %v4432_v27  ;;  %v2703_v57 = vld [vmem:[#allocation9 + $0x768] sm:$0xff] }
 0x1b0   :  { %v4436_v51 = vpop.eup %4435  ;;  %4461 = vpow2.f32 %v3937_v2  ;;  %3132 = vmatprep.mubr.f32.mxu0 %v4434_v33  ;;  %3256 = vmatpush2.msra.mxu1 %v2714_v14  ;;  %v5603_v2 = vpop.f32.mrf.mxu0  ;;  %v5606_v27 = vrot.slane %v5458_v47, %v1556_v3 }
 0x1b1   :  { %v4438_v58 = vpop.eup %4437  ;;  %4463 = vpow2.f32 %v4000_v17  ;;  %3020 = vmatmul.mubr.f32.gmra.mxu1 %v4428_v8  ;;  %3133 = vmatmul.mubr.f32.gmra.mxu0 %v4430_v1  ;;  %v1560_v8 = vsub.s32 7, %v5254_v42  ;;  %v2701_v17 = vld [vmem:[#allocation9 + $0x758] sm:$0xff] }
 0x1b2   :  { %v4440_v21 = vpop.eup %4439  ;;  %4465 = vpow2.f32 %v3938_v18  ;;  %3257 = vmatprep.subr.mxu1 %v2713_v30  ;;  %v5608_v18 = vpop.f32.mrf.mxu1  ;;  %v2699_v30 = vld [vmem:[#allocation9 + $0x748] sm:$0xff] }
 0x1b3   :  { %v4442_v40 = vpop.eup %4441  ;;  %4467 = vpow2.f32 %v4007_v15  ;;  %3258 = vmatpush2.msra.mxu1 %v2712_v5  ;;  %3025 = vmatprep.mubr.f32.mxu1 %v4440_v21  ;;  %v5611_v5 = vrot.slane %v5458_v47, %v1560_v8  ;;  %v2696_v47 = vld [vmem:[#allocation9 + $0x730] sm:$0xff]  ;;  %v1647_v8 = vadd.f32 %v5461_v50, %v5603_v2 }
 0x1b4   :  { %v4444_v25 = vpop.eup %4443  ;;  %4469 = vpow2.f32 %v3945_v26  ;;  %3259 = vmatprep.subr.mxu1 %v2711_v31  ;;  %3138 = vmatprep.mubr.f32.mxu0 %v4442_v40 }
 0x1b5   :  { %v4446_v48 = vpop.eup %4445  ;;  %v2180_v29 = vadd.f32 1.0, %v4444_v25  ;;  %4471 = vpow2.f32 %v4008_v16  ;;  %3260 = vmatpush2.msra.mxu1 %v2710_v36  ;;  %3139 = vmatmul.mubr.f32.gmra.mxu0 %v4438_v58  ;;  %v945_v58 = vpop.f32.mrf.mxu0  ;;  %v2698_v16 = vld [vmem:[#allocation9 + $0x740] sm:$0xff]  ;;  %v2697_v36 = vld [vmem:[#allocation9 + $0x738] sm:$0xff]  ;;  %v1576_v25 = vadd.f32 %v5606_v27, %v5533_v11 }
 0x1b6   :  { %v4448_v45 = vpop.eup %4447  ;;  %v2118_v12 = vadd.f32 1.0, %v4446_v48  ;;  %4473 = vpow2.f32 %v3946_v0  ;;  %3026 = vmatmul.mubr.f32.gmra.mxu1 %v4436_v51  ;;  %3261 = vmatprep.subr.mxu1 %v2709_v4  ;;  %v1638_v0 = vadd.f32 %v5452_v46, %v5589_v60  ;;  %v2695_v60 = vld [vmem:[#allocation9 + $0x728] sm:$0xff]  ;;  %v2694_v11 = vld [vmem:[#allocation9 + $0x720] sm:$0xff] }
 0x1b7   :  { %v4450_v37 = vpop.eup %4449  ;;  %4475 = vrcp.f32 %v2180_v29  ;;  %v2181_v62 = vadd.f32 1.0, %v4448_v45  ;;  %3262 = vmatpush2.msra.mxu1 %v2708_v6  ;;  %v5617_v6 = vpop.f32.mrf.mxu1 }
 0x1b8   :  { %v4452_v38 = vpop.eup %4451  ;;  %4477 = vrcp.f32 %v2118_v12  ;;  %v2119_v20 = vadd.f32 1.0, %v4450_v37  ;;  %3263 = vmatprep.subr.mxu1 %v2707_v13  ;;  %v1639_v13 = vadd.f32 %v5461_v50, %v5593_v24  ;;  %v947_v37 = vpop.f32.mrf.mxu0  ;;  %v2693_v24 = vld [vmem:[#allocation9 + $0x718] sm:$0xff] }
 0x1b9   :  { %v4454_v28 = vpop.eup %4453  ;;  %4479 = vrcp.f32 %v2181_v62  ;;  %v2188_v19 = vadd.f32 1.0, %v4452_v38  ;;  %3264 = vmatpush2.msra.mxu1 %v2706_v22  ;;  %v1577_v22 = vadd.f32 %v5611_v5, %v5539_v59  ;;  %v3953_v38 = vmul.f32 -1.442695, %v1638_v0  ;;  %v5627_v59 = vpop.f32.mrf.mxu1 }
 0x1ba   :  { %v4456_v10 = vpop.eup %4455  ;;  %4481 = vrcp.f32 %v2119_v20  ;;  %v2126_v34 = vadd.f32 1.0, %v4454_v28  ;;  %3265 = vmatprep.subr.mxu1 %v2705_v32  ;;  %v1646_v20 = vadd.f32 %v5452_v46, %v5597_v55  ;;  %v3891_v28 = vmul.f32 -1.442695, %v1576_v25 }
 0x1bb   :  { %v4458_v7 = vpop.eup %4457  ;;  %4483 = vrcp.f32 %v2188_v19  ;;  %v2189_v1 = vadd.f32 1.0, %v4456_v10  ;;  %3266 = vmatpush2.msra.mxu1 %v2704_v9  ;;  %v1584_v19 = vadd.f32 %v5606_v27, %v5545_v44  ;;  %v2691_v44 = vld [vmem:[#allocation9 + $0x708] sm:$0xff]  ;;  %v1600_v25 = vadd.f32 %v5606_v27, %v5584_v43 }
 0x1bc   :  { %v4460_v35 = vpop.eup %4459  ;;  %4485 = vrcp.f32 %v2126_v34  ;;  %v2127_v14 = vadd.f32 1.0, %v4458_v7  ;;  %3267 = vmatprep.subr.mxu1 %v2703_v57  ;;  %v2692_v57 = vld [vmem:[#allocation9 + $0x710] sm:$0xff]  ;;  %v3954_v34 = vmul.f32 -1.442695, %v1639_v13  ;;  %v1585_v7 = vadd.f32 %v5611_v5, %v5555_v56  ;;  %v5636_v56 = vpop.f32.mrf.mxu1 }
 0x1bd   :  { %v4462_v33 = vpop.eup %4461  ;;  %4487 = vrcp.f32 %v2189_v1  ;;  %v2196_v15 = vadd.f32 1.0, %v4460_v35  ;;  %3268 = vmatpush2.msra.mxu1 %v2702_v23  ;;  %v3892_v23 = vmul.f32 -1.442695, %v1577_v22  ;;  %v951_v1 = vpop.f32.mrf.mxu0  ;;  %v3961_v35 = vmul.f32 -1.442695, %v1646_v20 }
 0x1be   :  { %v4464_v51 = vpop.eup %4463  ;;  %4489 = vrcp.f32 %v2127_v14  ;;  %v2134_v26 = vadd.f32 1.0, %v4462_v33  ;;  %3269 = vmatprep.subr.mxu1 %v2701_v17  ;;  %v1654_v14 = vadd.f32 %v5452_v46, %v945_v58  ;;  %v3899_v2 = vmul.f32 -1.442695, %v1584_v19 }
 0x1bf   :  { %v4466_v31 = vpop.eup %4465  ;;  %4491 = vrcp.f32 %v2196_v15  ;;  %v2197_v21 = vadd.f32 1.0, %v4464_v51  ;;  %3270 = vmatpush2.msra.mxu1 %v2700_v61  ;;  %v2690_v61 = vld [vmem:[#allocation9 + $0x700] sm:$0xff]  ;;  %v1592_v15 = vadd.f32 %v5606_v27, %v5566_v52  ;;  %v3962_v51 = vmul.f32 -1.442695, %v1647_v8 }
 0x1c0   :  { %v4468_v40 = vpop.eup %4467  ;;  %4493 = vrcp.f32 %v2134_v26  ;;  %v2135_v4 = vadd.f32 1.0, %v4466_v31  ;;  %3271 = vmatprep.subr.mxu1 %v2699_v30  ;;  %v1655_v26 = vadd.f32 %v5461_v50, %v947_v37  ;;  %v1593_v31 = vadd.f32 %v5611_v5, %v5576_v49 }
 0x1c1   :  { %v4470_v48 = vpop.eup %4469  ;;  %4495 = vrcp.f32 %v2197_v21  ;;  %v2204_v29 = vadd.f32 1.0, %v4468_v40  ;;  %3272 = vmatpush2.msra.mxu1 %v2698_v16  ;;  %v3900_v16 = vmul.f32 -1.442695, %v1585_v7  ;;  %v953_v21 = vpop.f32.mrf.mxu0  ;;  %v3969_v0 = vmul.f32 -1.442695, %v1654_v14 }
 0x1c2   :  { %v4472_v45 = vpop.eup %4471  ;;  %4497 = vrcp.f32 %v2135_v4  ;;  %v2142_v12 = vadd.f32 1.0, %v4470_v48  ;;  %3273 = vmatprep.subr.mxu1 %v2697_v36  ;;  %v1662_v36 = vadd.f32 %v5452_v46, %v951_v1  ;;  %v3907_v4 = vmul.f32 -1.442695, %v1592_v15 }
 0x1c3   :  { %v4474_v62 = vpop.eup %4473  ;;  %4499 = vrcp.f32 %v2204_v29  ;;  %v2205_v32 = vadd.f32 1.0, %v4472_v45  ;;  %3274 = vmatpush2.msra.mxu1 %v2696_v47  ;;  %v5644_v47 = vpop.f32.mrf.mxu1  ;;  %v3970_v49 = vmul.f32 -1.442695, %v1655_v26  ;;  %v1663_v29 = vadd.f32 %v5461_v50, %v953_v21 }
 0x1c4   :  { %v4476_v3 = vpop.eup %4475  ;;  %4501 = vrcp.f32 %v2142_v12  ;;  %v2143_v9 = vadd.f32 1.0, %v4474_v62  ;;  %3275 = vmatprep.subr.mxu1 %v2695_v60  ;;  %v3908_v60 = vmul.f32 -1.442695, %v1593_v31  ;;  %v1601_v45 = vadd.f32 %v5611_v5, %v5591_v53  ;;  %v5649_v12 = vpop.f32.mrf.mxu0 }
 0x1c5   :  { %v4478_v10 = vpop.eup %4477  ;;  %4503 = vrcp.f32 %v2205_v32  ;;  %3276 = vmatpush2.msra.mxu1 %v2694_v11  ;;  %v3977_v43 = vmul.f32 -1.442695, %v1662_v36  ;;  %v3915_v11 = vmul.f32 -1.442695, %v1600_v25  ;;  %v5651_v62 = vpop.f32.mrf.mxu1 }
 0x1c6   :  { %v4480_v55 = vpop.eup %4479  ;;  %4505 = vrcp.f32 %v2143_v9  ;;  %3277 = vmatprep.subr.mxu1 %v2693_v24  ;;  %v3916_v53 = vmul.f32 -1.442695, %v1601_v45  ;;  %v959_v24 = vpop.f32.mrf.mxu0 }
 0x1c7   :  { %v4482_v17 = vpop.eup %4481  ;;  %4507 = vpow2.f32 %v3953_v38  ;;  %3031 = vmatprep.mubr.f32.mxu1 %v4480_v55  ;;  %3278 = vmatpush2.msra.mxu1 %v2692_v57  ;;  %v3978_v38 = vmul.f32 -1.442695, %v1663_v29 }
 0x1c8   :  { %v4484_v33 = vpop.eup %4483  ;;  %4509 = vpow2.f32 %v3891_v28  ;;  %3144 = vmatprep.mubr.f32.mxu0 %v4482_v17  ;;  %3032 = vmatmul.mubr.f32.gmra.mxu1 %v4476_v3  ;;  %v5653_v28 = vpop.f32.mrf.mxu1 }
 0x1c9   :  { %v4486_v30 = vpop.eup %4485  ;;  %4511 = vpow2.f32 %v3954_v34  ;;  %3145 = vmatmul.mubr.f32.gmra.mxu0 %v4478_v10  ;;  %3279 = vmatprep.subr.mxu1 %v2691_v44  ;;  %v963_v8 = vpop.f32.mrf.mxu0 }
 0x1ca   :  { %v4488_v58 = vpop.eup %4487  ;;  %4513 = vpow2.f32 %v3892_v23  ;;  %3280 = vmatpush2.msra.mxu1 %v2690_v61  ;;  %v5655_v44 = vpop.f32.mrf.mxu1 }
 0x1cb   :  { %v4490_v52 = vpop.eup %4489  ;;  %4515 = vpow2.f32 %v3961_v35  ;;  %3037 = vmatprep.mubr.f32.mxu1 %v4488_v58 }
 0x1cc   :  { %v4492_v40 = vpop.eup %4491  ;;  %4517 = vpow2.f32 %v3899_v2  ;;  %3150 = vmatprep.mubr.f32.mxu0 %v4490_v52  ;;  %3038 = vmatmul.mubr.f32.gmra.mxu1 %v4484_v33  ;;  %v965_v33 = vpop.f32.mrf.mxu0 }
 0x1cd   :  { %v4494_v48 = vpop.eup %4493  ;;  %4519 = vpow2.f32 %v3962_v51  ;;  %3151 = vmatmul.mubr.f32.gmra.mxu0 %v4486_v30  ;;  %v5657_v26 = vpop.f32.mrf.mxu1 }
 0x1ce   :  { %v4496_v13 = vpop.eup %4495  ;;  %4521 = vpow2.f32 %v3900_v16  ;;  %v969_v52 = vpop.f32.mrf.mxu0 }
 0x1cf   :  { %v4498_v22 = vpop.eup %4497  ;;  %4523 = vpow2.f32 %v3969_v0  ;;  %3043 = vmatprep.mubr.f32.mxu1 %v4496_v13 }
 0x1d0   :  { %v4500_v37 = vpop.eup %4499  ;;  %4525 = vpow2.f32 %v3907_v4  ;;  %3156 = vmatprep.mubr.f32.mxu0 %v4498_v22  ;;  %3044 = vmatmul.mubr.f32.gmra.mxu1 %v4492_v40  ;;  %v1670_v40 = vadd.f32 %v5452_v46, %v5649_v12  ;;  %v971_v12 = vpop.f32.mrf.mxu0 }
 0x1d1   :  { %v4502_v32 = vpop.eup %4501  ;;  %4527 = vpow2.f32 %v3970_v49  ;;  %3157 = vmatmul.mubr.f32.gmra.mxu0 %v4494_v48  ;;  %v1608_v48 = vadd.f32 %v5606_v27, %v5595_v39  ;;  %v5663_v49 = vpop.f32.mrf.mxu1  ;;  %v1678_v39 = vadd.f32 %v5452_v46, %v963_v8 }
 0x1d2   :  { %v4504_v20 = vpop.eup %4503  ;;  %4529 = vpow2.f32 %v3908_v60  ;;  %v1671_v60 = vadd.f32 %v5461_v50, %v959_v24  ;;  %v1616_v24 = vadd.f32 %v5606_v27, %v5608_v18  ;;  %v975_v8 = vpop.f32.mrf.mxu0 }
 0x1d3   :  { %v4506_v3 = vpop.eup %4505  ;;  %4531 = vpow2.f32 %v3977_v43  ;;  %3049 = vmatprep.mubr.f32.mxu1 %v4504_v20  ;;  %v1609_v43 = vadd.f32 %v5611_v5, %v5600_v63  ;;  %v1679_v63 = vadd.f32 %v5461_v50, %v965_v33 }
 0x1d4   :  { %v4508_v9 = vpop.eup %4507  ;;  %4533 = vpow2.f32 %v3915_v11  ;;  %3162 = vmatprep.mubr.f32.mxu0 %v4506_v3  ;;  %3050 = vmatmul.mubr.f32.gmra.mxu1 %v4500_v37  ;;  %v5671_v3 = vpop.f32.mrf.mxu1 }
 0x1d5   :  { %v4510_v19 = vpop.eup %4509  ;;  %v2150_v57 = vadd.f32 1.0, %v4508_v9  ;;  %4535 = vpow2.f32 %v3978_v38  ;;  %3163 = vmatmul.mubr.f32.gmra.mxu0 %v4502_v32  ;;  %v3985_v32 = vmul.f32 -1.442695, %v1670_v40 }
 0x1d6   :  { %v4512_v10 = vpop.eup %4511  ;;  %v2088_v34 = vadd.f32 1.0, %v4510_v19  ;;  %4537 = vpow2.f32 %v3916_v53  ;;  %v3923_v53 = vmul.f32 -1.442695, %v1608_v48  ;;  %v3986_v19 = vmul.f32 -1.442695, %v1671_v60  ;;  %v3601_v60 = vld [vmem:[#allocation11 + $0xf8] sm:$0xff] }
 0x1d7   :  { %v4514_v55 = vpop.eup %4513  ;;  %4539 = vrcp.f32 %v2150_v57  ;;  %v2151_v23 = vadd.f32 1.0, %v4512_v10  ;;  %v3924_v10 = vmul.f32 -1.442695, %v1609_v43  ;;  %4062 = vmatprep.subr.mxu0 %v3601_v60 }
 0x1d8   :  { %v4516_v7 = vpop.eup %4515  ;;  %4541 = vrcp.f32 %v2088_v34  ;;  %v2089_v1 = vadd.f32 1.0, %v4514_v55  ;;  %v1617_v34 = vadd.f32 %v5611_v5, %v5617_v6  ;;  %v3994_v6 = vmul.f32 -1.442695, %v1679_v63 }
 0x1d9   :  { %v4518_v17 = vpop.eup %4517  ;;  %4543 = vrcp.f32 %v2151_v23  ;;  %v2158_v35 = vadd.f32 1.0, %v4516_v7  ;;  %v3993_v23 = vmul.f32 -1.442695, %v1678_v39  ;;  %v1686_v7 = vadd.f32 %v5452_v46, %v969_v52  ;;  %v3584_v39 = vld [vmem:[#allocation11 + $0x70] sm:$0xff] }
 0x1da   :  { %v4520_v14 = vpop.eup %4519  ;;  %4545 = vrcp.f32 %v2089_v1  ;;  %v2096_v61 = vadd.f32 1.0, %v4518_v17  ;;  %v3931_v1 = vmul.f32 -1.442695, %v1616_v24  ;;  %v1624_v17 = vadd.f32 %v5606_v27, %v5627_v59 }
 0x1db   :  { %v4522_v2 = vpop.eup %4521  ;;  %4547 = vrcp.f32 %v2158_v35  ;;  %v2159_v15 = vadd.f32 1.0, %v4520_v14  ;;  %v5679_v35 = vpop.f32.mrf.mxu1  ;;  %v4001_v59 = vmul.f32 -1.442695, %v1686_v7 }
 0x1dc   :  { %v4524_v30 = vpop.eup %4523  ;;  %4549 = vrcp.f32 %v2096_v61  ;;  %v2097_v51 = vadd.f32 1.0, %v4522_v2  ;;  %v1687_v61 = vadd.f32 %v5461_v50, %v971_v12  ;;  %v3932_v2 = vmul.f32 -1.442695, %v1617_v34 }
 0x1dd   :  { %v4526_v58 = vpop.eup %4525  ;;  %4551 = vrcp.f32 %v2159_v15  ;;  %v2166_v16 = vadd.f32 1.0, %v4524_v30  ;;  %v1625_v15 = vadd.f32 %v5611_v5, %v5636_v56  ;;  %v977_v30 = vpop.f32.mrf.mxu0 }
 0x1de   :  { %v4528_v31 = vpop.eup %4527  ;;  %4553 = vrcp.f32 %v2097_v51  ;;  %v2104_v21 = vadd.f32 1.0, %v4526_v58  ;;  %v1694_v58 = vadd.f32 %v5452_v46, %v975_v8  ;;  %v5687_v52 = vpop.f32.mrf.mxu1  ;;  %v4002_v56 = vmul.f32 -1.442695, %v1687_v61 }
 0x1df   :  { %v4530_v0 = vpop.eup %4529  ;;  %4555 = vrcp.f32 %v2166_v16  ;;  %v2167_v36 = vadd.f32 1.0, %v4528_v31  ;;  %v3939_v31 = vmul.f32 -1.442695, %v1624_v17  ;;  %v3940_v46 = vmul.f32 -1.442695, %v1625_v15 }
 0x1e0   :  { %v4532_v4 = vpop.eup %4531  ;;  %4557 = vrcp.f32 %v2104_v21  ;;  %v2105_v25 = vadd.f32 1.0, %v4530_v0  ;;  %v1632_v21 = vadd.f32 %v5606_v27, %v5644_v47  ;;  %v4009_v48 = vmul.f32 -1.442695, %v1694_v58 }
 0x1e1   :  { %v4534_v29 = vpop.eup %4533  ;;  %4559 = vrcp.f32 %v2167_v36  ;;  %v2174_v13 = vadd.f32 1.0, %v4532_v4  ;;  %v1695_v36 = vadd.f32 %v5461_v50, %v977_v30  ;;  %v1633_v4 = vadd.f32 %v5611_v5, %v5651_v62  ;;  %v3585_v50 = vld [vmem:[#allocation11 + $0x78] sm:$0xff] }
 0x1e2   :  { %v4536_v45 = vpop.eup %4535  ;;  %4561 = vrcp.f32 %v2105_v25  ;;  %v2112_v22 = vadd.f32 1.0, %v4534_v29  ;;  %v3947_v29 = vmul.f32 -1.442695, %v1632_v21  ;;  %4063 = vmatpush3.msra.mxu0 %v3585_v50  ;;  %v1640_v58 = vadd.f32 %v5606_v27, %v5653_v28 }
 0x1e3   :  { %v4538_v37 = vpop.eup %4537  ;;  %4563 = vrcp.f32 %v2174_v13  ;;  %v2175_v11 = vadd.f32 1.0, %v4536_v45  ;;  %v5692_v13 = vpop.f32.mrf.mxu1  ;;  %v3948_v62 = vmul.f32 -1.442695, %v1633_v4  ;;  %v1641_v21 = vadd.f32 %v5611_v5, %v5655_v44 }
 0x1e4   :  { %v4540_v38 = vpop.eup %4539  ;;  %4565 = vrcp.f32 %v2112_v22  ;;  %v2113_v20 = vadd.f32 1.0, %v4538_v37  ;;  %v4010_v22 = vmul.f32 -1.442695, %v1695_v36  ;;  %v1657_v50 = vadd.f32 %v5611_v5, %v5679_v35 }
 0x1e5   :  { %v4542_v9 = vpop.eup %4541  ;;  %4567 = vrcp.f32 %v2175_v11  ;;  %v5694_v11 = vpop.f32.mrf.mxu1  ;;  %v3956_v60 = vmul.f32 -1.442695, %v1641_v21 }
 0x1e6   :  { %v4544_v57 = vpop.eup %4543  ;;  %4569 = vrcp.f32 %v2113_v20 }
 0x1e7   :  { %v4546_v55 = vpop.eup %4545  ;;  %4571 = vpow2.f32 %v3985_v32  ;;  %3168 = vmatprep.mubr.f32.mxu0 %v4544_v57  ;;  %v3600_v32 = vld [vmem:[#allocation11 + $0xf0] sm:$0xff] }
 0x1e8   :  { %v4548_v18 = vpop.eup %4547  ;;  %4573 = vpow2.f32 %v3923_v53  ;;  %3281 = vmatprep.mubr.f32.mxu1 %v4546_v55  ;;  %3169 = vmatmul.mubr.f32.gmra.mxu0 %v4540_v38  ;;  %v3599_v55 = vld [vmem:[#allocation11 + $0xe8] sm:$0xff] }
 0x1e9   :  { %v4550_v14 = vpop.eup %4549  ;;  %4575 = vpow2.f32 %v3986_v19  ;;  %3282 = vmatmul.mubr.f32.vlgmr.msra.gmra.mxu1 %v4542_v9  ;;  %4064 = vmatprep.subr.mxu0 %v3600_v32 }
 0x1ea   :  { %v4552_v33 = vpop.eup %4551  ;;  %4577 = vpow2.f32 %v3924_v10  ;;  %4065 = vmatpush3.msra.mxu0 %v3584_v39  ;;  %v5696_v10 = vpop.f32.mrf.mxu1  ;;  %v3972_v39 = vmul.f32 -1.442695, %v1657_v50 }
 0x1eb   :  { %v4554_v51 = vpop.eup %4553  ;;  %4579 = vpow2.f32 %v3993_v23  ;;  %3174 = vmatprep.mubr.f32.mxu0 %v4552_v33  ;;  %v3583_v23 = vld [vmem:[#allocation11 + $0x68] sm:$0xff]  ;;  %4066 = vmatprep.subr.mxu0 %v3599_v55  ;;  %v1673_v35 = vadd.f32 %v5611_v5, %v5696_v10 }
 0x1ec   :  { %v4556_v16 = vpop.eup %4555  ;;  %4581 = vpow2.f32 %v3931_v1  ;;  %3287 = vmatprep.mubr.f32.mxu1 %v4554_v51  ;;  %3175 = vmatmul.mubr.f32.gmra.mxu0 %v4548_v18  ;;  %v5698_v61 = vpop.f32.mrf.mxu1 }
 0x1ed   :  { %v4558_v0 = vpop.eup %4557  ;;  %4583 = vpow2.f32 %v3994_v6  ;;  %3288 = vmatmul.mubr.f32.gmra.mxu1 %v4550_v14  ;;  %4067 = vmatpush3.msra.mxu0 %v3583_v23  ;;  %v3988_v10 = vmul.f32 -1.442695, %v1673_v35  ;;  %v3582_v23 = vld [vmem:[#allocation11 + $0x60] sm:$0xff] }
 0x1ee   :  { %v4560_v40 = vpop.eup %4559  ;;  %4585 = vpow2.f32 %v3932_v2 }
 0x1ef   :  { %v4562_v25 = vpop.eup %4561  ;;  %4587 = vpow2.f32 %v4001_v59  ;;  %3180 = vmatprep.mubr.f32.mxu0 %v4560_v40  ;;  %v1648_v40 = vadd.f32 %v5606_v27, %v5657_v26 }
 0x1f0   :  { %v4564_v47 = vpop.eup %4563  ;;  %4589 = vpow2.f32 %v3939_v31  ;;  %3293 = vmatprep.mubr.f32.mxu1 %v4562_v25  ;;  %3181 = vmatmul.mubr.f32.gmra.mxu0 %v4556_v16  ;;  %v1649_v25 = vadd.f32 %v5611_v5, %v5663_v49 }
 0x1f1   :  { %v4566_v45 = vpop.eup %4565  ;;  %4591 = vpow2.f32 %v4002_v56  ;;  %3294 = vmatmul.mubr.f32.gmra.mxu1 %v4558_v0  ;;  %v1126_v0 = vpop.f32.mrf.mxu1  ;;  %v3963_v26 = vmul.f32 -1.442695, %v1648_v40 }
 0x1f2   :  { %v4568_v43 = vpop.eup %4567  ;;  %4593 = vpow2.f32 %v3940_v46  ;;  %v3964_v49 = vmul.f32 -1.442695, %v1649_v25  ;;  %v3580_v25 = vld [vmem:[#allocation11 + $0x50] sm:$0xff] }
 0x1f3   :  { %v4570_v12 = vpop.eup %4569  ;;  %4595 = vpow2.f32 %v4009_v48  ;;  %3186 = vmatprep.mubr.f32.mxu0 %v4568_v43  ;;  %v1656_v43 = vadd.f32 %v5606_v27, %v5671_v3 }
 0x1f4   :  { %v4572_v37 = vpop.eup %4571  ;;  %4597 = vpow2.f32 %v3947_v29  ;;  %3299 = vmatprep.mubr.f32.mxu1 %v4570_v12  ;;  %3187 = vmatmul.mubr.f32.gmra.mxu0 %v4564_v47  ;;  %v3955_v47 = vmul.f32 -1.442695, %v1640_v58  ;;  %v1665_v12 = vadd.f32 %v5611_v5, %v5692_v13  ;;  %v1664_v13 = vadd.f32 %v5606_v27, %v5687_v52  ;;  %v3598_v52 = vld [vmem:[#allocation11 + $0xe0] sm:$0xff] }
 0x1f5   :  { %v4574_v38 = vpop.eup %4573  ;;  %v2182_v20 = vadd.f32 1.0, %v4572_v37  ;;  %4599 = vpow2.f32 %v4010_v22  ;;  %3300 = vmatmul.mubr.f32.gmra.mxu1 %v4566_v45  ;;  %v1130_v45 = vpop.f32.mrf.mxu1  ;;  %4068 = vmatprep.subr.mxu0 %v3598_v52 }
 0x1f6   :  { %v4576_v53 = vpop.eup %4575  ;;  %v2120_v24 = vadd.f32 1.0, %v4574_v38  ;;  %4601 = vpow2.f32 %v3948_v62  ;;  %4069 = vmatpush3.msra.mxu0 %v3582_v23 }
 0x1f7   :  { %v4578_v9 = vpop.eup %4577  ;;  %4603 = vrcp.f32 %v2182_v20  ;;  %v2183_v19 = vadd.f32 1.0, %v4576_v53  ;;  %v1132_v38 = vpop.f32.mrf.mxu1  ;;  %v3971_v53 = vmul.f32 -1.442695, %v1656_v43 }
 0x1f8   :  { %v4580_v63 = vpop.eup %4579  ;;  %4605 = vrcp.f32 %v2120_v24  ;;  %v2121_v57 = vadd.f32 1.0, %v4578_v9  ;;  %v3980_v9 = vmul.f32 -1.442695, %v1665_v12 }
 0x1f9   :  { %v4582_v34 = vpop.eup %4581  ;;  %4607 = vrcp.f32 %v2183_v19  ;;  %v2190_v8 = vadd.f32 1.0, %v4580_v63  ;;  %v1672_v63 = vadd.f32 %v5606_v27, %v5694_v11 }
 0x1fa   :  { %v4584_v7 = vpop.eup %4583  ;;  %4609 = vrcp.f32 %v2121_v57  ;;  %v2128_v18 = vadd.f32 1.0, %v4582_v34  ;;  %v1681_v34 = vadd.f32 %v5611_v5, %v1126_v0 }
 0x1fb   :  { %v4586_v1 = vpop.eup %4585  ;;  %4611 = vrcp.f32 %v2190_v8  ;;  %v2191_v17 = vadd.f32 1.0, %v4584_v7  ;;  %v1136_v8 = vpop.f32.mrf.mxu1 }
 0x1fc   :  { %v4588_v14 = vpop.eup %4587  ;;  %4613 = vrcp.f32 %v2128_v18  ;;  %v2129_v6 = vadd.f32 1.0, %v4586_v1  ;;  %v3979_v18 = vmul.f32 -1.442695, %v1664_v13  ;;  %v1680_v1 = vadd.f32 %v5606_v27, %v5698_v61  ;;  %v3597_v61 = vld [vmem:[#allocation11 + $0xd8] sm:$0xff] }
 0x1fd   :  { %v4590_v33 = vpop.eup %4589  ;;  %4615 = vrcp.f32 %v2191_v17  ;;  %v2198_v2 = vadd.f32 1.0, %v4588_v14  ;;  %v1688_v17 = vadd.f32 %v5606_v27, %v1130_v45  ;;  %4070 = vmatprep.subr.mxu0 %v3597_v61 }
 0x1fe   :  { %v4592_v15 = vpop.eup %4591  ;;  %4617 = vrcp.f32 %v2129_v6  ;;  %v2136_v30 = vadd.f32 1.0, %v4590_v33  ;;  %v3987_v6 = vmul.f32 -1.442695, %v1672_v63  ;;  %v1689_v33 = vadd.f32 %v5611_v5, %v1132_v38 }
 0x1ff   :  { %v4594_v51 = vpop.eup %4593  ;;  %4619 = vrcp.f32 %v2198_v2  ;;  %v2199_v59 = vadd.f32 1.0, %v4592_v15  ;;  %v3996_v15 = vmul.f32 -1.442695, %v1681_v34  ;;  %v4003_v21 = vmul.f32 -1.442695, %v1688_v17 }
 0x200   :  { %v4596_v16 = vpop.eup %4595  ;;  %4621 = vrcp.f32 %v2136_v30  ;;  %v2137_v31 = vadd.f32 1.0, %v4594_v51  ;;  %v1138_v30 = vpop.f32.mrf.mxu1 }
 0x201   :  { %v4598_v56 = vpop.eup %4597  ;;  %4623 = vrcp.f32 %v2199_v59  ;;  %v2206_v36 = vadd.f32 1.0, %v4596_v16  ;;  %v3581_v59 = vld [vmem:[#allocation11 + $0x58] sm:$0xff]  ;;  %v3995_v16 = vmul.f32 -1.442695, %v1680_v1 }
 0x202   :  { %v4600_v46 = vpop.eup %4599  ;;  %4625 = vrcp.f32 %v2137_v31  ;;  %v2144_v4 = vadd.f32 1.0, %v4598_v56  ;;  %4071 = vmatpush3.msra.mxu0 %v3581_v59  ;;  %v4004_v56 = vmul.f32 -1.442695, %v1689_v33 }
 0x203   :  { %v4602_v28 = vpop.eup %4601  ;;  %4627 = vrcp.f32 %v2206_v36  ;;  %v2207_v48 = vadd.f32 1.0, %v4600_v46  ;;  %v1697_v36 = vadd.f32 %v5611_v5, %v1138_v30  ;;  %v1696_v5 = vadd.f32 %v5606_v27, %v1136_v8 }
 0x204   :  { %v4604_v29 = vpop.eup %4603  ;;  %4629 = vrcp.f32 %v2144_v4  ;;  %v2145_v44 = vadd.f32 1.0, %v4602_v28  ;;  %v3596_v4 = vld [vmem:[#allocation11 + $0xd0] sm:$0xff] }
 0x205   :  { %v4606_v22 = vpop.eup %4605  ;;  %4631 = vrcp.f32 %v2207_v48  ;;  %4072 = vmatprep.subr.mxu0 %v3596_v4 }
 0x206   :  { %v4608_v62 = vpop.eup %4607  ;;  %4633 = vrcp.f32 %v2145_v44  ;;  %4073 = vmatpush3.msra.mxu0 %v3580_v25 }
 0x207   :  { %v4610_v37 = vpop.eup %4609  ;;  %4635 = vpow2.f32 %v3955_v47  ;;  %3192 = vmatprep.mubr.f32.mxu0 %v4608_v62 }
 0x208   :  { %v4612_v32 = vpop.eup %4611  ;;  %4637 = vpow2.f32 %v3956_v60  ;;  %3305 = vmatprep.mubr.f32.mxu1 %v4610_v37  ;;  %3193 = vmatmul.mubr.f32.gmra.mxu0 %v4604_v29  ;;  %v5716_v20 = vpop.f32.mrf.mxu0  ;;  %v4012_v60 = vmul.f32 -1.442695, %v1697_v36 }
 0x209   :  { %v4614_v3 = vpop.eup %4613  ;;  %4639 = vpow2.f32 %v3963_v26  ;;  %3306 = vmatmul.mubr.f32.gmra.mxu1 %v4606_v22  ;;  %v3595_v22 = vld [vmem:[#allocation11 + $0xc8] sm:$0xff] }
 0x20a   :  { %v4616_v24 = vpop.eup %4615  ;;  %4641 = vpow2.f32 %v3964_v49  ;;  %v5723_v55 = vpop.f32.mrf.mxu0  ;;  %v3579_v26 = vld [vmem:[#allocation11 + $0x48] sm:$0xff]  ;;  %4074 = vmatprep.subr.mxu0 %v3595_v22 }
 0x20b   :  { %v4618_v19 = vpop.eup %4617  ;;  %3198 = vmatprep.mubr.f32.mxu0 %v4616_v24  ;;  %4643 = vpow2.f32 %v3972_v39  ;;  %4075 = vmatpush3.msra.mxu0 %v3579_v26 }
 0x20c   :  { %v4620_v57 = vpop.eup %4619  ;;  %3311 = vmatprep.mubr.f32.mxu1 %v4618_v19  ;;  %3199 = vmatmul.mubr.f32.gmra.mxu0 %v4612_v32  ;;  %4645 = vpow2.f32 %v3971_v53  ;;  %v5729_v51 = vpop.f32.mrf.mxu0  ;;  %v4011_v32 = vmul.f32 -1.442695, %v1696_v5 }
 0x20d   :  { %v4622_v7 = vpop.eup %4621  ;;  %3312 = vmatmul.mubr.f32.gmra.mxu1 %v4614_v3  ;;  %4647 = vpow2.f32 %v3980_v9 }
 0x20e   :  { %v4624_v11 = vpop.eup %4623  ;;  %4649 = vpow2.f32 %v3988_v10  ;;  %v5732_v46 = vpop.f32.mrf.mxu0 }
 0x20f   :  { %v4626_v14 = vpop.eup %4625  ;;  %3204 = vmatprep.mubr.f32.mxu0 %v4624_v11  ;;  %4651 = vpow2.f32 %v3979_v18 }
 0x210   :  { %v4628_v2 = vpop.eup %4627  ;;  %3317 = vmatprep.mubr.f32.mxu1 %v4626_v14  ;;  %3205 = vmatmul.mubr.f32.gmra.mxu0 %v4620_v57  ;;  %4653 = vpow2.f32 %v3987_v6  ;;  %v5735_v45 = vpop.f32.mrf.mxu0 }
 0x211   :  { %v4630_v58 = vpop.eup %4629  ;;  %3318 = vmatmul.mubr.f32.gmra.mxu1 %v4622_v7  ;;  %4655 = vpow2.f32 %v3996_v15 }
 0x212   :  { %v4632_v31 = vpop.eup %4631  ;;  %4657 = vpow2.f32 %v3995_v16  ;;  %v5737_v39 = vpop.f32.mrf.mxu0 }
 0x213   :  { %v4634_v0 = vpop.eup %4633  ;;  %3210 = vmatprep.mubr.f32.mxu0 %v4632_v31  ;;  %4659 = vpow2.f32 %v4003_v21 }
 0x214   :  { %v4636_v40 = vpop.eup %4635  ;;  %3323 = vmatprep.mubr.f32.mxu1 %v4634_v0  ;;  %3211 = vmatmul.mubr.f32.gmra.mxu0 %v4628_v2  ;;  %4661 = vpow2.f32 %v4004_v56  ;;  %v5739_v24 = vpop.f32.mrf.mxu0 }
 0x215   :  { %v4638_v28 = vpop.eup %4637  ;;  %v2152_v48 = vadd.f32 1.0, %v4636_v40  ;;  %3324 = vmatmul.mubr.f32.gmra.mxu1 %v4630_v58 }
 0x216   :  { %v4640_v47 = vpop.eup %4639  ;;  %v2153_v29 = vadd.f32 1.0, %v4638_v28  ;;  %v5741_v8 = vpop.f32.mrf.mxu0 }
 0x217   :  { %v4642_v44 = vpop.eup %4641  ;;  %v2160_v62 = vadd.f32 1.0, %v4640_v47 }
 0x218   :  { %4663 = vrcp.f32 %v2153_v29  ;;  %v2161_v50 = vadd.f32 1.0, %v4642_v44  ;;  %v4644_v43 = vpop.eup %4643 }
 0x219   :  { %4665 = vrcp.f32 %v2152_v48  ;;  %v4646_v49 = vpop.eup %4645  ;;  %v2169_v12 = vadd.f32 1.0, %v4644_v43  ;;  %v3593_v43 = vld [vmem:[#allocation11 + $0xb8] sm:$0xff] }
 0x21a   :  { %4667 = vrcp.f32 %v2161_v50  ;;  %v4648_v37 = vpop.eup %4647  ;;  %v2168_v38 = vadd.f32 1.0, %v4646_v49  ;;  %v3578_v50 = vld [vmem:[#allocation11 + $0x40] sm:$0xff] }
 0x21b   :  { %4669 = vpow2.f32 %v4012_v60  ;;  %v2177_v27 = vadd.f32 1.0, %v4648_v37  ;;  %v4650_v35 = vpop.eup %4649  ;;  %v3594_v60 = vld [vmem:[#allocation11 + $0xc0] sm:$0xff]  ;;  %v3592_v37 = vld [vmem:[#allocation11 + $0xb0] sm:$0xff] }
 0x21c   :  { %4671 = vrcp.f32 %v2169_v12  ;;  %v4652_v3 = vpop.eup %4651  ;;  %v2185_v13 = vadd.f32 1.0, %v4650_v35  ;;  %4076 = vmatprep.subr.mxu0 %v3594_v60  ;;  %v3573_v60 = vld [vmem:[#allocation11 + $0x18] sm:$0xff] }
 0x21d   :  { %4673 = vrcp.f32 %v2160_v62  ;;  %v4654_v53 = vpop.eup %4653  ;;  %v2176_v19 = vadd.f32 1.0, %v4652_v3  ;;  %4077 = vmatpush3.msra.mxu0 %v3578_v50  ;;  %v3577_v62 = vld [vmem:[#allocation11 + $0x38] sm:$0xff]  ;;  %v3591_v3 = vld [vmem:[#allocation11 + $0xa8] sm:$0xff] }
 0x21e   :  { %4675 = vpow2.f32 %v4011_v32  ;;  %v4656_v9 = vpop.eup %4655  ;;  %v2184_v23 = vadd.f32 1.0, %v4654_v53  ;;  %4078 = vmatprep.subr.mxu0 %v3593_v43  ;;  %v3576_v32 = vld [vmem:[#allocation11 + $0x30] sm:$0xff]  ;;  %v3575_v53 = vld [vmem:[#allocation11 + $0x28] sm:$0xff] }
 0x21f   :  { %4677 = vrcp.f32 %v2177_v27  ;;  %v4658_v63 = vpop.eup %4657  ;;  %v2193_v34 = vadd.f32 1.0, %v4656_v9  ;;  %4079 = vmatpush3.msra.mxu0 %v3577_v62 }
 0x220   :  { %4679 = vrcp.f32 %v2168_v38  ;;  %v4660_v57 = vpop.eup %4659  ;;  %v2192_v6 = vadd.f32 1.0, %v4658_v63  ;;  %4080 = vmatprep.subr.mxu0 %v3592_v37  ;;  %v2722_v63 = vld [vmem:[%s5990_s4] sm:$0x3] }
 0x221   :  { %v4662_v10 = vpop.eup %4661  ;;  %4681 = vrcp.f32 %v2185_v13  ;;  %v2200_v58 = vadd.f32 1.0, %v4660_v57  ;;  %4081 = vmatpush3.msra.mxu0 %v3576_v32  ;;  %v3572_v32 = vld [vmem:[#allocation11 + $0x10] sm:$0xff] }
 0x222   :  { %4683 = vrcp.f32 %v2176_v19  ;;  %v2201_v11 = vadd.f32 1.0, %v4662_v10  ;;  %4082 = vmatprep.subr.mxu0 %v3591_v3 }
 0x223   :  { %4685 = vrcp.f32 %v2193_v34  ;;  %4083 = vmatpush3.msra.mxu0 %v3575_v53  ;;  %v5782_v34 = vrot.slane %v2722_v63, %v1532_v41  ;;  %v3587_v53 = vld [vmem:[#allocation11 + $0x88] sm:$0xff] }
 0x224   :  { %4687 = vrcp.f32 %v2184_v23 }
 0x225   :  { %v4664_v52 = vpop.eup %4663  ;;  %4689 = vrcp.f32 %v2201_v11 }
 0x226   :  { %v4666_v7 = vpop.eup %4665  ;;  %3329 = vmatprep.mubr.f32.mxu1 %v4664_v52  ;;  %4691 = vrcp.f32 %v2192_v6 }
 0x227   :  { %v4668_v18 = vpop.eup %4667  ;;  %3330 = vmatmul.mubr.f32.gmra.mxu1 %v4666_v7  ;;  %v5790_v7 = vrot.slane %v2722_v63, %v1536_v54 }
 0x228   :  { %v4670_v1 = vpop.eup %4669  ;;  %3335 = vmatprep.mubr.f32.mxu1 %v4668_v18  ;;  %v5743_v17 = vpop.f32.mrf.mxu0 }
 0x229   :  { %v4672_v14 = vpop.eup %4671  ;;  %v2209_v30 = vadd.f32 1.0, %v4670_v1  ;;  %v2825_v18 = vadd.f32 %v5743_v17, %v5782_v34 }
 0x22a   :  { %v4674_v33 = vpop.eup %4673  ;;  %v5745_v2 = vpop.f32.mrf.mxu0 }
 0x22b   :  { %3336 = vmatmul.mubr.f32.gmra.mxu1 %v4674_v33  ;;  %v4676_v15 = vpop.eup %4675  ;;  %4693 = vrcp.f32 %v2209_v30  ;;  %v2827_v11 = vadd.f32 %v5745_v2, %v5790_v7 }
 0x22c   :  { %3341 = vmatprep.mubr.f32.mxu1 %v4672_v14  ;;  %v5747_v61 = vpop.f32.mrf.mxu0  ;;  %v4678_v59 = vpop.eup %4677  ;;  %4695 = vrcp.f32 %v2200_v58  ;;  %v2208_v0 = vadd.f32 1.0, %v4676_v15 }
 0x22d   :  { %v4680_v16 = vpop.eup %4679  ;;  %v2831_v33 = vadd.f32 %v5747_v61, %v5782_v34 }
 0x22e   :  { %v5749_v31 = vpop.f32.mrf.mxu0  ;;  %v4682_v21 = vpop.eup %4681  ;;  %4697 = vrcp.f32 %v2208_v0 }
 0x22f   :  { %3342 = vmatmul.mubr.f32.gmra.mxu1 %v4680_v16  ;;  %v4684_v56 = vpop.eup %4683  ;;  %v2833_v42 = vadd.f32 %v5749_v31, %v5790_v7 }
 0x230   :  { %3347 = vmatprep.mubr.f32.mxu1 %v4678_v59  ;;  %v5751_v36 = vpop.f32.mrf.mxu0  ;;  %v4686_v40 = vpop.eup %4685 }
 0x231   :  { %v4688_v4 = vpop.eup %4687  ;;  %v2837_v2 = vadd.f32 %v5751_v36, %v5782_v34 }
 0x232   :  { %v2838_v25 = vpop.f32.mrf.mxu0  ;;  %v4690_v28 = vpop.eup %4689 }
 0x233   :  { %3348 = vmatmul.mubr.f32.gmra.mxu1 %v4684_v56  ;;  %v4692_v48 = vpop.eup %4691  ;;  %v3590_v56 = vld [vmem:[#allocation11 + $0xa0] sm:$0xff] }
 0x234   :  { %3353 = vmatprep.mubr.f32.mxu1 %v4682_v21  ;;  %v5753_v47 = vpop.f32.mrf.mxu0  ;;  %v2839_v21 = vadd.f32 %v2838_v25, %v5790_v7  ;;  %4084 = vmatprep.subr.mxu0 %v3590_v56  ;;  %v3589_v25 = vld [vmem:[#allocation11 + $0x98] sm:$0xff] }
 0x235   :  { %v2843_v31 = vadd.f32 %v5753_v47, %v5782_v34  ;;  %v3588_v47 = vld [vmem:[#allocation11 + $0x90] sm:$0xff] }
 0x236   :  { %v2844_v5 = vpop.f32.mrf.mxu0 }
 0x237   :  { %3354 = vmatmul.mubr.f32.gmra.mxu1 %v4688_v4  ;;  %v2845_v36 = vadd.f32 %v2844_v5, %v5790_v7 }
 0x238   :  { %3359 = vmatprep.mubr.f32.mxu1 %v4686_v40  ;;  %v4694_v29 = vpop.eup %4693  ;;  %v5755_v26 = vpop.f32.mrf.mxu0  ;;  %v3574_v40 = vld [vmem:[#allocation11 + $0x20] sm:$0xff] }
 0x239   :  { %v4696_v44 = vpop.eup %4695  ;;  %4085 = vmatpush3.msra.mxu0 %v3574_v40  ;;  %v2849_v43 = vadd.f32 %v5755_v26, %v5782_v34  ;;  %v3586_v26 = vld [vmem:[#allocation11 + $0x80] sm:$0xff] }
 0x23a   :  { %v5759_v12 = vpop.f32.mrf.mxu0  ;;  %4086 = vmatprep.subr.mxu0 %v3589_v25 }
 0x23b   :  { %3360 = vmatmul.mubr.f32.gmra.mxu1 %v4692_v48  ;;  %v4698_v22 = vpop.eup %4697  ;;  %4087 = vmatpush3.msra.mxu0 %v3573_v60  ;;  %v2851_v5 = vadd.f32 %v5759_v12, %v5790_v7 }
 0x23c   :  { %3365 = vmatprep.mubr.f32.mxu1 %v4690_v28  ;;  %v5765_v38 = vpop.f32.mrf.mxu0  ;;  %4088 = vmatprep.subr.mxu0 %v3588_v47 }
 0x23d   :  { %4089 = vmatpush3.msra.mxu0 %v3572_v32 }
 0x23e   :  { %v5771_v19 = vpop.f32.mrf.mxu0  ;;  %4090 = vmatprep.subr.mxu0 %v3587_v53 }
 0x23f   :  { %3366 = vmatmul.mubr.f32.gmra.mxu1 %v4696_v44  ;;  %v2857_v12 = vadd.f32 %v5771_v19, %v5790_v7 }
 0x240   :  { %3371 = vmatprep.mubr.f32.mxu1 %v4694_v29  ;;  %v5784_v52 = vpop.f32.mrf.mxu0 }
 0x242   :  { %v2862_v14 = vpop.f32.mrf.mxu0 }
 0x243   :  { %3372 = vmatmul.mubr.f32.gmra.mxu1 %v4698_v22  ;;  %v2863_v56 = vadd.f32 %v2862_v14, %v5790_v7 }
 0x244   :  { %v2866_v54 = vpop.f32.mrf.mxu0 }
 0x245   :  { %v2867_v19 = vadd.f32 %v2866_v54, %v5782_v34 }
 0x246   :  { %v2868_v0 = vpop.f32.mrf.mxu0 }
 0x247   :  { %v5757_v49 = vpop.f32.mrf.mxu1  ;;  %v2869_v25 = vadd.f32 %v2868_v0, %v5790_v7 }
 0x249   :  { %v5761_v27 = vpop.f32.mrf.mxu1  ;;  %v2872_v29 = vpop.f32.mrf.mxu0 }
 0x24a   :  { %v2873_v32 = vadd.f32 %v2872_v29, %v5782_v34 }
 0x24b   :  { %v5763_v35 = vpop.f32.mrf.mxu1  ;;  %v2874_v62 = vpop.f32.mrf.mxu0 }
 0x24d   :  { %v5767_v13 = vpop.f32.mrf.mxu1 }
 0x24f   :  { %v5769_v9 = vpop.f32.mrf.mxu1 }
 0x251   :  { %v5776_v57 = vpop.f32.mrf.mxu1 }
 0x253   :  { %v5778_v10 = vpop.f32.mrf.mxu1 }
 0x255   :  { %v5786_v23 = vpop.f32.mrf.mxu1 }
 0x257   :  { %v2985_v1 = vpop.f32.mrf.mxu1 }
 0x258   :  { %v5796_v6 = vadd.f32 %v2985_v1, %v2825_v18  ;;  %v3571_v18 = vld [vmem:[#allocation11 + $0x8] sm:$0xff]  ;;  %v2855_v1 = vadd.f32 %v5765_v38, %v5782_v34  ;;  %v2861_v38 = vadd.f32 %v5784_v52, %v5782_v34 }
 0x259   :  { %v2987_v41 = vpop.f32.mrf.mxu1  ;;  %4091 = vmatpush3.msra.mxu0 %v3571_v18 }
 0x25a   :  { %v5800_v15 = vadd.f32 %v2987_v41, %v2827_v11  ;;  %v2878_v41 = vpop.f32.mrf.mxu0  ;;  %4092 = vmatprep.subr.mxu0 %v3586_v26 }
 0x25b   :  { %v2991_v30 = vpop.f32.mrf.mxu1  ;;  %v2879_v0 = vadd.f32 %v2878_v41, %v5782_v34 }
 0x25c   :  { %v5804_v59 = vadd.f32 %v2991_v30, %v2831_v33  ;;  %v3570_v30 = vld [vmem:[#allocation11] sm:$0xff] }
 0x25d   :  { %v2993_v17 = vpop.f32.mrf.mxu1  ;;  %4093 = vmatpush3.msra.mxu0 %v3570_v30 }
 0x25e   :  { %v5808_v58 = vadd.f32 %v2993_v17, %v2833_v42 }
 0x25f   :  { %v2997_v16 = vpop.f32.mrf.mxu1 }
 0x260   :  { %v5811_v61 = vadd.f32 %v2997_v16, %v2837_v2  ;;  %v2880_v16 = vpop.f32.mrf.mxu0 }
 0x261   :  { %v2999_v4 = vpop.f32.mrf.mxu1  ;;  %v2881_v30 = vadd.f32 %v2880_v16, %v5790_v7 }
 0x262   :  { %v5815_v28 = vadd.f32 %v2999_v4, %v2839_v21 }
 0x263   :  { %v3003_v48 = vpop.f32.mrf.mxu1 }
 0x264   :  { %v5818_v44 = vadd.f32 %v3003_v48, %v2843_v31  ;;  %v2884_v31 = vpop.f32.mrf.mxu0 }
 0x265   :  { %v3005_v50 = vpop.f32.mrf.mxu1  ;;  %v2885_v29 = vadd.f32 %v2884_v31, %v5782_v34 }
 0x266   :  { %v5820_v22 = vadd.f32 %v3005_v50, %v2845_v36  ;;  %v2886_v50 = vpop.f32.mrf.mxu0 }
 0x268   :  { %v3009_v37 = vpop.f32.mrf.mxu1  ;;  %v2890_v47 = vpop.f32.mrf.mxu0 }
 0x269   :  { %v5826_v3 = vadd.f32 %v3009_v37, %v2849_v43 }
 0x26a   :  { %v3011_v63 = vpop.f32.mrf.mxu1  ;;  %v2892_v37 = vpop.f32.mrf.mxu0 }
 0x26b   :  { %v5830_v11 = vadd.f32 %v3011_v63, %v2851_v5  ;;  %v2875_v63 = vadd.f32 %v2874_v62, %v5790_v7 }
 0x26c   :  { %v3015_v33 = vpop.f32.mrf.mxu1  ;;  %v3122_v14 = vpop.f32.mrf.mxu0 }
 0x26d   :  { %v5834_v42 = vadd.f32 %v3015_v33, %v2855_v1 }
 0x26e   :  { %v3017_v17 = vpop.f32.mrf.mxu1  ;;  %v3124_v5 = vpop.f32.mrf.mxu0 }
 0x26f   :  { %v5836_v2 = vadd.f32 %v3017_v17, %v2857_v12 }
 0x270   :  { %v3128_v26 = vpop.f32.mrf.mxu0 }
 0x271   :  { %v3021_v21 = vpop.f32.mrf.mxu1 }
 0x272   :  { %v5841_v40 = vadd.f32 %v3021_v21, %v2861_v38  ;;  %v3130_v21 = vpop.f32.mrf.mxu0 }
 0x273   :  { %v3023_v4 = vpop.f32.mrf.mxu1 }
 0x274   :  { %v5843_v48 = vadd.f32 %v3023_v4, %v2863_v56  ;;  %v2887_v56 = vadd.f32 %v2886_v50, %v5790_v7  ;;  %v2801_v50 = vadd.f32 %v5716_v20, %v5782_v34 }
 0x276   :  { %v3027_v36 = vpop.f32.mrf.mxu1 }
 0x277   :  { %v5847_v60 = vadd.f32 %v3027_v36, %v2867_v19  ;;  %v2891_v19 = vadd.f32 %v2890_v47, %v5782_v34  ;;  %v2803_v47 = vadd.f32 %v5723_v55, %v5790_v7  ;;  %v2813_v55 = vadd.f32 %v5735_v45, %v5782_v34 }
 0x278   :  { %v3029_v43 = vpop.f32.mrf.mxu1  ;;  %v2819_v45 = vadd.f32 %v5739_v24, %v5782_v34 }
 0x279   :  { %v5849_v52 = vadd.f32 %v3029_v43, %v2869_v25  ;;  %v3134_v25 = vpop.f32.mrf.mxu0  ;;  %v2893_v43 = vadd.f32 %v2892_v37, %v5790_v7  ;;  %v2807_v37 = vadd.f32 %v5729_v51, %v5782_v34 }
 0x27b   :  { %v2968_v20 = vadd.f32 %v5763_v35, %v2807_v37 }
 0x27d   :  { %v3129_v51 = vadd.f32 %v3128_v26, %v2968_v20 }
 0x288   :  { %v3033_v53 = vpop.f32.mrf.mxu1 }
 0x289   :  { %v5853_v18 = vadd.f32 %v3033_v53, %v2873_v32 }
 0x28a   :  { %v3035_v54 = vpop.f32.mrf.mxu1 }
 0x28b   :  { %v5856_v1 = vadd.f32 %v3035_v54, %v2875_v63  ;;  %v3136_v63 = vpop.f32.mrf.mxu0 }
 0x28c   :  { %v3039_v33 = vpop.f32.mrf.mxu1 }
 0x28d   :  { %v5859_v12 = vadd.f32 %v3039_v33, %v2879_v0  ;;  %v3140_v54 = vpop.f32.mrf.mxu0 }
 0x28e   :  { %v3041_v17 = vpop.f32.mrf.mxu1 }
 0x28f   :  { %v5862_v38 = vadd.f32 %v3041_v17, %v2881_v30  ;;  %v3142_v0 = vpop.f32.mrf.mxu0  ;;  %v2962_v30 = vadd.f32 %v5757_v49, %v2801_v50  ;;  %v2964_v17 = vadd.f32 %v5761_v27, %v2803_v47  ;;  %v2815_v50 = vadd.f32 %v5737_v39, %v5790_v7 }
 0x290   :  { %v3045_v62 = vpop.f32.mrf.mxu1  ;;  %v2821_v39 = vadd.f32 %v5741_v8, %v5790_v7 }
 0x291   :  { %v5865_v4 = vadd.f32 %v3045_v62, %v2885_v29  ;;  %v5877_v33 = vpop.f32.mrf.mxu0  ;;  %v3123_v29 = vadd.f32 %v3122_v14, %v2962_v30 }
 0x292   :  { %v3047_v41 = vpop.f32.mrf.mxu1  ;;  %v2982_v24 = vadd.f32 %v5786_v23, %v2821_v39 }
 0x293   :  { %v5868_v36 = vadd.f32 %v3047_v41, %v2887_v56  ;;  %v5885_v62 = vpop.f32.mrf.mxu0  ;;  %v2809_v41 = vadd.f32 %v5732_v46, %v5790_v7  ;;  %v2974_v46 = vadd.f32 %v5769_v9, %v2813_v55  ;;  %v2980_v9 = vadd.f32 %v5778_v10, %v2819_v45 }
 0x294   :  { %v3051_v16 = vpop.f32.mrf.mxu1 }
 0x295   :  { %v5871_v32 = vadd.f32 %v3051_v16, %v2891_v19  ;;  %v3125_v19 = vadd.f32 %v3124_v5, %v2964_v17  ;;  %v3135_v37 = vadd.f32 %v3134_v25, %v2974_v46  ;;  %v3141_v34 = vadd.f32 %v3140_v54, %v2980_v9 }
 0x296   :  { %v3053_v31 = vpop.f32.mrf.mxu1  ;;  %v3147_v9 = vadd.f32 %v5877_v33, %v5796_v6 }
 0x297   :  { %v5873_v53 = vadd.f32 %v3053_v31, %v2893_v43  ;;  %v2970_v43 = vadd.f32 %v5767_v13, %v2809_v41  ;;  %v5893_v31 = vpop.f32.mrf.mxu0  ;;  %v2976_v13 = vadd.f32 %v5776_v57, %v2815_v50 }
 0x299   :  { %v3131_v35 = vadd.f32 %v3130_v21, %v2970_v43  ;;  %v5901_v17 = vpop.f32.mrf.mxu0  ;;  %v3137_v41 = vadd.f32 %v3136_v63, %v2976_v13  ;;  %v3143_v43 = vadd.f32 %v3142_v0, %v2982_v24  ;;  %v3149_v24 = vadd.f32 %v5885_v62, %v5800_v15 }
 0x29b   :  { %v5907_v25 = vpop.f32.mrf.mxu0 }
 0x2a9   :  { %v3283_v56 = vpop.f32.mrf.mxu1 }
 0x2aa   :  { %v3284_v16 = vadd.f32 %v3283_v56, %v3123_v29 }
 0x2ab   :  { %v3285_v49 = vpop.f32.mrf.mxu1 }
 0x2ac   :  { %v4013_v27 = vmul.f32 -1.442695, %v3284_v16  ;;  %v3286_v14 = vadd.f32 %v3285_v49, %v3125_v19 }
 0x2ad   :  { %v3289_v47 = vpop.f32.mrf.mxu1 }
 0x2ae   :  { %4699 = vpow2.f32 %v4013_v27  ;;  %v4014_v5 = vmul.f32 -1.442695, %v3286_v14  ;;  %v3290_v30 = vadd.f32 %v3289_v47, %v3129_v51  ;;  %v3160_v51 = vpop.f32.mrf.mxu0 }
 0x2af   :  { %v3291_v26 = vpop.f32.mrf.mxu1 }
 0x2b0   :  { %4701 = vpow2.f32 %v4014_v5  ;;  %v4015_v29 = vmul.f32 -1.442695, %v3290_v30  ;;  %v3292_v56 = vadd.f32 %v3291_v26, %v3131_v35  ;;  %v3164_v50 = vpop.f32.mrf.mxu0 }
 0x2b1   :  { %v3295_v21 = vpop.f32.mrf.mxu1 }
 0x2b2   :  { %4703 = vpow2.f32 %v4015_v29  ;;  %v4016_v20 = vmul.f32 -1.442695, %v3292_v56  ;;  %v3296_v19 = vadd.f32 %v3295_v21, %v3135_v37  ;;  %v5909_v5 = vpop.f32.mrf.mxu0 }
 0x2b3   :  { %v3297_v57 = vpop.f32.mrf.mxu1 }
 0x2b4   :  { %4705 = vpow2.f32 %v4016_v20  ;;  %v4017_v16 = vmul.f32 -1.442695, %v3296_v19  ;;  %v3298_v55 = vadd.f32 %v3297_v57, %v3137_v41  ;;  %v5911_v26 = vpop.f32.mrf.mxu0 }
 0x2b5   :  { %v3301_v49 = vpop.f32.mrf.mxu1 }
 0x2b6   :  { %4707 = vpow2.f32 %v4017_v16  ;;  %v4018_v8 = vmul.f32 -1.442695, %v3298_v55  ;;  %v3302_v7 = vadd.f32 %v3301_v49, %v3141_v34  ;;  %v5915_v21 = vpop.f32.mrf.mxu0  ;;  %v3153_v55 = vadd.f32 %v5893_v31, %v5804_v59 }
 0x2b7   :  { %v3303_v10 = vpop.f32.mrf.mxu1  ;;  %v3159_v59 = vadd.f32 %v5907_v25, %v5811_v61 }
 0x2b8   :  { %4709 = vpow2.f32 %v4018_v8  ;;  %v4019_v63 = vmul.f32 -1.442695, %v3302_v7  ;;  %v3304_v27 = vadd.f32 %v3303_v10, %v3143_v43  ;;  %v5921_v49 = vpop.f32.mrf.mxu0  ;;  %v3155_v10 = vadd.f32 %v5901_v17, %v5808_v58 }
 0x2ba   :  { %4711 = vpow2.f32 %v4019_v63  ;;  %v4020_v14 = vmul.f32 -1.442695, %v3304_v27  ;;  %v5927_v31 = vpop.f32.mrf.mxu0 }
 0x2bb   :  { %v4700_v23 = vpop.eup %4699 }
 0x2bc   :  { %4713 = vpow2.f32 %v4020_v14  ;;  %v3474_v46 = vadd.f32 1.0, %v4700_v23 }
 0x2bd   :  { %v4702_v54 = vpop.eup %4701 }
 0x2be   :  { %v3475_v47 = vadd.f32 1.0, %v4702_v54 }
 0x2bf   :  { %v4704_v35 = vpop.eup %4703 }
 0x2c0   :  { %4715 = vrcp.f32 %v3475_v47  ;;  %v3476_v30 = vadd.f32 1.0, %v4704_v35  ;;  %v3161_v47 = vadd.f32 %v3160_v51, %v5815_v28 }
 0x2c1   :  { %v4706_v0 = vpop.eup %4705  ;;  %4717 = vrcp.f32 %v3474_v46 }
 0x2c2   :  { %v3477_v45 = vadd.f32 1.0, %v4706_v0  ;;  %v3165_v0 = vadd.f32 %v3164_v50, %v5818_v44 }
 0x2c3   :  { %v4708_v13 = vpop.eup %4707 }
 0x2c4   :  { %4719 = vrcp.f32 %v3477_v45  ;;  %v3478_v29 = vadd.f32 1.0, %v4708_v13 }
 0x2c5   :  { %v4710_v37 = vpop.eup %4709  ;;  %4721 = vrcp.f32 %v3476_v30  ;;  %v5931_v30 = vpop.f32.mrf.mxu0 }
 0x2c6   :  { %v3479_v56 = vadd.f32 1.0, %v4710_v37 }
 0x2c7   :  { %v4712_v39 = vpop.eup %4711 }
 0x2c8   :  { %4723 = vrcp.f32 %v3479_v56  ;;  %v3480_v20 = vadd.f32 1.0, %v4712_v39  ;;  %v5935_v39 = vpop.f32.mrf.mxu0 }
 0x2c9   :  { %v4714_v41 = vpop.eup %4713  ;;  %4725 = vrcp.f32 %v3478_v29  ;;  %v3307_v19 = vpop.f32.mrf.mxu1  ;;  %v3167_v29 = vadd.f32 %v5909_v5, %v5820_v22 }
 0x2ca   :  { %v3481_v57 = vadd.f32 1.0, %v4714_v41  ;;  %v3308_v34 = vadd.f32 %v3307_v19, %v3147_v9 }
 0x2cb   :  { %v3309_v16 = vpop.f32.mrf.mxu1 }
 0x2cc   :  { %4727 = vrcp.f32 %v3481_v57  ;;  %v4021_v6 = vmul.f32 -1.442695, %v3308_v34  ;;  %v3310_v33 = vadd.f32 %v3309_v16, %v3149_v24  ;;  %v3188_v24 = vpop.f32.mrf.mxu0 }
 0x2cd   :  { %v4716_v43 = vpop.eup %4715  ;;  %4729 = vrcp.f32 %v3480_v20  ;;  %v3313_v8 = vpop.f32.mrf.mxu1 }
 0x2ce   :  { %v4718_v7 = vpop.eup %4717  ;;  %4731 = vpow2.f32 %v4021_v6  ;;  %v4022_v15 = vmul.f32 -1.442695, %v3310_v33  ;;  %v3314_v62 = vadd.f32 %v3313_v8, %v3153_v55  ;;  %3673 = vmatprep.mubr.f32.mxu0 %v4716_v43  ;;  %v3190_v16 = vpop.f32.mrf.mxu0 }
 0x2cf   :  { %v3315_v63 = vpop.f32.mrf.mxu1  ;;  %3674 = vmatmul.mubr.f32.vlgmr.msra.gmra.mxu0 %v4718_v7 }
 0x2d0   :  { %4733 = vpow2.f32 %v4022_v15  ;;  %v4023_v27 = vmul.f32 -1.442695, %v3314_v62  ;;  %v3316_v14 = vadd.f32 %v3315_v63, %v3155_v10  ;;  %v3194_v8 = vpop.f32.mrf.mxu0  ;;  %v3171_v15 = vadd.f32 %v5911_v26, %v5826_v3 }
 0x2d1   :  { %v4720_v23 = vpop.eup %4719  ;;  %v3319_v54 = vpop.f32.mrf.mxu1  ;;  %v3179_v26 = vadd.f32 %v5927_v31, %v5836_v2  ;;  %v3185_v2 = vadd.f32 %v5935_v39, %v5843_v48 }
 0x2d2   :  { %v4722_v46 = vpop.eup %4721  ;;  %4735 = vpow2.f32 %v4023_v27  ;;  %v4024_v58 = vmul.f32 -1.442695, %v3316_v14  ;;  %v3320_v17 = vadd.f32 %v3319_v54, %v3159_v59  ;;  %3678 = vmatprep.mubr.f32.mxu0 %v4720_v23  ;;  %v3173_v27 = vadd.f32 %v5915_v21, %v5830_v11  ;;  %v3196_v14 = vpop.f32.mrf.mxu0 }
 0x2d3   :  { %v3321_v35 = vpop.f32.mrf.mxu1  ;;  %3679 = vmatmul.mubr.f32.gmra.mxu0 %v4722_v46 }
 0x2d4   :  { %4737 = vpow2.f32 %v4024_v58  ;;  %v4025_v61 = vmul.f32 -1.442695, %v3320_v17  ;;  %v3322_v25 = vadd.f32 %v3321_v35, %v3161_v47  ;;  %v3177_v58 = vadd.f32 %v5921_v49, %v5834_v42 }
 0x2d5   :  { %v4724_v45 = vpop.eup %4723  ;;  %v3325_v13 = vpop.f32.mrf.mxu1 }
 0x2d6   :  { %v4726_v37 = vpop.eup %4725  ;;  %4739 = vpow2.f32 %v4025_v61  ;;  %v4026_v28 = vmul.f32 -1.442695, %v3322_v25  ;;  %v3326_v51 = vadd.f32 %v3325_v13, %v3165_v0  ;;  %3683 = vmatprep.mubr.f32.mxu0 %v4724_v45  ;;  %v3200_v61 = vpop.f32.mrf.mxu0 }
 0x2d7   :  { %v3327_v56 = vpop.f32.mrf.mxu1  ;;  %3684 = vmatmul.mubr.f32.gmra.mxu0 %v4726_v37  ;;  %v3183_v37 = vadd.f32 %v5931_v30, %v5841_v40 }
 0x2d8   :  { %4741 = vpow2.f32 %v4026_v28  ;;  %v4027_v44 = vmul.f32 -1.442695, %v3326_v51  ;;  %v3328_v50 = vadd.f32 %v3327_v56, %v3167_v29  ;;  %v3202_v31 = vpop.f32.mrf.mxu0 }
 0x2d9   :  { %v4728_v9 = vpop.eup %4727 }
 0x2da   :  { %v4730_v41 = vpop.eup %4729  ;;  %4743 = vpow2.f32 %v4027_v44  ;;  %v4028_v20 = vmul.f32 -1.442695, %v3328_v50  ;;  %3688 = vmatprep.mubr.f32.mxu0 %v4728_v9  ;;  %v3189_v9 = vadd.f32 %v3188_v24, %v5847_v60 }
 0x2db   :  { %v4732_v19 = vpop.eup %4731  ;;  %3689 = vmatmul.mubr.f32.gmra.mxu0 %v4730_v41 }
 0x2dc   :  { %4745 = vpow2.f32 %v4028_v20  ;;  %v3482_v5 = vadd.f32 1.0, %v4732_v19  ;;  %v3191_v20 = vadd.f32 %v3190_v16, %v5849_v52  ;;  %v3206_v19 = vpop.f32.mrf.mxu0 }
 0x2dd   :  { %v4734_v22 = vpop.eup %4733 }
 0x2de   :  { %v3483_v57 = vadd.f32 1.0, %v4734_v22 }
 0x2df   :  { %v4736_v34 = vpop.eup %4735 }
 0x2e0   :  { %4747 = vrcp.f32 %v3483_v57  ;;  %v3484_v6 = vadd.f32 1.0, %v4736_v34  ;;  %v3195_v34 = vadd.f32 %v3194_v8, %v5853_v18 }
 0x2e1   :  { %v4738_v55 = vpop.eup %4737  ;;  %4749 = vrcp.f32 %v3482_v5 }
 0x2e2   :  { %v3485_v33 = vadd.f32 1.0, %v4738_v55 }
 0x2e3   :  { %v4740_v43 = vpop.eup %4739 }
 0x2e4   :  { %4751 = vrcp.f32 %v3485_v33  ;;  %v3486_v10 = vadd.f32 1.0, %v4740_v43  ;;  %v3197_v33 = vadd.f32 %v3196_v14, %v5856_v1  ;;  %v3208_v43 = vpop.f32.mrf.mxu0 }
 0x2e5   :  { %v4742_v7 = vpop.eup %4741  ;;  %4753 = vrcp.f32 %v3484_v6 }
 0x2e6   :  { %v3487_v62 = vadd.f32 1.0, %v4742_v7  ;;  %v3212_v1 = vpop.f32.mrf.mxu0 }
 0x2e7   :  { %v4744_v63 = vpop.eup %4743  ;;  %v3331_v59 = vpop.f32.mrf.mxu1 }
 0x2e8   :  { %4755 = vrcp.f32 %v3487_v62  ;;  %v3488_v23 = vadd.f32 1.0, %v4744_v63  ;;  %v3332_v54 = vadd.f32 %v3331_v59, %v3171_v15  ;;  %v3201_v62 = vadd.f32 %v3200_v61, %v5859_v12  ;;  %v3214_v61 = vpop.f32.mrf.mxu0 }
 0x2e9   :  { %v4746_v46 = vpop.eup %4745  ;;  %4757 = vrcp.f32 %v3486_v10  ;;  %v3333_v47 = vpop.f32.mrf.mxu1  ;;  %v3203_v59 = vadd.f32 %v3202_v31, %v5862_v38  ;;  %v3209_v38 = vadd.f32 %v3208_v43, %v5868_v36 }
 0x2ea   :  { %v3489_v17 = vadd.f32 1.0, %v4746_v46  ;;  %v4029_v35 = vmul.f32 -1.442695, %v3332_v54  ;;  %v3334_v0 = vadd.f32 %v3333_v47, %v3173_v27  ;;  %4759 = vrcp.f32 %v3488_v23 }
 0x2eb   :  { %v3337_v3 = vpop.f32.mrf.mxu1 }
 0x2ec   :  { %4761 = vrcp.f32 %v3489_v17  ;;  %v4030_v11 = vmul.f32 -1.442695, %v3334_v0  ;;  %v3338_v21 = vadd.f32 %v3337_v3, %v3177_v58  ;;  %v3207_v58 = vadd.f32 %v3206_v19, %v5865_v4 }
 0x2ed   :  { %v4748_v25 = vpop.eup %4747  ;;  %4763 = vpow2.f32 %v4029_v35  ;;  %v3339_v45 = vpop.f32.mrf.mxu1 }
 0x2ee   :  { %v4750_v13 = vpop.eup %4749  ;;  %4765 = vpow2.f32 %v4030_v11  ;;  %v4031_v42 = vmul.f32 -1.442695, %v3338_v21  ;;  %v3340_v49 = vadd.f32 %v3339_v45, %v3179_v26  ;;  %3693 = vmatprep.mubr.f32.mxu0 %v4748_v25 }
 0x2ef   :  { %v3343_v29 = vpop.f32.mrf.mxu1  ;;  %3694 = vmatmul.mubr.f32.gmra.mxu0 %v4750_v13  ;;  %v3213_v13 = vadd.f32 %v3212_v1, %v5871_v32 }
 0x2f0   :  { %4767 = vpow2.f32 %v4031_v42  ;;  %v4032_v28 = vmul.f32 -1.442695, %v3340_v49  ;;  %v3344_v51 = vadd.f32 %v3343_v29, %v3183_v37 }
 0x2f1   :  { %v4752_v56 = vpop.eup %4751  ;;  %v3345_v44 = vpop.f32.mrf.mxu1 }
 0x2f2   :  { %v4754_v50 = vpop.eup %4753  ;;  %4769 = vpow2.f32 %v4032_v28  ;;  %v4033_v40 = vmul.f32 -1.442695, %v3344_v51  ;;  %v3346_v30 = vadd.f32 %v3345_v44, %v3185_v2  ;;  %3698 = vmatprep.mubr.f32.mxu0 %v4752_v56  ;;  %v3215_v2 = vadd.f32 %v3214_v61, %v5873_v53 }
 0x2f3   :  { %v3349_v41 = vpop.f32.mrf.mxu1  ;;  %3699 = vmatmul.mubr.f32.gmra.mxu0 %v4754_v50 }
 0x2f4   :  { %4771 = vpow2.f32 %v4033_v40  ;;  %v4034_v48 = vmul.f32 -1.442695, %v3346_v30  ;;  %v3350_v39 = vadd.f32 %v3349_v41, %v3189_v9 }
 0x2f5   :  { %v4756_v22 = vpop.eup %4755  ;;  %v3351_v5 = vpop.f32.mrf.mxu1 }
 0x2f6   :  { %v4758_v57 = vpop.eup %4757  ;;  %4773 = vpow2.f32 %v4034_v48  ;;  %v4035_v55 = vmul.f32 -1.442695, %v3350_v39  ;;  %v3352_v60 = vadd.f32 %v3351_v5, %v3191_v20  ;;  %3703 = vmatprep.mubr.f32.mxu0 %v4756_v22 }
 0x2f7   :  { %v3355_v24 = vpop.f32.mrf.mxu1  ;;  %3704 = vmatmul.mubr.f32.gmra.mxu0 %v4758_v57  ;;  %v4760_v6 = vpop.eup %4759 }
 0x2f8   :  { %4775 = vpow2.f32 %v4035_v55  ;;  %v4036_v52 = vmul.f32 -1.442695, %v3352_v60  ;;  %v3356_v16 = vadd.f32 %v3355_v24, %v3195_v34 }
 0x2f9   :  { %v4762_v7 = vpop.eup %4761  ;;  %v3357_v10 = vpop.f32.mrf.mxu1 }
 0x2fa   :  { %v4764_v15 = vpop.eup %4763  ;;  %4777 = vpow2.f32 %v4036_v52  ;;  %v4037_v18 = vmul.f32 -1.442695, %v3356_v16  ;;  %v3358_v8 = vadd.f32 %v3357_v10, %v3197_v33  ;;  %3708 = vmatprep.mubr.f32.mxu0 %v4762_v7 }
 0x2fb   :  { %v4766_v63 = vpop.eup %4765  ;;  %v3490_v27 = vadd.f32 1.0, %v4764_v15  ;;  %v3361_v23 = vpop.f32.mrf.mxu1  ;;  %3709 = vmatmul.mubr.f32.gmra.mxu0 %v4760_v6 }
 0x2fc   :  { %v3491_v14 = vadd.f32 1.0, %v4766_v63  ;;  %4779 = vpow2.f32 %v4037_v18  ;;  %v4038_v54 = vmul.f32 -1.442695, %v3358_v8  ;;  %v3362_v46 = vadd.f32 %v3361_v23, %v3201_v62 }
 0x2fd   :  { %v4768_v47 = vpop.eup %4767  ;;  %4781 = vrcp.f32 %v3490_v27  ;;  %v3363_v12 = vpop.f32.mrf.mxu1 }
 0x2fe   :  { %4783 = vrcp.f32 %v3491_v14  ;;  %v3492_v17 = vadd.f32 1.0, %v4768_v47  ;;  %v4039_v35 = vmul.f32 -1.442695, %v3362_v46  ;;  %v3364_v0 = vadd.f32 %v3363_v12, %v3203_v59  ;;  %v5962_v12 = vld [vmem:[%s5992_s6] ss:$0 sm:$0xff]  ;;  %s5032_s6 = smov [#allocation12]  }
 0x2ff   :  { %v4770_v3 = vpop.eup %4769  ;;  %4785 = vpow2.f32 %v4038_v54  ;;  %v3367_v26 = vpop.f32.mrf.mxu1  ;;  %s3871_s30 = sshll.u32 %s5032_s6, 4  ;;  %s3872_s30 = int_to_ptr.vmem [resolvable:$true] %s3871_s30 }
 0x300   :  { %4787 = vrcp.f32 %v3492_v17  ;;  %v3493_v11 = vadd.f32 1.0, %v4770_v3  ;;  %v4040_v21 = vmul.f32 -1.442695, %v3364_v0  ;;  %v3368_v25 = vadd.f32 %v3367_v26, %v3207_v58  ;;  %s4992_s8 = scalar_lea.vmem %s3872_s30, 2048  ;;  %p4997_p12 = scmp.lt.s32.totalorder %s3872_s30, %s3872_s30 }
 0x301   :  { %v4772_v45 = vpop.eup %4771  ;;  %4789 = vpow2.f32 %v4039_v35  ;;  %v3369_v4 = vpop.f32.mrf.mxu1  ;;  %p4993_p11 = scmp.ne.s32.totalorder %s3872_s30, %s4992_s8  ;;  %p4998_p13 = scmp.lt.s32.totalorder %s4992_s8, %s4992_s8 }
 0x302   :  { %4791 = vrcp.f32 %v3493_v11  ;;  %v3494_v37 = vadd.f32 1.0, %v4772_v45  ;;  %v4041_v42 = vmul.f32 -1.442695, %v3368_v25  ;;  %v3370_v49 = vadd.f32 %v3369_v4, %v3209_v38 }
 0x303   :  { %v4774_v29 = vpop.eup %4773  ;;  %4793 = vpow2.f32 %v4040_v21  ;;  %v3373_v36 = vpop.f32.mrf.mxu1  ;;  %p4999_p0 = por %p4998_p13, %p4997_p12 }
 0x304   :  { %4795 = vrcp.f32 %v3494_v37  ;;  %v3495_v31 = vadd.f32 1.0, %v4774_v29  ;;  %v4042_v28 = vmul.f32 -1.442695, %v3370_v49  ;;  %v3374_v51 = vadd.f32 %v3373_v36, %v3213_v13 }
 0x305   :  { %v4776_v56 = vpop.eup %4775  ;;  %4797 = vpow2.f32 %v4041_v42  ;;  %v3375_v44 = vpop.f32.mrf.mxu1  ;;  %p5000_p1 = pnand %p4999_p0, %p4993_p11 }
 0x306   :  { %4799 = vrcp.f32 %v3495_v31  ;;  %v3496_v32 = vadd.f32 1.0, %v4776_v56  ;;  %v4043_v50 = vmul.f32 -1.442695, %v3374_v51  ;;  %v3376_v9 = vadd.f32 %v3375_v44, %v3215_v2 }
 0x307   :  { %v4778_v40 = vpop.eup %4777  ;;  %4801 = vpow2.f32 %v4042_v28 }
 0x308   :  { %4803 = vrcp.f32 %v3496_v32  ;;  %v3497_v30 = vadd.f32 1.0, %v4778_v40  ;;  %v4044_v41 = vmul.f32 -1.442695, %v3376_v9 }
 0x309   :  { %v4780_v20 = vpop.eup %4779  ;;  %4805 = vpow2.f32 %v4043_v50 }
 0x30a   :  { %v4782_v53 = vpop.eup %4781  ;;  %4807 = vrcp.f32 %v3497_v30  ;;  %v3498_v39 = vadd.f32 1.0, %v4780_v20 }
 0x30b   :  { %v4784_v19 = vpop.eup %4783  ;;  %4809 = vpow2.f32 %v4044_v41 }
 0x30c   :  { %v4786_v48 = vpop.eup %4785  ;;  %3713 = vmatprep.mubr.f32.mxu0 %v4784_v19 }
 0x30d   :  { %v4788_v22 = vpop.eup %4787  ;;  %v3499_v5 = vadd.f32 1.0, %v4786_v48  ;;  %3714 = vmatmul.mubr.f32.gmra.mxu0 %v4782_v53 }
 0x30e   :  { %v4790_v57 = vpop.eup %4789 }
 0x30f   :  { %v4792_v34 = vpop.eup %4791  ;;  %4811 = vrcp.f32 %v3499_v5  ;;  %v3500_v60 = vadd.f32 1.0, %v4790_v57 }
 0x310   :  { %v4794_v55 = vpop.eup %4793  ;;  %4813 = vrcp.f32 %v3498_v39  ;;  %3718 = vmatprep.mubr.f32.mxu0 %v4792_v34 }
 0x311   :  { %v4796_v24 = vpop.eup %4795  ;;  %v3501_v6 = vadd.f32 1.0, %v4794_v55  ;;  %3719 = vmatmul.mubr.f32.gmra.mxu0 %v4788_v22 }
 0x312   :  { %v4798_v33 = vpop.eup %4797 }
 0x313   :  { %v4800_v43 = vpop.eup %4799  ;;  %4815 = vrcp.f32 %v3501_v6  ;;  %v3502_v16 = vadd.f32 1.0, %v4798_v33 }
 0x314   :  { %v4802_v52 = vpop.eup %4801  ;;  %4817 = vrcp.f32 %v3500_v60  ;;  %3723 = vmatprep.mubr.f32.mxu0 %v4800_v43 }
 0x315   :  { %v4804_v7 = vpop.eup %4803  ;;  %v3503_v10 = vadd.f32 1.0, %v4802_v52  ;;  %3724 = vmatmul.mubr.f32.gmra.mxu0 %v4796_v24 }
 0x316   :  { %v4806_v15 = vpop.eup %4805 }
 0x317   :  { %v4808_v62 = vpop.eup %4807  ;;  %4819 = vrcp.f32 %v3503_v10  ;;  %v3504_v8 = vadd.f32 1.0, %v4806_v15 }
 0x318   :  { %v4810_v18 = vpop.eup %4809  ;;  %4821 = vrcp.f32 %v3502_v16  ;;  %3728 = vmatprep.mubr.f32.mxu0 %v4808_v62 }
 0x319   :  { %v3505_v63 = vadd.f32 1.0, %v4810_v18  ;;  %3729 = vmatmul.mubr.f32.gmra.mxu0 %v4804_v7 }
 0x31b   :  { %4823 = vrcp.f32 %v3505_v63 }
 0x31c   :  { %v4812_v59 = vpop.eup %4811  ;;  %4825 = vrcp.f32 %v3504_v8 }
 0x31d   :  { %v4814_v27 = vpop.eup %4813  ;;  %3733 = vmatprep.mubr.f32.mxu0 %v4812_v59 }
 0x31e   :  { %3734 = vmatmul.mubr.f32.gmra.mxu0 %v4814_v27 }
 0x320   :  { %v4816_v23 = vpop.eup %4815 }
 0x321   :  { %v4818_v1 = vpop.eup %4817  ;;  %3738 = vmatprep.mubr.f32.mxu0 %v4816_v23 }
 0x322   :  { %3739 = vmatmul.mubr.f32.gmra.mxu0 %v4818_v1 }
 0x324   :  { %v4820_v14 = vpop.eup %4819 }
 0x325   :  { %v4822_v54 = vpop.eup %4821  ;;  %3743 = vmatprep.mubr.f32.mxu0 %v4820_v14 }
 0x326   :  { %3744 = vmatmul.mubr.f32.gmra.mxu0 %v4822_v54 }
 0x328   :  { %v4824_v46 = vpop.eup %4823 }
 0x329   :  { %v4826_v47 = vpop.eup %4825  ;;  %3748 = vmatprep.mubr.f32.mxu0 %v4824_v46 }
 0x32a   :  { %3749 = vmatmul.mubr.f32.gmra.mxu0 %v4826_v47 }
 0x38f   :  { %v4094_v58 = vpop.f32.mrf.mxu0 }
 0x391   :  { %v4095_v17 = vpop.f32.mrf.mxu0 }
 0x392   :  { %v4096_v35 = vadd.f32 %v4095_v17, %v4094_v58 }
 0x393   :  { %v4097_v0 = vpop.f32.mrf.mxu0 }
 0x394   :  { %v3676_v3 = vadd.f32 %v4096_v35, %v5962_v12 }
 0x395   :  { %v4098_v38 = vpop.f32.mrf.mxu0 }
 0x396   :  { %v4046_v26 = vmul.f32 -1.442695, %v3676_v3  ;;  %v4099_v61 = vadd.f32 %v4098_v38, %v4097_v0 }
 0x397   :  { %v4100_v11 = vpop.f32.mrf.mxu0 }
 0x398   :  { %4827 = vpow2.f32 %v4046_v26  ;;  %v3681_v21 = vadd.f32 %v4099_v61, %v5962_v12 }
 0x399   :  { %v4101_v25 = vpop.f32.mrf.mxu0 }
 0x39a   :  { %v4047_v45 = vmul.f32 -1.442695, %v3681_v21  ;;  %v4102_v13 = vadd.f32 %v4101_v25, %v4100_v11 }
 0x39b   :  { %v4103_v4 = vpop.f32.mrf.mxu0 }
 0x39c   :  { %4829 = vpow2.f32 %v4047_v45  ;;  %v3686_v37 = vadd.f32 %v4102_v13, %v5962_v12 }
 0x39d   :  { %v4104_v42 = vpop.f32.mrf.mxu0 }
 0x39e   :  { %v4048_v49 = vmul.f32 -1.442695, %v3686_v37  ;;  %v4105_v29 = vadd.f32 %v4104_v42, %v4103_v4 }
 0x3a0   :  { %4831 = vpow2.f32 %v4048_v49  ;;  %v3691_v2 = vadd.f32 %v4105_v29, %v5962_v12 }
 0x3a2   :  { %v4049_v36 = vmul.f32 -1.442695, %v3691_v2 }
 0x3a4   :  { %4833 = vpow2.f32 %v4049_v36 }
 0x3a5   :  { %v4828_v31 = vpop.eup %4827 }
 0x3a6   :  { %v3802_v28 = vadd.f32 1.0, %v4828_v31 }
 0x3a8   :  { %4835 = vrcp.f32 %v3802_v28 }
 0x3a9   :  { %v4830_v51 = vpop.eup %4829 }
 0x3aa   :  { %v3803_v56 = vadd.f32 1.0, %v4830_v51 }
 0x3ac   :  { %4837 = vrcp.f32 %v3803_v56 }
 0x3ad   :  { %v4832_v44 = vpop.eup %4831 }
 0x3ae   :  { %v3804_v32 = vadd.f32 1.0, %v4832_v44 }
 0x3af   :  { %v4106_v50 = vpop.f32.mrf.mxu0 }
 0x3b0   :  { %4839 = vrcp.f32 %v3804_v32 }
 0x3b1   :  { %v4834_v9 = vpop.eup %4833  ;;  %v4107_v40 = vpop.f32.mrf.mxu0 }
 0x3b2   :  { %v3805_v30 = vadd.f32 1.0, %v4834_v9  ;;  %v4108_v41 = vadd.f32 %v4107_v40, %v4106_v50 }
 0x3b3   :  { %v4109_v20 = vpop.f32.mrf.mxu0 }
 0x3b4   :  { %4841 = vrcp.f32 %v3805_v30  ;;  %v3696_v53 = vadd.f32 %v4108_v41, %v5962_v12 }
 0x3b5   :  { %v4836_v19 = vpop.eup %4835  ;;  %v4110_v48 = vpop.f32.mrf.mxu0 }
 0x3b6   :  { %3850 = vst [vmem:[#allocation12] sm:$0xff] %v4836_v19  ;;  %v4050_v39 = vmul.f32 -1.442695, %v3696_v53  ;;  %v4111_v22 = vadd.f32 %v4110_v48, %v4109_v20 }
 0x3b7   :  { %v4112_v5 = vpop.f32.mrf.mxu0 }
 0x3b8   :  { %4843 = vpow2.f32 %v4050_v39  ;;  %v3701_v57 = vadd.f32 %v4111_v22, %v5962_v12 }
 0x3b9   :  { %v4838_v34 = vpop.eup %4837  ;;  %v4113_v55 = vpop.f32.mrf.mxu0 }
 0x3ba   :  { %3851 = vst [vmem:[#allocation12 + $0x8] sm:$0xff] %v4838_v34  ;;  %v4051_v60 = vmul.f32 -1.442695, %v3701_v57  ;;  %v4114_v24 = vadd.f32 %v4113_v55, %v4112_v5 }
 0x3bb   :  { %v4115_v6 = vpop.f32.mrf.mxu0 }
 0x3bc   :  { %4845 = vpow2.f32 %v4051_v60  ;;  %v3706_v33 = vadd.f32 %v4114_v24, %v5962_v12 }
 0x3bd   :  { %v4840_v43 = vpop.eup %4839  ;;  %v4116_v52 = vpop.f32.mrf.mxu0 }
 0x3be   :  { %3852 = vst [vmem:[#allocation12 + $0x10] sm:$0xff] %v4840_v43  ;;  %v4052_v16 = vmul.f32 -1.442695, %v3706_v33  ;;  %v4117_v7 = vadd.f32 %v4116_v52, %v4115_v6 }
 0x3c0   :  { %4847 = vpow2.f32 %v4052_v16  ;;  %v3711_v10 = vadd.f32 %v4117_v7, %v5962_v12 }
 0x3c1   :  { %v4842_v15 = vpop.eup %4841 }
 0x3c2   :  { %3853 = vst [vmem:[#allocation12 + $0x18] sm:$0xff] %v4842_v15  ;;  %v4053_v62 = vmul.f32 -1.442695, %v3711_v10 }
 0x3c4   :  { %4849 = vpow2.f32 %v4053_v62 }
 0x3c5   :  { %v4844_v18 = vpop.eup %4843 }
 0x3c6   :  { %v3806_v8 = vadd.f32 1.0, %v4844_v18 }
 0x3c8   :  { %4851 = vrcp.f32 %v3806_v8 }
 0x3c9   :  { %v4846_v63 = vpop.eup %4845 }
 0x3ca   :  { %v3807_v59 = vadd.f32 1.0, %v4846_v63 }
 0x3cc   :  { %4853 = vrcp.f32 %v3807_v59 }
 0x3cd   :  { %v4848_v27 = vpop.eup %4847  ;;  %v4118_v23 = vpop.f32.mrf.mxu0 }
 0x3ce   :  { %v3808_v1 = vadd.f32 1.0, %v4848_v27 }
 0x3cf   :  { %v4119_v14 = vpop.f32.mrf.mxu0 }
 0x3d0   :  { %4855 = vrcp.f32 %v3808_v1  ;;  %v4120_v54 = vadd.f32 %v4119_v14, %v4118_v23 }
 0x3d1   :  { %v4850_v46 = vpop.eup %4849  ;;  %v4121_v47 = vpop.f32.mrf.mxu0 }
 0x3d2   :  { %v3809_v58 = vadd.f32 1.0, %v4850_v46  ;;  %v3716_v17 = vadd.f32 %v4120_v54, %v5962_v12 }
 0x3d3   :  { %v4122_v35 = vpop.f32.mrf.mxu0 }
 0x3d4   :  { %4857 = vrcp.f32 %v3809_v58  ;;  %v4054_v0 = vmul.f32 -1.442695, %v3716_v17  ;;  %v4123_v3 = vadd.f32 %v4122_v35, %v4121_v47 }
 0x3d5   :  { %v4852_v38 = vpop.eup %4851  ;;  %v4124_v26 = vpop.f32.mrf.mxu0 }
 0x3d6   :  { %3854 = vst [vmem:[#allocation12 + $0x20] sm:$0xff] %v4852_v38  ;;  %4859 = vpow2.f32 %v4054_v0  ;;  %v3721_v61 = vadd.f32 %v4123_v3, %v5962_v12 }
 0x3d7   :  { %v4125_v11 = vpop.f32.mrf.mxu0 }
 0x3d8   :  { %v4055_v21 = vmul.f32 -1.442695, %v3721_v61  ;;  %v4126_v25 = vadd.f32 %v4125_v11, %v4124_v26 }
 0x3d9   :  { %v4854_v45 = vpop.eup %4853  ;;  %v4127_v13 = vpop.f32.mrf.mxu0 }
 0x3da   :  { %3855 = vst [vmem:[#allocation12 + $0x28] sm:$0xff] %v4854_v45  ;;  %4861 = vpow2.f32 %v4055_v21  ;;  %v3726_v4 = vadd.f32 %v4126_v25, %v5962_v12 }
 0x3db   :  { %v4128_v37 = vpop.f32.mrf.mxu0 }
 0x3dc   :  { %v4056_v42 = vmul.f32 -1.442695, %v3726_v4  ;;  %v4129_v49 = vadd.f32 %v4128_v37, %v4127_v13 }
 0x3dd   :  { %v4856_v29 = vpop.eup %4855 }
 0x3de   :  { %3856 = vst [vmem:[#allocation12 + $0x30] sm:$0xff] %v4856_v29  ;;  %4863 = vpow2.f32 %v4056_v42  ;;  %v3731_v2 = vadd.f32 %v4129_v49, %v5962_v12  ;;  %v4130_v36 = vpop.f32.mrf.mxu0 }
 0x3e0   :  { %v4057_v31 = vmul.f32 -1.442695, %v3731_v2  ;;  %v4131_v28 = vpop.f32.mrf.mxu0 }
 0x3e1   :  { %v4858_v51 = vpop.eup %4857  ;;  %v4132_v56 = vadd.f32 %v4131_v28, %v4130_v36 }
 0x3e2   :  { %3857 = vst [vmem:[#allocation12 + $0x38] sm:$0xff] %v4858_v51  ;;  %4865 = vpow2.f32 %v4057_v31  ;;  %v4133_v44 = vpop.f32.mrf.mxu0 }
 0x3e3   :  { %v4860_v32 = vpop.eup %4859  ;;  %v3736_v50 = vadd.f32 %v4132_v56, %v5962_v12 }
 0x3e4   :  { %v3810_v9 = vadd.f32 1.0, %v4860_v32  ;;  %v4134_v40 = vpop.f32.mrf.mxu0 }
 0x3e5   :  { %v4058_v30 = vmul.f32 -1.442695, %v3736_v50  ;;  %v4135_v41 = vadd.f32 %v4134_v40, %v4133_v44 }
 0x3e6   :  { %4867 = vrcp.f32 %v3810_v9  ;;  %v4136_v20 = vpop.f32.mrf.mxu0 }
 0x3e7   :  { %v4862_v53 = vpop.eup %4861  ;;  %4869 = vpow2.f32 %v4058_v30  ;;  %v3741_v19 = vadd.f32 %v4135_v41, %v5962_v12 }
 0x3e8   :  { %v3811_v48 = vadd.f32 1.0, %v4862_v53  ;;  %v4137_v39 = vpop.f32.mrf.mxu0 }
 0x3e9   :  { %v4059_v22 = vmul.f32 -1.442695, %v3741_v19  ;;  %v4138_v5 = vadd.f32 %v4137_v39, %v4136_v20 }
 0x3ea   :  { %4871 = vrcp.f32 %v3811_v48  ;;  %v4139_v57 = vpop.f32.mrf.mxu0 }
 0x3eb   :  { %v4864_v34 = vpop.eup %4863  ;;  %4873 = vpow2.f32 %v4059_v22  ;;  %v3746_v55 = vadd.f32 %v4138_v5, %v5962_v12 }
 0x3ec   :  { %v3812_v60 = vadd.f32 1.0, %v4864_v34  ;;  %v4140_v24 = vpop.f32.mrf.mxu0 }
 0x3ed   :  { %v4060_v6 = vmul.f32 -1.442695, %v3746_v55  ;;  %v4141_v33 = vadd.f32 %v4140_v24, %v4139_v57 }
 0x3ee   :  { %4875 = vrcp.f32 %v3812_v60 }
 0x3ef   :  { %v4866_v43 = vpop.eup %4865  ;;  %4877 = vpow2.f32 %v4060_v6  ;;  %v3751_v52 = vadd.f32 %v4141_v33, %v5962_v12 }
 0x3f0   :  { %v3813_v16 = vadd.f32 1.0, %v4866_v43 }
 0x3f1   :  { %v4061_v7 = vmul.f32 -1.442695, %v3751_v52 }
 0x3f2   :  { %4879 = vrcp.f32 %v3813_v16 }
 0x3f3   :  { %v4868_v10 = vpop.eup %4867  ;;  %4881 = vpow2.f32 %v4061_v7 }
 0x3f4   :  { %v4870_v15 = vpop.eup %4869  ;;  %3858 = vst [vmem:[#allocation12 + $0x40] sm:$0xff] %v4868_v10 }
 0x3f5   :  { %v3814_v62 = vadd.f32 1.0, %v4870_v15 }
 0x3f7   :  { %v4872_v18 = vpop.eup %4871  ;;  %4883 = vrcp.f32 %v3814_v62 }
 0x3f8   :  { %v4874_v8 = vpop.eup %4873  ;;  %3859 = vst [vmem:[#allocation12 + $0x48] sm:$0xff] %v4872_v18 }
 0x3f9   :  { %v3815_v63 = vadd.f32 1.0, %v4874_v8 }
 0x3fb   :  { %v4876_v59 = vpop.eup %4875  ;;  %4885 = vrcp.f32 %v3815_v63 }
 0x3fc   :  { %v4878_v27 = vpop.eup %4877  ;;  %3860 = vst [vmem:[#allocation12 + $0x50] sm:$0xff] %v4876_v59 }
 0x3fd   :  { %v3816_v23 = vadd.f32 1.0, %v4878_v27 }
 0x3ff   :  { %v4880_v1 = vpop.eup %4879  ;;  %4887 = vrcp.f32 %v3816_v23 }
 0x400   :  { %v4882_v12 = vpop.eup %4881  ;;  %3861 = vst [vmem:[#allocation12 + $0x58] sm:$0xff] %v4880_v1 }
 0x401   :  { %v3817_v14 = vadd.f32 1.0, %v4882_v12 }
 0x403   :  { %4889 = vrcp.f32 %v3817_v14 }
 0x404   :  { %v4884_v54 = vpop.eup %4883 }
 0x405   :  { %3862 = vst [vmem:[#allocation12 + $0x60] sm:$0xff] %v4884_v54 }
 0x408   :  { %v4886_v46 = vpop.eup %4885 }
 0x409   :  { %3863 = vst [vmem:[#allocation12 + $0x68] sm:$0xff] %v4886_v46 }
 0x40c   :  { %v4888_v47 = vpop.eup %4887 }
 0x40d   :  { %3864 = vst [vmem:[#allocation12 + $0x70] sm:$0xff] %v4888_v47 }
 0x410   :  { %v4890_v58 = vpop.eup %4889 }
 0x411   :  { %3865 = vst [vmem:[#allocation12 + $0x78] sm:$0xff] %v4890_v58 }
 0x412   :  { %5003 = shalt.err (!%p5000_p1)
}
 0x413   :  { %3877 = dma.vmem_to_hbm [thread:$0]  %s3872_s30, 2048, %s5993_s7, [#allocation5], %s5027_s17, %s5027_s17, %s5028_s18  }
 0x414   :  { %5018 = dma.done.wait [#allocation5], 2048  }
 0x415   :  { %5019 = vsyncadd [#allocation5], 4294965248 }
 0x416   :  { %3881 = vsyncpa [#allocation4], 1 }
 0x417   :  { %3882 = vsyncpa [#allocation7], 1 }
 0x418   :  { %3883 = vsyncpa [#allocation10], 1 }
 0x419   :  { %3884 = vsyncpa [#allocation5], 1 }

// kernel: tpu_custom_call.1
= control target key start
LH: loop header
LB: loop body
LE: loop exit
PB: predicated region body
PF: predicated region fallthrough
CT: control target
= control target key end

     0   :  { %12 = vsyncpa [#allocation4], 0  ;;  %s5986_s0 = inlined_call_operand.hbm [shape: f32[128,128], index: 0, kind: input, shape index: {}]   ;;  %s5987_s1 = inlined_call_operand.hbm [shape: f32[128,1024], index: 1, kind: input, shape index: {}]   ;;  %s5988_s2 = inlined_call_operand.hbm [shape: f32[1,1024], index: 2, kind: input, shape index: {}]   ;;  %s5989_s3 = inlined_call_operand.hbm [shape: f32[1024,256], index: 3, kind: input, shape index: {}]   ;;  %s5990_s4 = inlined_call_operand.vmem [shape: f32[1,256], index: 4, kind: input, shape index: {}]   ;;  %s5991_s5 = inlined_call_operand.hbm [shape: f32[256,128], index: 5, kind: input, shape index: {}]   ;;  %s5992_s6 = inlined_call_operand.vmem [shape: f32[1,128], index: 6, kind: input, shape index: {}]   ;;  %s5993_s7 = inlined_call_operand.hbm [shape: f32[128,128], index: 7, kind: output, shape index: {}]  }
   0x1   :  { %13 = vsyncpa [#allocation7], 0 }
   0x2   :  { %14 = vsyncpa [#allocation10], 0 }
   0x3   :  { %15 = vsyncpa [#allocation5], 0  ;;  %s5020_s24 = smov [#allocation6]  }
   0x4   :  { %s33_s25 = sshll.u32 %s5020_s24, 4  ;;  %s34_s25 = int_to_ptr.vmem [resolvable:$true] %s33_s25 }
   0x5   :  { %s4900_s26 = scalar_lea.vmem %s34_s25, 16384  ;;  %p4905_p1 = scmp.lt.s32.totalorder %s34_s25, %s34_s25 }
   0x6   :  { %p4901_p0 = scmp.ne.s32.totalorder %s34_s25, %s4900_s26  ;;  %p4906_p2 = scmp.lt.s32.totalorder %s4900_s26, %s4900_s26 }
   0x8   :  { %p4907_p3 = por %p4906_p2, %p4905_p1 }
   0xa   :  { %p4908_p4 = pnand %p4907_p3, %p4901_p0 }
   0xc   :  { %4911 = shalt.err (!%p4908_p4)
}
   0xd   :  { %s5021_s27 = smov 1024   ;;  %s5022_s28 = smov 64  }
   0xe   :  { %39 = dma.hbm_to_vmem [thread:$0]  %s5987_s1, 16384, %s34_s25, [#allocation7], %s5021_s27, %s5021_s27, %s5022_s28  }
   0xf   :  { %s5023_s8 = smov [#allocation9]  }
  0x10   :  { %s55_s9 = sshll.u32 %s5023_s8, 4  ;;  %s56_s9 = int_to_ptr.vmem [resolvable:$true] %s55_s9 }
  0x11   :  { %s4920_s10 = scalar_lea.vmem %s56_s9, 32768  ;;  %p4925_p6 = scmp.lt.s32.totalorder %s56_s9, %s56_s9 }
  0x12   :  { %p4921_p5 = scmp.ne.s32.totalorder %s56_s9, %s4920_s10  ;;  %p4926_p7 = scmp.lt.s32.totalorder %s4920_s10, %s4920_s10 }
  0x14   :  { %p4927_p8 = por %p4926_p7, %p4925_p6 }
  0x16   :  { %p4928_p9 = pnand %p4927_p8, %p4921_p5 }
  0x18   :  { %4931 = shalt.err (!%p4928_p9)
}
  0x19   :  { %s5024_s11 = smov 256   ;;  %s5025_s12 = smov 16  }
  0x1a   :  { %61 = dma.hbm_to_vmem [thread:$0]  %s5989_s3, 32768, %s56_s9, [#allocation10], %s5024_s11, %s5024_s11, %s5025_s12  }
  0x1b   :  { %s5026_s15 = smov [#allocation3]  }
  0x1c   :  { %s21_s16 = sshll.u32 %s5026_s15, 4  ;;  %s22_s16 = int_to_ptr.vmem [resolvable:$true] %s21_s16 }
  0x1d   :  { %s4940_s1 = scalar_lea.vmem %s22_s16, 2048  ;;  %p4945_p11 = scmp.lt.s32.totalorder %s22_s16, %s22_s16 }
  0x1e   :  { %p4941_p10 = scmp.ne.s32.totalorder %s22_s16, %s4940_s1  ;;  %p4946_p12 = scmp.lt.s32.totalorder %s4940_s1, %s4940_s1 }
  0x20   :  { %p4947_p13 = por %p4946_p12, %p4945_p11 }
  0x22   :  { %p4948_p0 = pnand %p4947_p13, %p4941_p10 }
  0x24   :  { %4951 = shalt.err (!%p4948_p0)
}
  0x25   :  { %s5027_s17 = smov 128   ;;  %s5028_s18 = smov 8  }
  0x26   :  { %27 = dma.hbm_to_vmem [thread:$0]  %s5986_s0, 2048, %s22_s16, [#allocation4], %s5027_s17, %s5027_s17, %s5028_s18  }
  0x27   :  { %s5029_s3 = smov [#allocation8]   ;;  %s5030_s22 = smov [#allocation11]  }
  0x28   :  { %s46_s21 = sshll.u32 %s5029_s3, 4  ;;  %s69_s23 = sshll.u32 %s5030_s22, 4  ;;  %s47_s21 = int_to_ptr.vmem [resolvable:$true] %s46_s21  ;;  %s70_s23 = int_to_ptr.vmem [resolvable:$true] %s69_s23 }
  0x29   :  { %s4960_s24 = scalar_lea.vmem %s47_s21, 128  ;;  %p4965_p2 = scmp.lt.s32.totalorder %s47_s21, %s47_s21 }
  0x2a   :  { %p4961_p1 = scmp.ne.s32.totalorder %s47_s21, %s4960_s24  ;;  %p4966_p3 = scmp.lt.s32.totalorder %s4960_s24, %s4960_s24 }
  0x2c   :  { %p4967_p4 = por %p4966_p3, %p4965_p2 }
  0x2e   :  { %p4968_p5 = pnand %p4967_p4, %p4961_p1 }
  0x30   :  { %4971 = shalt.err (!%p4968_p5)
}
  0x31   :  { %49 = dma.hbm_to_vmem [thread:$0]  %s5988_s2, 128, %s47_s21, [#allocation7]  }
  0x32   :  { %s4980_s27 = scalar_lea.vmem %s70_s23, 4096  ;;  %p4985_p7 = scmp.lt.s32.totalorder %s70_s23, %s70_s23 }
  0x33   :  { %p4981_p6 = scmp.ne.s32.totalorder %s70_s23, %s4980_s27  ;;  %p4986_p8 = scmp.lt.s32.totalorder %s4980_s27, %s4980_s27 }
  0x35   :  { %p4987_p9 = por %p4986_p8, %p4985_p7 }
  0x37   :  { %p4988_p10 = pnand %p4987_p9, %p4981_p6 }
  0x39   :  { %4991 = shalt.err (!%p4988_p10)
}
  0x3a   :  { %75 = dma.hbm_to_vmem [thread:$0]  %s5991_s5, 4096, %s70_s23, [#allocation10], %s5027_s17, %s5027_s17, %s5028_s18  }
  0x3b   :  { %5012 = dma.done.wait [#allocation4], 2048  }
  0x3c   :  { %5013 = vsyncadd [#allocation4], 4294965248 }
  0x3d   :  { %5014 = dma.done.wait [#allocation7], 16512  }
  0x3e   :  { %5015 = vsyncadd [#allocation7], 4294950784 }
  0x3f   :  { %5016 = dma.done.wait [#allocation10], 36864  }
  0x40   :  { %5017 = vsyncadd [#allocation10], 4294930432  ;;  %v5031_v0 = vmov 0.0   ;;  %v490_v1 = vld [vmem:[#allocation6 + $0x3c8] sm:$0xff]  ;;  %v489_v2 = vld [vmem:[#allocation6 + $0x3c0] sm:$0xff] }
  0x41   :  { %561 = vmatprep.mubr.f32.mxu0 %v5031_v0  ;;  %609 = vmatprep.mubr.f32.mxu1 %v5031_v0  ;;  %v482_v3 = vld [vmem:[#allocation6 + $0x388] sm:$0xff]  ;;  %v481_v4 = vld [vmem:[#allocation6 + $0x380] sm:$0xff]  ;;  %v492_v35 = vld [vmem:[#allocation6 + $0x3d8] sm:$0xff] }
  0x42   :  { %497 = vmatprep.subr.mxu0 %v490_v1  ;;  %4142 = vmatprep.subr.mxu1 %v490_v1  ;;  %v474_v5 = vld [vmem:[#allocation6 + $0x348] sm:$0xff]  ;;  %v473_v6 = vld [vmem:[#allocation6 + $0x340] sm:$0xff]  ;;  %v491_v36 = vld [vmem:[#allocation6 + $0x3d0] sm:$0xff] }
  0x43   :  { %498 = vmatpush1.msra.mxu0 %v489_v2  ;;  %4158 = vmatpush1.msra.mxu1 %v489_v2  ;;  %v466_v7 = vld [vmem:[#allocation6 + $0x308] sm:$0xff]  ;;  %v465_v8 = vld [vmem:[#allocation6 + $0x300] sm:$0xff]  ;;  %v484_v37 = vld [vmem:[#allocation6 + $0x398] sm:$0xff] }
  0x44   :  { %499 = vmatprep.subr.mxu0 %v482_v3  ;;  %4143 = vmatprep.subr.mxu1 %v482_v3  ;;  %v458_v9 = vld [vmem:[#allocation6 + $0x2c8] sm:$0xff]  ;;  %v457_v10 = vld [vmem:[#allocation6 + $0x2c0] sm:$0xff]  ;;  %v483_v39 = vld [vmem:[#allocation6 + $0x390] sm:$0xff] }
  0x45   :  { %500 = vmatpush1.msra.mxu0 %v481_v4  ;;  %4159 = vmatpush1.msra.mxu1 %v481_v4  ;;  %v450_v11 = vld [vmem:[#allocation6 + $0x288] sm:$0xff]  ;;  %v449_v12 = vld [vmem:[#allocation6 + $0x280] sm:$0xff]  ;;  %v476_v42 = vld [vmem:[#allocation6 + $0x358] sm:$0xff] }
  0x46   :  { %501 = vmatprep.subr.mxu0 %v474_v5  ;;  %4144 = vmatprep.subr.mxu1 %v474_v5  ;;  %v442_v13 = vld [vmem:[#allocation6 + $0x248] sm:$0xff]  ;;  %v441_v14 = vld [vmem:[#allocation6 + $0x240] sm:$0xff]  ;;  %v475_v43 = vld [vmem:[#allocation6 + $0x350] sm:$0xff] }
  0x47   :  { %502 = vmatpush1.msra.mxu0 %v473_v6  ;;  %4160 = vmatpush1.msra.mxu1 %v473_v6  ;;  %v434_v15 = vld [vmem:[#allocation6 + $0x208] sm:$0xff]  ;;  %v433_v16 = vld [vmem:[#allocation6 + $0x200] sm:$0xff]  ;;  %v468_v44 = vld [vmem:[#allocation6 + $0x318] sm:$0xff] }
  0x48   :  { %503 = vmatprep.subr.mxu0 %v466_v7  ;;  %4145 = vmatprep.subr.mxu1 %v466_v7  ;;  %v426_v17 = vld [vmem:[#allocation6 + $0x1c8] sm:$0xff]  ;;  %v425_v18 = vld [vmem:[#allocation6 + $0x1c0] sm:$0xff]  ;;  %v467_v45 = vld [vmem:[#allocation6 + $0x310] sm:$0xff] }
  0x49   :  { %504 = vmatpush1.msra.mxu0 %v465_v8  ;;  %4161 = vmatpush1.msra.mxu1 %v465_v8  ;;  %v418_v19 = vld [vmem:[#allocation6 + $0x188] sm:$0xff]  ;;  %v417_v20 = vld [vmem:[#allocation6 + $0x180] sm:$0xff]  ;;  %v5110_v46 = vld [vmem:[#allocation3 + $0x10] sm:$0xff] }
  0x4a   :  { %505 = vmatprep.subr.mxu0 %v458_v9  ;;  %4146 = vmatprep.subr.mxu1 %v458_v9  ;;  %v410_v21 = vld [vmem:[#allocation6 + $0x148] sm:$0xff]  ;;  %v409_v22 = vld [vmem:[#allocation6 + $0x140] sm:$0xff]  ;;  %v5113_v47 = vld [vmem:[#allocation3 + $0x50] sm:$0xff] }
  0x4b   :  { %506 = vmatpush1.msra.mxu0 %v457_v10  ;;  %4162 = vmatpush1.msra.mxu1 %v457_v10  ;;  %v402_v23 = vld [vmem:[#allocation6 + $0x108] sm:$0xff]  ;;  %v401_v24 = vld [vmem:[#allocation6 + $0x100] sm:$0xff]  ;;  %v460_v48 = vld [vmem:[#allocation6 + $0x2d8] sm:$0xff] }
  0x4c   :  { %507 = vmatprep.subr.mxu0 %v450_v11  ;;  %4147 = vmatprep.subr.mxu1 %v450_v11  ;;  %v394_v25 = vld [vmem:[#allocation6 + $0xc8] sm:$0xff]  ;;  %v393_v26 = vld [vmem:[#allocation6 + $0xc0] sm:$0xff]  ;;  %v459_v49 = vld [vmem:[#allocation6 + $0x2d0] sm:$0xff] }
  0x4d   :  { %508 = vmatpush1.msra.mxu0 %v449_v12  ;;  %4163 = vmatpush1.msra.mxu1 %v449_v12  ;;  %v386_v27 = vld [vmem:[#allocation6 + $0x88] sm:$0xff]  ;;  %v385_v28 = vld [vmem:[#allocation6 + $0x80] sm:$0xff]  ;;  %v452_v50 = vld [vmem:[#allocation6 + $0x298] sm:$0xff] }
  0x4e   :  { %509 = vmatprep.subr.mxu0 %v442_v13  ;;  %4148 = vmatprep.subr.mxu1 %v442_v13  ;;  %v378_v29 = vld [vmem:[#allocation6 + $0x48] sm:$0xff]  ;;  %v377_v30 = vld [vmem:[#allocation6 + $0x40] sm:$0xff]  ;;  %v451_v51 = vld [vmem:[#allocation6 + $0x290] sm:$0xff] }
  0x4f   :  { %510 = vmatpush1.msra.mxu0 %v441_v14  ;;  %4164 = vmatpush1.msra.mxu1 %v441_v14  ;;  %v370_v31 = vld [vmem:[#allocation6 + $0x8] sm:$0xff]  ;;  %v369_v32 = vld [vmem:[#allocation6] sm:$0xff]  ;;  %v5118_v52 = vld [vmem:[#allocation3 + $0x18] sm:$0xff] }
  0x50   :  { %511 = vmatprep.subr.mxu0 %v434_v15  ;;  %4149 = vmatprep.subr.mxu1 %v434_v15  ;;  %v5096_v33 = vld [vmem:[#allocation3] sm:$0xff]  ;;  %v494_v38 = vld [vmem:[#allocation6 + $0x3e8] sm:$0xff]  ;;  %v5121_v53 = vld [vmem:[#allocation3 + $0x58] sm:$0xff] }
  0x51   :  { %512 = vmatpush1.msra.mxu0 %v433_v16  ;;  %4165 = vmatpush1.msra.mxu1 %v433_v16  ;;  %v5098_v34 = vld [vmem:[#allocation3 + $0x40] sm:$0xff]  ;;  %v5103_v40 = vld [vmem:[#allocation3 + $0x8] sm:$0xff]  ;;  %v444_v54 = vld [vmem:[#allocation6 + $0x258] sm:$0xff] }
  0x52   :  { %513 = vmatprep.subr.mxu0 %v426_v17  ;;  %4150 = vmatprep.subr.mxu1 %v426_v17  ;;  %v5106_v41 = vld [vmem:[#allocation3 + $0x48] sm:$0xff]  ;;  %v443_v55 = vld [vmem:[#allocation6 + $0x250] sm:$0xff]  ;;  %v436_v56 = vld [vmem:[#allocation6 + $0x218] sm:$0xff] }
  0x53   :  { %514 = vmatpush1.msra.mxu0 %v425_v18  ;;  %4166 = vmatpush1.msra.mxu1 %v425_v18  ;;  %v435_v57 = vld [vmem:[#allocation6 + $0x210] sm:$0xff]  ;;  %v5126_v58 = vld [vmem:[#allocation3 + $0x20] sm:$0xff]  ;;  %v428_v60 = vld [vmem:[#allocation6 + $0x1d8] sm:$0xff] }
  0x54   :  { %515 = vmatprep.subr.mxu0 %v418_v19  ;;  %4151 = vmatprep.subr.mxu1 %v418_v19  ;;  %v5129_v59 = vld [vmem:[#allocation3 + $0x60] sm:$0xff]  ;;  %v427_v61 = vld [vmem:[#allocation6 + $0x1d0] sm:$0xff]  ;;  %v420_v62 = vld [vmem:[#allocation6 + $0x198] sm:$0xff] }
  0x55   :  { %516 = vmatpush1.msra.mxu0 %v417_v20  ;;  %4167 = vmatpush1.msra.mxu1 %v417_v20  ;;  %v419_v63 = vld [vmem:[#allocation6 + $0x190] sm:$0xff]  ;;  %v5134_v1 = vld [vmem:[#allocation3 + $0x28] sm:$0xff]  ;;  %v412_v3 = vld [vmem:[#allocation6 + $0x158] sm:$0xff] }
  0x56   :  { %517 = vmatprep.subr.mxu0 %v410_v21  ;;  %4152 = vmatprep.subr.mxu1 %v410_v21  ;;  %v5137_v2 = vld [vmem:[#allocation3 + $0x68] sm:$0xff]  ;;  %v411_v4 = vld [vmem:[#allocation6 + $0x150] sm:$0xff]  ;;  %v404_v5 = vld [vmem:[#allocation6 + $0x118] sm:$0xff] }
  0x57   :  { %518 = vmatpush1.msra.mxu0 %v409_v22  ;;  %4168 = vmatpush1.msra.mxu1 %v409_v22  ;;  %v403_v6 = vld [vmem:[#allocation6 + $0x110] sm:$0xff]  ;;  %v396_v9 = vld [vmem:[#allocation6 + $0xd8] sm:$0xff]  ;;  %v493_v18 = vld [vmem:[#allocation6 + $0x3e0] sm:$0xff] }
  0x58   :  { %519 = vmatprep.subr.mxu0 %v402_v23  ;;  %4153 = vmatprep.subr.mxu1 %v402_v23  ;;  %v5142_v7 = vld [vmem:[#allocation3 + $0x30] sm:$0xff]  ;;  %v388_v11 = vld [vmem:[#allocation6 + $0x98] sm:$0xff]  ;;  %v486_v20 = vld [vmem:[#allocation6 + $0x3a8] sm:$0xff] }
  0x59   :  { %520 = vmatpush1.msra.mxu0 %v401_v24  ;;  %4169 = vmatpush1.msra.mxu1 %v401_v24  ;;  %v5145_v8 = vld [vmem:[#allocation3 + $0x70] sm:$0xff]  ;;  %v5150_v13 = vld [vmem:[#allocation3 + $0x38] sm:$0xff]  ;;  %v485_v23 = vld [vmem:[#allocation6 + $0x3a0] sm:$0xff] }
  0x5a   :  { %521 = vmatprep.subr.mxu0 %v394_v25  ;;  %4154 = vmatprep.subr.mxu1 %v394_v25  ;;  %v395_v10 = vld [vmem:[#allocation6 + $0xd0] sm:$0xff]  ;;  %v5153_v14 = vld [vmem:[#allocation3 + $0x78] sm:$0xff]  ;;  %v478_v25 = vld [vmem:[#allocation6 + $0x368] sm:$0xff] }
  0x5b   :  { %522 = vmatpush1.msra.mxu0 %v393_v26  ;;  %4170 = vmatpush1.msra.mxu1 %v393_v26  ;;  %v387_v12 = vld [vmem:[#allocation6 + $0x90] sm:$0xff]  ;;  %v380_v15 = vld [vmem:[#allocation6 + $0x58] sm:$0xff] }
  0x5c   :  { %523 = vmatprep.subr.mxu0 %v386_v27  ;;  %4155 = vmatprep.subr.mxu1 %v386_v27  ;;  %v379_v16 = vld [vmem:[#allocation6 + $0x50] sm:$0xff]  ;;  %v372_v17 = vld [vmem:[#allocation6 + $0x18] sm:$0xff]  ;;  %v477_v27 = vld [vmem:[#allocation6 + $0x360] sm:$0xff] }
  0x5d   :  { %524 = vmatpush1.msra.mxu0 %v385_v28  ;;  %4171 = vmatpush1.msra.mxu1 %v385_v28  ;;  %v371_v19 = vld [vmem:[#allocation6 + $0x10] sm:$0xff]  ;;  %v496_v21 = vld [vmem:[#allocation6 + $0x3f8] sm:$0xff]  ;;  %v470_v28 = vld [vmem:[#allocation6 + $0x328] sm:$0xff] }
  0x5e   :  { %525 = vmatprep.subr.mxu0 %v378_v29  ;;  %4156 = vmatprep.subr.mxu1 %v378_v29  ;;  %v495_v22 = vld [vmem:[#allocation6 + $0x3f0] sm:$0xff]  ;;  %v488_v24 = vld [vmem:[#allocation6 + $0x3b8] sm:$0xff]  ;;  %v469_v29 = vld [vmem:[#allocation6 + $0x320] sm:$0xff] }
  0x5f   :  { %526 = vmatpush1.msra.mxu0 %v377_v30  ;;  %4172 = vmatpush1.msra.mxu1 %v377_v30  ;;  %v487_v26 = vld [vmem:[#allocation6 + $0x3b0] sm:$0xff]  ;;  %v480_v30 = vld [vmem:[#allocation6 + $0x378] sm:$0xff] }
  0x60   :  { %527 = vmatprep.subr.mxu0 %v370_v31  ;;  %4157 = vmatprep.subr.mxu1 %v370_v31  ;;  %v462_v31 = vld [vmem:[#allocation6 + $0x2e8] sm:$0xff] }
  0x61   :  { %528 = vmatpush1.msra.mxu0 %v369_v32  ;;  %4173 = vmatpush1.msra.mxu1 %v369_v32  ;;  %v479_v32 = vld [vmem:[#allocation6 + $0x370] sm:$0xff] }
  0x62   :  { %562 = vmatmul.mubr.f32.vlgmr.msra.gmra.mxu0 %v5096_v33  ;;  %610 = vmatmul.mubr.f32.vlgmr.msra.gmra.mxu1 %v5098_v34 }
  0x63   :  { %658 = vmatprep.subr.mxu1 %v492_v35  ;;  %567 = vmatprep.mubr.f32.mxu0 %v5031_v0  ;;  %v461_v35 = vld [vmem:[#allocation6 + $0x2e0] sm:$0xff] }
  0x64   :  { %659 = vmatpush1.msra.mxu1 %v491_v36  ;;  %615 = vmatprep.mubr.f32.mxu1 %v5031_v0  ;;  %v454_v36 = vld [vmem:[#allocation6 + $0x2a8] sm:$0xff] }
  0x65   :  { %660 = vmatprep.subr.mxu1 %v484_v37  ;;  %819 = vmatprep.subr.mxu0 %v494_v38  ;;  %v453_v37 = vld [vmem:[#allocation6 + $0x2a0] sm:$0xff]  ;;  %v472_v38 = vld [vmem:[#allocation6 + $0x338] sm:$0xff] }
  0x66   :  { %661 = vmatpush1.msra.mxu1 %v483_v39  ;;  %568 = vmatmul.mubr.f32.gmra.mxu0 %v5103_v40  ;;  %v446_v39 = vld [vmem:[#allocation6 + $0x268] sm:$0xff] }
  0x67   :  { %616 = vmatmul.mubr.f32.gmra.mxu1 %v5106_v41  ;;  %662 = vmatprep.subr.mxu1 %v476_v42  ;;  %v471_v42 = vld [vmem:[#allocation6 + $0x330] sm:$0xff] }
  0x68   :  { %663 = vmatpush1.msra.mxu1 %v475_v43  ;;  %573 = vmatprep.mubr.f32.mxu0 %v5031_v0  ;;  %v445_v43 = vld [vmem:[#allocation6 + $0x260] sm:$0xff] }
  0x69   :  { %664 = vmatprep.subr.mxu1 %v468_v44  ;;  %621 = vmatprep.mubr.f32.mxu1 %v5031_v0  ;;  %v438_v44 = vld [vmem:[#allocation6 + $0x228] sm:$0xff] }
  0x6a   :  { %665 = vmatpush1.msra.mxu1 %v467_v45  ;;  %574 = vmatmul.mubr.f32.gmra.mxu0 %v5110_v46  ;;  %v437_v45 = vld [vmem:[#allocation6 + $0x220] sm:$0xff] }
  0x6b   :  { %622 = vmatmul.mubr.f32.gmra.mxu1 %v5113_v47  ;;  %666 = vmatprep.subr.mxu1 %v460_v48  ;;  %v464_v48 = vld [vmem:[#allocation6 + $0x2f8] sm:$0xff] }
  0x6c   :  { %667 = vmatpush1.msra.mxu1 %v459_v49  ;;  %579 = vmatprep.mubr.f32.mxu0 %v5031_v0  ;;  %v430_v49 = vld [vmem:[#allocation6 + $0x1e8] sm:$0xff] }
  0x6d   :  { %668 = vmatprep.subr.mxu1 %v452_v50  ;;  %627 = vmatprep.mubr.f32.mxu1 %v5031_v0  ;;  %v463_v50 = vld [vmem:[#allocation6 + $0x2f0] sm:$0xff] }
  0x6e   :  { %669 = vmatpush1.msra.mxu1 %v451_v51  ;;  %580 = vmatmul.mubr.f32.gmra.mxu0 %v5118_v52  ;;  %v429_v51 = vld [vmem:[#allocation6 + $0x1e0] sm:$0xff] }
  0x6f   :  { %628 = vmatmul.mubr.f32.gmra.mxu1 %v5121_v53  ;;  %670 = vmatprep.subr.mxu1 %v444_v54  ;;  %v422_v54 = vld [vmem:[#allocation6 + $0x1a8] sm:$0xff] }
  0x70   :  { %671 = vmatpush1.msra.mxu1 %v443_v55  ;;  %585 = vmatprep.mubr.f32.mxu0 %v5031_v0  ;;  %v421_v55 = vld [vmem:[#allocation6 + $0x1a0] sm:$0xff] }
  0x71   :  { %672 = vmatprep.subr.mxu1 %v436_v56  ;;  %633 = vmatprep.mubr.f32.mxu1 %v5031_v0  ;;  %v456_v56 = vld [vmem:[#allocation6 + $0x2b8] sm:$0xff] }
  0x72   :  { %673 = vmatpush1.msra.mxu1 %v435_v57  ;;  %586 = vmatmul.mubr.f32.gmra.mxu0 %v5126_v58  ;;  %v414_v57 = vld [vmem:[#allocation6 + $0x168] sm:$0xff] }
  0x73   :  { %634 = vmatmul.mubr.f32.gmra.mxu1 %v5129_v59  ;;  %674 = vmatprep.subr.mxu1 %v428_v60  ;;  %v455_v60 = vld [vmem:[#allocation6 + $0x2b0] sm:$0xff] }
  0x74   :  { %675 = vmatpush1.msra.mxu1 %v427_v61  ;;  %591 = vmatprep.mubr.f32.mxu0 %v5031_v0  ;;  %v413_v61 = vld [vmem:[#allocation6 + $0x160] sm:$0xff] }
  0x75   :  { %676 = vmatprep.subr.mxu1 %v420_v62  ;;  %639 = vmatprep.mubr.f32.mxu1 %v5031_v0  ;;  %v406_v62 = vld [vmem:[#allocation6 + $0x128] sm:$0xff] }
  0x76   :  { %677 = vmatpush1.msra.mxu1 %v419_v63  ;;  %592 = vmatmul.mubr.f32.gmra.mxu0 %v5134_v1  ;;  %v405_v63 = vld [vmem:[#allocation6 + $0x120] sm:$0xff] }
  0x77   :  { %640 = vmatmul.mubr.f32.gmra.mxu1 %v5137_v2  ;;  %678 = vmatprep.subr.mxu1 %v412_v3  ;;  %v448_v3 = vld [vmem:[#allocation6 + $0x278] sm:$0xff] }
  0x78   :  { %679 = vmatpush1.msra.mxu1 %v411_v4  ;;  %597 = vmatprep.mubr.f32.mxu0 %v5031_v0  ;;  %v398_v4 = vld [vmem:[#allocation6 + $0xe8] sm:$0xff] }
  0x79   :  { %680 = vmatprep.subr.mxu1 %v404_v5  ;;  %645 = vmatprep.mubr.f32.mxu1 %v5031_v0  ;;  %v447_v5 = vld [vmem:[#allocation6 + $0x270] sm:$0xff] }
  0x7a   :  { %681 = vmatpush1.msra.mxu1 %v403_v6  ;;  %598 = vmatmul.mubr.f32.gmra.mxu0 %v5142_v7  ;;  %v397_v6 = vld [vmem:[#allocation6 + $0xe0] sm:$0xff] }
  0x7b   :  { %646 = vmatmul.mubr.f32.gmra.mxu1 %v5145_v8  ;;  %682 = vmatprep.subr.mxu1 %v396_v9  ;;  %v390_v9 = vld [vmem:[#allocation6 + $0xa8] sm:$0xff] }
  0x7c   :  { %683 = vmatpush1.msra.mxu1 %v395_v10  ;;  %603 = vmatprep.mubr.f32.mxu0 %v5031_v0  ;;  %v389_v10 = vld [vmem:[#allocation6 + $0xa0] sm:$0xff] }
  0x7d   :  { %684 = vmatprep.subr.mxu1 %v388_v11  ;;  %651 = vmatprep.mubr.f32.mxu1 %v5031_v0  ;;  %v440_v11 = vld [vmem:[#allocation6 + $0x238] sm:$0xff] }
  0x7e   :  { %685 = vmatpush1.msra.mxu1 %v387_v12  ;;  %604 = vmatmul.mubr.f32.gmra.mxu0 %v5150_v13  ;;  %v382_v12 = vld [vmem:[#allocation6 + $0x68] sm:$0xff] }
  0x7f   :  { %652 = vmatmul.mubr.f32.gmra.mxu1 %v5153_v14  ;;  %686 = vmatprep.subr.mxu1 %v380_v15  ;;  %v439_v15 = vld [vmem:[#allocation6 + $0x230] sm:$0xff] }
  0x80   :  { %687 = vmatpush1.msra.mxu1 %v379_v16  ;;  %722 = vmatprep.mubr.f32.mxu1 %v5031_v0  ;;  %v381_v16 = vld [vmem:[#allocation6 + $0x60] sm:$0xff] }
  0x81   :  { %688 = vmatprep.subr.mxu1 %v372_v17  ;;  %820 = vmatpush1.msra.mxu0 %v493_v18  ;;  %v374_v17 = vld [vmem:[#allocation6 + $0x28] sm:$0xff]  ;;  %v373_v18 = vld [vmem:[#allocation6 + $0x20] sm:$0xff] }
  0x82   :  { %689 = vmatpush1.msra.mxu1 %v371_v19  ;;  %821 = vmatprep.subr.mxu0 %v486_v20  ;;  %v432_v19 = vld [vmem:[#allocation6 + $0x1f8] sm:$0xff]  ;;  %v431_v20 = vld [vmem:[#allocation6 + $0x1f0] sm:$0xff] }
  0x83   :  { %723 = vmatmul.mubr.f32.vlgmr.msra.gmra.mxu1 %v5096_v33  ;;  %980 = vmatprep.subr.mxu1 %v496_v21  ;;  %v424_v21 = vld [vmem:[#allocation6 + $0x1b8] sm:$0xff] }
  0x84   :  { %981 = vmatpush1.msra.mxu1 %v495_v22  ;;  %728 = vmatprep.mubr.f32.mxu1 %v5031_v0  ;;  %v2497_v22 = vld [vmem:[#allocation9 + $0xf8] sm:$0xff] }
  0x85   :  { %822 = vmatpush1.msra.mxu0 %v485_v23  ;;  %982 = vmatprep.subr.mxu1 %v488_v24  ;;  %v423_v23 = vld [vmem:[#allocation6 + $0x1b0] sm:$0xff]  ;;  %v416_v24 = vld [vmem:[#allocation6 + $0x178] sm:$0xff] }
  0x86   :  { %823 = vmatprep.subr.mxu0 %v478_v25  ;;  %983 = vmatpush1.msra.mxu1 %v487_v26  ;;  %v415_v25 = vld [vmem:[#allocation6 + $0x170] sm:$0xff]  ;;  %v2496_v26 = vld [vmem:[#allocation9 + $0xf0] sm:$0xff] }
  0x87   :  { %729 = vmatmul.mubr.f32.gmra.mxu1 %v5103_v40  ;;  %824 = vmatpush1.msra.mxu0 %v477_v27  ;;  %v408_v27 = vld [vmem:[#allocation6 + $0x138] sm:$0xff] }
  0x88   :  { %825 = vmatprep.subr.mxu0 %v470_v28  ;;  %734 = vmatprep.mubr.f32.mxu1 %v5031_v0  ;;  %v407_v28 = vld [vmem:[#allocation6 + $0x130] sm:$0xff] }
  0x89   :  { %826 = vmatpush1.msra.mxu0 %v469_v29  ;;  %984 = vmatprep.subr.mxu1 %v480_v30  ;;  %v400_v29 = vld [vmem:[#allocation6 + $0xf8] sm:$0xff]  ;;  %v2495_v30 = vld [vmem:[#allocation9 + $0xe8] sm:$0xff] }
  0x8a   :  { %827 = vmatprep.subr.mxu0 %v462_v31  ;;  %985 = vmatpush1.msra.mxu1 %v479_v32  ;;  %v399_v31 = vld [vmem:[#allocation6 + $0xf0] sm:$0xff]  ;;  %v392_v32 = vld [vmem:[#allocation6 + $0xb8] sm:$0xff] }
  0x8b   :  { %735 = vmatmul.mubr.f32.gmra.mxu1 %v5110_v46  ;;  %828 = vmatpush1.msra.mxu0 %v461_v35  ;;  %v391_v35 = vld [vmem:[#allocation6 + $0xb0] sm:$0xff] }
  0x8c   :  { %829 = vmatprep.subr.mxu0 %v454_v36  ;;  %740 = vmatprep.mubr.f32.mxu1 %v5031_v0  ;;  %v2494_v36 = vld [vmem:[#allocation9 + $0xe0] sm:$0xff] }
  0x8d   :  { %830 = vmatpush1.msra.mxu0 %v453_v37  ;;  %986 = vmatprep.subr.mxu1 %v472_v38  ;;  %v384_v37 = vld [vmem:[#allocation6 + $0x78] sm:$0xff]  ;;  %v383_v38 = vld [vmem:[#allocation6 + $0x70] sm:$0xff] }
  0x8e   :  { %831 = vmatprep.subr.mxu0 %v446_v39  ;;  %987 = vmatpush1.msra.mxu1 %v471_v42  ;;  %v376_v39 = vld [vmem:[#allocation6 + $0x38] sm:$0xff]  ;;  %v2493_v42 = vld [vmem:[#allocation9 + $0xd8] sm:$0xff] }
  0x8f   :  { %741 = vmatmul.mubr.f32.gmra.mxu1 %v5118_v52  ;;  %832 = vmatpush1.msra.mxu0 %v445_v43  ;;  %v375_v43 = vld [vmem:[#allocation6 + $0x30] sm:$0xff] }
  0x90   :  { %833 = vmatprep.subr.mxu0 %v438_v44  ;;  %746 = vmatprep.mubr.f32.mxu1 %v5031_v0  ;;  %v2492_v44 = vld [vmem:[#allocation9 + $0xd0] sm:$0xff] }
  0x91   :  { %834 = vmatpush1.msra.mxu0 %v437_v45  ;;  %988 = vmatprep.subr.mxu1 %v464_v48  ;;  %v2491_v45 = vld [vmem:[#allocation9 + $0xc8] sm:$0xff]  ;;  %v2561_v48 = vld [vmem:[#allocation9 + $0x2f8] sm:$0xff] }
  0x92   :  { %835 = vmatprep.subr.mxu0 %v430_v49  ;;  %989 = vmatpush1.msra.mxu1 %v463_v50  ;;  %v2490_v49 = vld [vmem:[#allocation9 + $0xc0] sm:$0xff]  ;;  %v2489_v50 = vld [vmem:[#allocation9 + $0xb8] sm:$0xff] }
  0x93   :  { %747 = vmatmul.mubr.f32.gmra.mxu1 %v5126_v58  ;;  %836 = vmatpush1.msra.mxu0 %v429_v51  ;;  %v2488_v51 = vld [vmem:[#allocation9 + $0xb0] sm:$0xff] }
  0x94   :  { %837 = vmatprep.subr.mxu0 %v422_v54  ;;  %752 = vmatprep.mubr.f32.mxu1 %v5031_v0  ;;  %v2487_v54 = vld [vmem:[#allocation9 + $0xa8] sm:$0xff] }
  0x95   :  { %838 = vmatpush1.msra.mxu0 %v421_v55  ;;  %990 = vmatprep.subr.mxu1 %v456_v56  ;;  %v2486_v55 = vld [vmem:[#allocation9 + $0xa0] sm:$0xff]  ;;  %v2485_v56 = vld [vmem:[#allocation9 + $0x98] sm:$0xff] }
  0x96   :  { %839 = vmatprep.subr.mxu0 %v414_v57  ;;  %991 = vmatpush1.msra.mxu1 %v455_v60  ;;  %v2560_v57 = vld [vmem:[#allocation9 + $0x2f0] sm:$0xff]  ;;  %v2559_v60 = vld [vmem:[#allocation9 + $0x2e8] sm:$0xff] }
  0x97   :  { %753 = vmatmul.mubr.f32.gmra.mxu1 %v5134_v1  ;;  %840 = vmatpush1.msra.mxu0 %v413_v61  ;;  %v2484_v61 = vld [vmem:[#allocation9 + $0x90] sm:$0xff] }
  0x98   :  { %841 = vmatprep.subr.mxu0 %v406_v62  ;;  %758 = vmatprep.mubr.f32.mxu1 %v5031_v0  ;;  %v2483_v62 = vld [vmem:[#allocation9 + $0x88] sm:$0xff] }
  0x99   :  { %842 = vmatpush1.msra.mxu0 %v405_v63  ;;  %992 = vmatprep.subr.mxu1 %v448_v3  ;;  %v2558_v63 = vld [vmem:[#allocation9 + $0x2e0] sm:$0xff]  ;;  %v2557_v3 = vld [vmem:[#allocation9 + $0x2d8] sm:$0xff] }
  0x9a   :  { %843 = vmatprep.subr.mxu0 %v398_v4  ;;  %993 = vmatpush1.msra.mxu1 %v447_v5  ;;  %v2481_v4 = vld [vmem:[#allocation9 + $0x78] sm:$0xff]  ;;  %v2556_v5 = vld [vmem:[#allocation9 + $0x2d0] sm:$0xff] }
  0x9b   :  { %759 = vmatmul.mubr.f32.gmra.mxu1 %v5142_v7  ;;  %844 = vmatpush1.msra.mxu0 %v397_v6  ;;  %v2555_v6 = vld [vmem:[#allocation9 + $0x2c8] sm:$0xff] }
  0x9c   :  { %845 = vmatprep.subr.mxu0 %v390_v9  ;;  %764 = vmatprep.mubr.f32.mxu1 %v5031_v0  ;;  %v2479_v9 = vld [vmem:[#allocation9 + $0x68] sm:$0xff] }
  0x9d   :  { %846 = vmatpush1.msra.mxu0 %v389_v10  ;;  %994 = vmatprep.subr.mxu1 %v440_v11  ;;  %v2554_v10 = vld [vmem:[#allocation9 + $0x2c0] sm:$0xff]  ;;  %v2553_v11 = vld [vmem:[#allocation9 + $0x2b8] sm:$0xff] }
  0x9e   :  { %847 = vmatprep.subr.mxu0 %v382_v12  ;;  %995 = vmatpush1.msra.mxu1 %v439_v15  ;;  %v2477_v12 = vld [vmem:[#allocation9 + $0x58] sm:$0xff]  ;;  %v2552_v15 = vld [vmem:[#allocation9 + $0x2b0] sm:$0xff] }
  0x9f   :  { %765 = vmatmul.mubr.f32.gmra.mxu1 %v5150_v13  ;;  %848 = vmatpush1.msra.mxu0 %v381_v16  ;;  %v2551_v16 = vld [vmem:[#allocation9 + $0x2a8] sm:$0xff] }
  0xa0   :  { %849 = vmatprep.subr.mxu0 %v374_v17  ;;  %770 = vmatprep.mubr.f32.mxu1 %v5031_v0  ;;  %v2475_v17 = vld [vmem:[#allocation9 + $0x48] sm:$0xff] }
  0xa1   :  { %850 = vmatpush1.msra.mxu0 %v373_v18  ;;  %883 = vmatprep.mubr.f32.mxu0 %v5031_v0  ;;  %v2550_v18 = vld [vmem:[#allocation9 + $0x2a0] sm:$0xff] }
  0xa2   :  { %884 = vmatmul.mubr.f32.vlgmr.msra.gmra.mxu0 %v5096_v33  ;;  %996 = vmatprep.subr.mxu1 %v432_v19  ;;  %v2549_v19 = vld [vmem:[#allocation9 + $0x298] sm:$0xff] }
  0xa3   :  { %771 = vmatmul.mubr.f32.gmra.mxu1 %v5098_v34  ;;  %889 = vmatprep.mubr.f32.mxu0 %v5031_v0 }
  0xa4   :  { %997 = vmatpush1.msra.mxu1 %v431_v20  ;;  %776 = vmatprep.mubr.f32.mxu1 %v5031_v0  ;;  %v2473_v20 = vld [vmem:[#allocation9 + $0x38] sm:$0xff] }
  0xa5   :  { %998 = vmatprep.subr.mxu1 %v424_v21  ;;  %2734 = vmatprep.subr.mxu0 %v2497_v22  ;;  %v2548_v21 = vld [vmem:[#allocation9 + $0x290] sm:$0xff]  ;;  %v2547_v22 = vld [vmem:[#allocation9 + $0x288] sm:$0xff] }
  0xa6   :  { %890 = vmatmul.mubr.f32.gmra.mxu0 %v5103_v40  ;;  %999 = vmatpush1.msra.mxu1 %v423_v23  ;;  %v2471_v23 = vld [vmem:[#allocation9 + $0x28] sm:$0xff] }
  0xa7   :  { %777 = vmatmul.mubr.f32.gmra.mxu1 %v5106_v41  ;;  %895 = vmatprep.mubr.f32.mxu0 %v5031_v0 }
  0xa8   :  { %782 = vmatprep.mubr.f32.mxu1 %v5031_v0  ;;  %1000 = vmatprep.subr.mxu1 %v416_v24  ;;  %v2470_v24 = vld [vmem:[#allocation9 + $0x20] sm:$0xff] }
  0xa9   :  { %1001 = vmatpush1.msra.mxu1 %v415_v25  ;;  %2735 = vmatpush1.msra.mxu0 %v2496_v26  ;;  %v2546_v25 = vld [vmem:[#allocation9 + $0x280] sm:$0xff]  ;;  %v2469_v26 = vld [vmem:[#allocation9 + $0x18] sm:$0xff] }
  0xaa   :  { %896 = vmatmul.mubr.f32.gmra.mxu0 %v5110_v46  ;;  %1002 = vmatprep.subr.mxu1 %v408_v27  ;;  %v2468_v27 = vld [vmem:[#allocation9 + $0x10] sm:$0xff] }
  0xab   :  { %783 = vmatmul.mubr.f32.gmra.mxu1 %v5113_v47  ;;  %901 = vmatprep.mubr.f32.mxu0 %v5031_v0 }
  0xac   :  { %788 = vmatprep.mubr.f32.mxu1 %v5031_v0  ;;  %1003 = vmatpush1.msra.mxu1 %v407_v28  ;;  %v2467_v28 = vld [vmem:[#allocation9 + $0x8] sm:$0xff] }
  0xad   :  { %1004 = vmatprep.subr.mxu1 %v400_v29  ;;  %2736 = vmatprep.subr.mxu0 %v2495_v30  ;;  %v2466_v29 = vld [vmem:[#allocation9] sm:$0xff]  ;;  %v2544_v30 = vld [vmem:[#allocation9 + $0x270] sm:$0xff] }
  0xae   :  { %902 = vmatmul.mubr.f32.gmra.mxu0 %v5118_v52  ;;  %1005 = vmatpush1.msra.mxu1 %v399_v31  ;;  %v2529_v31 = vld [vmem:[#allocation9 + $0x1f8] sm:$0xff] }
  0xaf   :  { %789 = vmatmul.mubr.f32.gmra.mxu1 %v5121_v53  ;;  %907 = vmatprep.mubr.f32.mxu0 %v5031_v0 }
  0xb0   :  { %794 = vmatprep.mubr.f32.mxu1 %v5031_v0  ;;  %1006 = vmatprep.subr.mxu1 %v392_v32  ;;  %v2543_v32 = vld [vmem:[#allocation9 + $0x268] sm:$0xff] }
  0xb1   :  { %1007 = vmatpush1.msra.mxu1 %v391_v35  ;;  %2737 = vmatpush1.msra.mxu0 %v2494_v36  ;;  %v2527_v35 = vld [vmem:[#allocation9 + $0x1e8] sm:$0xff]  ;;  %v2526_v36 = vld [vmem:[#allocation9 + $0x1e0] sm:$0xff] }
  0xb2   :  { %908 = vmatmul.mubr.f32.gmra.mxu0 %v5126_v58  ;;  %1008 = vmatprep.subr.mxu1 %v384_v37  ;;  %v2542_v37 = vld [vmem:[#allocation9 + $0x260] sm:$0xff] }
  0xb3   :  { %795 = vmatmul.mubr.f32.gmra.mxu1 %v5129_v59  ;;  %913 = vmatprep.mubr.f32.mxu0 %v5031_v0 }
  0xb4   :  { %800 = vmatprep.mubr.f32.mxu1 %v5031_v0  ;;  %1009 = vmatpush1.msra.mxu1 %v383_v38  ;;  %v2525_v38 = vld [vmem:[#allocation9 + $0x1d8] sm:$0xff] }
  0xb5   :  { %1010 = vmatprep.subr.mxu1 %v376_v39  ;;  %2738 = vmatprep.subr.mxu0 %v2493_v42  ;;  %v2541_v39 = vld [vmem:[#allocation9 + $0x258] sm:$0xff]  ;;  %v2523_v42 = vld [vmem:[#allocation9 + $0x1c8] sm:$0xff] }
  0xb6   :  { %914 = vmatmul.mubr.f32.gmra.mxu0 %v5134_v1  ;;  %1011 = vmatpush1.msra.mxu1 %v375_v43  ;;  %v2522_v43 = vld [vmem:[#allocation9 + $0x1c0] sm:$0xff] }
  0xb7   :  { %801 = vmatmul.mubr.f32.gmra.mxu1 %v5137_v2  ;;  %919 = vmatprep.mubr.f32.mxu0 %v5031_v0 }
  0xb8   :  { %806 = vmatprep.mubr.f32.mxu1 %v5031_v0  ;;  %2739 = vmatpush1.msra.mxu0 %v2492_v44  ;;  %v2540_v44 = vld [vmem:[#allocation9 + $0x250] sm:$0xff] }
  0xb9   :  { %2740 = vmatprep.subr.mxu0 %v2491_v45  ;;  %2895 = vmatprep.subr.mxu1 %v2561_v48  ;;  %v2521_v45 = vld [vmem:[#allocation9 + $0x1b8] sm:$0xff]  ;;  %v2539_v48 = vld [vmem:[#allocation9 + $0x248] sm:$0xff] }
  0xba   :  { %920 = vmatmul.mubr.f32.gmra.mxu0 %v5142_v7 }
  0xbb   :  { %807 = vmatmul.mubr.f32.gmra.mxu1 %v5145_v8  ;;  %925 = vmatprep.mubr.f32.mxu0 %v5031_v0 }
  0xbc   :  { %812 = vmatprep.mubr.f32.mxu1 %v5031_v0  ;;  %2741 = vmatpush1.msra.mxu0 %v2490_v49  ;;  %v2519_v49 = vld [vmem:[#allocation9 + $0x1a8] sm:$0xff] }
  0xbd   :  { %2742 = vmatprep.subr.mxu0 %v2489_v50  ;;  %v2518_v50 = vld [vmem:[#allocation9 + $0x1a0] sm:$0xff] }
  0xbe   :  { %926 = vmatmul.mubr.f32.gmra.mxu0 %v5150_v13 }
  0xbf   :  { %813 = vmatmul.mubr.f32.gmra.mxu1 %v5153_v14  ;;  %931 = vmatprep.mubr.f32.mxu0 %v5031_v0 }
  0xc0   :  { %1044 = vmatprep.mubr.f32.mxu1 %v5031_v0  ;;  %2743 = vmatpush1.msra.mxu0 %v2488_v51  ;;  %v2538_v51 = vld [vmem:[#allocation9 + $0x240] sm:$0xff] }
  0xc1   :  { %2744 = vmatprep.subr.mxu0 %v2487_v54  ;;  %v2517_v54 = vld [vmem:[#allocation9 + $0x198] sm:$0xff] }
  0xc2   :  { %932 = vmatmul.mubr.f32.gmra.mxu0 %v5098_v34 }
  0xc3   :  { %1045 = vmatmul.mubr.f32.vlgmr.msra.gmra.mxu1 %v5096_v33  ;;  %937 = vmatprep.mubr.f32.mxu0 %v5031_v0  ;;  %v2482_v33 = vld [vmem:[#allocation9 + $0x80] sm:$0xff] }
  0xc4   :  { %1050 = vmatprep.mubr.f32.mxu1 %v5031_v0  ;;  %2745 = vmatpush1.msra.mxu0 %v2486_v55  ;;  %v2537_v55 = vld [vmem:[#allocation9 + $0x238] sm:$0xff] }
  0xc5   :  { %2746 = vmatprep.subr.mxu0 %v2485_v56  ;;  %2896 = vmatpush1.msra.mxu1 %v2560_v57  ;;  %v2515_v56 = vld [vmem:[#allocation9 + $0x188] sm:$0xff]  ;;  %v2514_v57 = vld [vmem:[#allocation9 + $0x180] sm:$0xff] }
  0xc6   :  { %938 = vmatmul.mubr.f32.gmra.mxu0 %v5106_v41  ;;  %2897 = vmatprep.subr.mxu1 %v2559_v60  ;;  %v2536_v60 = vld [vmem:[#allocation9 + $0x230] sm:$0xff] }
  0xc7   :  { %1051 = vmatmul.mubr.f32.gmra.mxu1 %v5103_v40  ;;  %943 = vmatprep.mubr.f32.mxu0 %v5031_v0  ;;  %v2480_v40 = vld [vmem:[#allocation9 + $0x70] sm:$0xff] }
  0xc8   :  { %1056 = vmatprep.mubr.f32.mxu1 %v5031_v0  ;;  %2747 = vmatpush1.msra.mxu0 %v2484_v61  ;;  %v2513_v61 = vld [vmem:[#allocation9 + $0x178] sm:$0xff] }
  0xc9   :  { %2748 = vmatprep.subr.mxu0 %v2483_v62  ;;  %2898 = vmatpush1.msra.mxu1 %v2558_v63  ;;  %v2535_v62 = vld [vmem:[#allocation9 + $0x228] sm:$0xff] }
  0xca   :  { %944 = vmatmul.mubr.f32.gmra.mxu0 %v5113_v47  ;;  %2899 = vmatprep.subr.mxu1 %v2557_v3  ;;  %v2511_v63 = vld [vmem:[#allocation9 + $0x168] sm:$0xff]  ;;  %v2510_v3 = vld [vmem:[#allocation9 + $0x160] sm:$0xff] }
  0xcb   :  { %1057 = vmatmul.mubr.f32.gmra.mxu1 %v5110_v46  ;;  %949 = vmatprep.mubr.f32.mxu0 %v5031_v0  ;;  %v2478_v46 = vld [vmem:[#allocation9 + $0x60] sm:$0xff] }
  0xcc   :  { %1062 = vmatprep.mubr.f32.mxu1 %v5031_v0  ;;  %2749 = vmatpush1.msra.mxu0 %v2482_v33  ;;  %v2534_v33 = vld [vmem:[#allocation9 + $0x220] sm:$0xff] }
  0xcd   :  { %2750 = vmatprep.subr.mxu0 %v2481_v4  ;;  %2900 = vmatpush1.msra.mxu1 %v2556_v5  ;;  %v2509_v4 = vld [vmem:[#allocation9 + $0x158] sm:$0xff] }
  0xce   :  { %950 = vmatmul.mubr.f32.gmra.mxu0 %v5121_v53  ;;  %2901 = vmatprep.subr.mxu1 %v2555_v6  ;;  %v2533_v5 = vld [vmem:[#allocation9 + $0x218] sm:$0xff]  ;;  %v2507_v6 = vld [vmem:[#allocation9 + $0x148] sm:$0xff] }
  0xcf   :  { %1063 = vmatmul.mubr.f32.gmra.mxu1 %v5118_v52  ;;  %955 = vmatprep.mubr.f32.mxu0 %v5031_v0  ;;  %v2476_v52 = vld [vmem:[#allocation9 + $0x50] sm:$0xff] }
  0xd0   :  { %1068 = vmatprep.mubr.f32.mxu1 %v5031_v0  ;;  %2751 = vmatpush1.msra.mxu0 %v2480_v40  ;;  %v2506_v40 = vld [vmem:[#allocation9 + $0x140] sm:$0xff] }
  0xd1   :  { %2752 = vmatprep.subr.mxu0 %v2479_v9  ;;  %2902 = vmatpush1.msra.mxu1 %v2554_v10  ;;  %v2532_v9 = vld [vmem:[#allocation9 + $0x210] sm:$0xff]  ;;  %v2505_v10 = vld [vmem:[#allocation9 + $0x138] sm:$0xff] }
  0xd2   :  { %956 = vmatmul.mubr.f32.gmra.mxu0 %v5129_v59  ;;  %2903 = vmatprep.subr.mxu1 %v2553_v11  ;;  %v2531_v11 = vld [vmem:[#allocation9 + $0x208] sm:$0xff] }
  0xd3   :  { %1069 = vmatmul.mubr.f32.gmra.mxu1 %v5126_v58  ;;  %961 = vmatprep.mubr.f32.mxu0 %v5031_v0  ;;  %v2474_v58 = vld [vmem:[#allocation9 + $0x40] sm:$0xff] }
  0xd4   :  { %1074 = vmatprep.mubr.f32.mxu1 %v5031_v0  ;;  %2753 = vmatpush1.msra.mxu0 %v2478_v46  ;;  %v2503_v46 = vld [vmem:[#allocation9 + $0x128] sm:$0xff] }
  0xd5   :  { %2754 = vmatprep.subr.mxu0 %v2477_v12  ;;  %2904 = vmatpush1.msra.mxu1 %v2552_v15  ;;  %v2530_v12 = vld [vmem:[#allocation9 + $0x200] sm:$0xff] }
  0xd6   :  { %962 = vmatmul.mubr.f32.gmra.mxu0 %v5137_v2  ;;  %2905 = vmatprep.subr.mxu1 %v2551_v16  ;;  %v2502_v15 = vld [vmem:[#allocation9 + $0x120] sm:$0xff]  ;;  %v2593_v16 = vld [vmem:[#allocation9 + $0x3f8] sm:$0xff] }
  0xd7   :  { %1075 = vmatmul.mubr.f32.gmra.mxu1 %v5134_v1  ;;  %967 = vmatprep.mubr.f32.mxu0 %v5031_v0  ;;  %v2472_v1 = vld [vmem:[#allocation9 + $0x30] sm:$0xff] }
  0xd8   :  { %1080 = vmatprep.mubr.f32.mxu1 %v5031_v0  ;;  %2755 = vmatpush1.msra.mxu0 %v2476_v52  ;;  %v2501_v52 = vld [vmem:[#allocation9 + $0x118] sm:$0xff] }
  0xd9   :  { %2756 = vmatprep.subr.mxu0 %v2475_v17  ;;  %2906 = vmatpush1.msra.mxu1 %v2550_v18  ;;  %v2500_v17 = vld [vmem:[#allocation9 + $0x110] sm:$0xff]  ;;  %v2591_v18 = vld [vmem:[#allocation9 + $0x3e8] sm:$0xff] }
  0xda   :  { %968 = vmatmul.mubr.f32.gmra.mxu0 %v5145_v8  ;;  %2907 = vmatprep.subr.mxu1 %v2549_v19  ;;  %v2590_v19 = vld [vmem:[#allocation9 + $0x3e0] sm:$0xff] }
  0xdb   :  { %1081 = vmatmul.mubr.f32.gmra.mxu1 %v5142_v7  ;;  %973 = vmatprep.mubr.f32.mxu0 %v5031_v0  ;;  %v2545_v7 = vld [vmem:[#allocation9 + $0x278] sm:$0xff] }
  0xdc   :  { %1086 = vmatprep.mubr.f32.mxu1 %v5031_v0  ;;  %2757 = vmatpush1.msra.mxu0 %v2474_v58  ;;  %v2498_v58 = vld [vmem:[#allocation9 + $0x100] sm:$0xff] }
  0xdd   :  { %2758 = vmatprep.subr.mxu0 %v2473_v20  ;;  %2908 = vmatpush1.msra.mxu1 %v2548_v21  ;;  %v2589_v20 = vld [vmem:[#allocation9 + $0x3d8] sm:$0xff] }
  0xde   :  { %974 = vmatmul.mubr.f32.gmra.mxu0 %v5153_v14  ;;  %2909 = vmatprep.subr.mxu1 %v2547_v22  ;;  %v2625_v21 = vld [vmem:[#allocation9 + $0x4f8] sm:$0xff]  ;;  %v2588_v22 = vld [vmem:[#allocation9 + $0x3d0] sm:$0xff] }
  0xdf   :  { %1087 = vmatmul.mubr.f32.gmra.mxu1 %v5150_v13  ;;  %2759 = vmatpush1.msra.mxu0 %v2472_v1  ;;  %v2528_v13 = vld [vmem:[#allocation9 + $0x1f0] sm:$0xff]  ;;  %v2586_v1 = vld [vmem:[#allocation9 + $0x3c0] sm:$0xff] }
  0xe0   :  { %1092 = vmatprep.mubr.f32.mxu1 %v5031_v0  ;;  %2760 = vmatprep.subr.mxu0 %v2471_v23  ;;  %v2585_v23 = vld [vmem:[#allocation9 + $0x3b8] sm:$0xff] }
  0xe1   :  { %2761 = vmatpush1.msra.mxu0 %v2470_v24  ;;  %2910 = vmatpush1.msra.mxu1 %v2546_v25  ;;  %v2584_v24 = vld [vmem:[#allocation9 + $0x3b0] sm:$0xff]  ;;  %v2583_v25 = vld [vmem:[#allocation9 + $0x3a8] sm:$0xff] }
  0xe2   :  { %2762 = vmatprep.subr.mxu0 %v2469_v26  ;;  %2911 = vmatprep.subr.mxu1 %v2545_v7  ;;  %v2582_v26 = vld [vmem:[#allocation9 + $0x3a0] sm:$0xff]  ;;  %v2581_v7 = vld [vmem:[#allocation9 + $0x398] sm:$0xff] }
  0xe3   :  { %1093 = vmatmul.mubr.f32.gmra.mxu1 %v5098_v34  ;;  %2763 = vmatpush1.msra.mxu0 %v2468_v27  ;;  %v2524_v34 = vld [vmem:[#allocation9 + $0x1d0] sm:$0xff] }
  0xe4   :  { %1098 = vmatprep.mubr.f32.mxu1 %v5031_v0  ;;  %2764 = vmatprep.subr.mxu0 %v2467_v28  ;;  %v2580_v27 = vld [vmem:[#allocation9 + $0x390] sm:$0xff]  ;;  %v2579_v28 = vld [vmem:[#allocation9 + $0x388] sm:$0xff] }
  0xe5   :  { %2765 = vmatpush1.msra.mxu0 %v2466_v29  ;;  %2912 = vmatpush1.msra.mxu1 %v2544_v30  ;;  %v2578_v29 = vld [vmem:[#allocation9 + $0x380] sm:$0xff]  ;;  %v2577_v30 = vld [vmem:[#allocation9 + $0x378] sm:$0xff] }
  0xe6   :  { %2766 = vmatprep.subr.mxu0 %v2529_v31  ;;  %2913 = vmatprep.subr.mxu1 %v2543_v32  ;;  %v2576_v31 = vld [vmem:[#allocation9 + $0x370] sm:$0xff]  ;;  %v2575_v32 = vld [vmem:[#allocation9 + $0x368] sm:$0xff] }
  0xe7   :  { %1099 = vmatmul.mubr.f32.gmra.mxu1 %v5106_v41  ;;  %2767 = vmatpush2.msra.mxu0 %v2528_v13  ;;  %v2520_v41 = vld [vmem:[#allocation9 + $0x1b0] sm:$0xff]  ;;  %v2574_v13 = vld [vmem:[#allocation9 + $0x360] sm:$0xff] }
  0xe8   :  { %1104 = vmatprep.mubr.f32.mxu1 %v5031_v0  ;;  %2768 = vmatprep.subr.mxu0 %v2527_v35  ;;  %v2573_v35 = vld [vmem:[#allocation9 + $0x358] sm:$0xff] }
  0xe9   :  { %2769 = vmatpush2.msra.mxu0 %v2526_v36  ;;  %2914 = vmatpush1.msra.mxu1 %v2542_v37  ;;  %v1530_v36 = vlaneseq  ;;  %v2572_v37 = vld [vmem:[#allocation9 + $0x350] sm:$0xff] }
  0xea   :  { %2770 = vmatprep.subr.mxu0 %v2525_v38  ;;  %2915 = vmatprep.subr.mxu1 %v2541_v39  ;;  %v2571_v38 = vld [vmem:[#allocation9 + $0x348] sm:$0xff]  ;;  %v2570_v39 = vld [vmem:[#allocation9 + $0x340] sm:$0xff] }
  0xeb   :  { %1105 = vmatmul.mubr.f32.gmra.mxu1 %v5113_v47  ;;  %2771 = vmatpush2.msra.mxu0 %v2524_v34  ;;  %v2516_v47 = vld [vmem:[#allocation9 + $0x190] sm:$0xff]  ;;  %v2569_v34 = vld [vmem:[#allocation9 + $0x338] sm:$0xff] }
  0xec   :  { %1110 = vmatprep.mubr.f32.mxu1 %v5031_v0  ;;  %2772 = vmatprep.subr.mxu0 %v2523_v42  ;;  %v5254_v42 = vshrl.u32 %v1530_v36, 7 }
  0xed   :  { %2773 = vmatpush2.msra.mxu0 %v2522_v43  ;;  %2916 = vmatpush1.msra.mxu1 %v2540_v44  ;;  %v2568_v43 = vld [vmem:[#allocation9 + $0x330] sm:$0xff]  ;;  %v2567_v44 = vld [vmem:[#allocation9 + $0x328] sm:$0xff] }
  0xee   :  { %2774 = vmatprep.subr.mxu0 %v2521_v45  ;;  %2917 = vmatprep.subr.mxu1 %v2539_v48  ;;  %v2566_v45 = vld [vmem:[#allocation9 + $0x320] sm:$0xff]  ;;  %v2565_v48 = vld [vmem:[#allocation9 + $0x318] sm:$0xff] }
  0xef   :  { %1111 = vmatmul.mubr.f32.gmra.mxu1 %v5121_v53  ;;  %2775 = vmatpush2.msra.mxu0 %v2520_v41  ;;  %v2512_v53 = vld [vmem:[#allocation9 + $0x170] sm:$0xff]  ;;  %v1532_v41 = vsub.s32 0, %v5254_v42 }
  0xf0   :  { %1116 = vmatprep.mubr.f32.mxu1 %v5031_v0  ;;  %2776 = vmatprep.subr.mxu0 %v2519_v49  ;;  %v2564_v49 = vld [vmem:[#allocation9 + $0x310] sm:$0xff] }
  0xf1   :  { %2777 = vmatpush2.msra.mxu0 %v2518_v50  ;;  %2918 = vmatpush1.msra.mxu1 %v2538_v51  ;;  %v5257_v50 = vld [vmem:[#allocation8] sm:$0xff]  ;;  %v2563_v51 = vld [vmem:[#allocation9 + $0x308] sm:$0xff] }
  0xf2   :  { %2778 = vmatprep.subr.mxu0 %v2517_v54  ;;  %2919 = vmatprep.subr.mxu1 %v2537_v55  ;;  %v1536_v54 = vsub.s32 1, %v5254_v42  ;;  %v2562_v55 = vld [vmem:[#allocation9 + $0x300] sm:$0xff] }
  0xf3   :  { %1117 = vmatmul.mubr.f32.gmra.mxu1 %v5129_v59  ;;  %2779 = vmatpush2.msra.mxu0 %v2516_v47  ;;  %v2508_v59 = vld [vmem:[#allocation9 + $0x150] sm:$0xff]  ;;  %v2689_v47 = vld [vmem:[#allocation9 + $0x6f8] sm:$0xff] }
  0xf4   :  { %1122 = vmatprep.mubr.f32.mxu1 %v5031_v0  ;;  %2780 = vmatprep.subr.mxu0 %v2515_v56  ;;  %v5263_v56 = vrot.slane %v5257_v50, %v1532_v41 }
  0xf5   :  { %2781 = vmatpush2.msra.mxu0 %v2514_v57  ;;  %2920 = vmatpush1.msra.mxu1 %v2536_v60  ;;  %v5268_v57 = vrot.slane %v5257_v50, %v1536_v54 }
  0xf6   :  { %2782 = vmatprep.subr.mxu0 %v2513_v61  ;;  %2921 = vmatprep.subr.mxu1 %v2535_v62 }
  0xf7   :  { %1123 = vmatmul.mubr.f32.gmra.mxu1 %v5137_v2  ;;  %2783 = vmatpush2.msra.mxu0 %v2512_v53  ;;  %v2504_v2 = vld [vmem:[#allocation9 + $0x130] sm:$0xff] }
  0xf8   :  { %1128 = vmatprep.mubr.f32.mxu1 %v5031_v0  ;;  %2784 = vmatprep.subr.mxu0 %v2511_v63 }
  0xf9   :  { %2785 = vmatpush2.msra.mxu0 %v2510_v3  ;;  %2922 = vmatpush1.msra.mxu1 %v2534_v33 }
  0xfa   :  { %2786 = vmatprep.subr.mxu0 %v2509_v4  ;;  %2923 = vmatprep.subr.mxu1 %v2533_v5 }
  0xfb   :  { %1129 = vmatmul.mubr.f32.gmra.mxu1 %v5145_v8  ;;  %2787 = vmatpush2.msra.mxu0 %v2508_v59  ;;  %v2592_v8 = vld [vmem:[#allocation9 + $0x3f0] sm:$0xff] }
  0xfc   :  { %1134 = vmatprep.mubr.f32.mxu1 %v5031_v0  ;;  %2788 = vmatprep.subr.mxu0 %v2507_v6  ;;  %v2499_v0 = vld [vmem:[#allocation9 + $0x108] sm:$0xff] }
  0xfd   :  { %2789 = vmatpush2.msra.mxu0 %v2506_v40  ;;  %2924 = vmatpush1.msra.mxu1 %v2532_v9 }
  0xfe   :  { %2790 = vmatprep.subr.mxu0 %v2505_v10  ;;  %2925 = vmatprep.subr.mxu1 %v2531_v11 }
  0xff   :  { %1135 = vmatmul.mubr.f32.gmra.mxu1 %v5153_v14  ;;  %2791 = vmatpush2.msra.mxu0 %v2504_v2  ;;  %v2587_v14 = vld [vmem:[#allocation9 + $0x3c8] sm:$0xff] }
 0x100   :  { %2792 = vmatprep.subr.mxu0 %v2503_v46  ;;  %2926 = vmatpush1.msra.mxu1 %v2530_v12 }
 0x101   :  { %2793 = vmatpush2.msra.mxu0 %v2502_v15  ;;  %2927 = vmatprep.subr.mxu1 %v2593_v16 }
 0x102   :  { %2794 = vmatprep.subr.mxu0 %v2501_v52  ;;  %2928 = vmatpush2.msra.mxu1 %v2592_v8 }
 0x103   :  { %2795 = vmatpush2.msra.mxu0 %v2500_v17  ;;  %2929 = vmatprep.subr.mxu1 %v2591_v18 }
 0x104   :  { %2796 = vmatprep.subr.mxu0 %v2499_v0  ;;  %2930 = vmatpush2.msra.mxu1 %v2590_v19 }
 0x105   :  { %2797 = vmatpush2.msra.mxu0 %v2498_v58  ;;  %2931 = vmatprep.subr.mxu1 %v2589_v20 }
 0x106   :  { %3056 = vmatprep.subr.mxu0 %v2625_v21  ;;  %2932 = vmatpush2.msra.mxu1 %v2588_v22 }
 0x107   :  { %2933 = vmatprep.subr.mxu1 %v2587_v14 }
 0x108   :  { %2934 = vmatpush2.msra.mxu1 %v2586_v1 }
 0x109   :  { %2935 = vmatprep.subr.mxu1 %v2585_v23 }
 0x10a   :  { %2936 = vmatpush2.msra.mxu1 %v2584_v24 }
 0x10b   :  { %2937 = vmatprep.subr.mxu1 %v2583_v25 }
 0x10c   :  { %2938 = vmatpush2.msra.mxu1 %v2582_v26 }
 0x10d   :  { %2939 = vmatprep.subr.mxu1 %v2581_v7 }
 0x10e   :  { %2940 = vmatpush2.msra.mxu1 %v2580_v27 }
 0x10f   :  { %2941 = vmatprep.subr.mxu1 %v2579_v28 }
 0x110   :  { %2942 = vmatpush2.msra.mxu1 %v2578_v29 }
 0x111   :  { %2943 = vmatprep.subr.mxu1 %v2577_v30 }
 0x112   :  { %2944 = vmatpush2.msra.mxu1 %v2576_v31 }
 0x113   :  { %2945 = vmatprep.subr.mxu1 %v2575_v32 }
 0x114   :  { %2946 = vmatpush2.msra.mxu1 %v2574_v13 }
 0x115   :  { %2947 = vmatprep.subr.mxu1 %v2573_v35 }
 0x116   :  { %2948 = vmatpush2.msra.mxu1 %v2572_v37 }
 0x117   :  { %2949 = vmatprep.subr.mxu1 %v2571_v38 }
 0x118   :  { %2950 = vmatpush2.msra.mxu1 %v2570_v39 }
 0x119   :  { %2951 = vmatprep.subr.mxu1 %v2569_v34 }
 0x11a   :  { %2952 = vmatpush2.msra.mxu1 %v2568_v43 }
 0x11b   :  { %2953 = vmatprep.subr.mxu1 %v2567_v44 }
 0x11c   :  { %2954 = vmatpush2.msra.mxu1 %v2566_v45 }
 0x11d   :  { %2955 = vmatprep.subr.mxu1 %v2565_v48 }
 0x11e   :  { %2956 = vmatpush2.msra.mxu1 %v2564_v49 }
 0x11f   :  { %2957 = vmatprep.subr.mxu1 %v2563_v51 }
 0x120   :  { %2958 = vmatpush2.msra.mxu1 %v2562_v55 }
 0x121   :  { %3217 = vmatprep.subr.mxu1 %v2689_v47 }
 0x122   :  { %v563_v60 = vpop.f32.mrf.mxu0  ;;  %v611_v61 = vpop.f32.mrf.mxu1 }
 0x123   :  { %v1570_v62 = vadd.f32 %v5263_v56, %v563_v60  ;;  %v1634_v53 = vadd.f32 %v5263_v56, %v611_v61 }
 0x124   :  { %v565_v63 = vpop.f32.mrf.mxu0  ;;  %v613_v3 = vpop.f32.mrf.mxu1 }
 0x125   :  { %v3885_v33 = vmul.f32 -1.442695, %v1570_v62  ;;  %v3949_v4 = vmul.f32 -1.442695, %v1634_v53  ;;  %v1571_v5 = vadd.f32 %v5268_v57, %v565_v63  ;;  %v1635_v59 = vadd.f32 %v5268_v57, %v613_v3 }
 0x126   :  { %v569_v6 = vpop.f32.mrf.mxu0 }
 0x127   :  { %4187 = vpow2.f32 %v3885_v33  ;;  %v3886_v40 = vmul.f32 -1.442695, %v1571_v5  ;;  %v3950_v9 = vmul.f32 -1.442695, %v1635_v59  ;;  %v1578_v10 = vadd.f32 %v5263_v56, %v569_v6  ;;  %v617_v11 = vpop.f32.mrf.mxu1 }
 0x128   :  { %4189 = vpow2.f32 %v3949_v4  ;;  %v1642_v2 = vadd.f32 %v5263_v56, %v617_v11  ;;  %v571_v46 = vpop.f32.mrf.mxu0 }
 0x129   :  { %4191 = vpow2.f32 %v3886_v40  ;;  %v3893_v12 = vmul.f32 -1.442695, %v1578_v10  ;;  %v1579_v15 = vadd.f32 %v5268_v57, %v571_v46  ;;  %v619_v16 = vpop.f32.mrf.mxu1 }
 0x12a   :  { %4193 = vpow2.f32 %v3950_v9  ;;  %v3957_v52 = vmul.f32 -1.442695, %v1642_v2  ;;  %v1643_v8 = vadd.f32 %v5268_v57, %v619_v16  ;;  %v575_v17 = vpop.f32.mrf.mxu0 }
 0x12b   :  { %4195 = vpow2.f32 %v3893_v12  ;;  %v3894_v18 = vmul.f32 -1.442695, %v1579_v15  ;;  %v1586_v0 = vadd.f32 %v5263_v56, %v575_v17  ;;  %v623_v19 = vpop.f32.mrf.mxu1 }
 0x12c   :  { %4197 = vpow2.f32 %v3957_v52  ;;  %v3958_v58 = vmul.f32 -1.442695, %v1643_v8  ;;  %v1650_v20 = vadd.f32 %v5263_v56, %v623_v19  ;;  %v577_v21 = vpop.f32.mrf.mxu0 }
 0x12d   :  { %4199 = vpow2.f32 %v3894_v18  ;;  %v3901_v22 = vmul.f32 -1.442695, %v1586_v0  ;;  %v1587_v14 = vadd.f32 %v5268_v57, %v577_v21  ;;  %v625_v1 = vpop.f32.mrf.mxu1 }
 0x12e   :  { %4201 = vpow2.f32 %v3958_v58  ;;  %v3965_v23 = vmul.f32 -1.442695, %v1650_v20  ;;  %v1651_v24 = vadd.f32 %v5268_v57, %v625_v1  ;;  %v581_v25 = vpop.f32.mrf.mxu0 }
 0x12f   :  { %4203 = vpow2.f32 %v3901_v22  ;;  %v3902_v26 = vmul.f32 -1.442695, %v1587_v14  ;;  %v1594_v7 = vadd.f32 %v5263_v56, %v581_v25  ;;  %v629_v27 = vpop.f32.mrf.mxu1 }
 0x130   :  { %4205 = vpow2.f32 %v3965_v23  ;;  %v3966_v28 = vmul.f32 -1.442695, %v1651_v24  ;;  %v1658_v29 = vadd.f32 %v5263_v56, %v629_v27  ;;  %v583_v30 = vpop.f32.mrf.mxu0 }
 0x131   :  { %4207 = vpow2.f32 %v3902_v26  ;;  %v3909_v31 = vmul.f32 -1.442695, %v1594_v7  ;;  %v1595_v32 = vadd.f32 %v5268_v57, %v583_v30  ;;  %v631_v13 = vpop.f32.mrf.mxu1 }
 0x132   :  { %4209 = vpow2.f32 %v3966_v28  ;;  %v3973_v35 = vmul.f32 -1.442695, %v1658_v29  ;;  %v1659_v36 = vadd.f32 %v5268_v57, %v631_v13  ;;  %v587_v37 = vpop.f32.mrf.mxu0 }
 0x133   :  { %4211 = vpow2.f32 %v3909_v31  ;;  %v3910_v38 = vmul.f32 -1.442695, %v1595_v32  ;;  %v635_v39 = vpop.f32.mrf.mxu1  ;;  %v1602_v0 = vadd.f32 %v5263_v56, %v587_v37 }
 0x134   :  { %v4188_v34 = vpop.eup %4187  ;;  %4213 = vpow2.f32 %v3973_v35  ;;  %v3974_v43 = vmul.f32 -1.442695, %v1659_v36  ;;  %v589_v44 = vpop.f32.mrf.mxu0  ;;  %v1666_v21 = vadd.f32 %v5263_v56, %v635_v39 }
 0x135   :  { %v4190_v45 = vpop.eup %4189  ;;  %v2082_v48 = vadd.f32 1.0, %v4188_v34  ;;  %4215 = vpow2.f32 %v3910_v38  ;;  %v637_v49 = vpop.f32.mrf.mxu1  ;;  %v1603_v1 = vadd.f32 %v5268_v57, %v589_v44  ;;  %v3917_v29 = vmul.f32 -1.442695, %v1602_v0  ;;  %v2618_v0 = vld [vmem:[#allocation9 + $0x4c0] sm:$0xff] }
 0x136   :  { %v4192_v51 = vpop.eup %4191  ;;  %v2146_v55 = vadd.f32 1.0, %v4190_v45  ;;  %4217 = vpow2.f32 %v3974_v43  ;;  %v593_v47 = vpop.f32.mrf.mxu0  ;;  %v1667_v26 = vadd.f32 %v5268_v57, %v637_v49  ;;  %v3981_v35 = vmul.f32 -1.442695, %v1666_v21  ;;  %v2624_v49 = vld [vmem:[#allocation9 + $0x4f0] sm:$0xff] }
 0x137   :  { %v4194_v60 = vpop.eup %4193  ;;  %4219 = vrcp.f32 %v2082_v48  ;;  %v2083_v61 = vadd.f32 1.0, %v4192_v51  ;;  %v641_v62 = vpop.f32.mrf.mxu1  ;;  %v1610_v30 = vadd.f32 %v5263_v56, %v593_v47  ;;  %v3918_v38 = vmul.f32 -1.442695, %v1603_v1 }
 0x138   :  { %v4196_v53 = vpop.eup %4195  ;;  %4221 = vrcp.f32 %v2146_v55  ;;  %v2147_v63 = vadd.f32 1.0, %v4194_v60  ;;  %v595_v6 = vpop.f32.mrf.mxu0  ;;  %v1674_v36 = vadd.f32 %v5263_v56, %v641_v62  ;;  %v3982_v44 = vmul.f32 -1.442695, %v1667_v26 }
 0x139   :  { %v4198_v3 = vpop.eup %4197  ;;  %4223 = vrcp.f32 %v2083_v61  ;;  %v2090_v33 = vadd.f32 1.0, %v4196_v53  ;;  %v643_v4 = vpop.f32.mrf.mxu1  ;;  %v1611_v39 = vadd.f32 %v5268_v57, %v595_v6  ;;  %v3925_v55 = vmul.f32 -1.442695, %v1610_v30  ;;  %v2623_v61 = vld [vmem:[#allocation9 + $0x4e8] sm:$0xff]  ;;  %v2621_v6 = vld [vmem:[#allocation9 + $0x4d8] sm:$0xff]  ;;  %v2614_v30 = vld [vmem:[#allocation9 + $0x4a0] sm:$0xff] }
 0x13a   :  { %v4200_v5 = vpop.eup %4199  ;;  %4225 = vrcp.f32 %v2147_v63  ;;  %v2154_v59 = vadd.f32 1.0, %v4198_v3  ;;  %v599_v8 = vpop.f32.mrf.mxu0  ;;  %v1675_v45 = vadd.f32 %v5268_v57, %v643_v4  ;;  %v3989_v53 = vmul.f32 -1.442695, %v1674_v36  ;;  %v2622_v3 = vld [vmem:[#allocation9 + $0x4e0] sm:$0xff] }
 0x13b   :  { %v4202_v40 = vpop.eup %4201  ;;  %4227 = vrcp.f32 %v2090_v33  ;;  %v2091_v9 = vadd.f32 1.0, %v4200_v5  ;;  %v5286_v10 = vpop.f32.mrf.mxu1  ;;  %v1618_v47 = vadd.f32 %v5263_v56, %v599_v8  ;;  %v3926_v4 = vmul.f32 -1.442695, %v1611_v39  ;;  %v2619_v8 = vld [vmem:[#allocation9 + $0x4c8] sm:$0xff] }
 0x13c   :  { %v4204_v11 = vpop.eup %4203  ;;  %4229 = vrcp.f32 %v2154_v59  ;;  %v2155_v2 = vadd.f32 1.0, %v4202_v40  ;;  %v601_v7 = vpop.f32.mrf.mxu0  ;;  %v1682_v63 = vadd.f32 %v5263_v56, %v5286_v10  ;;  %v2620_v10 = vld [vmem:[#allocation9 + $0x4d0] sm:$0xff] }
 0x13d   :  { %v4206_v46 = vpop.eup %4205  ;;  %4231 = vrcp.f32 %v2091_v9  ;;  %v2098_v12 = vadd.f32 1.0, %v4204_v11  ;;  %v5288_v15 = vpop.f32.mrf.mxu1  ;;  %v1619_v5 = vadd.f32 %v5268_v57, %v601_v7  ;;  %v3990_v9 = vmul.f32 -1.442695, %v1675_v45 }
 0x13e   :  { %v4208_v16 = vpop.eup %4207  ;;  %4233 = vrcp.f32 %v2155_v2  ;;  %v2162_v52 = vadd.f32 1.0, %v4206_v46  ;;  %v605_v48 = vpop.f32.mrf.mxu0  ;;  %v1683_v11 = vadd.f32 %v5268_v57, %v5288_v15 }
 0x13f   :  { %v4210_v17 = vpop.eup %4209  ;;  %4235 = vrcp.f32 %v2098_v12  ;;  %v2099_v18 = vadd.f32 1.0, %v4208_v16  ;;  %v5291_v19 = vpop.f32.mrf.mxu1  ;;  %v3933_v12 = vmul.f32 -1.442695, %v1618_v47  ;;  %v1626_v16 = vadd.f32 %v5263_v56, %v605_v48  ;;  %v2610_v48 = vld [vmem:[#allocation9 + $0x480] sm:$0xff] }
 0x140   :  { %v4212_v58 = vpop.eup %4211  ;;  %4237 = vrcp.f32 %v2162_v52  ;;  %v2163_v20 = vadd.f32 1.0, %v4210_v17  ;;  %v607_v2 = vpop.f32.mrf.mxu0  ;;  %v1690_v15 = vadd.f32 %v5263_v56, %v5291_v19  ;;  %v2616_v56 = vld [vmem:[#allocation9 + $0x4b0] sm:$0xff] }
 0x141   :  { %v4214_v22 = vpop.eup %4213  ;;  %4239 = vrcp.f32 %v2099_v18  ;;  %v2106_v14 = vadd.f32 1.0, %v4212_v58  ;;  %v5295_v23 = vpop.f32.mrf.mxu1  ;;  %v3997_v18 = vmul.f32 -1.442695, %v1682_v63  ;;  %v1627_v21 = vadd.f32 %v5268_v57, %v607_v2  ;;  %v2608_v63 = vld [vmem:[#allocation9 + $0x470] sm:$0xff] }
 0x142   :  { %v4216_v24 = vpop.eup %4215  ;;  %4241 = vrcp.f32 %v2163_v20  ;;  %v2170_v25 = vadd.f32 1.0, %v4214_v22  ;;  %v3934_v20 = vmul.f32 -1.442695, %v1619_v5  ;;  %v3941_v26 = vmul.f32 -1.442695, %v1626_v16 }
 0x143   :  { %v4218_v27 = vpop.eup %4217  ;;  %4243 = vrcp.f32 %v2106_v14  ;;  %v2107_v28 = vadd.f32 1.0, %v4216_v24  ;;  %v5299_v31 = vpop.f32.mrf.mxu1  ;;  %v2617_v14 = vld [vmem:[#allocation9 + $0x4b8] sm:$0xff]  ;;  %v3998_v24 = vmul.f32 -1.442695, %v1683_v11  ;;  %v1540_v5 = vsub.s32 2, %v5254_v42 }
 0x144   :  { %v4220_v32 = vpop.eup %4219  ;;  %4245 = vrcp.f32 %v2170_v25  ;;  %v2171_v13 = vadd.f32 1.0, %v4218_v27  ;;  %v1691_v25 = vadd.f32 %v5268_v57, %v5295_v23  ;;  %v2615_v27 = vld [vmem:[#allocation9 + $0x4a8] sm:$0xff]  ;;  %v3942_v57 = vmul.f32 -1.442695, %v1627_v21 }
 0x145   :  { %v5302_v37 = vpop.eup %4221  ;;  %4247 = vrcp.f32 %v2107_v28  ;;  %v5305_v34 = vpop.f32.mrf.mxu1  ;;  %v1544_v2 = vsub.s32 3, %v5254_v42 }
 0x146   :  { %v4224_v43 = vpop.eup %4223  ;;  %4249 = vrcp.f32 %v2171_v13  ;;  %v2613_v13 = vld [vmem:[#allocation9 + $0x498] sm:$0xff]  ;;  %v4006_v36 = vmul.f32 -1.442695, %v1691_v25 }
 0x147   :  { %v5308_v51 = vpop.eup %4225  ;;  %4251 = vpow2.f32 %v3917_v29  ;;  %v5311_v60 = vpop.f32.mrf.mxu1  ;;  %2798 = vmatprep.mubr.f32.mxu0 %v4224_v43  ;;  %v4005_v29 = vmul.f32 -1.442695, %v1690_v15 }
 0x148   :  { %v4228_v62 = vpop.eup %4227  ;;  %4253 = vpow2.f32 %v3981_v35  ;;  %2799 = vmatmul.mubr.f32.vlgmr.msra.gmra.mxu0 %v4220_v32 }
 0x149   :  { %v5315_v33 = vpop.eup %4229  ;;  %4255 = vpow2.f32 %v3918_v38  ;;  %v5318_v59 = vpop.f32.mrf.mxu1  ;;  %3057 = vmatpush1.msra.mxu0 %v2624_v49  ;;  %v2612_v38 = vld [vmem:[#allocation9 + $0x490] sm:$0xff] }
 0x14a   :  { %v4232_v40 = vpop.eup %4231  ;;  %4257 = vpow2.f32 %v3982_v44  ;;  %3058 = vmatprep.subr.mxu0 %v2623_v61  ;;  %v2611_v44 = vld [vmem:[#allocation9 + $0x488] sm:$0xff]  ;;  %v2609_v61 = vld [vmem:[#allocation9 + $0x478] sm:$0xff] }
 0x14b   :  { %v5322_v46 = vpop.eup %4233  ;;  %4259 = vpow2.f32 %v3925_v55  ;;  %v5325_v52 = vpop.f32.mrf.mxu1  ;;  %2804 = vmatprep.mubr.f32.mxu0 %v4232_v40  ;;  %3059 = vmatpush1.msra.mxu0 %v2622_v3  ;;  %v2607_v40 = vld [vmem:[#allocation9 + $0x468] sm:$0xff] }
 0x14c   :  { %v4236_v17 = vpop.eup %4235  ;;  %4261 = vpow2.f32 %v3989_v53  ;;  %2805 = vmatmul.mubr.f32.gmra.mxu0 %v4228_v62  ;;  %3060 = vmatprep.subr.mxu0 %v2621_v6 }
 0x14d   :  { %v5329_v58 = vpop.eup %4237  ;;  %4263 = vpow2.f32 %v3926_v4  ;;  %v5332_v22 = vpop.f32.mrf.mxu1  ;;  %3061 = vmatpush1.msra.mxu0 %v2620_v10  ;;  %v2606_v10 = vld [vmem:[#allocation9 + $0x460] sm:$0xff] }
 0x14e   :  { %v4240_v1 = vpop.eup %4239  ;;  %4265 = vpow2.f32 %v3990_v9  ;;  %3062 = vmatprep.subr.mxu0 %v2619_v8 }
 0x14f   :  { %v5336_v19 = vpop.eup %4241  ;;  %4267 = vpow2.f32 %v3933_v12  ;;  %v5338_v7 = vpop.f32.mrf.mxu1  ;;  %2810 = vmatprep.mubr.f32.mxu0 %v4240_v1  ;;  %3063 = vmatpush1.msra.mxu0 %v2618_v0  ;;  %v2604_v0 = vld [vmem:[#allocation9 + $0x450] sm:$0xff] }
 0x150   :  { %v4244_v28 = vpop.eup %4243  ;;  %4269 = vpow2.f32 %v3997_v18  ;;  %2811 = vmatmul.mubr.f32.gmra.mxu0 %v4236_v17  ;;  %3064 = vmatprep.subr.mxu0 %v2617_v14  ;;  %v2605_v17 = vld [vmem:[#allocation9 + $0x458] sm:$0xff]  ;;  %v5357_v14 = vrot.slane %v5257_v50, %v1540_v5 }
 0x151   :  { %v5340_v32 = vpop.eup %4245  ;;  %4271 = vpow2.f32 %v3934_v20  ;;  %v5342_v23 = vpop.f32.mrf.mxu1  ;;  %3065 = vmatpush1.msra.mxu0 %v2616_v56 }
 0x152   :  { %v4248_v35 = vpop.eup %4247  ;;  %4273 = vpow2.f32 %v3998_v24  ;;  %3066 = vmatprep.subr.mxu0 %v2615_v27  ;;  %v2603_v24 = vld [vmem:[#allocation9 + $0x448] sm:$0xff]  ;;  %v2602_v27 = vld [vmem:[#allocation9 + $0x440] sm:$0xff] }
 0x153   :  { %v5344_v39 = vpop.eup %4249  ;;  %4275 = vpow2.f32 %v3941_v26  ;;  %v5346_v43 = vpop.f32.mrf.mxu1  ;;  %2816 = vmatprep.mubr.f32.mxu0 %v4248_v35  ;;  %3067 = vmatpush1.msra.mxu0 %v2614_v30  ;;  %v5362_v26 = vrot.slane %v5257_v50, %v1544_v2 }
 0x154   :  { %v4252_v45 = vpop.eup %4251  ;;  %4277 = vpow2.f32 %v4005_v29  ;;  %2817 = vmatmul.mubr.f32.gmra.mxu0 %v4244_v28  ;;  %3068 = vmatprep.subr.mxu0 %v2613_v13 }
 0x155   :  { %v4254_v49 = vpop.eup %4253  ;;  %v2114_v55 = vadd.f32 1.0, %v4252_v45  ;;  %4279 = vpow2.f32 %v3942_v57  ;;  %v5348_v47 = vpop.f32.mrf.mxu1  ;;  %3069 = vmatpush1.msra.mxu0 %v2612_v38  ;;  %v2601_v57 = vld [vmem:[#allocation9 + $0x438] sm:$0xff]  ;;  %v1572_v45 = vadd.f32 %v5357_v14, %v5299_v31 }
 0x156   :  { %v4256_v62 = vpop.eup %4255  ;;  %v2178_v53 = vadd.f32 1.0, %v4254_v49  ;;  %4281 = vpow2.f32 %v4006_v36  ;;  %3070 = vmatprep.subr.mxu0 %v2611_v44  ;;  %v2600_v36 = vld [vmem:[#allocation9 + $0x430] sm:$0xff]  ;;  %v2599_v49 = vld [vmem:[#allocation9 + $0x428] sm:$0xff]  ;;  %v2597_v31 = vld [vmem:[#allocation9 + $0x418] sm:$0xff] }
 0x157   :  { %v4258_v3 = vpop.eup %4257  ;;  %4283 = vrcp.f32 %v2114_v55  ;;  %v2115_v4 = vadd.f32 1.0, %v4256_v62  ;;  %v5351_v6 = vpop.f32.mrf.mxu1  ;;  %3071 = vmatpush1.msra.mxu0 %v2610_v48  ;;  %v1573_v62 = vadd.f32 %v5362_v26, %v5305_v34  ;;  %v2596_v34 = vld [vmem:[#allocation9 + $0x410] sm:$0xff] }
 0x158   :  { %v4260_v9 = vpop.eup %4259  ;;  %4285 = vrcp.f32 %v2178_v53  ;;  %v2179_v11 = vadd.f32 1.0, %v4258_v3  ;;  %3072 = vmatprep.subr.mxu0 %v2609_v61  ;;  %v2598_v53 = vld [vmem:[#allocation9 + $0x420] sm:$0xff] }
 0x159   :  { %v4262_v12 = vpop.eup %4261  ;;  %4287 = vrcp.f32 %v2115_v4  ;;  %v2122_v16 = vadd.f32 1.0, %v4260_v9  ;;  %v5354_v8 = vpop.f32.mrf.mxu1  ;;  %3073 = vmatpush1.msra.mxu0 %v2608_v63  ;;  %v1580_v4 = vadd.f32 %v5357_v14, %v5311_v60 }
 0x15a   :  { %v4264_v18 = vpop.eup %4263  ;;  %4289 = vrcp.f32 %v2179_v11  ;;  %v2186_v15 = vadd.f32 1.0, %v4262_v12  ;;  %3074 = vmatprep.subr.mxu0 %v2607_v40  ;;  %v1581_v11 = vadd.f32 %v5362_v26, %v5318_v59  ;;  %v3887_v12 = vmul.f32 -1.442695, %v1572_v45  ;;  %v2654_v45 = vld [vmem:[#allocation9 + $0x5e0] sm:$0xff] }
 0x15b   :  { %v4266_v20 = vpop.eup %4265  ;;  %4291 = vrcp.f32 %v2122_v16  ;;  %v2123_v21 = vadd.f32 1.0, %v4264_v18  ;;  %v5359_v1 = vpop.f32.mrf.mxu1  ;;  %3075 = vmatpush1.msra.mxu0 %v2606_v10  ;;  %v1588_v16 = vadd.f32 %v5357_v14, %v5325_v52  ;;  %v1589_v59 = vadd.f32 %v5362_v26, %v5332_v22  ;;  %v2656_v22 = vld [vmem:[#allocation9 + $0x5f0] sm:$0xff] }
 0x15c   :  { %v4268_v25 = vpop.eup %4267  ;;  %4293 = vrcp.f32 %v2186_v15  ;;  %v2187_v56 = vadd.f32 1.0, %v4266_v20  ;;  %3076 = vmatprep.subr.mxu0 %v2605_v17  ;;  %v2595_v17 = vld [vmem:[#allocation9 + $0x408] sm:$0xff]  ;;  %v2594_v20 = vld [vmem:[#allocation9 + $0x400] sm:$0xff]  ;;  %v1596_v52 = vadd.f32 %v5357_v14, %v5338_v7 }
 0x15d   :  { %v4270_v28 = vpop.eup %4269  ;;  %4295 = vrcp.f32 %v2123_v21  ;;  %v2130_v29 = vadd.f32 1.0, %v4268_v25  ;;  %v5364_v30 = vpop.f32.mrf.mxu1  ;;  %3077 = vmatpush1.msra.mxu0 %v2604_v0  ;;  %v3888_v0 = vmul.f32 -1.442695, %v1573_v62  ;;  %v2653_v62 = vld [vmem:[#allocation9 + $0x5d8] sm:$0xff] }
 0x15e   :  { %v4272_v13 = vpop.eup %4271  ;;  %4297 = vrcp.f32 %v2187_v56  ;;  %v2194_v35 = vadd.f32 1.0, %v4270_v28  ;;  %3078 = vmatprep.subr.mxu0 %v2603_v24  ;;  %v3895_v24 = vmul.f32 -1.442695, %v1580_v4  ;;  %v2657_v56 = vld [vmem:[#allocation9 + $0x5f8] sm:$0xff]  ;;  %v3896_v28 = vmul.f32 -1.442695, %v1581_v11 }
 0x15f   :  { %v4274_v38 = vpop.eup %4273  ;;  %4299 = vrcp.f32 %v2130_v29  ;;  %v2131_v44 = vadd.f32 1.0, %v4272_v13  ;;  %v5368_v48 = vpop.f32.mrf.mxu1  ;;  %3079 = vmatpush1.msra.mxu0 %v2602_v27  ;;  %v1597_v29 = vadd.f32 %v5362_v26, %v5342_v23  ;;  %v3903_v13 = vmul.f32 -1.442695, %v1588_v16 }
 0x160   :  { %v4276_v55 = vpop.eup %4275  ;;  %4301 = vrcp.f32 %v2194_v35  ;;  %v2195_v61 = vadd.f32 1.0, %v4274_v38  ;;  %3080 = vmatprep.subr.mxu0 %v2601_v57  ;;  %v1604_v35 = vadd.f32 %v5357_v14, %v5346_v43  ;;  %v1605_v23 = vadd.f32 %v5362_v26, %v5348_v47 }
 0x161   :  { %v4278_v63 = vpop.eup %4277  ;;  %4303 = vrcp.f32 %v2131_v44  ;;  %v2138_v3 = vadd.f32 1.0, %v4276_v55  ;;  %v5374_v5 = vpop.f32.mrf.mxu1  ;;  %3081 = vmatpush1.msra.mxu0 %v2600_v36  ;;  %v2655_v36 = vld [vmem:[#allocation9 + $0x5e8] sm:$0xff]  ;;  %v3904_v44 = vmul.f32 -1.442695, %v1589_v59  ;;  %v3911_v55 = vmul.f32 -1.442695, %v1596_v52 }
 0x162   :  { %v4280_v40 = vpop.eup %4279  ;;  %4305 = vrcp.f32 %v2195_v61  ;;  %v2202_v9 = vadd.f32 1.0, %v4278_v63  ;;  %3082 = vmatprep.subr.mxu0 %v2599_v49  ;;  %v1612_v43 = vadd.f32 %v5357_v14, %v5351_v6  ;;  %v3912_v63 = vmul.f32 -1.442695, %v1597_v29  ;;  %v2648_v59 = vld [vmem:[#allocation9 + $0x5b0] sm:$0xff]  ;;  %v2647_v52 = vld [vmem:[#allocation9 + $0x5a8] sm:$0xff] }
 0x163   :  { %v4282_v2 = vpop.eup %4281  ;;  %4307 = vrcp.f32 %v2138_v3  ;;  %v2139_v10 = vadd.f32 1.0, %v4280_v40  ;;  %v5380_v60 = vpop.f32.mrf.mxu1  ;;  %3083 = vmatpush1.msra.mxu0 %v2598_v53  ;;  %v1613_v47 = vadd.f32 %v5362_v26, %v5354_v8  ;;  %v2652_v3 = vld [vmem:[#allocation9 + $0x5d0] sm:$0xff]  ;;  %v1620_v40 = vadd.f32 %v5357_v14, %v5359_v1 }
 0x164   :  { %v4284_v18 = vpop.eup %4283  ;;  %4309 = vrcp.f32 %v2202_v9  ;;  %v2203_v15 = vadd.f32 1.0, %v4282_v2  ;;  %3084 = vmatprep.subr.mxu0 %v2597_v31  ;;  %v3919_v31 = vmul.f32 -1.442695, %v1604_v35  ;;  %v2651_v9 = vld [vmem:[#allocation9 + $0x5c8] sm:$0xff]  ;;  %v1621_v8 = vadd.f32 %v5362_v26, %v5364_v30  ;;  %v2650_v2 = vld [vmem:[#allocation9 + $0x5c0] sm:$0xff] }
 0x165   :  { %v5384_v21 = vpop.eup %4285  ;;  %4311 = vrcp.f32 %v2139_v10  ;;  %v5388_v25 = vpop.f32.mrf.mxu1  ;;  %3085 = vmatpush1.msra.mxu0 %v2596_v34  ;;  %v3920_v34 = vmul.f32 -1.442695, %v1605_v23  ;;  %v1628_v1 = vadd.f32 %v5357_v14, %v5368_v48  ;;  %v1629_v30 = vadd.f32 %v5362_v26, %v5374_v5 }
 0x166   :  { %v4288_v27 = vpop.eup %4287  ;;  %4313 = vrcp.f32 %v2203_v15  ;;  %3086 = vmatprep.subr.mxu0 %v2595_v17  ;;  %v2649_v17 = vld [vmem:[#allocation9 + $0x5b8] sm:$0xff]  ;;  %v3928_v15 = vmul.f32 -1.442695, %v1613_v47 }
 0x167   :  { %v5392_v57 = vpop.eup %4289  ;;  %4315 = vpow2.f32 %v3887_v12  ;;  %2822 = vmatprep.mubr.f32.mxu0 %v4288_v27  ;;  %v5396_v7 = vpop.f32.mrf.mxu1  ;;  %3087 = vmatpush1.msra.mxu0 %v2594_v20  ;;  %v3927_v12 = vmul.f32 -1.442695, %v1612_v43  ;;  %v3936_v27 = vmul.f32 -1.442695, %v1621_v8  ;;  %v3943_v29 = vmul.f32 -1.442695, %v1628_v1 }
 0x168   :  { %v4292_v38 = vpop.eup %4291  ;;  %4317 = vpow2.f32 %v3888_v0  ;;  %2823 = vmatmul.mubr.f32.gmra.mxu0 %v4284_v18  ;;  %3088 = vmatprep.subr.mxu0 %v2657_v56  ;;  %v5424_v0 = vpop.f32.mrf.mxu0  ;;  %v2641_v47 = vld [vmem:[#allocation9 + $0x578] sm:$0xff]  ;;  %v2639_v8 = vld [vmem:[#allocation9 + $0x568] sm:$0xff]  ;;  %v1548_v1 = vsub.s32 4, %v5254_v42 }
 0x169   :  { %v5400_v49 = vpop.eup %4293  ;;  %4319 = vpow2.f32 %v3895_v24  ;;  %v5404_v61 = vpop.f32.mrf.mxu1  ;;  %3089 = vmatpush2.msra.mxu0 %v2656_v22  ;;  %v3935_v24 = vmul.f32 -1.442695, %v1620_v40 }
 0x16a   :  { %v4296_v53 = vpop.eup %4295  ;;  %4321 = vpow2.f32 %v3896_v28  ;;  %3090 = vmatprep.subr.mxu0 %v2655_v36  ;;  %v2646_v28 = vld [vmem:[#allocation9 + $0x5a0] sm:$0xff]  ;;  %v3944_v36 = vmul.f32 -1.442695, %v1629_v30  ;;  %v2637_v30 = vld [vmem:[#allocation9 + $0x558] sm:$0xff] }
 0x16b   :  { %v5408_v4 = vpop.eup %4297  ;;  %4323 = vpow2.f32 %v3903_v13  ;;  %2828 = vmatprep.mubr.f32.mxu0 %v4296_v53  ;;  %v5412_v6 = vpop.f32.mrf.mxu1  ;;  %3091 = vmatpush2.msra.mxu0 %v2654_v45  ;;  %v2645_v13 = vld [vmem:[#allocation9 + $0x598] sm:$0xff]  ;;  %v2643_v45 = vld [vmem:[#allocation9 + $0x588] sm:$0xff] }
 0x16c   :  { %v4300_v11 = vpop.eup %4299  ;;  %4325 = vpow2.f32 %v3904_v44  ;;  %2829 = vmatmul.mubr.f32.gmra.mxu0 %v4292_v38  ;;  %3092 = vmatprep.subr.mxu0 %v2653_v62  ;;  %v5434_v38 = vpop.f32.mrf.mxu0  ;;  %v2644_v44 = vld [vmem:[#allocation9 + $0x590] sm:$0xff]  ;;  %v2642_v62 = vld [vmem:[#allocation9 + $0x580] sm:$0xff] }
 0x16d   :  { %v5416_v10 = vpop.eup %4301  ;;  %4327 = vpow2.f32 %v3911_v55  ;;  %v5420_v16 = vpop.f32.mrf.mxu1  ;;  %3093 = vmatpush2.msra.mxu0 %v2652_v3 }
 0x16e   :  { %v4304_v18 = vpop.eup %4303  ;;  %4329 = vpow2.f32 %v3912_v63  ;;  %3094 = vmatprep.subr.mxu0 %v2651_v9  ;;  %v5441_v40 = vpop.f32.mrf.mxu0  ;;  %v2640_v9 = vld [vmem:[#allocation9 + $0x570] sm:$0xff] }
 0x16f   :  { %v5426_v20 = vpop.eup %4305  ;;  %4331 = vpow2.f32 %v3919_v31  ;;  %2834 = vmatprep.mubr.f32.mxu0 %v4304_v18  ;;  %v5428_v48 = vpop.f32.mrf.mxu1  ;;  %3095 = vmatpush2.msra.mxu0 %v2650_v2 }
 0x170   :  { %v4308_v56 = vpop.eup %4307  ;;  %4333 = vpow2.f32 %v3920_v34  ;;  %2835 = vmatmul.mubr.f32.gmra.mxu0 %v4300_v11  ;;  %3096 = vmatprep.subr.mxu0 %v2649_v17  ;;  %v2638_v17 = vld [vmem:[#allocation9 + $0x560] sm:$0xff] }
 0x171   :  { %v5430_v5 = vpop.eup %4309  ;;  %4335 = vpow2.f32 %v3927_v12  ;;  %v5432_v22 = vpop.f32.mrf.mxu1  ;;  %3097 = vmatpush2.msra.mxu0 %v2648_v59 }
 0x172   :  { %v4312_v35 = vpop.eup %4311  ;;  %4337 = vpow2.f32 %v3928_v15  ;;  %3098 = vmatprep.subr.mxu0 %v2647_v52  ;;  %v1552_v52 = vsub.s32 5, %v5254_v42 }
 0x173   :  { %v5436_v23 = vpop.eup %4313  ;;  %4339 = vpow2.f32 %v3935_v24  ;;  %2840 = vmatprep.mubr.f32.mxu0 %v4312_v35  ;;  %3099 = vmatpush2.msra.mxu0 %v2646_v28  ;;  %v5438_v43 = vpop.f32.mrf.mxu1 }
 0x174   :  { %v4316_v55 = vpop.eup %4315  ;;  %4341 = vpow2.f32 %v3936_v27  ;;  %2841 = vmatmul.mubr.f32.gmra.mxu0 %v4308_v56  ;;  %3100 = vmatprep.subr.mxu0 %v2645_v13  ;;  %v5449_v56 = vpop.f32.mrf.mxu0 }
 0x175   :  { %v4318_v53 = vpop.eup %4317  ;;  %v2084_v63 = vadd.f32 1.0, %v4316_v55  ;;  %4343 = vpow2.f32 %v3943_v29  ;;  %2846 = vmatprep.mubr.f32.mxu0 %v5308_v51  ;;  %3101 = vmatpush2.msra.mxu0 %v2644_v44  ;;  %v5445_v51 = vpop.f32.mrf.mxu1  ;;  %v2635_v29 = vld [vmem:[#allocation9 + $0x548] sm:$0xff]  ;;  %v2634_v44 = vld [vmem:[#allocation9 + $0x540] sm:$0xff] }
 0x176   :  { %v4320_v3 = vpop.eup %4319  ;;  %v2085_v31 = vadd.f32 1.0, %v4318_v53  ;;  %4345 = vpow2.f32 %v3944_v36  ;;  %3102 = vmatprep.subr.mxu0 %v2643_v45 }
 0x177   :  { %v4322_v11 = vpop.eup %4321  ;;  %4347 = vrcp.f32 %v2084_v63  ;;  %v2092_v34 = vadd.f32 1.0, %v4320_v3  ;;  %3103 = vmatpush2.msra.mxu0 %v2642_v62  ;;  %v5455_v36 = vpop.f32.mrf.mxu1  ;;  %v2633_v62 = vld [vmem:[#allocation9 + $0x538] sm:$0xff]  ;;  %v2632_v3 = vld [vmem:[#allocation9 + $0x530] sm:$0xff] }
 0x178   :  { %v4324_v2 = vpop.eup %4323  ;;  %4349 = vrcp.f32 %v2085_v31  ;;  %v2093_v12 = vadd.f32 1.0, %v4322_v11  ;;  %2847 = vmatmul.mubr.f32.gmra.mxu0 %v5302_v37  ;;  %3104 = vmatprep.subr.mxu0 %v2641_v47  ;;  %v2636_v37 = vld [vmem:[#allocation9 + $0x550] sm:$0xff]  ;;  %v5458_v47 = vld [vmem:[#allocation8] sm:$0xff]  ;;  %v2631_v11 = vld [vmem:[#allocation9 + $0x528] sm:$0xff] }
 0x179   :  { %v4326_v18 = vpop.eup %4325  ;;  %4351 = vrcp.f32 %v2092_v34  ;;  %v2100_v15 = vadd.f32 1.0, %v4324_v2  ;;  %2852 = vmatprep.mubr.f32.mxu0 %v5322_v46  ;;  %3105 = vmatpush2.msra.mxu0 %v2640_v9  ;;  %v5452_v46 = vrot.slane %v5257_v50, %v1548_v1  ;;  %v5461_v50 = vrot.slane %v5458_v47, %v1552_v52  ;;  %v2630_v1 = vld [vmem:[#allocation9 + $0x520] sm:$0xff] }
 0x17a   :  { %v4328_v59 = vpop.eup %4327  ;;  %4353 = vrcp.f32 %v2093_v12  ;;  %v2101_v24 = vadd.f32 1.0, %v4326_v18  ;;  %3106 = vmatprep.subr.mxu0 %v2639_v8  ;;  %v5470_v12 = vpop.f32.mrf.mxu1 }
 0x17b   :  { %v4330_v27 = vpop.eup %4329  ;;  %4355 = vrcp.f32 %v2100_v15  ;;  %v2108_v28 = vadd.f32 1.0, %v4328_v59  ;;  %3107 = vmatpush2.msra.mxu0 %v2638_v17  ;;  %v1574_v2 = vadd.f32 %v5452_v46, %v5424_v0  ;;  %v2629_v15 = vld [vmem:[#allocation9 + $0x518] sm:$0xff] }
 0x17c   :  { %v4332_v13 = vpop.eup %4331  ;;  %4357 = vrcp.f32 %v2101_v24  ;;  %v2109_v35 = vadd.f32 1.0, %v4330_v27  ;;  %2853 = vmatmul.mubr.f32.gmra.mxu0 %v5315_v33  ;;  %3108 = vmatprep.subr.mxu0 %v2637_v30  ;;  %v5463_v33 = vpop.f32.mrf.mxu0  ;;  %v2628_v24 = vld [vmem:[#allocation9 + $0x510] sm:$0xff] }
 0x17d   :  { %v4334_v45 = vpop.eup %4333  ;;  %4359 = vrcp.f32 %v2108_v28  ;;  %v2116_v55 = vadd.f32 1.0, %v4332_v13  ;;  %2858 = vmatprep.mubr.f32.mxu0 %v5336_v19  ;;  %3109 = vmatpush2.msra.mxu0 %v2636_v37  ;;  %v1636_v19 = vadd.f32 %v5357_v14, %v5380_v60  ;;  %v1637_v60 = vadd.f32 %v5362_v26, %v5388_v25 }
 0x17e   :  { %v4336_v53 = vpop.eup %4335  ;;  %4361 = vrcp.f32 %v2109_v35  ;;  %v2117_v63 = vadd.f32 1.0, %v4334_v45  ;;  %3110 = vmatprep.subr.mxu0 %v2635_v29  ;;  %v899_v0 = vpop.f32.mrf.mxu0  ;;  %v1644_v25 = vadd.f32 %v5357_v14, %v5396_v7  ;;  %v3889_v13 = vmul.f32 -1.442695, %v1574_v2 }
 0x17f   :  { %v4338_v31 = vpop.eup %4337  ;;  %4363 = vrcp.f32 %v2116_v55  ;;  %v2124_v9 = vadd.f32 1.0, %v4336_v53  ;;  %3111 = vmatpush2.msra.mxu0 %v2634_v44  ;;  %v3951_v27 = vmul.f32 -1.442695, %v1636_v19  ;;  %v1582_v35 = vadd.f32 %v5452_v46, %v5441_v40  ;;  %v2626_v44 = vld [vmem:[#allocation9 + $0x500] sm:$0xff]  ;;  %v2687_v40 = vld [vmem:[#allocation9 + $0x6e8] sm:$0xff] }
 0x180   :  { %v4340_v34 = vpop.eup %4339  ;;  %4365 = vrcp.f32 %v2117_v63  ;;  %v2125_v8 = vadd.f32 1.0, %v4338_v31  ;;  %2859 = vmatmul.mubr.f32.gmra.mxu0 %v5329_v58  ;;  %3112 = vmatprep.subr.mxu0 %v2633_v62  ;;  %v1575_v58 = vadd.f32 %v5461_v50, %v5434_v38  ;;  %v5482_v38 = vpop.f32.mrf.mxu1  ;;  %v3952_v55 = vmul.f32 -1.442695, %v1637_v60  ;;  %v2688_v62 = vld [vmem:[#allocation9 + $0x6f0] sm:$0xff]  ;;  %v2686_v19 = vld [vmem:[#allocation9 + $0x6e0] sm:$0xff] }
 0x181   :  { %v4342_v17 = vpop.eup %4341  ;;  %4367 = vrcp.f32 %v2124_v9  ;;  %v2132_v18 = vadd.f32 1.0, %v4340_v34  ;;  %2864 = vmatprep.mubr.f32.mxu0 %v5344_v39  ;;  %3113 = vmatpush2.msra.mxu0 %v2632_v3  ;;  %v2627_v39 = vld [vmem:[#allocation9 + $0x508] sm:$0xff]  ;;  %v1645_v7 = vadd.f32 %v5362_v26, %v5404_v61  ;;  %v903_v3 = vpop.f32.mrf.mxu0  ;;  %v3959_v9 = vmul.f32 -1.442695, %v1644_v25 }
 0x182   :  { %v4344_v30 = vpop.eup %4343  ;;  %4369 = vrcp.f32 %v2125_v8  ;;  %v2133_v59 = vadd.f32 1.0, %v4342_v17  ;;  %3114 = vmatprep.subr.mxu0 %v2631_v11  ;;  %v3890_v63 = vmul.f32 -1.442695, %v1575_v58  ;;  %v1652_v61 = vadd.f32 %v5357_v14, %v5412_v6  ;;  %v5493_v8 = vpop.f32.mrf.mxu1  ;;  %v2684_v17 = vld [vmem:[#allocation9 + $0x6d0] sm:$0xff] }
 0x183   :  { %v4346_v52 = vpop.eup %4345  ;;  %4371 = vrcp.f32 %v2132_v18  ;;  %v2140_v37 = vadd.f32 1.0, %v4344_v30  ;;  %3115 = vmatpush2.msra.mxu0 %v2630_v1  ;;  %v3897_v11 = vmul.f32 -1.442695, %v1582_v35  ;;  %v1590_v34 = vadd.f32 %v5452_v46, %v5463_v33  ;;  %v905_v30 = vpop.f32.mrf.mxu0 }
 0x184   :  { %v4348_v28 = vpop.eup %4347  ;;  %4373 = vrcp.f32 %v2133_v59  ;;  %v2141_v29 = vadd.f32 1.0, %v4346_v52  ;;  %2865 = vmatmul.mubr.f32.gmra.mxu0 %v5340_v32  ;;  %3116 = vmatprep.subr.mxu0 %v2629_v15  ;;  %v1583_v32 = vadd.f32 %v5461_v50, %v5449_v56  ;;  %v2685_v56 = vld [vmem:[#allocation9 + $0x6d8] sm:$0xff]  ;;  %v3960_v1 = vmul.f32 -1.442695, %v1645_v7  ;;  %v2683_v15 = vld [vmem:[#allocation9 + $0x6c8] sm:$0xff] }
 0x185   :  { %v4350_v45 = vpop.eup %4349  ;;  %4375 = vrcp.f32 %v2140_v37  ;;  %2870 = vmatprep.mubr.f32.mxu0 %v5392_v57  ;;  %3117 = vmatpush2.msra.mxu0 %v2628_v24  ;;  %v1653_v6 = vadd.f32 %v5362_v26, %v5420_v16  ;;  %v1591_v33 = vadd.f32 %v5461_v50, %v899_v0  ;;  %v3967_v58 = vmul.f32 -1.442695, %v1652_v61  ;;  %v2681_v37 = vld [vmem:[#allocation9 + $0x6b8] sm:$0xff]  ;;  %v5515_v35 = vpop.f32.mrf.mxu0 }
 0x186   :  { %v4352_v53 = vpop.eup %4351  ;;  %4377 = vrcp.f32 %v2141_v29  ;;  %2959 = vmatprep.mubr.f32.mxu1 %v4350_v45  ;;  %3118 = vmatprep.subr.mxu0 %v2627_v39  ;;  %v3898_v60 = vmul.f32 -1.442695, %v1583_v32  ;;  %v1660_v16 = vadd.f32 %v5357_v14, %v5428_v48  ;;  %v3905_v52 = vmul.f32 -1.442695, %v1590_v34  ;;  %v2680_v48 = vld [vmem:[#allocation9 + $0x6b0] sm:$0xff] }
 0x187   :  { %v4354_v31 = vpop.eup %4353  ;;  %4379 = vpow2.f32 %v3951_v27  ;;  %2960 = vmatmul.mubr.f32.vlgmr.msra.gmra.mxu1 %v4348_v28  ;;  %3119 = vmatpush2.msra.mxu0 %v2626_v44  ;;  %v1598_v0 = vadd.f32 %v5452_v46, %v903_v3  ;;  %v5507_v27 = vpop.f32.mrf.mxu1  ;;  %v3968_v25 = vmul.f32 -1.442695, %v1653_v6  ;;  %v1661_v39 = vadd.f32 %v5362_v26, %v5432_v22  ;;  %v2679_v44 = vld [vmem:[#allocation9 + $0x6a8] sm:$0xff]  ;;  %v2678_v22 = vld [vmem:[#allocation9 + $0x6a0] sm:$0xff] }
 0x188   :  { %v4356_v57 = vpop.eup %4355  ;;  %4381 = vpow2.f32 %v3889_v13  ;;  %3218 = vmatpush1.msra.mxu1 %v2688_v62  ;;  %2965 = vmatprep.mubr.f32.mxu1 %v4354_v31  ;;  %v3906_v29 = vmul.f32 -1.442695, %v1591_v33  ;;  %v1599_v13 = vadd.f32 %v5461_v50, %v905_v30  ;;  %v2677_v62 = vld [vmem:[#allocation9 + $0x698] sm:$0xff]  ;;  %v5527_v31 = vpop.f32.mrf.mxu0  ;;  %v2670_v33 = vld [vmem:[#allocation9 + $0x660] sm:$0xff] }
 0x189   :  { %v4358_v2 = vpop.eup %4357  ;;  %4383 = vpow2.f32 %v3952_v55  ;;  %3219 = vmatprep.subr.mxu1 %v2687_v40  ;;  %2871 = vmatmul.mubr.f32.gmra.mxu0 %v5384_v21  ;;  %v2682_v21 = vld [vmem:[#allocation9 + $0x6c0] sm:$0xff]  ;;  %v3975_v55 = vmul.f32 -1.442695, %v1660_v16  ;;  %v3976_v32 = vmul.f32 -1.442695, %v1661_v39 }
 0x18a   :  { %v5498_v18 = vpop.eup %4359  ;;  %4385 = vpow2.f32 %v3890_v63  ;;  %3220 = vmatpush1.msra.mxu1 %v2686_v19  ;;  %2876 = vmatprep.mubr.f32.mxu0 %v5408_v4  ;;  %v3914_v3 = vmul.f32 -1.442695, %v1599_v13  ;;  %v2674_v19 = vld [vmem:[#allocation9 + $0x680] sm:$0xff]  ;;  %v5536_v6 = vpop.f32.mrf.mxu0  ;;  %v2665_v13 = vld [vmem:[#allocation9 + $0x638] sm:$0xff] }
 0x18b   :  { %v4362_v59 = vpop.eup %4361  ;;  %4387 = vpow2.f32 %v3959_v9  ;;  %2966 = vmatmul.mubr.f32.gmra.mxu1 %v4352_v53  ;;  %3221 = vmatprep.subr.mxu1 %v2685_v56  ;;  %v5520_v53 = vpop.f32.mrf.mxu1  ;;  %v2675_v9 = vld [vmem:[#allocation9 + $0x688] sm:$0xff]  ;;  %v2666_v39 = vld [vmem:[#allocation9 + $0x640] sm:$0xff] }
 0x18c   :  { %v5504_v24 = vpop.eup %4363  ;;  %4389 = vpow2.f32 %v3897_v11  ;;  %3222 = vmatpush1.msra.mxu1 %v2684_v17  ;;  %2971 = vmatprep.mubr.f32.mxu1 %v4358_v2  ;;  %v2672_v2 = vld [vmem:[#allocation9 + $0x670] sm:$0xff]  ;;  %v2671_v17 = vld [vmem:[#allocation9 + $0x668] sm:$0xff] }
 0x18d   :  { %v4366_v4 = vpop.eup %4365  ;;  %4391 = vpow2.f32 %v3960_v1  ;;  %3223 = vmatprep.subr.mxu1 %v2683_v15  ;;  %2877 = vmatmul.mubr.f32.gmra.mxu0 %v5400_v49  ;;  %v3913_v49 = vmul.f32 -1.442695, %v1598_v0  ;;  %v5533_v11 = vpop.f32.mrf.mxu1 }
 0x18e   :  { %v5512_v28 = vpop.eup %4367  ;;  %4393 = vpow2.f32 %v3898_v60  ;;  %3224 = vmatpush1.msra.mxu1 %v2682_v21  ;;  %2882 = vmatprep.mubr.f32.mxu0 %v5426_v20  ;;  %v2676_v20 = vld [vmem:[#allocation9 + $0x690] sm:$0xff] }
 0x18f   :  { %v4370_v45 = vpop.eup %4369  ;;  %4395 = vpow2.f32 %v3967_v58  ;;  %2972 = vmatmul.mubr.f32.gmra.mxu1 %v4356_v57  ;;  %3225 = vmatprep.subr.mxu1 %v2681_v37  ;;  %v2668_v21 = vld [vmem:[#allocation9 + $0x650] sm:$0xff]  ;;  %v5541_v37 = vpop.f32.mrf.mxu0 }
 0x190   :  { %v5518_v7 = vpop.eup %4371  ;;  %4397 = vpow2.f32 %v3905_v52  ;;  %3226 = vmatpush1.msra.mxu1 %v2680_v48  ;;  %2977 = vmatprep.mubr.f32.mxu1 %v4362_v59  ;;  %v5539_v59 = vpop.f32.mrf.mxu1 }
 0x191   :  { %v5522_v63 = vpop.eup %4373  ;;  %4399 = vpow2.f32 %v3968_v25  ;;  %3227 = vmatprep.subr.mxu1 %v2679_v44  ;;  %2883 = vmatmul.mubr.f32.gmra.mxu0 %v5416_v10  ;;  %v2673_v10 = vld [vmem:[#allocation9 + $0x678] sm:$0xff] }
 0x192   :  { %v5525_v40 = vpop.eup %4375  ;;  %4401 = vpow2.f32 %v3906_v29  ;;  %3228 = vmatpush1.msra.mxu1 %v2678_v22  ;;  %2888 = vmatprep.mubr.f32.mxu0 %v5436_v23  ;;  %v5545_v44 = vpop.f32.mrf.mxu1  ;;  %v2664_v22 = vld [vmem:[#allocation9 + $0x630] sm:$0xff] }
 0x193   :  { %v5530_v61 = vpop.eup %4377  ;;  %4403 = vpow2.f32 %v3975_v55  ;;  %2978 = vmatmul.mubr.f32.gmra.mxu1 %v5498_v18  ;;  %3229 = vmatprep.subr.mxu1 %v2677_v62 }
 0x194   :  { %v4380_v57 = vpop.eup %4379  ;;  %4405 = vpow2.f32 %v3913_v49  ;;  %3230 = vmatpush1.msra.mxu1 %v2676_v20  ;;  %2983 = vmatprep.mubr.f32.mxu1 %v4366_v4 }
 0x195   :  { %v4382_v34 = vpop.eup %4381  ;;  %v2148_v56 = vadd.f32 1.0, %v4380_v57  ;;  %4407 = vpow2.f32 %v3976_v32  ;;  %3231 = vmatprep.subr.mxu1 %v2675_v9  ;;  %2889 = vmatmul.mubr.f32.gmra.mxu0 %v5430_v5  ;;  %v2669_v5 = vld [vmem:[#allocation9 + $0x658] sm:$0xff]  ;;  %v2663_v32 = vld [vmem:[#allocation9 + $0x628] sm:$0xff]  ;;  %v2662_v9 = vld [vmem:[#allocation9 + $0x620] sm:$0xff] }
 0x196   :  { %v4384_v23 = vpop.eup %4383  ;;  %v2086_v1 = vadd.f32 1.0, %v4382_v34  ;;  %4409 = vpow2.f32 %v3914_v3  ;;  %3232 = vmatpush1.msra.mxu1 %v2674_v19  ;;  %v2661_v34 = vld [vmem:[#allocation9 + $0x618] sm:$0xff] }
 0x197   :  { %v4386_v18 = vpop.eup %4385  ;;  %4411 = vrcp.f32 %v2148_v56  ;;  %v2149_v60 = vadd.f32 1.0, %v4384_v23  ;;  %2984 = vmatmul.mubr.f32.gmra.mxu1 %v5504_v24  ;;  %3233 = vmatprep.subr.mxu1 %v2673_v10  ;;  %v2667_v24 = vld [vmem:[#allocation9 + $0x648] sm:$0xff]  ;;  %v1606_v10 = vadd.f32 %v5452_v46, %v5515_v35  ;;  %v5555_v56 = vpop.f32.mrf.mxu1  ;;  %v1607_v35 = vadd.f32 %v5461_v50, %v5527_v31 }
 0x198   :  { %v4388_v15 = vpop.eup %4387  ;;  %4413 = vrcp.f32 %v2086_v1  ;;  %v2087_v30 = vadd.f32 1.0, %v4386_v18  ;;  %3234 = vmatpush1.msra.mxu1 %v2672_v2  ;;  %2989 = vmatprep.mubr.f32.mxu1 %v4370_v45  ;;  %v1614_v31 = vadd.f32 %v5452_v46, %v5536_v6  ;;  %v2720_v6 = vld [vmem:[#allocation9 + $0x7f0] sm:$0xff] }
 0x199   :  { %v4390_v58 = vpop.eup %4389  ;;  %4415 = vrcp.f32 %v2149_v60  ;;  %v2156_v16 = vadd.f32 1.0, %v4388_v15  ;;  %3235 = vmatprep.subr.mxu1 %v2671_v17 }
 0x19a   :  { %v4392_v52 = vpop.eup %4391  ;;  %4417 = vrcp.f32 %v2087_v30  ;;  %v2094_v0 = vadd.f32 1.0, %v4390_v58  ;;  %3236 = vmatpush1.msra.mxu1 %v2670_v33  ;;  %v1676_v30 = vadd.f32 %v5357_v14, %v5455_v36  ;;  %v1677_v36 = vadd.f32 %v5362_v26, %v5470_v12 }
 0x19b   :  { %v4394_v4 = vpop.eup %4393  ;;  %4419 = vrcp.f32 %v2156_v16  ;;  %v2157_v25 = vadd.f32 1.0, %v4392_v52  ;;  %2990 = vmatmul.mubr.f32.gmra.mxu1 %v5512_v28  ;;  %3237 = vmatprep.subr.mxu1 %v2669_v5  ;;  %v5547_v28 = vpop.f32.mrf.mxu0  ;;  %v3921_v16 = vmul.f32 -1.442695, %v1606_v10  ;;  %v1692_v10 = vadd.f32 %v5357_v14, %v5507_v27 }
 0x19c   :  { %v4396_v48 = vpop.eup %4395  ;;  %4421 = vrcp.f32 %v2094_v0  ;;  %v2095_v29 = vadd.f32 1.0, %v4394_v4  ;;  %3238 = vmatpush1.msra.mxu1 %v2668_v21  ;;  %2995 = vmatprep.mubr.f32.mxu1 %v5522_v63  ;;  %v1668_v63 = vadd.f32 %v5357_v14, %v5438_v43  ;;  %v1669_v43 = vadd.f32 %v5362_v26, %v5445_v51  ;;  %v2658_v51 = vld [vmem:[#allocation9 + $0x600] sm:$0xff]  ;;  %v2721_v21 = vld [vmem:[#allocation9 + $0x7f8] sm:$0xff]  ;;  %v5566_v52 = vpop.f32.mrf.mxu1 }
 0x19d   :  { %v4398_v45 = vpop.eup %4397  ;;  %4423 = vrcp.f32 %v2157_v25  ;;  %v2164_v55 = vadd.f32 1.0, %v4396_v48  ;;  %3239 = vmatprep.subr.mxu1 %v2667_v24  ;;  %v923_v18 = vpop.f32.mrf.mxu0  ;;  %v3922_v4 = vmul.f32 -1.442695, %v1607_v35  ;;  %v1615_v25 = vadd.f32 %v5461_v50, %v5541_v37  ;;  %v2718_v37 = vld [vmem:[#allocation9 + $0x7e0] sm:$0xff] }
 0x19e   :  { %v4400_v49 = vpop.eup %4399  ;;  %4425 = vrcp.f32 %v2095_v29  ;;  %v2102_v62 = vadd.f32 1.0, %v4398_v45  ;;  %3240 = vmatpush1.msra.mxu1 %v2666_v39  ;;  %v3983_v15 = vmul.f32 -1.442695, %v1668_v63  ;;  %v3984_v24 = vmul.f32 -1.442695, %v1669_v43  ;;  %v2719_v45 = vld [vmem:[#allocation9 + $0x7e8] sm:$0xff] }
 0x19f   :  { %v4402_v20 = vpop.eup %4401  ;;  %4427 = vrcp.f32 %v2164_v55  ;;  %v2165_v3 = vadd.f32 1.0, %v4400_v49  ;;  %2996 = vmatmul.mubr.f32.gmra.mxu1 %v5518_v7  ;;  %3241 = vmatprep.subr.mxu1 %v2665_v13  ;;  %v2660_v7 = vld [vmem:[#allocation9 + $0x610] sm:$0xff]  ;;  %v927_v39 = vpop.f32.mrf.mxu0  ;;  %v3991_v29 = vmul.f32 -1.442695, %v1676_v30  ;;  %v1684_v13 = vadd.f32 %v5357_v14, %v5482_v38  ;;  %v2714_v14 = vld [vmem:[#allocation9 + $0x7c0] sm:$0xff]  ;;  %v2713_v30 = vld [vmem:[#allocation9 + $0x7b8] sm:$0xff] }
 0x1a0   :  { %v4404_v19 = vpop.eup %4403  ;;  %4429 = vrcp.f32 %v2102_v62  ;;  %v2103_v57 = vadd.f32 1.0, %v4402_v20  ;;  %3242 = vmatpush1.msra.mxu1 %v2664_v22  ;;  %3001 = vmatprep.mubr.f32.mxu1 %v5530_v61  ;;  %v2659_v61 = vld [vmem:[#allocation9 + $0x608] sm:$0xff]  ;;  %v3929_v55 = vmul.f32 -1.442695, %v1614_v31  ;;  %v1622_v22 = vadd.f32 %v5452_v46, %v5547_v28  ;;  %v5576_v49 = vpop.f32.mrf.mxu1  ;;  %v2717_v28 = vld [vmem:[#allocation9 + $0x7d8] sm:$0xff] }
 0x1a1   :  { %v4406_v2 = vpop.eup %4405  ;;  %4431 = vrcp.f32 %v2165_v3  ;;  %v2172_v23 = vadd.f32 1.0, %v4404_v19  ;;  %3243 = vmatprep.subr.mxu1 %v2663_v32  ;;  %v3992_v32 = vmul.f32 -1.442695, %v1677_v36  ;;  %v1685_v38 = vadd.f32 %v5362_v26, %v5493_v8  ;;  %v2711_v31 = vld [vmem:[#allocation9 + $0x7a8] sm:$0xff]  ;;  %v2710_v36 = vld [vmem:[#allocation9 + $0x7a0] sm:$0xff] }
 0x1a2   :  { %v4408_v1 = vpop.eup %4407  ;;  %4433 = vrcp.f32 %v2103_v57  ;;  %v2110_v17 = vadd.f32 1.0, %v4406_v2  ;;  %3244 = vmatpush1.msra.mxu1 %v2662_v9  ;;  %v3930_v3 = vmul.f32 -1.442695, %v1615_v25  ;;  %v1623_v63 = vadd.f32 %v5461_v50, %v923_v18  ;;  %v929_v9 = vpop.f32.mrf.mxu0 }
 0x1a3   :  { %v4410_v60 = vpop.eup %4409  ;;  %4435 = vrcp.f32 %v2172_v23  ;;  %v2173_v33 = vadd.f32 1.0, %v4408_v1  ;;  %3002 = vmatmul.mubr.f32.gmra.mxu1 %v5525_v40  ;;  %3245 = vmatprep.subr.mxu1 %v2661_v34  ;;  %v3999_v57 = vmul.f32 -1.442695, %v1684_v13  ;;  %v2716_v34 = vld [vmem:[#allocation9 + $0x7d0] sm:$0xff]  ;;  %v3937_v2 = vmul.f32 -1.442695, %v1622_v22  ;;  %v5584_v43 = vpop.f32.mrf.mxu1 }
 0x1a4   :  { %v4412_v5 = vpop.eup %4411  ;;  %4437 = vrcp.f32 %v2110_v17  ;;  %v2111_v58 = vadd.f32 1.0, %v4410_v60  ;;  %3246 = vmatpush1.msra.mxu1 %v2660_v7  ;;  %v1630_v23 = vadd.f32 %v5452_v46, %v927_v39  ;;  %v2715_v7 = vld [vmem:[#allocation9 + $0x7c8] sm:$0xff]  ;;  %v4000_v17 = vmul.f32 -1.442695, %v1685_v38  ;;  %v5589_v60 = vpop.f32.mrf.mxu0  ;;  %v2706_v22 = vld [vmem:[#allocation9 + $0x780] sm:$0xff] }
 0x1a5   :  { %v4414_v0 = vpop.eup %4413  ;;  %4439 = vrcp.f32 %v2173_v33  ;;  %3247 = vmatprep.subr.mxu1 %v2659_v61  ;;  %v1693_v35 = vadd.f32 %v5362_v26, %v5520_v53  ;;  %v3938_v18 = vmul.f32 -1.442695, %v1623_v63  ;;  %v1631_v61 = vadd.f32 %v5461_v50, %v929_v9  ;;  %v5591_v53 = vpop.f32.mrf.mxu1  ;;  %v2707_v13 = vld [vmem:[#allocation9 + $0x788] sm:$0xff]  ;;  %v2704_v9 = vld [vmem:[#allocation9 + $0x770] sm:$0xff] }
 0x1a6   :  { %v4416_v40 = vpop.eup %4415  ;;  %4441 = vrcp.f32 %v2111_v58  ;;  %3248 = vmatpush1.msra.mxu1 %v2658_v51  ;;  %v3945_v26 = vmul.f32 -1.442695, %v1630_v23  ;;  %v2702_v23 = vld [vmem:[#allocation9 + $0x760] sm:$0xff] }
 0x1a7   :  { %v4418_v48 = vpop.eup %4417  ;;  %4443 = vpow2.f32 %v3983_v15  ;;  %3007 = vmatprep.mubr.f32.mxu1 %v4416_v40  ;;  %3249 = vmatprep.subr.mxu1 %v2721_v21  ;;  %v4007_v15 = vmul.f32 -1.442695, %v1692_v10  ;;  %v5595_v39 = vpop.f32.mrf.mxu1 }
 0x1a8   :  { %v4420_v12 = vpop.eup %4419  ;;  %4445 = vpow2.f32 %v3921_v16  ;;  %3120 = vmatprep.mubr.f32.mxu0 %v4418_v48  ;;  %3008 = vmatmul.mubr.f32.gmra.mxu1 %v4412_v5  ;;  %v2712_v5 = vld [vmem:[#allocation9 + $0x7b0] sm:$0xff]  ;;  %v4008_v16 = vmul.f32 -1.442695, %v1693_v35 }
 0x1a9   :  { %v4422_v62 = vpop.eup %4421  ;;  %4447 = vpow2.f32 %v3984_v24  ;;  %3121 = vmatmul.mubr.f32.vlgmr.msra.gmra.mxu0 %v4414_v0  ;;  %3250 = vmatpush2.msra.mxu1 %v2720_v6  ;;  %v3946_v0 = vmul.f32 -1.442695, %v1631_v61  ;;  %v5593_v24 = vpop.f32.mrf.mxu0  ;;  %v2708_v6 = vld [vmem:[#allocation9 + $0x790] sm:$0xff] }
 0x1aa   :  { %v4424_v20 = vpop.eup %4423  ;;  %4449 = vpow2.f32 %v3922_v4  ;;  %3251 = vmatprep.subr.mxu1 %v2719_v45  ;;  %v2709_v4 = vld [vmem:[#allocation9 + $0x798] sm:$0xff]  ;;  %v5600_v63 = vpop.f32.mrf.mxu1  ;;  %v2700_v61 = vld [vmem:[#allocation9 + $0x750] sm:$0xff] }
 0x1ab   :  { %v4426_v19 = vpop.eup %4425  ;;  %4451 = vpow2.f32 %v3991_v29  ;;  %3013 = vmatprep.mubr.f32.mxu1 %v4424_v20  ;;  %3252 = vmatpush2.msra.mxu1 %v2718_v37 }
 0x1ac   :  { %v4428_v8 = vpop.eup %4427  ;;  %4453 = vpow2.f32 %v3929_v55  ;;  %3126 = vmatprep.mubr.f32.mxu0 %v4426_v19  ;;  %3014 = vmatmul.mubr.f32.gmra.mxu1 %v4420_v12  ;;  %v5597_v55 = vpop.f32.mrf.mxu0 }
 0x1ad   :  { %v4430_v1 = vpop.eup %4429  ;;  %4455 = vpow2.f32 %v3992_v32  ;;  %3127 = vmatmul.mubr.f32.gmra.mxu0 %v4422_v62  ;;  %3253 = vmatprep.subr.mxu1 %v2717_v28  ;;  %v2705_v32 = vld [vmem:[#allocation9 + $0x778] sm:$0xff] }
 0x1ae   :  { %v4432_v27 = vpop.eup %4431  ;;  %4457 = vpow2.f32 %v3930_v3  ;;  %3254 = vmatpush2.msra.mxu1 %v2716_v34  ;;  %v1556_v3 = vsub.s32 6, %v5254_v42 }
 0x1af   :  { %v4434_v33 = vpop.eup %4433  ;;  %4459 = vpow2.f32 %v3999_v57  ;;  %3255 = vmatprep.subr.mxu1 %v2715_v7  ;;  %3019 = vmatprep.mubr.f32.mxu1 %v4432_v27  ;;  %v2703_v57 = vld [vmem:[#allocation9 + $0x768] sm:$0xff] }
 0x1b0   :  { %v4436_v51 = vpop.eup %4435  ;;  %4461 = vpow2.f32 %v3937_v2  ;;  %3132 = vmatprep.mubr.f32.mxu0 %v4434_v33  ;;  %3256 = vmatpush2.msra.mxu1 %v2714_v14  ;;  %v5603_v2 = vpop.f32.mrf.mxu0  ;;  %v5606_v27 = vrot.slane %v5458_v47, %v1556_v3 }
 0x1b1   :  { %v4438_v58 = vpop.eup %4437  ;;  %4463 = vpow2.f32 %v4000_v17  ;;  %3020 = vmatmul.mubr.f32.gmra.mxu1 %v4428_v8  ;;  %3133 = vmatmul.mubr.f32.gmra.mxu0 %v4430_v1  ;;  %v1560_v8 = vsub.s32 7, %v5254_v42  ;;  %v2701_v17 = vld [vmem:[#allocation9 + $0x758] sm:$0xff] }
 0x1b2   :  { %v4440_v21 = vpop.eup %4439  ;;  %4465 = vpow2.f32 %v3938_v18  ;;  %3257 = vmatprep.subr.mxu1 %v2713_v30  ;;  %v5608_v18 = vpop.f32.mrf.mxu1  ;;  %v2699_v30 = vld [vmem:[#allocation9 + $0x748] sm:$0xff] }
 0x1b3   :  { %v4442_v40 = vpop.eup %4441  ;;  %4467 = vpow2.f32 %v4007_v15  ;;  %3258 = vmatpush2.msra.mxu1 %v2712_v5  ;;  %3025 = vmatprep.mubr.f32.mxu1 %v4440_v21  ;;  %v5611_v5 = vrot.slane %v5458_v47, %v1560_v8  ;;  %v2696_v47 = vld [vmem:[#allocation9 + $0x730] sm:$0xff]  ;;  %v1647_v8 = vadd.f32 %v5461_v50, %v5603_v2 }
 0x1b4   :  { %v4444_v25 = vpop.eup %4443  ;;  %4469 = vpow2.f32 %v3945_v26  ;;  %3259 = vmatprep.subr.mxu1 %v2711_v31  ;;  %3138 = vmatprep.mubr.f32.mxu0 %v4442_v40 }
 0x1b5   :  { %v4446_v48 = vpop.eup %4445  ;;  %v2180_v29 = vadd.f32 1.0, %v4444_v25  ;;  %4471 = vpow2.f32 %v4008_v16  ;;  %3260 = vmatpush2.msra.mxu1 %v2710_v36  ;;  %3139 = vmatmul.mubr.f32.gmra.mxu0 %v4438_v58  ;;  %v945_v58 = vpop.f32.mrf.mxu0  ;;  %v2698_v16 = vld [vmem:[#allocation9 + $0x740] sm:$0xff]  ;;  %v2697_v36 = vld [vmem:[#allocation9 + $0x738] sm:$0xff]  ;;  %v1576_v25 = vadd.f32 %v5606_v27, %v5533_v11 }
 0x1b6   :  { %v4448_v45 = vpop.eup %4447  ;;  %v2118_v12 = vadd.f32 1.0, %v4446_v48  ;;  %4473 = vpow2.f32 %v3946_v0  ;;  %3026 = vmatmul.mubr.f32.gmra.mxu1 %v4436_v51  ;;  %3261 = vmatprep.subr.mxu1 %v2709_v4  ;;  %v1638_v0 = vadd.f32 %v5452_v46, %v5589_v60  ;;  %v2695_v60 = vld [vmem:[#allocation9 + $0x728] sm:$0xff]  ;;  %v2694_v11 = vld [vmem:[#allocation9 + $0x720] sm:$0xff] }
 0x1b7   :  { %v4450_v37 = vpop.eup %4449  ;;  %4475 = vrcp.f32 %v2180_v29  ;;  %v2181_v62 = vadd.f32 1.0, %v4448_v45  ;;  %3262 = vmatpush2.msra.mxu1 %v2708_v6  ;;  %v5617_v6 = vpop.f32.mrf.mxu1 }
 0x1b8   :  { %v4452_v38 = vpop.eup %4451  ;;  %4477 = vrcp.f32 %v2118_v12  ;;  %v2119_v20 = vadd.f32 1.0, %v4450_v37  ;;  %3263 = vmatprep.subr.mxu1 %v2707_v13  ;;  %v1639_v13 = vadd.f32 %v5461_v50, %v5593_v24  ;;  %v947_v37 = vpop.f32.mrf.mxu0  ;;  %v2693_v24 = vld [vmem:[#allocation9 + $0x718] sm:$0xff] }
 0x1b9   :  { %v4454_v28 = vpop.eup %4453  ;;  %4479 = vrcp.f32 %v2181_v62  ;;  %v2188_v19 = vadd.f32 1.0, %v4452_v38  ;;  %3264 = vmatpush2.msra.mxu1 %v2706_v22  ;;  %v1577_v22 = vadd.f32 %v5611_v5, %v5539_v59  ;;  %v3953_v38 = vmul.f32 -1.442695, %v1638_v0  ;;  %v5627_v59 = vpop.f32.mrf.mxu1 }
 0x1ba   :  { %v4456_v10 = vpop.eup %4455  ;;  %4481 = vrcp.f32 %v2119_v20  ;;  %v2126_v34 = vadd.f32 1.0, %v4454_v28  ;;  %3265 = vmatprep.subr.mxu1 %v2705_v32  ;;  %v1646_v20 = vadd.f32 %v5452_v46, %v5597_v55  ;;  %v3891_v28 = vmul.f32 -1.442695, %v1576_v25 }
 0x1bb   :  { %v4458_v7 = vpop.eup %4457  ;;  %4483 = vrcp.f32 %v2188_v19  ;;  %v2189_v1 = vadd.f32 1.0, %v4456_v10  ;;  %3266 = vmatpush2.msra.mxu1 %v2704_v9  ;;  %v1584_v19 = vadd.f32 %v5606_v27, %v5545_v44  ;;  %v2691_v44 = vld [vmem:[#allocation9 + $0x708] sm:$0xff]  ;;  %v1600_v25 = vadd.f32 %v5606_v27, %v5584_v43 }
 0x1bc   :  { %v4460_v35 = vpop.eup %4459  ;;  %4485 = vrcp.f32 %v2126_v34  ;;  %v2127_v14 = vadd.f32 1.0, %v4458_v7  ;;  %3267 = vmatprep.subr.mxu1 %v2703_v57  ;;  %v2692_v57 = vld [vmem:[#allocation9 + $0x710] sm:$0xff]  ;;  %v3954_v34 = vmul.f32 -1.442695, %v1639_v13  ;;  %v1585_v7 = vadd.f32 %v5611_v5, %v5555_v56  ;;  %v5636_v56 = vpop.f32.mrf.mxu1 }
 0x1bd   :  { %v4462_v33 = vpop.eup %4461  ;;  %4487 = vrcp.f32 %v2189_v1  ;;  %v2196_v15 = vadd.f32 1.0, %v4460_v35  ;;  %3268 = vmatpush2.msra.mxu1 %v2702_v23  ;;  %v3892_v23 = vmul.f32 -1.442695, %v1577_v22  ;;  %v951_v1 = vpop.f32.mrf.mxu0  ;;  %v3961_v35 = vmul.f32 -1.442695, %v1646_v20 }
 0x1be   :  { %v4464_v51 = vpop.eup %4463  ;;  %4489 = vrcp.f32 %v2127_v14  ;;  %v2134_v26 = vadd.f32 1.0, %v4462_v33  ;;  %3269 = vmatprep.subr.mxu1 %v2701_v17  ;;  %v1654_v14 = vadd.f32 %v5452_v46, %v945_v58  ;;  %v3899_v2 = vmul.f32 -1.442695, %v1584_v19 }
 0x1bf   :  { %v4466_v31 = vpop.eup %4465  ;;  %4491 = vrcp.f32 %v2196_v15  ;;  %v2197_v21 = vadd.f32 1.0, %v4464_v51  ;;  %3270 = vmatpush2.msra.mxu1 %v2700_v61  ;;  %v2690_v61 = vld [vmem:[#allocation9 + $0x700] sm:$0xff]  ;;  %v1592_v15 = vadd.f32 %v5606_v27, %v5566_v52  ;;  %v3962_v51 = vmul.f32 -1.442695, %v1647_v8 }
 0x1c0   :  { %v4468_v40 = vpop.eup %4467  ;;  %4493 = vrcp.f32 %v2134_v26  ;;  %v2135_v4 = vadd.f32 1.0, %v4466_v31  ;;  %3271 = vmatprep.subr.mxu1 %v2699_v30  ;;  %v1655_v26 = vadd.f32 %v5461_v50, %v947_v37  ;;  %v1593_v31 = vadd.f32 %v5611_v5, %v5576_v49 }
 0x1c1   :  { %v4470_v48 = vpop.eup %4469  ;;  %4495 = vrcp.f32 %v2197_v21  ;;  %v2204_v29 = vadd.f32 1.0, %v4468_v40  ;;  %3272 = vmatpush2.msra.mxu1 %v2698_v16  ;;  %v3900_v16 = vmul.f32 -1.442695, %v1585_v7  ;;  %v953_v21 = vpop.f32.mrf.mxu0  ;;  %v3969_v0 = vmul.f32 -1.442695, %v1654_v14 }
 0x1c2   :  { %v4472_v45 = vpop.eup %4471  ;;  %4497 = vrcp.f32 %v2135_v4  ;;  %v2142_v12 = vadd.f32 1.0, %v4470_v48  ;;  %3273 = vmatprep.subr.mxu1 %v2697_v36  ;;  %v1662_v36 = vadd.f32 %v5452_v46, %v951_v1  ;;  %v3907_v4 = vmul.f32 -1.442695, %v1592_v15 }
 0x1c3   :  { %v4474_v62 = vpop.eup %4473  ;;  %4499 = vrcp.f32 %v2204_v29  ;;  %v2205_v32 = vadd.f32 1.0, %v4472_v45  ;;  %3274 = vmatpush2.msra.mxu1 %v2696_v47  ;;  %v5644_v47 = vpop.f32.mrf.mxu1  ;;  %v3970_v49 = vmul.f32 -1.442695, %v1655_v26  ;;  %v1663_v29 = vadd.f32 %v5461_v50, %v953_v21 }
 0x1c4   :  { %v4476_v3 = vpop.eup %4475  ;;  %4501 = vrcp.f32 %v2142_v12  ;;  %v2143_v9 = vadd.f32 1.0, %v4474_v62  ;;  %3275 = vmatprep.subr.mxu1 %v2695_v60  ;;  %v3908_v60 = vmul.f32 -1.442695, %v1593_v31  ;;  %v1601_v45 = vadd.f32 %v5611_v5, %v5591_v53  ;;  %v5649_v12 = vpop.f32.mrf.mxu0 }
 0x1c5   :  { %v4478_v10 = vpop.eup %4477  ;;  %4503 = vrcp.f32 %v2205_v32  ;;  %3276 = vmatpush2.msra.mxu1 %v2694_v11  ;;  %v3977_v43 = vmul.f32 -1.442695, %v1662_v36  ;;  %v3915_v11 = vmul.f32 -1.442695, %v1600_v25  ;;  %v5651_v62 = vpop.f32.mrf.mxu1 }
 0x1c6   :  { %v4480_v55 = vpop.eup %4479  ;;  %4505 = vrcp.f32 %v2143_v9  ;;  %3277 = vmatprep.subr.mxu1 %v2693_v24  ;;  %v3916_v53 = vmul.f32 -1.442695, %v1601_v45  ;;  %v959_v24 = vpop.f32.mrf.mxu0 }
 0x1c7   :  { %v4482_v17 = vpop.eup %4481  ;;  %4507 = vpow2.f32 %v3953_v38  ;;  %3031 = vmatprep.mubr.f32.mxu1 %v4480_v55  ;;  %3278 = vmatpush2.msra.mxu1 %v2692_v57  ;;  %v3978_v38 = vmul.f32 -1.442695, %v1663_v29 }
 0x1c8   :  { %v4484_v33 = vpop.eup %4483  ;;  %4509 = vpow2.f32 %v3891_v28  ;;  %3144 = vmatprep.mubr.f32.mxu0 %v4482_v17  ;;  %3032 = vmatmul.mubr.f32.gmra.mxu1 %v4476_v3  ;;  %v5653_v28 = vpop.f32.mrf.mxu1 }
 0x1c9   :  { %v4486_v30 = vpop.eup %4485  ;;  %4511 = vpow2.f32 %v3954_v34  ;;  %3145 = vmatmul.mubr.f32.gmra.mxu0 %v4478_v10  ;;  %3279 = vmatprep.subr.mxu1 %v2691_v44  ;;  %v963_v8 = vpop.f32.mrf.mxu0 }
 0x1ca   :  { %v4488_v58 = vpop.eup %4487  ;;  %4513 = vpow2.f32 %v3892_v23  ;;  %3280 = vmatpush2.msra.mxu1 %v2690_v61  ;;  %v5655_v44 = vpop.f32.mrf.mxu1 }
 0x1cb   :  { %v4490_v52 = vpop.eup %4489  ;;  %4515 = vpow2.f32 %v3961_v35  ;;  %3037 = vmatprep.mubr.f32.mxu1 %v4488_v58 }
 0x1cc   :  { %v4492_v40 = vpop.eup %4491  ;;  %4517 = vpow2.f32 %v3899_v2  ;;  %3150 = vmatprep.mubr.f32.mxu0 %v4490_v52  ;;  %3038 = vmatmul.mubr.f32.gmra.mxu1 %v4484_v33  ;;  %v965_v33 = vpop.f32.mrf.mxu0 }
 0x1cd   :  { %v4494_v48 = vpop.eup %4493  ;;  %4519 = vpow2.f32 %v3962_v51  ;;  %3151 = vmatmul.mubr.f32.gmra.mxu0 %v4486_v30  ;;  %v5657_v26 = vpop.f32.mrf.mxu1 }
 0x1ce   :  { %v4496_v13 = vpop.eup %4495  ;;  %4521 = vpow2.f32 %v3900_v16  ;;  %v969_v52 = vpop.f32.mrf.mxu0 }
 0x1cf   :  { %v4498_v22 = vpop.eup %4497  ;;  %4523 = vpow2.f32 %v3969_v0  ;;  %3043 = vmatprep.mubr.f32.mxu1 %v4496_v13 }
 0x1d0   :  { %v4500_v37 = vpop.eup %4499  ;;  %4525 = vpow2.f32 %v3907_v4  ;;  %3156 = vmatprep.mubr.f32.mxu0 %v4498_v22  ;;  %3044 = vmatmul.mubr.f32.gmra.mxu1 %v4492_v40  ;;  %v1670_v40 = vadd.f32 %v5452_v46, %v5649_v12  ;;  %v971_v12 = vpop.f32.mrf.mxu0 }
 0x1d1   :  { %v4502_v32 = vpop.eup %4501  ;;  %4527 = vpow2.f32 %v3970_v49  ;;  %3157 = vmatmul.mubr.f32.gmra.mxu0 %v4494_v48  ;;  %v1608_v48 = vadd.f32 %v5606_v27, %v5595_v39  ;;  %v5663_v49 = vpop.f32.mrf.mxu1  ;;  %v1678_v39 = vadd.f32 %v5452_v46, %v963_v8 }
 0x1d2   :  { %v4504_v20 = vpop.eup %4503  ;;  %4529 = vpow2.f32 %v3908_v60  ;;  %v1671_v60 = vadd.f32 %v5461_v50, %v959_v24  ;;  %v1616_v24 = vadd.f32 %v5606_v27, %v5608_v18  ;;  %v975_v8 = vpop.f32.mrf.mxu0 }
 0x1d3   :  { %v4506_v3 = vpop.eup %4505  ;;  %4531 = vpow2.f32 %v3977_v43  ;;  %3049 = vmatprep.mubr.f32.mxu1 %v4504_v20  ;;  %v1609_v43 = vadd.f32 %v5611_v5, %v5600_v63  ;;  %v1679_v63 = vadd.f32 %v5461_v50, %v965_v33 }
 0x1d4   :  { %v4508_v9 = vpop.eup %4507  ;;  %4533 = vpow2.f32 %v3915_v11  ;;  %3162 = vmatprep.mubr.f32.mxu0 %v4506_v3  ;;  %3050 = vmatmul.mubr.f32.gmra.mxu1 %v4500_v37  ;;  %v5671_v3 = vpop.f32.mrf.mxu1 }
 0x1d5   :  { %v4510_v19 = vpop.eup %4509  ;;  %v2150_v57 = vadd.f32 1.0, %v4508_v9  ;;  %4535 = vpow2.f32 %v3978_v38  ;;  %3163 = vmatmul.mubr.f32.gmra.mxu0 %v4502_v32  ;;  %v3985_v32 = vmul.f32 -1.442695, %v1670_v40 }
 0x1d6   :  { %v4512_v10 = vpop.eup %4511  ;;  %v2088_v34 = vadd.f32 1.0, %v4510_v19  ;;  %4537 = vpow2.f32 %v3916_v53  ;;  %v3923_v53 = vmul.f32 -1.442695, %v1608_v48  ;;  %v3986_v19 = vmul.f32 -1.442695, %v1671_v60  ;;  %v3601_v60 = vld [vmem:[#allocation11 + $0xf8] sm:$0xff] }
 0x1d7   :  { %v4514_v55 = vpop.eup %4513  ;;  %4539 = vrcp.f32 %v2150_v57  ;;  %v2151_v23 = vadd.f32 1.0, %v4512_v10  ;;  %v3924_v10 = vmul.f32 -1.442695, %v1609_v43  ;;  %4062 = vmatprep.subr.mxu0 %v3601_v60 }
 0x1d8   :  { %v4516_v7 = vpop.eup %4515  ;;  %4541 = vrcp.f32 %v2088_v34  ;;  %v2089_v1 = vadd.f32 1.0, %v4514_v55  ;;  %v1617_v34 = vadd.f32 %v5611_v5, %v5617_v6  ;;  %v3994_v6 = vmul.f32 -1.442695, %v1679_v63 }
 0x1d9   :  { %v4518_v17 = vpop.eup %4517  ;;  %4543 = vrcp.f32 %v2151_v23  ;;  %v2158_v35 = vadd.f32 1.0, %v4516_v7  ;;  %v3993_v23 = vmul.f32 -1.442695, %v1678_v39  ;;  %v1686_v7 = vadd.f32 %v5452_v46, %v969_v52  ;;  %v3584_v39 = vld [vmem:[#allocation11 + $0x70] sm:$0xff] }
 0x1da   :  { %v4520_v14 = vpop.eup %4519  ;;  %4545 = vrcp.f32 %v2089_v1  ;;  %v2096_v61 = vadd.f32 1.0, %v4518_v17  ;;  %v3931_v1 = vmul.f32 -1.442695, %v1616_v24  ;;  %v1624_v17 = vadd.f32 %v5606_v27, %v5627_v59 }
 0x1db   :  { %v4522_v2 = vpop.eup %4521  ;;  %4547 = vrcp.f32 %v2158_v35  ;;  %v2159_v15 = vadd.f32 1.0, %v4520_v14  ;;  %v5679_v35 = vpop.f32.mrf.mxu1  ;;  %v4001_v59 = vmul.f32 -1.442695, %v1686_v7 }
 0x1dc   :  { %v4524_v30 = vpop.eup %4523  ;;  %4549 = vrcp.f32 %v2096_v61  ;;  %v2097_v51 = vadd.f32 1.0, %v4522_v2  ;;  %v1687_v61 = vadd.f32 %v5461_v50, %v971_v12  ;;  %v3932_v2 = vmul.f32 -1.442695, %v1617_v34 }
 0x1dd   :  { %v4526_v58 = vpop.eup %4525  ;;  %4551 = vrcp.f32 %v2159_v15  ;;  %v2166_v16 = vadd.f32 1.0, %v4524_v30  ;;  %v1625_v15 = vadd.f32 %v5611_v5, %v5636_v56  ;;  %v977_v30 = vpop.f32.mrf.mxu0 }
 0x1de   :  { %v4528_v31 = vpop.eup %4527  ;;  %4553 = vrcp.f32 %v2097_v51  ;;  %v2104_v21 = vadd.f32 1.0, %v4526_v58  ;;  %v1694_v58 = vadd.f32 %v5452_v46, %v975_v8  ;;  %v5687_v52 = vpop.f32.mrf.mxu1  ;;  %v4002_v56 = vmul.f32 -1.442695, %v1687_v61 }
 0x1df   :  { %v4530_v0 = vpop.eup %4529  ;;  %4555 = vrcp.f32 %v2166_v16  ;;  %v2167_v36 = vadd.f32 1.0, %v4528_v31  ;;  %v3939_v31 = vmul.f32 -1.442695, %v1624_v17  ;;  %v3940_v46 = vmul.f32 -1.442695, %v1625_v15 }
 0x1e0   :  { %v4532_v4 = vpop.eup %4531  ;;  %4557 = vrcp.f32 %v2104_v21  ;;  %v2105_v25 = vadd.f32 1.0, %v4530_v0  ;;  %v1632_v21 = vadd.f32 %v5606_v27, %v5644_v47  ;;  %v4009_v48 = vmul.f32 -1.442695, %v1694_v58 }
 0x1e1   :  { %v4534_v29 = vpop.eup %4533  ;;  %4559 = vrcp.f32 %v2167_v36  ;;  %v2174_v13 = vadd.f32 1.0, %v4532_v4  ;;  %v1695_v36 = vadd.f32 %v5461_v50, %v977_v30  ;;  %v1633_v4 = vadd.f32 %v5611_v5, %v5651_v62  ;;  %v3585_v50 = vld [vmem:[#allocation11 + $0x78] sm:$0xff] }
 0x1e2   :  { %v4536_v45 = vpop.eup %4535  ;;  %4561 = vrcp.f32 %v2105_v25  ;;  %v2112_v22 = vadd.f32 1.0, %v4534_v29  ;;  %v3947_v29 = vmul.f32 -1.442695, %v1632_v21  ;;  %4063 = vmatpush3.msra.mxu0 %v3585_v50  ;;  %v1640_v58 = vadd.f32 %v5606_v27, %v5653_v28 }
 0x1e3   :  { %v4538_v37 = vpop.eup %4537  ;;  %4563 = vrcp.f32 %v2174_v13  ;;  %v2175_v11 = vadd.f32 1.0, %v4536_v45  ;;  %v5692_v13 = vpop.f32.mrf.mxu1  ;;  %v3948_v62 = vmul.f32 -1.442695, %v1633_v4  ;;  %v1641_v21 = vadd.f32 %v5611_v5, %v5655_v44 }
 0x1e4   :  { %v4540_v38 = vpop.eup %4539  ;;  %4565 = vrcp.f32 %v2112_v22  ;;  %v2113_v20 = vadd.f32 1.0, %v4538_v37  ;;  %v4010_v22 = vmul.f32 -1.442695, %v1695_v36  ;;  %v1657_v50 = vadd.f32 %v5611_v5, %v5679_v35 }
 0x1e5   :  { %v4542_v9 = vpop.eup %4541  ;;  %4567 = vrcp.f32 %v2175_v11  ;;  %v5694_v11 = vpop.f32.mrf.mxu1  ;;  %v3956_v60 = vmul.f32 -1.442695, %v1641_v21 }
 0x1e6   :  { %v4544_v57 = vpop.eup %4543  ;;  %4569 = vrcp.f32 %v2113_v20 }
 0x1e7   :  { %v4546_v55 = vpop.eup %4545  ;;  %4571 = vpow2.f32 %v3985_v32  ;;  %3168 = vmatprep.mubr.f32.mxu0 %v4544_v57  ;;  %v3600_v32 = vld [vmem:[#allocation11 + $0xf0] sm:$0xff] }
 0x1e8   :  { %v4548_v18 = vpop.eup %4547  ;;  %4573 = vpow2.f32 %v3923_v53  ;;  %3281 = vmatprep.mubr.f32.mxu1 %v4546_v55  ;;  %3169 = vmatmul.mubr.f32.gmra.mxu0 %v4540_v38  ;;  %v3599_v55 = vld [vmem:[#allocation11 + $0xe8] sm:$0xff] }
 0x1e9   :  { %v4550_v14 = vpop.eup %4549  ;;  %4575 = vpow2.f32 %v3986_v19  ;;  %3282 = vmatmul.mubr.f32.vlgmr.msra.gmra.mxu1 %v4542_v9  ;;  %4064 = vmatprep.subr.mxu0 %v3600_v32 }
 0x1ea   :  { %v4552_v33 = vpop.eup %4551  ;;  %4577 = vpow2.f32 %v3924_v10  ;;  %4065 = vmatpush3.msra.mxu0 %v3584_v39  ;;  %v5696_v10 = vpop.f32.mrf.mxu1  ;;  %v3972_v39 = vmul.f32 -1.442695, %v1657_v50 }
 0x1eb   :  { %v4554_v51 = vpop.eup %4553  ;;  %4579 = vpow2.f32 %v3993_v23  ;;  %3174 = vmatprep.mubr.f32.mxu0 %v4552_v33  ;;  %v3583_v23 = vld [vmem:[#allocation11 + $0x68] sm:$0xff]  ;;  %4066 = vmatprep.subr.mxu0 %v3599_v55  ;;  %v1673_v35 = vadd.f32 %v5611_v5, %v5696_v10 }
 0x1ec   :  { %v4556_v16 = vpop.eup %4555  ;;  %4581 = vpow2.f32 %v3931_v1  ;;  %3287 = vmatprep.mubr.f32.mxu1 %v4554_v51  ;;  %3175 = vmatmul.mubr.f32.gmra.mxu0 %v4548_v18  ;;  %v5698_v61 = vpop.f32.mrf.mxu1 }
 0x1ed   :  { %v4558_v0 = vpop.eup %4557  ;;  %4583 = vpow2.f32 %v3994_v6  ;;  %3288 = vmatmul.mubr.f32.gmra.mxu1 %v4550_v14  ;;  %4067 = vmatpush3.msra.mxu0 %v3583_v23  ;;  %v3988_v10 = vmul.f32 -1.442695, %v1673_v35  ;;  %v3582_v23 = vld [vmem:[#allocation11 + $0x60] sm:$0xff] }
 0x1ee   :  { %v4560_v40 = vpop.eup %4559  ;;  %4585 = vpow2.f32 %v3932_v2 }
 0x1ef   :  { %v4562_v25 = vpop.eup %4561  ;;  %4587 = vpow2.f32 %v4001_v59  ;;  %3180 = vmatprep.mubr.f32.mxu0 %v4560_v40  ;;  %v1648_v40 = vadd.f32 %v5606_v27, %v5657_v26 }
 0x1f0   :  { %v4564_v47 = vpop.eup %4563  ;;  %4589 = vpow2.f32 %v3939_v31  ;;  %3293 = vmatprep.mubr.f32.mxu1 %v4562_v25  ;;  %3181 = vmatmul.mubr.f32.gmra.mxu0 %v4556_v16  ;;  %v1649_v25 = vadd.f32 %v5611_v5, %v5663_v49 }
 0x1f1   :  { %v4566_v45 = vpop.eup %4565  ;;  %4591 = vpow2.f32 %v4002_v56  ;;  %3294 = vmatmul.mubr.f32.gmra.mxu1 %v4558_v0  ;;  %v1126_v0 = vpop.f32.mrf.mxu1  ;;  %v3963_v26 = vmul.f32 -1.442695, %v1648_v40 }
 0x1f2   :  { %v4568_v43 = vpop.eup %4567  ;;  %4593 = vpow2.f32 %v3940_v46  ;;  %v3964_v49 = vmul.f32 -1.442695, %v1649_v25  ;;  %v3580_v25 = vld [vmem:[#allocation11 + $0x50] sm:$0xff] }
 0x1f3   :  { %v4570_v12 = vpop.eup %4569  ;;  %4595 = vpow2.f32 %v4009_v48  ;;  %3186 = vmatprep.mubr.f32.mxu0 %v4568_v43  ;;  %v1656_v43 = vadd.f32 %v5606_v27, %v5671_v3 }
 0x1f4   :  { %v4572_v37 = vpop.eup %4571  ;;  %4597 = vpow2.f32 %v3947_v29  ;;  %3299 = vmatprep.mubr.f32.mxu1 %v4570_v12  ;;  %3187 = vmatmul.mubr.f32.gmra.mxu0 %v4564_v47  ;;  %v3955_v47 = vmul.f32 -1.442695, %v1640_v58  ;;  %v1665_v12 = vadd.f32 %v5611_v5, %v5692_v13  ;;  %v1664_v13 = vadd.f32 %v5606_v27, %v5687_v52  ;;  %v3598_v52 = vld [vmem:[#allocation11 + $0xe0] sm:$0xff] }
 0x1f5   :  { %v4574_v38 = vpop.eup %4573  ;;  %v2182_v20 = vadd.f32 1.0, %v4572_v37  ;;  %4599 = vpow2.f32 %v4010_v22  ;;  %3300 = vmatmul.mubr.f32.gmra.mxu1 %v4566_v45  ;;  %v1130_v45 = vpop.f32.mrf.mxu1  ;;  %4068 = vmatprep.subr.mxu0 %v3598_v52 }
 0x1f6   :  { %v4576_v53 = vpop.eup %4575  ;;  %v2120_v24 = vadd.f32 1.0, %v4574_v38  ;;  %4601 = vpow2.f32 %v3948_v62  ;;  %4069 = vmatpush3.msra.mxu0 %v3582_v23 }
 0x1f7   :  { %v4578_v9 = vpop.eup %4577  ;;  %4603 = vrcp.f32 %v2182_v20  ;;  %v2183_v19 = vadd.f32 1.0, %v4576_v53  ;;  %v1132_v38 = vpop.f32.mrf.mxu1  ;;  %v3971_v53 = vmul.f32 -1.442695, %v1656_v43 }
 0x1f8   :  { %v4580_v63 = vpop.eup %4579  ;;  %4605 = vrcp.f32 %v2120_v24  ;;  %v2121_v57 = vadd.f32 1.0, %v4578_v9  ;;  %v3980_v9 = vmul.f32 -1.442695, %v1665_v12 }
 0x1f9   :  { %v4582_v34 = vpop.eup %4581  ;;  %4607 = vrcp.f32 %v2183_v19  ;;  %v2190_v8 = vadd.f32 1.0, %v4580_v63  ;;  %v1672_v63 = vadd.f32 %v5606_v27, %v5694_v11 }
 0x1fa   :  { %v4584_v7 = vpop.eup %4583  ;;  %4609 = vrcp.f32 %v2121_v57  ;;  %v2128_v18 = vadd.f32 1.0, %v4582_v34  ;;  %v1681_v34 = vadd.f32 %v5611_v5, %v1126_v0 }
 0x1fb   :  { %v4586_v1 = vpop.eup %4585  ;;  %4611 = vrcp.f32 %v2190_v8  ;;  %v2191_v17 = vadd.f32 1.0, %v4584_v7  ;;  %v1136_v8 = vpop.f32.mrf.mxu1 }
 0x1fc   :  { %v4588_v14 = vpop.eup %4587  ;;  %4613 = vrcp.f32 %v2128_v18  ;;  %v2129_v6 = vadd.f32 1.0, %v4586_v1  ;;  %v3979_v18 = vmul.f32 -1.442695, %v1664_v13  ;;  %v1680_v1 = vadd.f32 %v5606_v27, %v5698_v61  ;;  %v3597_v61 = vld [vmem:[#allocation11 + $0xd8] sm:$0xff] }
 0x1fd   :  { %v4590_v33 = vpop.eup %4589  ;;  %4615 = vrcp.f32 %v2191_v17  ;;  %v2198_v2 = vadd.f32 1.0, %v4588_v14  ;;  %v1688_v17 = vadd.f32 %v5606_v27, %v1130_v45  ;;  %4070 = vmatprep.subr.mxu0 %v3597_v61 }
 0x1fe   :  { %v4592_v15 = vpop.eup %4591  ;;  %4617 = vrcp.f32 %v2129_v6  ;;  %v2136_v30 = vadd.f32 1.0, %v4590_v33  ;;  %v3987_v6 = vmul.f32 -1.442695, %v1672_v63  ;;  %v1689_v33 = vadd.f32 %v5611_v5, %v1132_v38 }
 0x1ff   :  { %v4594_v51 = vpop.eup %4593  ;;  %4619 = vrcp.f32 %v2198_v2  ;;  %v2199_v59 = vadd.f32 1.0, %v4592_v15  ;;  %v3996_v15 = vmul.f32 -1.442695, %v1681_v34  ;;  %v4003_v21 = vmul.f32 -1.442695, %v1688_v17 }
 0x200   :  { %v4596_v16 = vpop.eup %4595  ;;  %4621 = vrcp.f32 %v2136_v30  ;;  %v2137_v31 = vadd.f32 1.0, %v4594_v51  ;;  %v1138_v30 = vpop.f32.mrf.mxu1 }
 0x201   :  { %v4598_v56 = vpop.eup %4597  ;;  %4623 = vrcp.f32 %v2199_v59  ;;  %v2206_v36 = vadd.f32 1.0, %v4596_v16  ;;  %v3581_v59 = vld [vmem:[#allocation11 + $0x58] sm:$0xff]  ;;  %v3995_v16 = vmul.f32 -1.442695, %v1680_v1 }
 0x202   :  { %v4600_v46 = vpop.eup %4599  ;;  %4625 = vrcp.f32 %v2137_v31  ;;  %v2144_v4 = vadd.f32 1.0, %v4598_v56  ;;  %4071 = vmatpush3.msra.mxu0 %v3581_v59  ;;  %v4004_v56 = vmul.f32 -1.442695, %v1689_v33 }
 0x203   :  { %v4602_v28 = vpop.eup %4601  ;;  %4627 = vrcp.f32 %v2206_v36  ;;  %v2207_v48 = vadd.f32 1.0, %v4600_v46  ;;  %v1697_v36 = vadd.f32 %v5611_v5, %v1138_v30  ;;  %v1696_v5 = vadd.f32 %v5606_v27, %v1136_v8 }
 0x204   :  { %v4604_v29 = vpop.eup %4603  ;;  %4629 = vrcp.f32 %v2144_v4  ;;  %v2145_v44 = vadd.f32 1.0, %v4602_v28  ;;  %v3596_v4 = vld [vmem:[#allocation11 + $0xd0] sm:$0xff] }
 0x205   :  { %v4606_v22 = vpop.eup %4605  ;;  %4631 = vrcp.f32 %v2207_v48  ;;  %4072 = vmatprep.subr.mxu0 %v3596_v4 }
 0x206   :  { %v4608_v62 = vpop.eup %4607  ;;  %4633 = vrcp.f32 %v2145_v44  ;;  %4073 = vmatpush3.msra.mxu0 %v3580_v25 }
 0x207   :  { %v4610_v37 = vpop.eup %4609  ;;  %4635 = vpow2.f32 %v3955_v47  ;;  %3192 = vmatprep.mubr.f32.mxu0 %v4608_v62 }
 0x208   :  { %v4612_v32 = vpop.eup %4611  ;;  %4637 = vpow2.f32 %v3956_v60  ;;  %3305 = vmatprep.mubr.f32.mxu1 %v4610_v37  ;;  %3193 = vmatmul.mubr.f32.gmra.mxu0 %v4604_v29  ;;  %v5716_v20 = vpop.f32.mrf.mxu0  ;;  %v4012_v60 = vmul.f32 -1.442695, %v1697_v36 }
 0x209   :  { %v4614_v3 = vpop.eup %4613  ;;  %4639 = vpow2.f32 %v3963_v26  ;;  %3306 = vmatmul.mubr.f32.gmra.mxu1 %v4606_v22  ;;  %v3595_v22 = vld [vmem:[#allocation11 + $0xc8] sm:$0xff] }
 0x20a   :  { %v4616_v24 = vpop.eup %4615  ;;  %4641 = vpow2.f32 %v3964_v49  ;;  %v5723_v55 = vpop.f32.mrf.mxu0  ;;  %v3579_v26 = vld [vmem:[#allocation11 + $0x48] sm:$0xff]  ;;  %4074 = vmatprep.subr.mxu0 %v3595_v22 }
 0x20b   :  { %v4618_v19 = vpop.eup %4617  ;;  %3198 = vmatprep.mubr.f32.mxu0 %v4616_v24  ;;  %4643 = vpow2.f32 %v3972_v39  ;;  %4075 = vmatpush3.msra.mxu0 %v3579_v26 }
 0x20c   :  { %v4620_v57 = vpop.eup %4619  ;;  %3311 = vmatprep.mubr.f32.mxu1 %v4618_v19  ;;  %3199 = vmatmul.mubr.f32.gmra.mxu0 %v4612_v32  ;;  %4645 = vpow2.f32 %v3971_v53  ;;  %v5729_v51 = vpop.f32.mrf.mxu0  ;;  %v4011_v32 = vmul.f32 -1.442695, %v1696_v5 }
 0x20d   :  { %v4622_v7 = vpop.eup %4621  ;;  %3312 = vmatmul.mubr.f32.gmra.mxu1 %v4614_v3  ;;  %4647 = vpow2.f32 %v3980_v9 }
 0x20e   :  { %v4624_v11 = vpop.eup %4623  ;;  %4649 = vpow2.f32 %v3988_v10  ;;  %v5732_v46 = vpop.f32.mrf.mxu0 }
 0x20f   :  { %v4626_v14 = vpop.eup %4625  ;;  %3204 = vmatprep.mubr.f32.mxu0 %v4624_v11  ;;  %4651 = vpow2.f32 %v3979_v18 }
 0x210   :  { %v4628_v2 = vpop.eup %4627  ;;  %3317 = vmatprep.mubr.f32.mxu1 %v4626_v14  ;;  %3205 = vmatmul.mubr.f32.gmra.mxu0 %v4620_v57  ;;  %4653 = vpow2.f32 %v3987_v6  ;;  %v5735_v45 = vpop.f32.mrf.mxu0 }
 0x211   :  { %v4630_v58 = vpop.eup %4629  ;;  %3318 = vmatmul.mubr.f32.gmra.mxu1 %v4622_v7  ;;  %4655 = vpow2.f32 %v3996_v15 }
 0x212   :  { %v4632_v31 = vpop.eup %4631  ;;  %4657 = vpow2.f32 %v3995_v16  ;;  %v5737_v39 = vpop.f32.mrf.mxu0 }
 0x213   :  { %v4634_v0 = vpop.eup %4633  ;;  %3210 = vmatprep.mubr.f32.mxu0 %v4632_v31  ;;  %4659 = vpow2.f32 %v4003_v21 }
 0x214   :  { %v4636_v40 = vpop.eup %4635  ;;  %3323 = vmatprep.mubr.f32.mxu1 %v4634_v0  ;;  %3211 = vmatmul.mubr.f32.gmra.mxu0 %v4628_v2  ;;  %4661 = vpow2.f32 %v4004_v56  ;;  %v5739_v24 = vpop.f32.mrf.mxu0 }
 0x215   :  { %v4638_v28 = vpop.eup %4637  ;;  %v2152_v48 = vadd.f32 1.0, %v4636_v40  ;;  %3324 = vmatmul.mubr.f32.gmra.mxu1 %v4630_v58 }
 0x216   :  { %v4640_v47 = vpop.eup %4639  ;;  %v2153_v29 = vadd.f32 1.0, %v4638_v28  ;;  %v5741_v8 = vpop.f32.mrf.mxu0 }
 0x217   :  { %v4642_v44 = vpop.eup %4641  ;;  %v2160_v62 = vadd.f32 1.0, %v4640_v47 }
 0x218   :  { %4663 = vrcp.f32 %v2153_v29  ;;  %v2161_v50 = vadd.f32 1.0, %v4642_v44  ;;  %v4644_v43 = vpop.eup %4643 }
 0x219   :  { %4665 = vrcp.f32 %v2152_v48  ;;  %v4646_v49 = vpop.eup %4645  ;;  %v2169_v12 = vadd.f32 1.0, %v4644_v43  ;;  %v3593_v43 = vld [vmem:[#allocation11 + $0xb8] sm:$0xff] }
 0x21a   :  { %4667 = vrcp.f32 %v2161_v50  ;;  %v4648_v37 = vpop.eup %4647  ;;  %v2168_v38 = vadd.f32 1.0, %v4646_v49  ;;  %v3578_v50 = vld [vmem:[#allocation11 + $0x40] sm:$0xff] }
 0x21b   :  { %4669 = vpow2.f32 %v4012_v60  ;;  %v2177_v27 = vadd.f32 1.0, %v4648_v37  ;;  %v4650_v35 = vpop.eup %4649  ;;  %v3594_v60 = vld [vmem:[#allocation11 + $0xc0] sm:$0xff]  ;;  %v3592_v37 = vld [vmem:[#allocation11 + $0xb0] sm:$0xff] }
 0x21c   :  { %4671 = vrcp.f32 %v2169_v12  ;;  %v4652_v3 = vpop.eup %4651  ;;  %v2185_v13 = vadd.f32 1.0, %v4650_v35  ;;  %4076 = vmatprep.subr.mxu0 %v3594_v60  ;;  %v3573_v60 = vld [vmem:[#allocation11 + $0x18] sm:$0xff] }
 0x21d   :  { %4673 = vrcp.f32 %v2160_v62  ;;  %v4654_v53 = vpop.eup %4653  ;;  %v2176_v19 = vadd.f32 1.0, %v4652_v3  ;;  %4077 = vmatpush3.msra.mxu0 %v3578_v50  ;;  %v3577_v62 = vld [vmem:[#allocation11 + $0x38] sm:$0xff]  ;;  %v3591_v3 = vld [vmem:[#allocation11 + $0xa8] sm:$0xff] }
 0x21e   :  { %4675 = vpow2.f32 %v4011_v32  ;;  %v4656_v9 = vpop.eup %4655  ;;  %v2184_v23 = vadd.f32 1.0, %v4654_v53  ;;  %4078 = vmatprep.subr.mxu0 %v3593_v43  ;;  %v3576_v32 = vld [vmem:[#allocation11 + $0x30] sm:$0xff]  ;;  %v3575_v53 = vld [vmem:[#allocation11 + $0x28] sm:$0xff] }
 0x21f   :  { %4677 = vrcp.f32 %v2177_v27  ;;  %v4658_v63 = vpop.eup %4657  ;;  %v2193_v34 = vadd.f32 1.0, %v4656_v9  ;;  %4079 = vmatpush3.msra.mxu0 %v3577_v62 }
 0x220   :  { %4679 = vrcp.f32 %v2168_v38  ;;  %v4660_v57 = vpop.eup %4659  ;;  %v2192_v6 = vadd.f32 1.0, %v4658_v63  ;;  %4080 = vmatprep.subr.mxu0 %v3592_v37  ;;  %v2722_v63 = vld [vmem:[%s5990_s4] sm:$0x3] }
 0x221   :  { %v4662_v10 = vpop.eup %4661  ;;  %4681 = vrcp.f32 %v2185_v13  ;;  %v2200_v58 = vadd.f32 1.0, %v4660_v57  ;;  %4081 = vmatpush3.msra.mxu0 %v3576_v32  ;;  %v3572_v32 = vld [vmem:[#allocation11 + $0x10] sm:$0xff] }
 0x222   :  { %4683 = vrcp.f32 %v2176_v19  ;;  %v2201_v11 = vadd.f32 1.0, %v4662_v10  ;;  %4082 = vmatprep.subr.mxu0 %v3591_v3 }
 0x223   :  { %4685 = vrcp.f32 %v2193_v34  ;;  %4083 = vmatpush3.msra.mxu0 %v3575_v53  ;;  %v5782_v34 = vrot.slane %v2722_v63, %v1532_v41  ;;  %v3587_v53 = vld [vmem:[#allocation11 + $0x88] sm:$0xff] }
 0x224   :  { %4687 = vrcp.f32 %v2184_v23 }
 0x225   :  { %v4664_v52 = vpop.eup %4663  ;;  %4689 = vrcp.f32 %v2201_v11 }
 0x226   :  { %v4666_v7 = vpop.eup %4665  ;;  %3329 = vmatprep.mubr.f32.mxu1 %v4664_v52  ;;  %4691 = vrcp.f32 %v2192_v6 }
 0x227   :  { %v4668_v18 = vpop.eup %4667  ;;  %3330 = vmatmul.mubr.f32.gmra.mxu1 %v4666_v7  ;;  %v5790_v7 = vrot.slane %v2722_v63, %v1536_v54 }
 0x228   :  { %v4670_v1 = vpop.eup %4669  ;;  %3335 = vmatprep.mubr.f32.mxu1 %v4668_v18  ;;  %v5743_v17 = vpop.f32.mrf.mxu0 }
 0x229   :  { %v4672_v14 = vpop.eup %4671  ;;  %v2209_v30 = vadd.f32 1.0, %v4670_v1  ;;  %v2825_v18 = vadd.f32 %v5743_v17, %v5782_v34 }
 0x22a   :  { %v4674_v33 = vpop.eup %4673  ;;  %v5745_v2 = vpop.f32.mrf.mxu0 }
 0x22b   :  { %3336 = vmatmul.mubr.f32.gmra.mxu1 %v4674_v33  ;;  %v4676_v15 = vpop.eup %4675  ;;  %4693 = vrcp.f32 %v2209_v30  ;;  %v2827_v11 = vadd.f32 %v5745_v2, %v5790_v7 }
 0x22c   :  { %3341 = vmatprep.mubr.f32.mxu1 %v4672_v14  ;;  %v5747_v61 = vpop.f32.mrf.mxu0  ;;  %v4678_v59 = vpop.eup %4677  ;;  %4695 = vrcp.f32 %v2200_v58  ;;  %v2208_v0 = vadd.f32 1.0, %v4676_v15 }
 0x22d   :  { %v4680_v16 = vpop.eup %4679  ;;  %v2831_v33 = vadd.f32 %v5747_v61, %v5782_v34 }
 0x22e   :  { %v5749_v31 = vpop.f32.mrf.mxu0  ;;  %v4682_v21 = vpop.eup %4681  ;;  %4697 = vrcp.f32 %v2208_v0 }
 0x22f   :  { %3342 = vmatmul.mubr.f32.gmra.mxu1 %v4680_v16  ;;  %v4684_v56 = vpop.eup %4683  ;;  %v2833_v42 = vadd.f32 %v5749_v31, %v5790_v7 }
 0x230   :  { %3347 = vmatprep.mubr.f32.mxu1 %v4678_v59  ;;  %v5751_v36 = vpop.f32.mrf.mxu0  ;;  %v4686_v40 = vpop.eup %4685 }
 0x231   :  { %v4688_v4 = vpop.eup %4687  ;;  %v2837_v2 = vadd.f32 %v5751_v36, %v5782_v34 }
 0x232   :  { %v2838_v25 = vpop.f32.mrf.mxu0  ;;  %v4690_v28 = vpop.eup %4689 }
 0x233   :  { %3348 = vmatmul.mubr.f32.gmra.mxu1 %v4684_v56  ;;  %v4692_v48 = vpop.eup %4691  ;;  %v3590_v56 = vld [vmem:[#allocation11 + $0xa0] sm:$0xff] }
 0x234   :  { %3353 = vmatprep.mubr.f32.mxu1 %v4682_v21  ;;  %v5753_v47 = vpop.f32.mrf.mxu0  ;;  %v2839_v21 = vadd.f32 %v2838_v25, %v5790_v7  ;;  %4084 = vmatprep.subr.mxu0 %v3590_v56  ;;  %v3589_v25 = vld [vmem:[#allocation11 + $0x98] sm:$0xff] }
 0x235   :  { %v2843_v31 = vadd.f32 %v5753_v47, %v5782_v34  ;;  %v3588_v47 = vld [vmem:[#allocation11 + $0x90] sm:$0xff] }
 0x236   :  { %v2844_v5 = vpop.f32.mrf.mxu0 }
 0x237   :  { %3354 = vmatmul.mubr.f32.gmra.mxu1 %v4688_v4  ;;  %v2845_v36 = vadd.f32 %v2844_v5, %v5790_v7 }
 0x238   :  { %3359 = vmatprep.mubr.f32.mxu1 %v4686_v40  ;;  %v4694_v29 = vpop.eup %4693  ;;  %v5755_v26 = vpop.f32.mrf.mxu0  ;;  %v3574_v40 = vld [vmem:[#allocation11 + $0x20] sm:$0xff] }
 0x239   :  { %v4696_v44 = vpop.eup %4695  ;;  %4085 = vmatpush3.msra.mxu0 %v3574_v40  ;;  %v2849_v43 = vadd.f32 %v5755_v26, %v5782_v34  ;;  %v3586_v26 = vld [vmem:[#allocation11 + $0x80] sm:$0xff] }
 0x23a   :  { %v5759_v12 = vpop.f32.mrf.mxu0  ;;  %4086 = vmatprep.subr.mxu0 %v3589_v25 }
 0x23b   :  { %3360 = vmatmul.mubr.f32.gmra.mxu1 %v4692_v48  ;;  %v4698_v22 = vpop.eup %4697  ;;  %4087 = vmatpush3.msra.mxu0 %v3573_v60  ;;  %v2851_v5 = vadd.f32 %v5759_v12, %v5790_v7 }
 0x23c   :  { %3365 = vmatprep.mubr.f32.mxu1 %v4690_v28  ;;  %v5765_v38 = vpop.f32.mrf.mxu0  ;;  %4088 = vmatprep.subr.mxu0 %v3588_v47 }
 0x23d   :  { %4089 = vmatpush3.msra.mxu0 %v3572_v32 }
 0x23e   :  { %v5771_v19 = vpop.f32.mrf.mxu0  ;;  %4090 = vmatprep.subr.mxu0 %v3587_v53 }
 0x23f   :  { %3366 = vmatmul.mubr.f32.gmra.mxu1 %v4696_v44  ;;  %v2857_v12 = vadd.f32 %v5771_v19, %v5790_v7 }
 0x240   :  { %3371 = vmatprep.mubr.f32.mxu1 %v4694_v29  ;;  %v5784_v52 = vpop.f32.mrf.mxu0 }
 0x242   :  { %v2862_v14 = vpop.f32.mrf.mxu0 }
 0x243   :  { %3372 = vmatmul.mubr.f32.gmra.mxu1 %v4698_v22  ;;  %v2863_v56 = vadd.f32 %v2862_v14, %v5790_v7 }
 0x244   :  { %v2866_v54 = vpop.f32.mrf.mxu0 }
 0x245   :  { %v2867_v19 = vadd.f32 %v2866_v54, %v5782_v34 }
 0x246   :  { %v2868_v0 = vpop.f32.mrf.mxu0 }
 0x247   :  { %v5757_v49 = vpop.f32.mrf.mxu1  ;;  %v2869_v25 = vadd.f32 %v2868_v0, %v5790_v7 }
 0x249   :  { %v5761_v27 = vpop.f32.mrf.mxu1  ;;  %v2872_v29 = vpop.f32.mrf.mxu0 }
 0x24a   :  { %v2873_v32 = vadd.f32 %v2872_v29, %v5782_v34 }
 0x24b   :  { %v5763_v35 = vpop.f32.mrf.mxu1  ;;  %v2874_v62 = vpop.f32.mrf.mxu0 }
 0x24d   :  { %v5767_v13 = vpop.f32.mrf.mxu1 }
 0x24f   :  { %v5769_v9 = vpop.f32.mrf.mxu1 }
 0x251   :  { %v5776_v57 = vpop.f32.mrf.mxu1 }
 0x253   :  { %v5778_v10 = vpop.f32.mrf.mxu1 }
 0x255   :  { %v5786_v23 = vpop.f32.mrf.mxu1 }
 0x257   :  { %v2985_v1 = vpop.f32.mrf.mxu1 }
 0x258   :  { %v5796_v6 = vadd.f32 %v2985_v1, %v2825_v18  ;;  %v3571_v18 = vld [vmem:[#allocation11 + $0x8] sm:$0xff]  ;;  %v2855_v1 = vadd.f32 %v5765_v38, %v5782_v34  ;;  %v2861_v38 = vadd.f32 %v5784_v52, %v5782_v34 }
 0x259   :  { %v2987_v41 = vpop.f32.mrf.mxu1  ;;  %4091 = vmatpush3.msra.mxu0 %v3571_v18 }
 0x25a   :  { %v5800_v15 = vadd.f32 %v2987_v41, %v2827_v11  ;;  %v2878_v41 = vpop.f32.mrf.mxu0  ;;  %4092 = vmatprep.subr.mxu0 %v3586_v26 }
 0x25b   :  { %v2991_v30 = vpop.f32.mrf.mxu1  ;;  %v2879_v0 = vadd.f32 %v2878_v41, %v5782_v34 }
 0x25c   :  { %v5804_v59 = vadd.f32 %v2991_v30, %v2831_v33  ;;  %v3570_v30 = vld [vmem:[#allocation11] sm:$0xff] }
 0x25d   :  { %v2993_v17 = vpop.f32.mrf.mxu1  ;;  %4093 = vmatpush3.msra.mxu0 %v3570_v30 }
 0x25e   :  { %v5808_v58 = vadd.f32 %v2993_v17, %v2833_v42 }
 0x25f   :  { %v2997_v16 = vpop.f32.mrf.mxu1 }
 0x260   :  { %v5811_v61 = vadd.f32 %v2997_v16, %v2837_v2  ;;  %v2880_v16 = vpop.f32.mrf.mxu0 }
 0x261   :  { %v2999_v4 = vpop.f32.mrf.mxu1  ;;  %v2881_v30 = vadd.f32 %v2880_v16, %v5790_v7 }
 0x262   :  { %v5815_v28 = vadd.f32 %v2999_v4, %v2839_v21 }
 0x263   :  { %v3003_v48 = vpop.f32.mrf.mxu1 }
 0x264   :  { %v5818_v44 = vadd.f32 %v3003_v48, %v2843_v31  ;;  %v2884_v31 = vpop.f32.mrf.mxu0 }
 0x265   :  { %v3005_v50 = vpop.f32.mrf.mxu1  ;;  %v2885_v29 = vadd.f32 %v2884_v31, %v5782_v34 }
 0x266   :  { %v5820_v22 = vadd.f32 %v3005_v50, %v2845_v36  ;;  %v2886_v50 = vpop.f32.mrf.mxu0 }
 0x268   :  { %v3009_v37 = vpop.f32.mrf.mxu1  ;;  %v2890_v47 = vpop.f32.mrf.mxu0 }
 0x269   :  { %v5826_v3 = vadd.f32 %v3009_v37, %v2849_v43 }
 0x26a   :  { %v3011_v63 = vpop.f32.mrf.mxu1  ;;  %v2892_v37 = vpop.f32.mrf.mxu0 }
 0x26b   :  { %v5830_v11 = vadd.f32 %v3011_v63, %v2851_v5  ;;  %v2875_v63 = vadd.f32 %v2874_v62, %v5790_v7 }
 0x26c   :  { %v3015_v33 = vpop.f32.mrf.mxu1  ;;  %v3122_v14 = vpop.f32.mrf.mxu0 }
 0x26d   :  { %v5834_v42 = vadd.f32 %v3015_v33, %v2855_v1 }
 0x26e   :  { %v3017_v17 = vpop.f32.mrf.mxu1  ;;  %v3124_v5 = vpop.f32.mrf.mxu0 }
 0x26f   :  { %v5836_v2 = vadd.f32 %v3017_v17, %v2857_v12 }
 0x270   :  { %v3128_v26 = vpop.f32.mrf.mxu0 }
 0x271   :  { %v3021_v21 = vpop.f32.mrf.mxu1 }
 0x272   :  { %v5841_v40 = vadd.f32 %v3021_v21, %v2861_v38  ;;  %v3130_v21 = vpop.f32.mrf.mxu0 }
 0x273   :  { %v3023_v4 = vpop.f32.mrf.mxu1 }
 0x274   :  { %v5843_v48 = vadd.f32 %v3023_v4, %v2863_v56  ;;  %v2887_v56 = vadd.f32 %v2886_v50, %v5790_v7  ;;  %v2801_v50 = vadd.f32 %v5716_v20, %v5782_v34 }
 0x276   :  { %v3027_v36 = vpop.f32.mrf.mxu1 }
 0x277   :  { %v5847_v60 = vadd.f32 %v3027_v36, %v2867_v19  ;;  %v2891_v19 = vadd.f32 %v2890_v47, %v5782_v34  ;;  %v2803_v47 = vadd.f32 %v5723_v55, %v5790_v7  ;;  %v2813_v55 = vadd.f32 %v5735_v45, %v5782_v34 }
 0x278   :  { %v3029_v43 = vpop.f32.mrf.mxu1  ;;  %v2819_v45 = vadd.f32 %v5739_v24, %v5782_v34 }
 0x279   :  { %v5849_v52 = vadd.f32 %v3029_v43, %v2869_v25  ;;  %v3134_v25 = vpop.f32.mrf.mxu0  ;;  %v2893_v43 = vadd.f32 %v2892_v37, %v5790_v7  ;;  %v2807_v37 = vadd.f32 %v5729_v51, %v5782_v34 }
 0x27b   :  { %v2968_v20 = vadd.f32 %v5763_v35, %v2807_v37 }
 0x27d   :  { %v3129_v51 = vadd.f32 %v3128_v26, %v2968_v20 }
 0x288   :  { %v3033_v53 = vpop.f32.mrf.mxu1 }
 0x289   :  { %v5853_v18 = vadd.f32 %v3033_v53, %v2873_v32 }
 0x28a   :  { %v3035_v54 = vpop.f32.mrf.mxu1 }
 0x28b   :  { %v5856_v1 = vadd.f32 %v3035_v54, %v2875_v63  ;;  %v3136_v63 = vpop.f32.mrf.mxu0 }
 0x28c   :  { %v3039_v33 = vpop.f32.mrf.mxu1 }
 0x28d   :  { %v5859_v12 = vadd.f32 %v3039_v33, %v2879_v0  ;;  %v3140_v54 = vpop.f32.mrf.mxu0 }
 0x28e   :  { %v3041_v17 = vpop.f32.mrf.mxu1 }
 0x28f   :  { %v5862_v38 = vadd.f32 %v3041_v17, %v2881_v30  ;;  %v3142_v0 = vpop.f32.mrf.mxu0  ;;  %v2962_v30 = vadd.f32 %v5757_v49, %v2801_v50  ;;  %v2964_v17 = vadd.f32 %v5761_v27, %v2803_v47  ;;  %v2815_v50 = vadd.f32 %v5737_v39, %v5790_v7 }
 0x290   :  { %v3045_v62 = vpop.f32.mrf.mxu1  ;;  %v2821_v39 = vadd.f32 %v5741_v8, %v5790_v7 }
 0x291   :  { %v5865_v4 = vadd.f32 %v3045_v62, %v2885_v29  ;;  %v5877_v33 = vpop.f32.mrf.mxu0  ;;  %v3123_v29 = vadd.f32 %v3122_v14, %v2962_v30 }
 0x292   :  { %v3047_v41 = vpop.f32.mrf.mxu1  ;;  %v2982_v24 = vadd.f32 %v5786_v23, %v2821_v39 }
 0x293   :  { %v5868_v36 = vadd.f32 %v3047_v41, %v2887_v56  ;;  %v5885_v62 = vpop.f32.mrf.mxu0  ;;  %v2809_v41 = vadd.f32 %v5732_v46, %v5790_v7  ;;  %v2974_v46 = vadd.f32 %v5769_v9, %v2813_v55  ;;  %v2980_v9 = vadd.f32 %v5778_v10, %v2819_v45 }
 0x294   :  { %v3051_v16 = vpop.f32.mrf.mxu1 }
 0x295   :  { %v5871_v32 = vadd.f32 %v3051_v16, %v2891_v19  ;;  %v3125_v19 = vadd.f32 %v3124_v5, %v2964_v17  ;;  %v3135_v37 = vadd.f32 %v3134_v25, %v2974_v46  ;;  %v3141_v34 = vadd.f32 %v3140_v54, %v2980_v9 }
 0x296   :  { %v3053_v31 = vpop.f32.mrf.mxu1  ;;  %v3147_v9 = vadd.f32 %v5877_v33, %v5796_v6 }
 0x297   :  { %v5873_v53 = vadd.f32 %v3053_v31, %v2893_v43  ;;  %v2970_v43 = vadd.f32 %v5767_v13, %v2809_v41  ;;  %v5893_v31 = vpop.f32.mrf.mxu0  ;;  %v2976_v13 = vadd.f32 %v5776_v57, %v2815_v50 }
 0x299   :  { %v3131_v35 = vadd.f32 %v3130_v21, %v2970_v43  ;;  %v5901_v17 = vpop.f32.mrf.mxu0  ;;  %v3137_v41 = vadd.f32 %v3136_v63, %v2976_v13  ;;  %v3143_v43 = vadd.f32 %v3142_v0, %v2982_v24  ;;  %v3149_v24 = vadd.f32 %v5885_v62, %v5800_v15 }
 0x29b   :  { %v5907_v25 = vpop.f32.mrf.mxu0 }
 0x2a9   :  { %v3283_v56 = vpop.f32.mrf.mxu1 }
 0x2aa   :  { %v3284_v16 = vadd.f32 %v3283_v56, %v3123_v29 }
 0x2ab   :  { %v3285_v49 = vpop.f32.mrf.mxu1 }
 0x2ac   :  { %v4013_v27 = vmul.f32 -1.442695, %v3284_v16  ;;  %v3286_v14 = vadd.f32 %v3285_v49, %v3125_v19 }
 0x2ad   :  { %v3289_v47 = vpop.f32.mrf.mxu1 }
 0x2ae   :  { %4699 = vpow2.f32 %v4013_v27  ;;  %v4014_v5 = vmul.f32 -1.442695, %v3286_v14  ;;  %v3290_v30 = vadd.f32 %v3289_v47, %v3129_v51  ;;  %v3160_v51 = vpop.f32.mrf.mxu0 }
 0x2af   :  { %v3291_v26 = vpop.f32.mrf.mxu1 }
 0x2b0   :  { %4701 = vpow2.f32 %v4014_v5  ;;  %v4015_v29 = vmul.f32 -1.442695, %v3290_v30  ;;  %v3292_v56 = vadd.f32 %v3291_v26, %v3131_v35  ;;  %v3164_v50 = vpop.f32.mrf.mxu0 }
 0x2b1   :  { %v3295_v21 = vpop.f32.mrf.mxu1 }
 0x2b2   :  { %4703 = vpow2.f32 %v4015_v29  ;;  %v4016_v20 = vmul.f32 -1.442695, %v3292_v56  ;;  %v3296_v19 = vadd.f32 %v3295_v21, %v3135_v37  ;;  %v5909_v5 = vpop.f32.mrf.mxu0 }
 0x2b3   :  { %v3297_v57 = vpop.f32.mrf.mxu1 }
 0x2b4   :  { %4705 = vpow2.f32 %v4016_v20  ;;  %v4017_v16 = vmul.f32 -1.442695, %v3296_v19  ;;  %v3298_v55 = vadd.f32 %v3297_v57, %v3137_v41  ;;  %v5911_v26 = vpop.f32.mrf.mxu0 }
 0x2b5   :  { %v3301_v49 = vpop.f32.mrf.mxu1 }
 0x2b6   :  { %4707 = vpow2.f32 %v4017_v16  ;;  %v4018_v8 = vmul.f32 -1.442695, %v3298_v55  ;;  %v3302_v7 = vadd.f32 %v3301_v49, %v3141_v34  ;;  %v5915_v21 = vpop.f32.mrf.mxu0  ;;  %v3153_v55 = vadd.f32 %v5893_v31, %v5804_v59 }
 0x2b7   :  { %v3303_v10 = vpop.f32.mrf.mxu1  ;;  %v3159_v59 = vadd.f32 %v5907_v25, %v5811_v61 }
 0x2b8   :  { %4709 = vpow2.f32 %v4018_v8  ;;  %v4019_v63 = vmul.f32 -1.442695, %v3302_v7  ;;  %v3304_v27 = vadd.f32 %v3303_v10, %v3143_v43  ;;  %v5921_v49 = vpop.f32.mrf.mxu0  ;;  %v3155_v10 = vadd.f32 %v5901_v17, %v5808_v58 }
 0x2ba   :  { %4711 = vpow2.f32 %v4019_v63  ;;  %v4020_v14 = vmul.f32 -1.442695, %v3304_v27  ;;  %v5927_v31 = vpop.f32.mrf.mxu0 }
 0x2bb   :  { %v4700_v23 = vpop.eup %4699 }
 0x2bc   :  { %4713 = vpow2.f32 %v4020_v14  ;;  %v3474_v46 = vadd.f32 1.0, %v4700_v23 }
 0x2bd   :  { %v4702_v54 = vpop.eup %4701 }
 0x2be   :  { %v3475_v47 = vadd.f32 1.0, %v4702_v54 }
 0x2bf   :  { %v4704_v35 = vpop.eup %4703 }
 0x2c0   :  { %4715 = vrcp.f32 %v3475_v47  ;;  %v3476_v30 = vadd.f32 1.0, %v4704_v35  ;;  %v3161_v47 = vadd.f32 %v3160_v51, %v5815_v28 }
 0x2c1   :  { %v4706_v0 = vpop.eup %4705  ;;  %4717 = vrcp.f32 %v3474_v46 }
 0x2c2   :  { %v3477_v45 = vadd.f32 1.0, %v4706_v0  ;;  %v3165_v0 = vadd.f32 %v3164_v50, %v5818_v44 }
 0x2c3   :  { %v4708_v13 = vpop.eup %4707 }
 0x2c4   :  { %4719 = vrcp.f32 %v3477_v45  ;;  %v3478_v29 = vadd.f32 1.0, %v4708_v13 }
 0x2c5   :  { %v4710_v37 = vpop.eup %4709  ;;  %4721 = vrcp.f32 %v3476_v30  ;;  %v5931_v30 = vpop.f32.mrf.mxu0 }
 0x2c6   :  { %v3479_v56 = vadd.f32 1.0, %v4710_v37 }
 0x2c7   :  { %v4712_v39 = vpop.eup %4711 }
 0x2c8   :  { %4723 = vrcp.f32 %v3479_v56  ;;  %v3480_v20 = vadd.f32 1.0, %v4712_v39  ;;  %v5935_v39 = vpop.f32.mrf.mxu0 }
 0x2c9   :  { %v4714_v41 = vpop.eup %4713  ;;  %4725 = vrcp.f32 %v3478_v29  ;;  %v3307_v19 = vpop.f32.mrf.mxu1  ;;  %v3167_v29 = vadd.f32 %v5909_v5, %v5820_v22 }
 0x2ca   :  { %v3481_v57 = vadd.f32 1.0, %v4714_v41  ;;  %v3308_v34 = vadd.f32 %v3307_v19, %v3147_v9 }
 0x2cb   :  { %v3309_v16 = vpop.f32.mrf.mxu1 }
 0x2cc   :  { %4727 = vrcp.f32 %v3481_v57  ;;  %v4021_v6 = vmul.f32 -1.442695, %v3308_v34  ;;  %v3310_v33 = vadd.f32 %v3309_v16, %v3149_v24  ;;  %v3188_v24 = vpop.f32.mrf.mxu0 }
 0x2cd   :  { %v4716_v43 = vpop.eup %4715  ;;  %4729 = vrcp.f32 %v3480_v20  ;;  %v3313_v8 = vpop.f32.mrf.mxu1 }
 0x2ce   :  { %v4718_v7 = vpop.eup %4717  ;;  %4731 = vpow2.f32 %v4021_v6  ;;  %v4022_v15 = vmul.f32 -1.442695, %v3310_v33  ;;  %v3314_v62 = vadd.f32 %v3313_v8, %v3153_v55  ;;  %3673 = vmatprep.mubr.f32.mxu0 %v4716_v43  ;;  %v3190_v16 = vpop.f32.mrf.mxu0 }
 0x2cf   :  { %v3315_v63 = vpop.f32.mrf.mxu1  ;;  %3674 = vmatmul.mubr.f32.vlgmr.msra.gmra.mxu0 %v4718_v7 }
 0x2d0   :  { %4733 = vpow2.f32 %v4022_v15  ;;  %v4023_v27 = vmul.f32 -1.442695, %v3314_v62  ;;  %v3316_v14 = vadd.f32 %v3315_v63, %v3155_v10  ;;  %v3194_v8 = vpop.f32.mrf.mxu0  ;;  %v3171_v15 = vadd.f32 %v5911_v26, %v5826_v3 }
 0x2d1   :  { %v4720_v23 = vpop.eup %4719  ;;  %v3319_v54 = vpop.f32.mrf.mxu1  ;;  %v3179_v26 = vadd.f32 %v5927_v31, %v5836_v2  ;;  %v3185_v2 = vadd.f32 %v5935_v39, %v5843_v48 }
 0x2d2   :  { %v4722_v46 = vpop.eup %4721  ;;  %4735 = vpow2.f32 %v4023_v27  ;;  %v4024_v58 = vmul.f32 -1.442695, %v3316_v14  ;;  %v3320_v17 = vadd.f32 %v3319_v54, %v3159_v59  ;;  %3678 = vmatprep.mubr.f32.mxu0 %v4720_v23  ;;  %v3173_v27 = vadd.f32 %v5915_v21, %v5830_v11  ;;  %v3196_v14 = vpop.f32.mrf.mxu0 }
 0x2d3   :  { %v3321_v35 = vpop.f32.mrf.mxu1  ;;  %3679 = vmatmul.mubr.f32.gmra.mxu0 %v4722_v46 }
 0x2d4   :  { %4737 = vpow2.f32 %v4024_v58  ;;  %v4025_v61 = vmul.f32 -1.442695, %v3320_v17  ;;  %v3322_v25 = vadd.f32 %v3321_v35, %v3161_v47  ;;  %v3177_v58 = vadd.f32 %v5921_v49, %v5834_v42 }
 0x2d5   :  { %v4724_v45 = vpop.eup %4723  ;;  %v3325_v13 = vpop.f32.mrf.mxu1 }
 0x2d6   :  { %v4726_v37 = vpop.eup %4725  ;;  %4739 = vpow2.f32 %v4025_v61  ;;  %v4026_v28 = vmul.f32 -1.442695, %v3322_v25  ;;  %v3326_v51 = vadd.f32 %v3325_v13, %v3165_v0  ;;  %3683 = vmatprep.mubr.f32.mxu0 %v4724_v45  ;;  %v3200_v61 = vpop.f32.mrf.mxu0 }
 0x2d7   :  { %v3327_v56 = vpop.f32.mrf.mxu1  ;;  %3684 = vmatmul.mubr.f32.gmra.mxu0 %v4726_v37  ;;  %v3183_v37 = vadd.f32 %v5931_v30, %v5841_v40 }
 0x2d8   :  { %4741 = vpow2.f32 %v4026_v28  ;;  %v4027_v44 = vmul.f32 -1.442695, %v3326_v51  ;;  %v3328_v50 = vadd.f32 %v3327_v56, %v3167_v29  ;;  %v3202_v31 = vpop.f32.mrf.mxu0 }
 0x2d9   :  { %v4728_v9 = vpop.eup %4727 }
 0x2da   :  { %v4730_v41 = vpop.eup %4729  ;;  %4743 = vpow2.f32 %v4027_v44  ;;  %v4028_v20 = vmul.f32 -1.442695, %v3328_v50  ;;  %3688 = vmatprep.mubr.f32.mxu0 %v4728_v9  ;;  %v3189_v9 = vadd.f32 %v3188_v24, %v5847_v60 }
 0x2db   :  { %v4732_v19 = vpop.eup %4731  ;;  %3689 = vmatmul.mubr.f32.gmra.mxu0 %v4730_v41 }
 0x2dc   :  { %4745 = vpow2.f32 %v4028_v20  ;;  %v3482_v5 = vadd.f32 1.0, %v4732_v19  ;;  %v3191_v20 = vadd.f32 %v3190_v16, %v5849_v52  ;;  %v3206_v19 = vpop.f32.mrf.mxu0 }
 0x2dd   :  { %v4734_v22 = vpop.eup %4733 }
 0x2de   :  { %v3483_v57 = vadd.f32 1.0, %v4734_v22 }
 0x2df   :  { %v4736_v34 = vpop.eup %4735 }
 0x2e0   :  { %4747 = vrcp.f32 %v3483_v57  ;;  %v3484_v6 = vadd.f32 1.0, %v4736_v34  ;;  %v3195_v34 = vadd.f32 %v3194_v8, %v5853_v18 }
 0x2e1   :  { %v4738_v55 = vpop.eup %4737  ;;  %4749 = vrcp.f32 %v3482_v5 }
 0x2e2   :  { %v3485_v33 = vadd.f32 1.0, %v4738_v55 }
 0x2e3   :  { %v4740_v43 = vpop.eup %4739 }
 0x2e4   :  { %4751 = vrcp.f32 %v3485_v33  ;;  %v3486_v10 = vadd.f32 1.0, %v4740_v43  ;;  %v3197_v33 = vadd.f32 %v3196_v14, %v5856_v1  ;;  %v3208_v43 = vpop.f32.mrf.mxu0 }
 0x2e5   :  { %v4742_v7 = vpop.eup %4741  ;;  %4753 = vrcp.f32 %v3484_v6 }
 0x2e6   :  { %v3487_v62 = vadd.f32 1.0, %v4742_v7  ;;  %v3212_v1 = vpop.f32.mrf.mxu0 }
 0x2e7   :  { %v4744_v63 = vpop.eup %4743  ;;  %v3331_v59 = vpop.f32.mrf.mxu1 }
 0x2e8   :  { %4755 = vrcp.f32 %v3487_v62  ;;  %v3488_v23 = vadd.f32 1.0, %v4744_v63  ;;  %v3332_v54 = vadd.f32 %v3331_v59, %v3171_v15  ;;  %v3201_v62 = vadd.f32 %v3200_v61, %v5859_v12  ;;  %v3214_v61 = vpop.f32.mrf.mxu0 }
 0x2e9   :  { %v4746_v46 = vpop.eup %4745  ;;  %4757 = vrcp.f32 %v3486_v10  ;;  %v3333_v47 = vpop.f32.mrf.mxu1  ;;  %v3203_v59 = vadd.f32 %v3202_v31, %v5862_v38  ;;  %v3209_v38 = vadd.f32 %v3208_v43, %v5868_v36 }
 0x2ea   :  { %v3489_v17 = vadd.f32 1.0, %v4746_v46  ;;  %v4029_v35 = vmul.f32 -1.442695, %v3332_v54  ;;  %v3334_v0 = vadd.f32 %v3333_v47, %v3173_v27  ;;  %4759 = vrcp.f32 %v3488_v23 }
 0x2eb   :  { %v3337_v3 = vpop.f32.mrf.mxu1 }
 0x2ec   :  { %4761 = vrcp.f32 %v3489_v17  ;;  %v4030_v11 = vmul.f32 -1.442695, %v3334_v0  ;;  %v3338_v21 = vadd.f32 %v3337_v3, %v3177_v58  ;;  %v3207_v58 = vadd.f32 %v3206_v19, %v5865_v4 }
 0x2ed   :  { %v4748_v25 = vpop.eup %4747  ;;  %4763 = vpow2.f32 %v4029_v35  ;;  %v3339_v45 = vpop.f32.mrf.mxu1 }
 0x2ee   :  { %v4750_v13 = vpop.eup %4749  ;;  %4765 = vpow2.f32 %v4030_v11  ;;  %v4031_v42 = vmul.f32 -1.442695, %v3338_v21  ;;  %v3340_v49 = vadd.f32 %v3339_v45, %v3179_v26  ;;  %3693 = vmatprep.mubr.f32.mxu0 %v4748_v25 }
 0x2ef   :  { %v3343_v29 = vpop.f32.mrf.mxu1  ;;  %3694 = vmatmul.mubr.f32.gmra.mxu0 %v4750_v13  ;;  %v3213_v13 = vadd.f32 %v3212_v1, %v5871_v32 }
 0x2f0   :  { %4767 = vpow2.f32 %v4031_v42  ;;  %v4032_v28 = vmul.f32 -1.442695, %v3340_v49  ;;  %v3344_v51 = vadd.f32 %v3343_v29, %v3183_v37 }
 0x2f1   :  { %v4752_v56 = vpop.eup %4751  ;;  %v3345_v44 = vpop.f32.mrf.mxu1 }
 0x2f2   :  { %v4754_v50 = vpop.eup %4753  ;;  %4769 = vpow2.f32 %v4032_v28  ;;  %v4033_v40 = vmul.f32 -1.442695, %v3344_v51  ;;  %v3346_v30 = vadd.f32 %v3345_v44, %v3185_v2  ;;  %3698 = vmatprep.mubr.f32.mxu0 %v4752_v56  ;;  %v3215_v2 = vadd.f32 %v3214_v61, %v5873_v53 }
 0x2f3   :  { %v3349_v41 = vpop.f32.mrf.mxu1  ;;  %3699 = vmatmul.mubr.f32.gmra.mxu0 %v4754_v50 }
 0x2f4   :  { %4771 = vpow2.f32 %v4033_v40  ;;  %v4034_v48 = vmul.f32 -1.442695, %v3346_v30  ;;  %v3350_v39 = vadd.f32 %v3349_v41, %v3189_v9 }
 0x2f5   :  { %v4756_v22 = vpop.eup %4755  ;;  %v3351_v5 = vpop.f32.mrf.mxu1 }
 0x2f6   :  { %v4758_v57 = vpop.eup %4757  ;;  %4773 = vpow2.f32 %v4034_v48  ;;  %v4035_v55 = vmul.f32 -1.442695, %v3350_v39  ;;  %v3352_v60 = vadd.f32 %v3351_v5, %v3191_v20  ;;  %3703 = vmatprep.mubr.f32.mxu0 %v4756_v22 }
 0x2f7   :  { %v3355_v24 = vpop.f32.mrf.mxu1  ;;  %3704 = vmatmul.mubr.f32.gmra.mxu0 %v4758_v57  ;;  %v4760_v6 = vpop.eup %4759 }
 0x2f8   :  { %4775 = vpow2.f32 %v4035_v55  ;;  %v4036_v52 = vmul.f32 -1.442695, %v3352_v60  ;;  %v3356_v16 = vadd.f32 %v3355_v24, %v3195_v34 }
 0x2f9   :  { %v4762_v7 = vpop.eup %4761  ;;  %v3357_v10 = vpop.f32.mrf.mxu1 }
 0x2fa   :  { %v4764_v15 = vpop.eup %4763  ;;  %4777 = vpow2.f32 %v4036_v52  ;;  %v4037_v18 = vmul.f32 -1.442695, %v3356_v16  ;;  %v3358_v8 = vadd.f32 %v3357_v10, %v3197_v33  ;;  %3708 = vmatprep.mubr.f32.mxu0 %v4762_v7 }
 0x2fb   :  { %v4766_v63 = vpop.eup %4765  ;;  %v3490_v27 = vadd.f32 1.0, %v4764_v15  ;;  %v3361_v23 = vpop.f32.mrf.mxu1  ;;  %3709 = vmatmul.mubr.f32.gmra.mxu0 %v4760_v6 }
 0x2fc   :  { %v3491_v14 = vadd.f32 1.0, %v4766_v63  ;;  %4779 = vpow2.f32 %v4037_v18  ;;  %v4038_v54 = vmul.f32 -1.442695, %v3358_v8  ;;  %v3362_v46 = vadd.f32 %v3361_v23, %v3201_v62 }
 0x2fd   :  { %v4768_v47 = vpop.eup %4767  ;;  %4781 = vrcp.f32 %v3490_v27  ;;  %v3363_v12 = vpop.f32.mrf.mxu1 }
 0x2fe   :  { %4783 = vrcp.f32 %v3491_v14  ;;  %v3492_v17 = vadd.f32 1.0, %v4768_v47  ;;  %v4039_v35 = vmul.f32 -1.442695, %v3362_v46  ;;  %v3364_v0 = vadd.f32 %v3363_v12, %v3203_v59  ;;  %v5962_v12 = vld [vmem:[%s5992_s6] ss:$0 sm:$0xff]  ;;  %s5032_s6 = smov [#allocation12]  }
 0x2ff   :  { %v4770_v3 = vpop.eup %4769  ;;  %4785 = vpow2.f32 %v4038_v54  ;;  %v3367_v26 = vpop.f32.mrf.mxu1  ;;  %s3871_s30 = sshll.u32 %s5032_s6, 4  ;;  %s3872_s30 = int_to_ptr.vmem [resolvable:$true] %s3871_s30 }
 0x300   :  { %4787 = vrcp.f32 %v3492_v17  ;;  %v3493_v11 = vadd.f32 1.0, %v4770_v3  ;;  %v4040_v21 = vmul.f32 -1.442695, %v3364_v0  ;;  %v3368_v25 = vadd.f32 %v3367_v26, %v3207_v58  ;;  %s4992_s8 = scalar_lea.vmem %s3872_s30, 2048  ;;  %p4997_p12 = scmp.lt.s32.totalorder %s3872_s30, %s3872_s30 }
 0x301   :  { %v4772_v45 = vpop.eup %4771  ;;  %4789 = vpow2.f32 %v4039_v35  ;;  %v3369_v4 = vpop.f32.mrf.mxu1  ;;  %p4993_p11 = scmp.ne.s32.totalorder %s3872_s30, %s4992_s8  ;;  %p4998_p13 = scmp.lt.s32.totalorder %s4992_s8, %s4992_s8 }
 0x302   :  { %4791 = vrcp.f32 %v3493_v11  ;;  %v3494_v37 = vadd.f32 1.0, %v4772_v45  ;;  %v4041_v42 = vmul.f32 -1.442695, %v3368_v25  ;;  %v3370_v49 = vadd.f32 %v3369_v4, %v3209_v38 }
 0x303   :  { %v4774_v29 = vpop.eup %4773  ;;  %4793 = vpow2.f32 %v4040_v21  ;;  %v3373_v36 = vpop.f32.mrf.mxu1  ;;  %p4999_p0 = por %p4998_p13, %p4997_p12 }
 0x304   :  { %4795 = vrcp.f32 %v3494_v37  ;;  %v3495_v31 = vadd.f32 1.0, %v4774_v29  ;;  %v4042_v28 = vmul.f32 -1.442695, %v3370_v49  ;;  %v3374_v51 = vadd.f32 %v3373_v36, %v3213_v13 }
 0x305   :  { %v4776_v56 = vpop.eup %4775  ;;  %4797 = vpow2.f32 %v4041_v42  ;;  %v3375_v44 = vpop.f32.mrf.mxu1  ;;  %p5000_p1 = pnand %p4999_p0, %p4993_p11 }
 0x306   :  { %4799 = vrcp.f32 %v3495_v31  ;;  %v3496_v32 = vadd.f32 1.0, %v4776_v56  ;;  %v4043_v50 = vmul.f32 -1.442695, %v3374_v51  ;;  %v3376_v9 = vadd.f32 %v3375_v44, %v3215_v2 }
 0x307   :  { %v4778_v40 = vpop.eup %4777  ;;  %4801 = vpow2.f32 %v4042_v28 }
 0x308   :  { %4803 = vrcp.f32 %v3496_v32  ;;  %v3497_v30 = vadd.f32 1.0, %v4778_v40  ;;  %v4044_v41 = vmul.f32 -1.442695, %v3376_v9 }
 0x309   :  { %v4780_v20 = vpop.eup %4779  ;;  %4805 = vpow2.f32 %v4043_v50 }
 0x30a   :  { %v4782_v53 = vpop.eup %4781  ;;  %4807 = vrcp.f32 %v3497_v30  ;;  %v3498_v39 = vadd.f32 1.0, %v4780_v20 }
 0x30b   :  { %v4784_v19 = vpop.eup %4783  ;;  %4809 = vpow2.f32 %v4044_v41 }
 0x30c   :  { %v4786_v48 = vpop.eup %4785  ;;  %3713 = vmatprep.mubr.f32.mxu0 %v4784_v19 }
 0x30d   :  { %v4788_v22 = vpop.eup %4787  ;;  %v3499_v5 = vadd.f32 1.0, %v4786_v48  ;;  %3714 = vmatmul.mubr.f32.gmra.mxu0 %v4782_v53 }
 0x30e   :  { %v4790_v57 = vpop.eup %4789 }
 0x30f   :  { %v4792_v34 = vpop.eup %4791  ;;  %4811 = vrcp.f32 %v3499_v5  ;;  %v3500_v60 = vadd.f32 1.0, %v4790_v57 }
 0x310   :  { %v4794_v55 = vpop.eup %4793  ;;  %4813 = vrcp.f32 %v3498_v39  ;;  %3718 = vmatprep.mubr.f32.mxu0 %v4792_v34 }
 0x311   :  { %v4796_v24 = vpop.eup %4795  ;;  %v3501_v6 = vadd.f32 1.0, %v4794_v55  ;;  %3719 = vmatmul.mubr.f32.gmra.mxu0 %v4788_v22 }
 0x312   :  { %v4798_v33 = vpop.eup %4797 }
 0x313   :  { %v4800_v43 = vpop.eup %4799  ;;  %4815 = vrcp.f32 %v3501_v6  ;;  %v3502_v16 = vadd.f32 1.0, %v4798_v33 }
 0x314   :  { %v4802_v52 = vpop.eup %4801  ;;  %4817 = vrcp.f32 %v3500_v60  ;;  %3723 = vmatprep.mubr.f32.mxu0 %v4800_v43 }
 0x315   :  { %v4804_v7 = vpop.eup %4803  ;;  %v3503_v10 = vadd.f32 1.0, %v4802_v52  ;;  %3724 = vmatmul.mubr.f32.gmra.mxu0 %v4796_v24 }
 0x316   :  { %v4806_v15 = vpop.eup %4805 }
 0x317   :  { %v4808_v62 = vpop.eup %4807  ;;  %4819 = vrcp.f32 %v3503_v10  ;;  %v3504_v8 = vadd.f32 1.0, %v4806_v15 }
 0x318   :  { %v4810_v18 = vpop.eup %4809  ;;  %4821 = vrcp.f32 %v3502_v16  ;;  %3728 = vmatprep.mubr.f32.mxu0 %v4808_v62 }
 0x319   :  { %v3505_v63 = vadd.f32 1.0, %v4810_v18  ;;  %3729 = vmatmul.mubr.f32.gmra.mxu0 %v4804_v7 }
 0x31b   :  { %4823 = vrcp.f32 %v3505_v63 }
 0x31c   :  { %v4812_v59 = vpop.eup %4811  ;;  %4825 = vrcp.f32 %v3504_v8 }
 0x31d   :  { %v4814_v27 = vpop.eup %4813  ;;  %3733 = vmatprep.mubr.f32.mxu0 %v4812_v59 }
 0x31e   :  { %3734 = vmatmul.mubr.f32.gmra.mxu0 %v4814_v27 }
 0x320   :  { %v4816_v23 = vpop.eup %4815 }
 0x321   :  { %v4818_v1 = vpop.eup %4817  ;;  %3738 = vmatprep.mubr.f32.mxu0 %v4816_v23 }
 0x322   :  { %3739 = vmatmul.mubr.f32.gmra.mxu0 %v4818_v1 }
 0x324   :  { %v4820_v14 = vpop.eup %4819 }
 0x325   :  { %v4822_v54 = vpop.eup %4821  ;;  %3743 = vmatprep.mubr.f32.mxu0 %v4820_v14 }
 0x326   :  { %3744 = vmatmul.mubr.f32.gmra.mxu0 %v4822_v54 }
 0x328   :  { %v4824_v46 = vpop.eup %4823 }
 0x329   :  { %v4826_v47 = vpop.eup %4825  ;;  %3748 = vmatprep.mubr.f32.mxu0 %v4824_v46 }
 0x32a   :  { %3749 = vmatmul.mubr.f32.gmra.mxu0 %v4826_v47 }
 0x38f   :  { %v4094_v58 = vpop.f32.mrf.mxu0 }
 0x391   :  { %v4095_v17 = vpop.f32.mrf.mxu0 }
 0x392   :  { %v4096_v35 = vadd.f32 %v4095_v17, %v4094_v58 }
 0x393   :  { %v4097_v0 = vpop.f32.mrf.mxu0 }
 0x394   :  { %v3676_v3 = vadd.f32 %v4096_v35, %v5962_v12 }
 0x395   :  { %v4098_v38 = vpop.f32.mrf.mxu0 }
 0x396   :  { %v4046_v26 = vmul.f32 -1.442695, %v3676_v3  ;;  %v4099_v61 = vadd.f32 %v4098_v38, %v4097_v0 }
 0x397   :  { %v4100_v11 = vpop.f32.mrf.mxu0 }
 0x398   :  { %4827 = vpow2.f32 %v4046_v26  ;;  %v3681_v21 = vadd.f32 %v4099_v61, %v5962_v12 }
 0x399   :  { %v4101_v25 = vpop.f32.mrf.mxu0 }
 0x39a   :  { %v4047_v45 = vmul.f32 -1.442695, %v3681_v21  ;;  %v4102_v13 = vadd.f32 %v4101_v25, %v4100_v11 }
 0x39b   :  { %v4103_v4 = vpop.f32.mrf.mxu0 }
 0x39c   :  { %4829 = vpow2.f32 %v4047_v45  ;;  %v3686_v37 = vadd.f32 %v4102_v13, %v5962_v12 }
 0x39d   :  { %v4104_v42 = vpop.f32.mrf.mxu0 }
 0x39e   :  { %v4048_v49 = vmul.f32 -1.442695, %v3686_v37  ;;  %v4105_v29 = vadd.f32 %v4104_v42, %v4103_v4 }
 0x3a0   :  { %4831 = vpow2.f32 %v4048_v49  ;;  %v3691_v2 = vadd.f32 %v4105_v29, %v5962_v12 }
 0x3a2   :  { %v4049_v36 = vmul.f32 -1.442695, %v3691_v2 }
 0x3a4   :  { %4833 = vpow2.f32 %v4049_v36 }
 0x3a5   :  { %v4828_v31 = vpop.eup %4827 }
 0x3a6   :  { %v3802_v28 = vadd.f32 1.0, %v4828_v31 }
 0x3a8   :  { %4835 = vrcp.f32 %v3802_v28 }
 0x3a9   :  { %v4830_v51 = vpop.eup %4829 }
 0x3aa   :  { %v3803_v56 = vadd.f32 1.0, %v4830_v51 }
 0x3ac   :  { %4837 = vrcp.f32 %v3803_v56 }
 0x3ad   :  { %v4832_v44 = vpop.eup %4831 }
 0x3ae   :  { %v3804_v32 = vadd.f32 1.0, %v4832_v44 }
 0x3af   :  { %v4106_v50 = vpop.f32.mrf.mxu0 }
 0x3b0   :  { %4839 = vrcp.f32 %v3804_v32 }
 0x3b1   :  { %v4834_v9 = vpop.eup %4833  ;;  %v4107_v40 = vpop.f32.mrf.mxu0 }
 0x3b2   :  { %v3805_v30 = vadd.f32 1.0, %v4834_v9  ;;  %v4108_v41 = vadd.f32 %v4107_v40, %v4106_v50 }
 0x3b3   :  { %v4109_v20 = vpop.f32.mrf.mxu0 }
 0x3b4   :  { %4841 = vrcp.f32 %v3805_v30  ;;  %v3696_v53 = vadd.f32 %v4108_v41, %v5962_v12 }
 0x3b5   :  { %v4836_v19 = vpop.eup %4835  ;;  %v4110_v48 = vpop.f32.mrf.mxu0 }
 0x3b6   :  { %3850 = vst [vmem:[#allocation12] sm:$0xff] %v4836_v19  ;;  %v4050_v39 = vmul.f32 -1.442695, %v3696_v53  ;;  %v4111_v22 = vadd.f32 %v4110_v48, %v4109_v20 }
 0x3b7   :  { %v4112_v5 = vpop.f32.mrf.mxu0 }
 0x3b8   :  { %4843 = vpow2.f32 %v4050_v39  ;;  %v3701_v57 = vadd.f32 %v4111_v22, %v5962_v12 }
 0x3b9   :  { %v4838_v34 = vpop.eup %4837  ;;  %v4113_v55 = vpop.f32.mrf.mxu0 }
 0x3ba   :  { %3851 = vst [vmem:[#allocation12 + $0x8] sm:$0xff] %v4838_v34  ;;  %v4051_v60 = vmul.f32 -1.442695, %v3701_v57  ;;  %v4114_v24 = vadd.f32 %v4113_v55, %v4112_v5 }
 0x3bb   :  { %v4115_v6 = vpop.f32.mrf.mxu0 }
 0x3bc   :  { %4845 = vpow2.f32 %v4051_v60  ;;  %v3706_v33 = vadd.f32 %v4114_v24, %v5962_v12 }
 0x3bd   :  { %v4840_v43 = vpop.eup %4839  ;;  %v4116_v52 = vpop.f32.mrf.mxu0 }
 0x3be   :  { %3852 = vst [vmem:[#allocation12 + $0x10] sm:$0xff] %v4840_v43  ;;  %v4052_v16 = vmul.f32 -1.442695, %v3706_v33  ;;  %v4117_v7 = vadd.f32 %v4116_v52, %v4115_v6 }
 0x3c0   :  { %4847 = vpow2.f32 %v4052_v16  ;;  %v3711_v10 = vadd.f32 %v4117_v7, %v5962_v12 }
 0x3c1   :  { %v4842_v15 = vpop.eup %4841 }
 0x3c2   :  { %3853 = vst [vmem:[#allocation12 + $0x18] sm:$0xff] %v4842_v15  ;;  %v4053_v62 = vmul.f32 -1.442695, %v3711_v10 }
 0x3c4   :  { %4849 = vpow2.f32 %v4053_v62 }
 0x3c5   :  { %v4844_v18 = vpop.eup %4843 }
 0x3c6   :  { %v3806_v8 = vadd.f32 1.0, %v4844_v18 }
 0x3c8   :  { %4851 = vrcp.f32 %v3806_v8 }
 0x3c9   :  { %v4846_v63 = vpop.eup %4845 }
 0x3ca   :  { %v3807_v59 = vadd.f32 1.0, %v4846_v63 }
 0x3cc   :  { %4853 = vrcp.f32 %v3807_v59 }
 0x3cd   :  { %v4848_v27 = vpop.eup %4847  ;;  %v4118_v23 = vpop.f32.mrf.mxu0 }
 0x3ce   :  { %v3808_v1 = vadd.f32 1.0, %v4848_v27 }
 0x3cf   :  { %v4119_v14 = vpop.f32.mrf.mxu0 }
 0x3d0   :  { %4855 = vrcp.f32 %v3808_v1  ;;  %v4120_v54 = vadd.f32 %v4119_v14, %v4118_v23 }
 0x3d1   :  { %v4850_v46 = vpop.eup %4849  ;;  %v4121_v47 = vpop.f32.mrf.mxu0 }
 0x3d2   :  { %v3809_v58 = vadd.f32 1.0, %v4850_v46  ;;  %v3716_v17 = vadd.f32 %v4120_v54, %v5962_v12 }
 0x3d3   :  { %v4122_v35 = vpop.f32.mrf.mxu0 }
 0x3d4   :  { %4857 = vrcp.f32 %v3809_v58  ;;  %v4054_v0 = vmul.f32 -1.442695, %v3716_v17  ;;  %v4123_v3 = vadd.f32 %v4122_v35, %v4121_v47 }
 0x3d5   :  { %v4852_v38 = vpop.eup %4851  ;;  %v4124_v26 = vpop.f32.mrf.mxu0 }
 0x3d6   :  { %3854 = vst [vmem:[#allocation12 + $0x20] sm:$0xff] %v4852_v38  ;;  %4859 = vpow2.f32 %v4054_v0  ;;  %v3721_v61 = vadd.f32 %v4123_v3, %v5962_v12 }
 0x3d7   :  { %v4125_v11 = vpop.f32.mrf.mxu0 }
 0x3d8   :  { %v4055_v21 = vmul.f32 -1.442695, %v3721_v61  ;;  %v4126_v25 = vadd.f32 %v4125_v11, %v4124_v26 }
 0x3d9   :  { %v4854_v45 = vpop.eup %4853  ;;  %v4127_v13 = vpop.f32.mrf.mxu0 }
 0x3da   :  { %3855 = vst [vmem:[#allocation12 + $0x28] sm:$0xff] %v4854_v45  ;;  %4861 = vpow2.f32 %v4055_v21  ;;  %v3726_v4 = vadd.f32 %v4126_v25, %v5962_v12 }
 0x3db   :  { %v4128_v37 = vpop.f32.mrf.mxu0 }
 0x3dc   :  { %v4056_v42 = vmul.f32 -1.442695, %v3726_v4  ;;  %v4129_v49 = vadd.f32 %v4128_v37, %v4127_v13 }
 0x3dd   :  { %v4856_v29 = vpop.eup %4855 }
 0x3de   :  { %3856 = vst [vmem:[#allocation12 + $0x30] sm:$0xff] %v4856_v29  ;;  %4863 = vpow2.f32 %v4056_v42  ;;  %v3731_v2 = vadd.f32 %v4129_v49, %v5962_v12  ;;  %v4130_v36 = vpop.f32.mrf.mxu0 }
 0x3e0   :  { %v4057_v31 = vmul.f32 -1.442695, %v3731_v2  ;;  %v4131_v28 = vpop.f32.mrf.mxu0 }
 0x3e1   :  { %v4858_v51 = vpop.eup %4857  ;;  %v4132_v56 = vadd.f32 %v4131_v28, %v4130_v36 }
 0x3e2   :  { %3857 = vst [vmem:[#allocation12 + $0x38] sm:$0xff] %v4858_v51  ;;  %4865 = vpow2.f32 %v4057_v31  ;;  %v4133_v44 = vpop.f32.mrf.mxu0 }
 0x3e3   :  { %v4860_v32 = vpop.eup %4859  ;;  %v3736_v50 = vadd.f32 %v4132_v56, %v5962_v12 }
 0x3e4   :  { %v3810_v9 = vadd.f32 1.0, %v4860_v32  ;;  %v4134_v40 = vpop.f32.mrf.mxu0 }
 0x3e5   :  { %v4058_v30 = vmul.f32 -1.442695, %v3736_v50  ;;  %v4135_v41 = vadd.f32 %v4134_v40, %v4133_v44 }
 0x3e6   :  { %4867 = vrcp.f32 %v3810_v9  ;;  %v4136_v20 = vpop.f32.mrf.mxu0 }
 0x3e7   :  { %v4862_v53 = vpop.eup %4861  ;;  %4869 = vpow2.f32 %v4058_v30  ;;  %v3741_v19 = vadd.f32 %v4135_v41, %v5962_v12 }
 0x3e8   :  { %v3811_v48 = vadd.f32 1.0, %v4862_v53  ;;  %v4137_v39 = vpop.f32.mrf.mxu0 }
 0x3e9   :  { %v4059_v22 = vmul.f32 -1.442695, %v3741_v19  ;;  %v4138_v5 = vadd.f32 %v4137_v39, %v4136_v20 }
 0x3ea   :  { %4871 = vrcp.f32 %v3811_v48  ;;  %v4139_v57 = vpop.f32.mrf.mxu0 }
 0x3eb   :  { %v4864_v34 = vpop.eup %4863  ;;  %4873 = vpow2.f32 %v4059_v22  ;;  %v3746_v55 = vadd.f32 %v4138_v5, %v5962_v12 }
 0x3ec   :  { %v3812_v60 = vadd.f32 1.0, %v4864_v34  ;;  %v4140_v24 = vpop.f32.mrf.mxu0 }
 0x3ed   :  { %v4060_v6 = vmul.f32 -1.442695, %v3746_v55  ;;  %v4141_v33 = vadd.f32 %v4140_v24, %v4139_v57 }
 0x3ee   :  { %4875 = vrcp.f32 %v3812_v60 }
 0x3ef   :  { %v4866_v43 = vpop.eup %4865  ;;  %4877 = vpow2.f32 %v4060_v6  ;;  %v3751_v52 = vadd.f32 %v4141_v33, %v5962_v12 }
 0x3f0   :  { %v3813_v16 = vadd.f32 1.0, %v4866_v43 }
 0x3f1   :  { %v4061_v7 = vmul.f32 -1.442695, %v3751_v52 }
 0x3f2   :  { %4879 = vrcp.f32 %v3813_v16 }
 0x3f3   :  { %v4868_v10 = vpop.eup %4867  ;;  %4881 = vpow2.f32 %v4061_v7 }
 0x3f4   :  { %v4870_v15 = vpop.eup %4869  ;;  %3858 = vst [vmem:[#allocation12 + $0x40] sm:$0xff] %v4868_v10 }
 0x3f5   :  { %v3814_v62 = vadd.f32 1.0, %v4870_v15 }
 0x3f7   :  { %v4872_v18 = vpop.eup %4871  ;;  %4883 = vrcp.f32 %v3814_v62 }
 0x3f8   :  { %v4874_v8 = vpop.eup %4873  ;;  %3859 = vst [vmem:[#allocation12 + $0x48] sm:$0xff] %v4872_v18 }
 0x3f9   :  { %v3815_v63 = vadd.f32 1.0, %v4874_v8 }
 0x3fb   :  { %v4876_v59 = vpop.eup %4875  ;;  %4885 = vrcp.f32 %v3815_v63 }
 0x3fc   :  { %v4878_v27 = vpop.eup %4877  ;;  %3860 = vst [vmem:[#allocation12 + $0x50] sm:$0xff] %v4876_v59 }
 0x3fd   :  { %v3816_v23 = vadd.f32 1.0, %v4878_v27 }
 0x3ff   :  { %v4880_v1 = vpop.eup %4879  ;;  %4887 = vrcp.f32 %v3816_v23 }
 0x400   :  { %v4882_v12 = vpop.eup %4881  ;;  %3861 = vst [vmem:[#allocation12 + $0x58] sm:$0xff] %v4880_v1 }
 0x401   :  { %v3817_v14 = vadd.f32 1.0, %v4882_v12 }
 0x403   :  { %4889 = vrcp.f32 %v3817_v14 }
 0x404   :  { %v4884_v54 = vpop.eup %4883 }
 0x405   :  { %3862 = vst [vmem:[#allocation12 + $0x60] sm:$0xff] %v4884_v54 }
 0x408   :  { %v4886_v46 = vpop.eup %4885 }
 0x409   :  { %3863 = vst [vmem:[#allocation12 + $0x68] sm:$0xff] %v4886_v46 }
 0x40c   :  { %v4888_v47 = vpop.eup %4887 }
 0x40d   :  { %3864 = vst [vmem:[#allocation12 + $0x70] sm:$0xff] %v4888_v47 }
 0x410   :  { %v4890_v58 = vpop.eup %4889 }
 0x411   :  { %3865 = vst [vmem:[#allocation12 + $0x78] sm:$0xff] %v4890_v58 }
 0x412   :  { %5003 = shalt.err (!%p5000_p1)
}
 0x413   :  { %3877 = dma.vmem_to_hbm [thread:$0]  %s3872_s30, 2048, %s5993_s7, [#allocation5], %s5027_s17, %s5027_s17, %s5028_s18  }
 0x414   :  { %5018 = dma.done.wait [#allocation5], 2048  }
 0x415   :  { %5019 = vsyncadd [#allocation5], 4294965248 }
 0x416   :  { %3881 = vsyncpa [#allocation4], 1 }
 0x417   :  { %3882 = vsyncpa [#allocation7], 1 }
 0x418   :  { %3883 = vsyncpa [#allocation10], 1 }
 0x419   :  { %3884 = vsyncpa [#allocation5], 1 }

</bundles_post_ra>
